<compile_context>
chip_gen: v5e
topology: v5e:2x2
jax: 0.10.0
libtpu: 0.0.40
codegen_flags: <defaults>
</compile_context>

<pallas_src>
import jax
import jax.numpy as jnp
from jax import lax
from jax.experimental import pallas as pl
from jax.experimental.pallas import tpu as pltpu

L_IN = 84            # forced by Linear(1824, 32): 32 * 57 = 1824
BATCH = 2
L_FLAT = 32 * 57     # 1824

CONV_CFG = [         # (cin, cout, k)
    (1, 32, 7),
    (32, 64, 7),
    (64, 128, 5),
    (128, 256, 5),
    (256, 512, 3),
    (512, 32, 3),
]
POOL_AFTER = {1, 3, 5}        # MaxPool1d(2, 1) after these conv indices (0-based)
MANUAL_DMA_LAYERS = (3, 4)    # conv4 / conv5 weights prefetched manually
BN_EPS = 1e-5


# ----------------------------- Pallas kernel ------------------------------- #

def mainnet_kernel(x_ref,
                   w1, b1, w2, b2, w3, b3, w4_hbm, b4, w5_hbm, b5, w6, b6,
                   g_ref, mask_ref, fb1_ref, fw2_ref, fb2_ref,
                   out_ref,
                   w4_vmem, w5_vmem, dma_sem):
    B = x_ref.shape[1] // L_IN

    # Kick off DMA of the two largest conv weights; they land while conv1-3 run.
    cp4 = pltpu.make_async_copy(w4_hbm, w4_vmem, dma_sem.at[0])
    cp5 = pltpu.make_async_copy(w5_hbm, w5_vmem, dma_sem.at[1])
    cp4.start()
    cp5.start()

    conv_w_refs = [w1, w2, w3, None, None, w6]   # conv4/conv5 come from scratch
    conv_b_refs = [b1, b2, b3, b4, b5, b6]

    # Hidden state is a batch-packed (C, width) f32 slab; per-batch blocks start
    # at `offs` (static Python ints) and are `length` columns long.
    h = x_ref[...]                                # (1, B*84) f32
    offs = tuple(b * L_IN for b in range(B))
    length = L_IN

    for li, (_cin, _cout, K) in enumerate(CONV_CFG):
        lout = length - K + 1
        hb = h.astype(jnp.bfloat16)

        # im2col: RHS row (k*Cin + c) = x[c, off_b + k + j]  -> (K*Cin, B*lout)
        cols = []
        for off in offs:
            taps = [hb[:, off + k: off + k + lout] for k in range(K)]
            cols.append(jnp.concatenate(taps, axis=0))
        rhs = jnp.concatenate(cols, axis=1)

        if li == 3:
            cp4.wait()
            w = w4_vmem[...]
        elif li == 4:
            cp5.wait()
            w = w5_vmem[...]
        else:
            w = conv_w_refs[li][...]

        y = jnp.dot(w, rhs, preferred_element_type=jnp.float32)   # (Cout, B*lout)
        y = jnp.maximum(y + conv_b_refs[li][...], 0.0)

        offs = tuple(b * lout for b in range(B))
        length = lout
        if li in POOL_AFTER:
            # MaxPool1d(2, 1); the cross-batch column is junk but is never read.
            y = jnp.maximum(y[:, :-1], y[:, 1:])
            length -= 1
        h = y

    # h: (32, 2*58 - 1) f32, per-batch (32, 57) blocks at offs.
    h_all = jnp.concatenate([h[:, off: off + length] for off in offs],
                            axis=0).astype(jnp.bfloat16)          # (B*32, 57)

    # FC1 as one matmul:  P[b*32+c', c*32+o] = sum_l h_b[c', l] * W1[o, c*57+l]
    p = jnp.dot(h_all, g_ref[...], preferred_element_type=jnp.float32)  # (B*32, 1024)
    p = p * mask_ref[...]                     # keep only c' == c terms

    # Reduce sublanes per batch block -> (B, 1024)
    s = jnp.concatenate(
        [jnp.sum(p[b * 32:(b + 1) * 32], axis=0, keepdims=True) for b in range(B)],
        axis=0)

    # Lane fold: hid[b, o] = sum_c s[b, c*32 + o]
    width = 32 * 32
    while width > 32:
        width //= 2
        s = s[:, :width] + s[:, width: 2 * width]                 # (B, 32) at end

    hid = jnp.maximum(s + fb1_ref[...], 0.0)                      # (B, 32)
    out = jnp.dot(hid, fw2_ref[...], preferred_element_type=jnp.float32) + fb2_ref[...]
    out_ref[...] = out                                            # (B, 2)


# ------------------------------ wrapper ------------------------------------ #

def mainnet_pallas(x, conv_w2d, conv_b2d, g, mask, fb1, fw2, fb2):
    B = x.shape[0]
    x_packed = x.reshape(1, B * L_IN)          # NCL (B,1,84) -> lane-packed (1, B*84)

    def vspec(shape):
        return pl.BlockSpec(shape, lambda i, nd=len(shape): (0,) * nd)

    args = [x_packed]
    in_specs = [vspec(x_packed.shape)]
    for li, (w, bia) in enumerate(zip(conv_w2d, conv_b2d)):
        args += [w, bia]
        if li in MANUAL_DMA_LAYERS:
            in_specs.append(pl.BlockSpec(memory_space=pl.ANY))   # raw HBM, manual DMA
        else:
            in_specs.append(vspec(w.shape))
        in_specs.append(vspec(bia.shape))
    for p in (g, mask, fb1, fw2, fb2):
        args.append(p)
        in_specs.append(vspec(p.shape))

    out = pl.pallas_call(
        mainnet_kernel,
        out_shape=jax.ShapeDtypeStruct((B, 2), jnp.float32),
        grid_spec=pltpu.PrefetchScalarGridSpec(
            num_scalar_prefetch=0,
            grid=(1,),
            in_specs=in_specs,
            out_specs=pl.BlockSpec((B, 2), lambda i: (0, 0)),
            scratch_shapes=[
                pltpu.VMEM(conv_w2d[3].shape, jnp.bfloat16),   # conv4 weight buffer
                pltpu.VMEM(conv_w2d[4].shape, jnp.bfloat16),   # conv5 weight buffer
                pltpu.SemaphoreType.DMA((2,)),
            ],
        ),
        compiler_params=pltpu.CompilerParams(
            dimension_semantics=("arbitrary",),
            vmem_limit_bytes=16 * 1024 * 1024,
        ),
    )(*args)
    return out                                  # (B, 2)


# -------------------------- parameter init --------------------------------- #

def init_params(key, batch):
    keys = jax.random.split(key, 6 * len(CONV_CFG) + 4)
    ki = iter(keys)

    conv_w2d, conv_b2d, conv_folded = [], [], []
    for (cin, cout, k) in CONV_CFG:
        fan_in = cin * k
        w = jax.random.normal(next(ki), (cout, cin, k), jnp.float32) / jnp.sqrt(fan_in)
        b = 0.05 * jax.random.normal(next(ki), (cout,), jnp.float32)
        gamma = 1.0 + 0.1 * jax.random.normal(next(ki), (cout,), jnp.float32)
        beta = 0.05 * jax.random.normal(next(ki), (cout,), jnp.float32)
        mean = 0.05 * jax.random.normal(next(ki), (cout,), jnp.float32)
        var = 1.0 + 0.1 * jax.random.uniform(next(ki), (cout,), jnp.float32)
        # Fold inference-mode BatchNorm into the conv (scale/shift).
        scale = gamma / jnp.sqrt(var + BN_EPS)
        w_f = w * scale[:, None, None]                       # (Cout, Cin, K)
        b_f = beta + (b - mean) * scale                      # (Cout,)
        conv_folded.append((w_f, b_f))
        # im2col weight: column index k*Cin + c  -> bf16 for the MXU
        w2d = jnp.transpose(w_f, (0, 2, 1)).reshape(cout, k * cin)
        conv_w2d.append(w2d.astype(jnp.bfloat16))
        conv_b2d.append(b_f[:, None])                        # (Cout, 1) f32

    W1 = jax.random.normal(next(ki), (32, L_FLAT), jnp.float32) / jnp.sqrt(L_FLAT)
    b1 = 0.05 * jax.random.normal(next(ki), (32,), jnp.float32)
    W2 = jax.random.normal(next(ki), (2, 32), jnp.float32) / jnp.sqrt(32.0)
    b2 = 0.05 * jax.random.normal(next(ki), (2,), jnp.float32)

    # FC1 matmul operand: G[l, c*32 + o] = W1[o, c*57 + l]   -> (57, 1024) bf16
    g = jnp.transpose(W1.reshape(32, 32, 57), (2, 1, 0)).reshape(57, 32 * 32)
    g = g.astype(jnp.bfloat16)
    # 0/1 diagonal-selection mask: mask[b*32 + c', c*32 + o] = (c' == c)
    rows = jnp.arange(batch * 32) % 32
    cols = jnp.arange(32 * 32) // 32
    mask = (rows[:, None] == cols[None, :]).astype(jnp.float32)   # (B*32, 1024)

    fb1 = b1[None, :]                                        # (1, 32)
    fw2 = W2.T                                               # (32, 2)
    fb2 = b2[None, :]                                        # (1, 2)
    return conv_w2d, conv_b2d, g, mask, fb1, fw2, fb2, conv_folded, W1, b1, W2, b2


# -------------------------- pure-JAX reference ------------------------------ #

def mainnet_reference(x, conv_folded, W1, b1, W2, b2):
    h = x
    for i, (w, bias) in enumerate(conv_folded):
        h = lax.conv_general_dilated(
            h, w, window_strides=(1,), padding="VALID",
            dimension_numbers=("NCH", "OIH", "NCH"),
            precision=lax.Precision.HIGHEST)
        h = jnp.maximum(h + bias[None, :, None], 0.0)
        if i in POOL_AFTER:
            h = jnp.maximum(h[:, :, :-1], h[:, :, 1:])
    y = h.reshape(h.shape[0], -1)                            # (B, 1824)
    hid = jnp.maximum(
        jnp.dot(y, W1.T, precision=lax.Precision.HIGHEST) + b1, 0.0)
    return jnp.dot(hid, W2.T, precision=lax.Precision.HIGHEST) + b2


# --------------------------------- main ------------------------------------ #

if __name__ == "__main__":
    key = jax.random.PRNGKey(0)
    pkey, xkey = jax.random.split(key)
    (conv_w2d, conv_b2d, g, mask, fb1, fw2, fb2,
     conv_folded, W1, b1, W2, b2) = init_params(pkey, BATCH)

    x = jax.random.normal(xkey, (BATCH, 1, L_IN), jnp.float32)  # NCL, like PyTorch

    out = jax.jit(mainnet_pallas)(x, conv_w2d, conv_b2d, g, mask, fb1, fw2, fb2)
    out = jax.block_until_ready(out)

    ref = jax.block_until_ready(mainnet_reference(x, conv_folded, W1, b1, W2, b2))

    assert out.shape == (BATCH, 2), out.shape
    # bf16 matmul operands (f32 accumulation) -> slightly looser tolerance.
    assert jnp.allclose(out, ref, atol=2e-2, rtol=2e-2), (out, ref)
    print("KERNEL_OK")
</pallas_src>

<mosaic_0001>
module attributes {stable_mosaic.version = 11 : i64} {
  func.func @mainnet_kernel(%arg0: i32, %arg1: memref<1x168xf32, #tpu.memory_space<vmem>>, %arg2: memref<32x7xbf16, #tpu.memory_space<vmem>>, %arg3: memref<32x1xf32, #tpu.memory_space<vmem>>, %arg4: memref<64x224xbf16, #tpu.memory_space<vmem>>, %arg5: memref<64x1xf32, #tpu.memory_space<vmem>>, %arg6: memref<128x320xbf16, #tpu.memory_space<vmem>>, %arg7: memref<128x1xf32, #tpu.memory_space<vmem>>, %arg8: memref<256x640xbf16, #tpu.memory_space<any>>, %arg9: memref<256x1xf32, #tpu.memory_space<vmem>>, %arg10: memref<512x768xbf16, #tpu.memory_space<any>>, %arg11: memref<512x1xf32, #tpu.memory_space<vmem>>, %arg12: memref<32x1536xbf16, #tpu.memory_space<vmem>>, %arg13: memref<32x1xf32, #tpu.memory_space<vmem>>, %arg14: memref<57x1024xbf16, #tpu.memory_space<vmem>>, %arg15: memref<64x1024xf32, #tpu.memory_space<vmem>>, %arg16: memref<1x32xf32, #tpu.memory_space<vmem>>, %arg17: memref<32x2xf32, #tpu.memory_space<vmem>>, %arg18: memref<1x2xf32, #tpu.memory_space<vmem>>, %arg19: memref<2x2xf32, #tpu.memory_space<vmem>>, %arg20: memref<256x640xbf16, #tpu.memory_space<vmem>>, %arg21: memref<512x768xbf16, #tpu.memory_space<vmem>>, %arg22: memref<2x!tpu.dma_semaphore, #tpu.memory_space<semaphore_mem>>) attributes {dimension_semantics = [#tpu.dimension_semantics<arbitrary>], iteration_bounds = array<i64: 1>, scalar_prefetch = 0 : i64, scratch_operands = 3 : i64, tpu.core_type = #tpu.core_type<tc>, window_params = [{pipeline_mode = #tpu.pipeline_mode<synchronous>, transform_indices = @transform_0, window_bounds = array<i64: 1, 168>}, {pipeline_mode = #tpu.pipeline_mode<synchronous>, transform_indices = @transform_1, window_bounds = array<i64: 32, 7>}, {pipeline_mode = #tpu.pipeline_mode<synchronous>, transform_indices = @transform_2, window_bounds = array<i64: 32, 1>}, {pipeline_mode = #tpu.pipeline_mode<synchronous>, transform_indices = @transform_3, window_bounds = array<i64: 64, 224>}, {pipeline_mode = #tpu.pipeline_mode<synchronous>, transform_indices = @transform_4, window_bounds = array<i64: 64, 1>}, {pipeline_mode = #tpu.pipeline_mode<synchronous>, transform_indices = @transform_5, window_bounds = array<i64: 128, 320>}, {pipeline_mode = #tpu.pipeline_mode<synchronous>, transform_indices = @transform_6, window_bounds = array<i64: 128, 1>}, {}, {pipeline_mode = #tpu.pipeline_mode<synchronous>, transform_indices = @transform_8, window_bounds = array<i64: 256, 1>}, {}, {pipeline_mode = #tpu.pipeline_mode<synchronous>, transform_indices = @transform_10, window_bounds = array<i64: 512, 1>}, {pipeline_mode = #tpu.pipeline_mode<synchronous>, transform_indices = @transform_11, window_bounds = array<i64: 32, 1536>}, {pipeline_mode = #tpu.pipeline_mode<synchronous>, transform_indices = @transform_12, window_bounds = array<i64: 32, 1>}, {pipeline_mode = #tpu.pipeline_mode<synchronous>, transform_indices = @transform_13, window_bounds = array<i64: 57, 1024>}, {pipeline_mode = #tpu.pipeline_mode<synchronous>, transform_indices = @transform_14, window_bounds = array<i64: 64, 1024>}, {pipeline_mode = #tpu.pipeline_mode<synchronous>, transform_indices = @transform_15, window_bounds = array<i64: 1, 32>}, {pipeline_mode = #tpu.pipeline_mode<synchronous>, transform_indices = @transform_16, window_bounds = array<i64: 32, 2>}, {pipeline_mode = #tpu.pipeline_mode<synchronous>, transform_indices = @transform_17, window_bounds = array<i64: 1, 2>}, {pipeline_mode = #tpu.pipeline_mode<synchronous>, transform_indices = @transform_18, window_bounds = array<i64: 2, 2>}]} {
    %c0_i32 = arith.constant 0 : i32
    %0 = tpu.memref_slice %arg22[%c0_i32] : memref<2x!tpu.dma_semaphore, #tpu.memory_space<semaphore_mem>> -> memref<1x!tpu.dma_semaphore, #tpu.memory_space<semaphore_mem>>
    %1 = tpu.memref_squeeze %0 : memref<1x!tpu.dma_semaphore, #tpu.memory_space<semaphore_mem>> -> memref<!tpu.dma_semaphore, #tpu.memory_space<semaphore_mem>>
    tpu.enqueue_dma source(%arg8 : memref<256x640xbf16, #tpu.memory_space<any>>) target(%arg20 : memref<256x640xbf16, #tpu.memory_space<vmem>>) target_semaphore(%1 : memref<!tpu.dma_semaphore, #tpu.memory_space<semaphore_mem>>)
    %c1_i32 = arith.constant 1 : i32
    %2 = tpu.memref_slice %arg22[%c1_i32] : memref<2x!tpu.dma_semaphore, #tpu.memory_space<semaphore_mem>> -> memref<1x!tpu.dma_semaphore, #tpu.memory_space<semaphore_mem>>
    %3 = tpu.memref_squeeze %2 : memref<1x!tpu.dma_semaphore, #tpu.memory_space<semaphore_mem>> -> memref<!tpu.dma_semaphore, #tpu.memory_space<semaphore_mem>>
    tpu.enqueue_dma source(%arg10 : memref<512x768xbf16, #tpu.memory_space<any>>) target(%arg21 : memref<512x768xbf16, #tpu.memory_space<vmem>>) target_semaphore(%3 : memref<!tpu.dma_semaphore, #tpu.memory_space<semaphore_mem>>)
    %c0 = arith.constant 0 : index
    %c0_0 = arith.constant 0 : index
    %4 = vector.load %arg1[%c0, %c0_0] : memref<1x168xf32, #tpu.memory_space<vmem>>, vector<1x168xf32>
    %5 = arith.truncf %4 : vector<1x168xf32> to vector<1x168xbf16>
    %6 = vector.extract_strided_slice %5 {offsets = [0, 0], sizes = [1, 78], strides = [1, 1]} : vector<1x168xbf16> to vector<1x78xbf16>
    %7 = vector.extract_strided_slice %5 {offsets = [0, 1], sizes = [1, 78], strides = [1, 1]} : vector<1x168xbf16> to vector<1x78xbf16>
    %8 = vector.extract_strided_slice %5 {offsets = [0, 2], sizes = [1, 78], strides = [1, 1]} : vector<1x168xbf16> to vector<1x78xbf16>
    %9 = vector.extract_strided_slice %5 {offsets = [0, 3], sizes = [1, 78], strides = [1, 1]} : vector<1x168xbf16> to vector<1x78xbf16>
    %10 = vector.extract_strided_slice %5 {offsets = [0, 4], sizes = [1, 78], strides = [1, 1]} : vector<1x168xbf16> to vector<1x78xbf16>
    %11 = vector.extract_strided_slice %5 {offsets = [0, 5], sizes = [1, 78], strides = [1, 1]} : vector<1x168xbf16> to vector<1x78xbf16>
    %12 = vector.extract_strided_slice %5 {offsets = [0, 6], sizes = [1, 78], strides = [1, 1]} : vector<1x168xbf16> to vector<1x78xbf16>
    %13 = tpu.concatenate %6, %7, %8, %9, %10, %11, %12 in 0 : vector<1x78xbf16>, vector<1x78xbf16>, vector<1x78xbf16>, vector<1x78xbf16>, vector<1x78xbf16>, vector<1x78xbf16>, vector<1x78xbf16> -> vector<7x78xbf16>
    %14 = vector.extract_strided_slice %5 {offsets = [0, 84], sizes = [1, 78], strides = [1, 1]} : vector<1x168xbf16> to vector<1x78xbf16>
    %15 = vector.extract_strided_slice %5 {offsets = [0, 85], sizes = [1, 78], strides = [1, 1]} : vector<1x168xbf16> to vector<1x78xbf16>
    %16 = vector.extract_strided_slice %5 {offsets = [0, 86], sizes = [1, 78], strides = [1, 1]} : vector<1x168xbf16> to vector<1x78xbf16>
    %17 = vector.extract_strided_slice %5 {offsets = [0, 87], sizes = [1, 78], strides = [1, 1]} : vector<1x168xbf16> to vector<1x78xbf16>
    %18 = vector.extract_strided_slice %5 {offsets = [0, 88], sizes = [1, 78], strides = [1, 1]} : vector<1x168xbf16> to vector<1x78xbf16>
    %19 = vector.extract_strided_slice %5 {offsets = [0, 89], sizes = [1, 78], strides = [1, 1]} : vector<1x168xbf16> to vector<1x78xbf16>
    %20 = vector.extract_strided_slice %5 {offsets = [0, 90], sizes = [1, 78], strides = [1, 1]} : vector<1x168xbf16> to vector<1x78xbf16>
    %21 = tpu.concatenate %14, %15, %16, %17, %18, %19, %20 in 0 : vector<1x78xbf16>, vector<1x78xbf16>, vector<1x78xbf16>, vector<1x78xbf16>, vector<1x78xbf16>, vector<1x78xbf16>, vector<1x78xbf16> -> vector<7x78xbf16>
    %22 = tpu.concatenate %13, %21 in 1 : vector<7x78xbf16>, vector<7x78xbf16> -> vector<7x156xbf16>
    %c0_1 = arith.constant 0 : index
    %c0_2 = arith.constant 0 : index
    %23 = vector.load %arg2[%c0_1, %c0_2] : memref<32x7xbf16, #tpu.memory_space<vmem>>, vector<32x7xbf16>
    %cst = arith.constant dense<0.000000e+00> : vector<32x156xf32>
    %24 = tpu.matmul %23, %22, %cst {dimension_numbers = #tpu.dot_dimension_numbers<[1], [0], [0], [1], [0, 0, 1, 1], [], []>} : vector<32x7xbf16>, vector<7x156xbf16>, vector<32x156xf32> -> vector<32x156xf32>
    %c0_3 = arith.constant 0 : index
    %c0_4 = arith.constant 0 : index
    %25 = vector.load %arg3[%c0_3, %c0_4] : memref<32x1xf32, #tpu.memory_space<vmem>>, vector<32x1xf32>
    %26 = vector.broadcast %25 : vector<32x1xf32> to vector<32x156xf32>
    %27 = arith.addf %24, %26 : vector<32x156xf32>
    %cst_5 = arith.constant 0.000000e+00 : f32
    %28 = vector.broadcast %cst_5 : f32 to vector<32x156xf32>
    %29 = arith.maximumf %27, %28 : vector<32x156xf32>
    %30 = arith.truncf %29 : vector<32x156xf32> to vector<32x156xbf16>
    %31 = vector.extract_strided_slice %30 {offsets = [0, 0], sizes = [32, 72], strides = [1, 1]} : vector<32x156xbf16> to vector<32x72xbf16>
    %32 = vector.extract_strided_slice %30 {offsets = [0, 1], sizes = [32, 72], strides = [1, 1]} : vector<32x156xbf16> to vector<32x72xbf16>
    %33 = vector.extract_strided_slice %30 {offsets = [0, 2], sizes = [32, 72], strides = [1, 1]} : vector<32x156xbf16> to vector<32x72xbf16>
    %34 = vector.extract_strided_slice %30 {offsets = [0, 3], sizes = [32, 72], strides = [1, 1]} : vector<32x156xbf16> to vector<32x72xbf16>
    %35 = vector.extract_strided_slice %30 {offsets = [0, 4], sizes = [32, 72], strides = [1, 1]} : vector<32x156xbf16> to vector<32x72xbf16>
    %36 = vector.extract_strided_slice %30 {offsets = [0, 5], sizes = [32, 72], strides = [1, 1]} : vector<32x156xbf16> to vector<32x72xbf16>
    %37 = vector.extract_strided_slice %30 {offsets = [0, 6], sizes = [32, 72], strides = [1, 1]} : vector<32x156xbf16> to vector<32x72xbf16>
    %38 = tpu.concatenate %31, %32, %33, %34, %35, %36, %37 in 0 : vector<32x72xbf16>, vector<32x72xbf16>, vector<32x72xbf16>, vector<32x72xbf16>, vector<32x72xbf16>, vector<32x72xbf16>, vector<32x72xbf16> -> vector<224x72xbf16>
    %39 = vector.extract_strided_slice %30 {offsets = [0, 78], sizes = [32, 72], strides = [1, 1]} : vector<32x156xbf16> to vector<32x72xbf16>
    %40 = vector.extract_strided_slice %30 {offsets = [0, 79], sizes = [32, 72], strides = [1, 1]} : vector<32x156xbf16> to vector<32x72xbf16>
    %41 = vector.extract_strided_slice %30 {offsets = [0, 80], sizes = [32, 72], strides = [1, 1]} : vector<32x156xbf16> to vector<32x72xbf16>
    %42 = vector.extract_strided_slice %30 {offsets = [0, 81], sizes = [32, 72], strides = [1, 1]} : vector<32x156xbf16> to vector<32x72xbf16>
    %43 = vector.extract_strided_slice %30 {offsets = [0, 82], sizes = [32, 72], strides = [1, 1]} : vector<32x156xbf16> to vector<32x72xbf16>
    %44 = vector.extract_strided_slice %30 {offsets = [0, 83], sizes = [32, 72], strides = [1, 1]} : vector<32x156xbf16> to vector<32x72xbf16>
    %45 = vector.extract_strided_slice %30 {offsets = [0, 84], sizes = [32, 72], strides = [1, 1]} : vector<32x156xbf16> to vector<32x72xbf16>
    %46 = tpu.concatenate %39, %40, %41, %42, %43, %44, %45 in 0 : vector<32x72xbf16>, vector<32x72xbf16>, vector<32x72xbf16>, vector<32x72xbf16>, vector<32x72xbf16>, vector<32x72xbf16>, vector<32x72xbf16> -> vector<224x72xbf16>
    %47 = tpu.concatenate %38, %46 in 1 : vector<224x72xbf16>, vector<224x72xbf16> -> vector<224x144xbf16>
    %c0_6 = arith.constant 0 : index
    %c0_7 = arith.constant 0 : index
    %48 = vector.load %arg4[%c0_6, %c0_7] : memref<64x224xbf16, #tpu.memory_space<vmem>>, vector<64x224xbf16>
    %cst_8 = arith.constant dense<0.000000e+00> : vector<64x144xf32>
    %49 = tpu.matmul %48, %47, %cst_8 {dimension_numbers = #tpu.dot_dimension_numbers<[1], [0], [0], [1], [0, 0, 1, 1], [], []>} : vector<64x224xbf16>, vector<224x144xbf16>, vector<64x144xf32> -> vector<64x144xf32>
    %c0_9 = arith.constant 0 : index
    %c0_10 = arith.constant 0 : index
    %50 = vector.load %arg5[%c0_9, %c0_10] : memref<64x1xf32, #tpu.memory_space<vmem>>, vector<64x1xf32>
    %51 = vector.broadcast %50 : vector<64x1xf32> to vector<64x144xf32>
    %52 = arith.addf %49, %51 : vector<64x144xf32>
    %cst_11 = arith.constant 0.000000e+00 : f32
    %53 = vector.broadcast %cst_11 : f32 to vector<64x144xf32>
    %54 = arith.maximumf %52, %53 : vector<64x144xf32>
    %55 = vector.extract_strided_slice %54 {offsets = [0, 0], sizes = [64, 143], strides = [1, 1]} : vector<64x144xf32> to vector<64x143xf32>
    %56 = vector.extract_strided_slice %54 {offsets = [0, 1], sizes = [64, 143], strides = [1, 1]} : vector<64x144xf32> to vector<64x143xf32>
    %57 = arith.maximumf %55, %56 : vector<64x143xf32>
    %58 = arith.truncf %57 : vector<64x143xf32> to vector<64x143xbf16>
    %59 = vector.extract_strided_slice %58 {offsets = [0, 0], sizes = [64, 67], strides = [1, 1]} : vector<64x143xbf16> to vector<64x67xbf16>
    %60 = vector.extract_strided_slice %58 {offsets = [0, 1], sizes = [64, 67], strides = [1, 1]} : vector<64x143xbf16> to vector<64x67xbf16>
    %61 = vector.extract_strided_slice %58 {offsets = [0, 2], sizes = [64, 67], strides = [1, 1]} : vector<64x143xbf16> to vector<64x67xbf16>
    %62 = vector.extract_strided_slice %58 {offsets = [0, 3], sizes = [64, 67], strides = [1, 1]} : vector<64x143xbf16> to vector<64x67xbf16>
    %63 = vector.extract_strided_slice %58 {offsets = [0, 4], sizes = [64, 67], strides = [1, 1]} : vector<64x143xbf16> to vector<64x67xbf16>
    %64 = tpu.concatenate %59, %60, %61, %62, %63 in 0 : vector<64x67xbf16>, vector<64x67xbf16>, vector<64x67xbf16>, vector<64x67xbf16>, vector<64x67xbf16> -> vector<320x67xbf16>
    %65 = vector.extract_strided_slice %58 {offsets = [0, 72], sizes = [64, 67], strides = [1, 1]} : vector<64x143xbf16> to vector<64x67xbf16>
    %66 = vector.extract_strided_slice %58 {offsets = [0, 73], sizes = [64, 67], strides = [1, 1]} : vector<64x143xbf16> to vector<64x67xbf16>
    %67 = vector.extract_strided_slice %58 {offsets = [0, 74], sizes = [64, 67], strides = [1, 1]} : vector<64x143xbf16> to vector<64x67xbf16>
    %68 = vector.extract_strided_slice %58 {offsets = [0, 75], sizes = [64, 67], strides = [1, 1]} : vector<64x143xbf16> to vector<64x67xbf16>
    %69 = vector.extract_strided_slice %58 {offsets = [0, 76], sizes = [64, 67], strides = [1, 1]} : vector<64x143xbf16> to vector<64x67xbf16>
    %70 = tpu.concatenate %65, %66, %67, %68, %69 in 0 : vector<64x67xbf16>, vector<64x67xbf16>, vector<64x67xbf16>, vector<64x67xbf16>, vector<64x67xbf16> -> vector<320x67xbf16>
    %71 = tpu.concatenate %64, %70 in 1 : vector<320x67xbf16>, vector<320x67xbf16> -> vector<320x134xbf16>
    %c0_12 = arith.constant 0 : index
    %c0_13 = arith.constant 0 : index
    %72 = vector.load %arg6[%c0_12, %c0_13] : memref<128x320xbf16, #tpu.memory_space<vmem>>, vector<128x320xbf16>
    %cst_14 = arith.constant dense<0.000000e+00> : vector<128x134xf32>
    %73 = tpu.matmul %72, %71, %cst_14 {dimension_numbers = #tpu.dot_dimension_numbers<[1], [0], [0], [1], [0, 0, 1, 1], [], []>} : vector<128x320xbf16>, vector<320x134xbf16>, vector<128x134xf32> -> vector<128x134xf32>
    %c0_15 = arith.constant 0 : index
    %c0_16 = arith.constant 0 : index
    %74 = vector.load %arg7[%c0_15, %c0_16] : memref<128x1xf32, #tpu.memory_space<vmem>>, vector<128x1xf32>
    %75 = vector.broadcast %74 : vector<128x1xf32> to vector<128x134xf32>
    %76 = arith.addf %73, %75 : vector<128x134xf32>
    %cst_17 = arith.constant 0.000000e+00 : f32
    %77 = vector.broadcast %cst_17 : f32 to vector<128x134xf32>
    %78 = arith.maximumf %76, %77 : vector<128x134xf32>
    %79 = arith.truncf %78 : vector<128x134xf32> to vector<128x134xbf16>
    %80 = vector.extract_strided_slice %79 {offsets = [0, 0], sizes = [128, 63], strides = [1, 1]} : vector<128x134xbf16> to vector<128x63xbf16>
    %81 = vector.extract_strided_slice %79 {offsets = [0, 1], sizes = [128, 63], strides = [1, 1]} : vector<128x134xbf16> to vector<128x63xbf16>
    %82 = vector.extract_strided_slice %79 {offsets = [0, 2], sizes = [128, 63], strides = [1, 1]} : vector<128x134xbf16> to vector<128x63xbf16>
    %83 = vector.extract_strided_slice %79 {offsets = [0, 3], sizes = [128, 63], strides = [1, 1]} : vector<128x134xbf16> to vector<128x63xbf16>
    %84 = vector.extract_strided_slice %79 {offsets = [0, 4], sizes = [128, 63], strides = [1, 1]} : vector<128x134xbf16> to vector<128x63xbf16>
    %85 = tpu.concatenate %80, %81, %82, %83, %84 in 0 : vector<128x63xbf16>, vector<128x63xbf16>, vector<128x63xbf16>, vector<128x63xbf16>, vector<128x63xbf16> -> vector<640x63xbf16>
    %86 = vector.extract_strided_slice %79 {offsets = [0, 67], sizes = [128, 63], strides = [1, 1]} : vector<128x134xbf16> to vector<128x63xbf16>
    %87 = vector.extract_strided_slice %79 {offsets = [0, 68], sizes = [128, 63], strides = [1, 1]} : vector<128x134xbf16> to vector<128x63xbf16>
    %88 = vector.extract_strided_slice %79 {offsets = [0, 69], sizes = [128, 63], strides = [1, 1]} : vector<128x134xbf16> to vector<128x63xbf16>
    %89 = vector.extract_strided_slice %79 {offsets = [0, 70], sizes = [128, 63], strides = [1, 1]} : vector<128x134xbf16> to vector<128x63xbf16>
    %90 = vector.extract_strided_slice %79 {offsets = [0, 71], sizes = [128, 63], strides = [1, 1]} : vector<128x134xbf16> to vector<128x63xbf16>
    %91 = tpu.concatenate %86, %87, %88, %89, %90 in 0 : vector<128x63xbf16>, vector<128x63xbf16>, vector<128x63xbf16>, vector<128x63xbf16>, vector<128x63xbf16> -> vector<640x63xbf16>
    %92 = tpu.concatenate %85, %91 in 1 : vector<640x63xbf16>, vector<640x63xbf16> -> vector<640x126xbf16>
    %c0_i32_18 = arith.constant 0 : i32
    %93 = tpu.memref_slice %arg22[%c0_i32_18] : memref<2x!tpu.dma_semaphore, #tpu.memory_space<semaphore_mem>> -> memref<1x!tpu.dma_semaphore, #tpu.memory_space<semaphore_mem>>
    %94 = tpu.memref_squeeze %93 : memref<1x!tpu.dma_semaphore, #tpu.memory_space<semaphore_mem>> -> memref<!tpu.dma_semaphore, #tpu.memory_space<semaphore_mem>>
    tpu.wait_dma2 semaphore(%94 : memref<!tpu.dma_semaphore, #tpu.memory_space<semaphore_mem>>) src(%arg8 : memref<256x640xbf16, #tpu.memory_space<any>>) dst(%arg20 : memref<256x640xbf16, #tpu.memory_space<vmem>>)
    %c0_19 = arith.constant 0 : index
    %c0_20 = arith.constant 0 : index
    %95 = vector.load %arg20[%c0_19, %c0_20] : memref<256x640xbf16, #tpu.memory_space<vmem>>, vector<256x640xbf16>
    %cst_21 = arith.constant dense<0.000000e+00> : vector<256x126xf32>
    %96 = tpu.matmul %95, %92, %cst_21 {dimension_numbers = #tpu.dot_dimension_numbers<[1], [0], [0], [1], [0, 0, 1, 1], [], []>} : vector<256x640xbf16>, vector<640x126xbf16>, vector<256x126xf32> -> vector<256x126xf32>
    %c0_22 = arith.constant 0 : index
    %c0_23 = arith.constant 0 : index
    %97 = vector.load %arg9[%c0_22, %c0_23] : memref<256x1xf32, #tpu.memory_space<vmem>>, vector<256x1xf32>
    %98 = vector.broadcast %97 : vector<256x1xf32> to vector<256x126xf32>
    %99 = arith.addf %96, %98 : vector<256x126xf32>
    %cst_24 = arith.constant 0.000000e+00 : f32
    %100 = vector.broadcast %cst_24 : f32 to vector<256x126xf32>
    %101 = arith.maximumf %99, %100 : vector<256x126xf32>
    %102 = vector.extract_strided_slice %101 {offsets = [0, 0], sizes = [256, 125], strides = [1, 1]} : vector<256x126xf32> to vector<256x125xf32>
    %103 = vector.extract_strided_slice %101 {offsets = [0, 1], sizes = [256, 125], strides = [1, 1]} : vector<256x126xf32> to vector<256x125xf32>
    %104 = arith.maximumf %102, %103 : vector<256x125xf32>
    %105 = arith.truncf %104 : vector<256x125xf32> to vector<256x125xbf16>
    %106 = vector.extract_strided_slice %105 {offsets = [0, 0], sizes = [256, 60], strides = [1, 1]} : vector<256x125xbf16> to vector<256x60xbf16>
    %107 = vector.extract_strided_slice %105 {offsets = [0, 1], sizes = [256, 60], strides = [1, 1]} : vector<256x125xbf16> to vector<256x60xbf16>
    %108 = vector.extract_strided_slice %105 {offsets = [0, 2], sizes = [256, 60], strides = [1, 1]} : vector<256x125xbf16> to vector<256x60xbf16>
    %109 = tpu.concatenate %106, %107, %108 in 0 : vector<256x60xbf16>, vector<256x60xbf16>, vector<256x60xbf16> -> vector<768x60xbf16>
    %110 = vector.extract_strided_slice %105 {offsets = [0, 63], sizes = [256, 60], strides = [1, 1]} : vector<256x125xbf16> to vector<256x60xbf16>
    %111 = vector.extract_strided_slice %105 {offsets = [0, 64], sizes = [256, 60], strides = [1, 1]} : vector<256x125xbf16> to vector<256x60xbf16>
    %112 = vector.extract_strided_slice %105 {offsets = [0, 65], sizes = [256, 60], strides = [1, 1]} : vector<256x125xbf16> to vector<256x60xbf16>
    %113 = tpu.concatenate %110, %111, %112 in 0 : vector<256x60xbf16>, vector<256x60xbf16>, vector<256x60xbf16> -> vector<768x60xbf16>
    %114 = tpu.concatenate %109, %113 in 1 : vector<768x60xbf16>, vector<768x60xbf16> -> vector<768x120xbf16>
    %c1_i32_25 = arith.constant 1 : i32
    %115 = tpu.memref_slice %arg22[%c1_i32_25] : memref<2x!tpu.dma_semaphore, #tpu.memory_space<semaphore_mem>> -> memref<1x!tpu.dma_semaphore, #tpu.memory_space<semaphore_mem>>
    %116 = tpu.memref_squeeze %115 : memref<1x!tpu.dma_semaphore, #tpu.memory_space<semaphore_mem>> -> memref<!tpu.dma_semaphore, #tpu.memory_space<semaphore_mem>>
    tpu.wait_dma2 semaphore(%116 : memref<!tpu.dma_semaphore, #tpu.memory_space<semaphore_mem>>) src(%arg10 : memref<512x768xbf16, #tpu.memory_space<any>>) dst(%arg21 : memref<512x768xbf16, #tpu.memory_space<vmem>>)
    %c0_26 = arith.constant 0 : index
    %c0_27 = arith.constant 0 : index
    %117 = vector.load %arg21[%c0_26, %c0_27] : memref<512x768xbf16, #tpu.memory_space<vmem>>, vector<512x768xbf16>
    %cst_28 = arith.constant dense<0.000000e+00> : vector<512x120xf32>
    %118 = tpu.matmul %117, %114, %cst_28 {dimension_numbers = #tpu.dot_dimension_numbers<[1], [0], [0], [1], [0, 0, 1, 1], [], []>} : vector<512x768xbf16>, vector<768x120xbf16>, vector<512x120xf32> -> vector<512x120xf32>
    %c0_29 = arith.constant 0 : index
    %c0_30 = arith.constant 0 : index
    %119 = vector.load %arg11[%c0_29, %c0_30] : memref<512x1xf32, #tpu.memory_space<vmem>>, vector<512x1xf32>
    %120 = vector.broadcast %119 : vector<512x1xf32> to vector<512x120xf32>
    %121 = arith.addf %118, %120 : vector<512x120xf32>
    %cst_31 = arith.constant 0.000000e+00 : f32
    %122 = vector.broadcast %cst_31 : f32 to vector<512x120xf32>
    %123 = arith.maximumf %121, %122 : vector<512x120xf32>
    %124 = arith.truncf %123 : vector<512x120xf32> to vector<512x120xbf16>
    %125 = vector.extract_strided_slice %124 {offsets = [0, 0], sizes = [512, 58], strides = [1, 1]} : vector<512x120xbf16> to vector<512x58xbf16>
    %126 = vector.extract_strided_slice %124 {offsets = [0, 1], sizes = [512, 58], strides = [1, 1]} : vector<512x120xbf16> to vector<512x58xbf16>
    %127 = vector.extract_strided_slice %124 {offsets = [0, 2], sizes = [512, 58], strides = [1, 1]} : vector<512x120xbf16> to vector<512x58xbf16>
    %128 = tpu.concatenate %125, %126, %127 in 0 : vector<512x58xbf16>, vector<512x58xbf16>, vector<512x58xbf16> -> vector<1536x58xbf16>
    %129 = vector.extract_strided_slice %124 {offsets = [0, 60], sizes = [512, 58], strides = [1, 1]} : vector<512x120xbf16> to vector<512x58xbf16>
    %130 = vector.extract_strided_slice %124 {offsets = [0, 61], sizes = [512, 58], strides = [1, 1]} : vector<512x120xbf16> to vector<512x58xbf16>
    %131 = vector.extract_strided_slice %124 {offsets = [0, 62], sizes = [512, 58], strides = [1, 1]} : vector<512x120xbf16> to vector<512x58xbf16>
    %132 = tpu.concatenate %129, %130, %131 in 0 : vector<512x58xbf16>, vector<512x58xbf16>, vector<512x58xbf16> -> vector<1536x58xbf16>
    %133 = tpu.concatenate %128, %132 in 1 : vector<1536x58xbf16>, vector<1536x58xbf16> -> vector<1536x116xbf16>
    %c0_32 = arith.constant 0 : index
    %c0_33 = arith.constant 0 : index
    %134 = vector.load %arg12[%c0_32, %c0_33] : memref<32x1536xbf16, #tpu.memory_space<vmem>>, vector<32x1536xbf16>
    %cst_34 = arith.constant dense<0.000000e+00> : vector<32x116xf32>
    %135 = tpu.matmul %134, %133, %cst_34 {dimension_numbers = #tpu.dot_dimension_numbers<[1], [0], [0], [1], [0, 0, 1, 1], [], []>} : vector<32x1536xbf16>, vector<1536x116xbf16>, vector<32x116xf32> -> vector<32x116xf32>
    %c0_35 = arith.constant 0 : index
    %c0_36 = arith.constant 0 : index
    %136 = vector.load %arg13[%c0_35, %c0_36] : memref<32x1xf32, #tpu.memory_space<vmem>>, vector<32x1xf32>
    %137 = vector.broadcast %136 : vector<32x1xf32> to vector<32x116xf32>
    %138 = arith.addf %135, %137 : vector<32x116xf32>
    %cst_37 = arith.constant 0.000000e+00 : f32
    %139 = vector.broadcast %cst_37 : f32 to vector<32x116xf32>
    %140 = arith.maximumf %138, %139 : vector<32x116xf32>
    %141 = vector.extract_strided_slice %140 {offsets = [0, 0], sizes = [32, 115], strides = [1, 1]} : vector<32x116xf32> to vector<32x115xf32>
    %142 = vector.extract_strided_slice %140 {offsets = [0, 1], sizes = [32, 115], strides = [1, 1]} : vector<32x116xf32> to vector<32x115xf32>
    %143 = arith.maximumf %141, %142 : vector<32x115xf32>
    %144 = vector.extract_strided_slice %143 {offsets = [0, 0], sizes = [32, 57], strides = [1, 1]} : vector<32x115xf32> to vector<32x57xf32>
    %145 = vector.extract_strided_slice %143 {offsets = [0, 58], sizes = [32, 57], strides = [1, 1]} : vector<32x115xf32> to vector<32x57xf32>
    %146 = tpu.concatenate %144, %145 in 0 : vector<32x57xf32>, vector<32x57xf32> -> vector<64x57xf32>
    %147 = arith.truncf %146 : vector<64x57xf32> to vector<64x57xbf16>
    %c0_38 = arith.constant 0 : index
    %c0_39 = arith.constant 0 : index
    %148 = vector.load %arg14[%c0_38, %c0_39] : memref<57x1024xbf16, #tpu.memory_space<vmem>>, vector<57x1024xbf16>
    %cst_40 = arith.constant dense<0.000000e+00> : vector<64x1024xf32>
    %149 = tpu.matmul %147, %148, %cst_40 {dimension_numbers = #tpu.dot_dimension_numbers<[1], [0], [0], [1], [0, 0, 1, 1], [], []>} : vector<64x57xbf16>, vector<57x1024xbf16>, vector<64x1024xf32> -> vector<64x1024xf32>
    %c0_41 = arith.constant 0 : index
    %c0_42 = arith.constant 0 : index
    %150 = vector.load %arg15[%c0_41, %c0_42] : memref<64x1024xf32, #tpu.memory_space<vmem>>, vector<64x1024xf32>
    %151 = arith.mulf %149, %150 : vector<64x1024xf32>
    %152 = vector.extract_strided_slice %151 {offsets = [0, 0], sizes = [32, 1024], strides = [1, 1]} : vector<64x1024xf32> to vector<32x1024xf32>
    %cst_43 = arith.constant dense<0.000000e+00> : vector<1024xf32>
    %153 = vector.multi_reduction <add>, %152, %cst_43 [0] : vector<32x1024xf32> to vector<1024xf32>
    %154 = vector.shape_cast %153 : vector<1024xf32> to vector<1x1024xf32>
    %155 = vector.extract_strided_slice %151 {offsets = [32, 0], sizes = [32, 1024], strides = [1, 1]} : vector<64x1024xf32> to vector<32x1024xf32>
    %cst_44 = arith.constant dense<0.000000e+00> : vector<1024xf32>
    %156 = vector.multi_reduction <add>, %155, %cst_44 [0] : vector<32x1024xf32> to vector<1024xf32>
    %157 = vector.shape_cast %156 : vector<1024xf32> to vector<1x1024xf32>
    %158 = tpu.concatenate %154, %157 in 0 : vector<1x1024xf32>, vector<1x1024xf32> -> vector<2x1024xf32>
    %159 = vector.extract_strided_slice %158 {offsets = [0, 0], sizes = [2, 512], strides = [1, 1]} : vector<2x1024xf32> to vector<2x512xf32>
    %160 = vector.extract_strided_slice %158 {offsets = [0, 512], sizes = [2, 512], strides = [1, 1]} : vector<2x1024xf32> to vector<2x512xf32>
    %161 = arith.addf %159, %160 : vector<2x512xf32>
    %162 = vector.extract_strided_slice %161 {offsets = [0, 0], sizes = [2, 256], strides = [1, 1]} : vector<2x512xf32> to vector<2x256xf32>
    %163 = vector.extract_strided_slice %161 {offsets = [0, 256], sizes = [2, 256], strides = [1, 1]} : vector<2x512xf32> to vector<2x256xf32>
    %164 = arith.addf %162, %163 : vector<2x256xf32>
    %165 = vector.extract_strided_slice %164 {offsets = [0, 0], sizes = [2, 128], strides = [1, 1]} : vector<2x256xf32> to vector<2x128xf32>
    %166 = vector.extract_strided_slice %164 {offsets = [0, 128], sizes = [2, 128], strides = [1, 1]} : vector<2x256xf32> to vector<2x128xf32>
    %167 = arith.addf %165, %166 : vector<2x128xf32>
    %168 = vector.extract_strided_slice %167 {offsets = [0, 0], sizes = [2, 64], strides = [1, 1]} : vector<2x128xf32> to vector<2x64xf32>
    %169 = vector.extract_strided_slice %167 {offsets = [0, 64], sizes = [2, 64], strides = [1, 1]} : vector<2x128xf32> to vector<2x64xf32>
    %170 = arith.addf %168, %169 : vector<2x64xf32>
    %171 = vector.extract_strided_slice %170 {offsets = [0, 0], sizes = [2, 32], strides = [1, 1]} : vector<2x64xf32> to vector<2x32xf32>
    %172 = vector.extract_strided_slice %170 {offsets = [0, 32], sizes = [2, 32], strides = [1, 1]} : vector<2x64xf32> to vector<2x32xf32>
    %173 = arith.addf %171, %172 : vector<2x32xf32>
    %c0_45 = arith.constant 0 : index
    %c0_46 = arith.constant 0 : index
    %174 = vector.load %arg16[%c0_45, %c0_46] : memref<1x32xf32, #tpu.memory_space<vmem>>, vector<1x32xf32>
    %175 = vector.broadcast %174 : vector<1x32xf32> to vector<2x32xf32>
    %176 = arith.addf %173, %175 : vector<2x32xf32>
    %cst_47 = arith.constant 0.000000e+00 : f32
    %177 = vector.broadcast %cst_47 : f32 to vector<2x32xf32>
    %178 = arith.maximumf %176, %177 : vector<2x32xf32>
    %c0_48 = arith.constant 0 : index
    %c0_49 = arith.constant 0 : index
    %179 = vector.load %arg17[%c0_48, %c0_49] : memref<32x2xf32, #tpu.memory_space<vmem>>, vector<32x2xf32>
    %cst_50 = arith.constant dense<0.000000e+00> : vector<2x2xf32>
    %180 = tpu.matmul %178, %179, %cst_50 {dimension_numbers = #tpu.dot_dimension_numbers<[1], [0], [0], [1], [0, 0, 1, 1], [], []>} : vector<2x32xf32>, vector<32x2xf32>, vector<2x2xf32> -> vector<2x2xf32>
    %c0_51 = arith.constant 0 : index
    %c0_52 = arith.constant 0 : index
    %181 = vector.load %arg18[%c0_51, %c0_52] : memref<1x2xf32, #tpu.memory_space<vmem>>, vector<1x2xf32>
    %182 = vector.broadcast %181 : vector<1x2xf32> to vector<2x2xf32>
    %183 = arith.addf %180, %182 : vector<2x2xf32>
    %c0_53 = arith.constant 0 : index
    %c0_54 = arith.constant 0 : index
    %184 = vector.load %arg19[%c0_53, %c0_54] : memref<2x2xf32, #tpu.memory_space<vmem>>, vector<2x2xf32>
    tpu.vector_store %arg19[%c0_53, %c0_54], %183 {strides = array<i32>} : memref<2x2xf32, #tpu.memory_space<vmem>>, vector<2x2xf32>,
    return
  }
  func.func @transform_0(%arg0: i32) -> (i32, i32) {
    %c0_i32 = arith.constant 0 : i32
    %c0_i32_0 = arith.constant 0 : i32
    %c0_i32_1 = arith.constant 0 : i32
    return %c0_i32, %c0_i32_0 : i32, i32
  }
  func.func @transform_1(%arg0: i32) -> (i32, i32) {
    %c0_i32 = arith.constant 0 : i32
    %c0_i32_0 = arith.constant 0 : i32
    %c0_i32_1 = arith.constant 0 : i32
    return %c0_i32, %c0_i32_0 : i32, i32
  }
  func.func @transform_2(%arg0: i32) -> (i32, i32) {
    %c0_i32 = arith.constant 0 : i32
    %c0_i32_0 = arith.constant 0 : i32
    %c0_i32_1 = arith.constant 0 : i32
    return %c0_i32, %c0_i32_0 : i32, i32
  }
  func.func @transform_3(%arg0: i32) -> (i32, i32) {
    %c0_i32 = arith.constant 0 : i32
    %c0_i32_0 = arith.constant 0 : i32
    %c0_i32_1 = arith.constant 0 : i32
    return %c0_i32, %c0_i32_0 : i32, i32
  }
  func.func @transform_4(%arg0: i32) -> (i32, i32) {
    %c0_i32 = arith.constant 0 : i32
    %c0_i32_0 = arith.constant 0 : i32
    %c0_i32_1 = arith.constant 0 : i32
    return %c0_i32, %c0_i32_0 : i32, i32
  }
  func.func @transform_5(%arg0: i32) -> (i32, i32) {
    %c0_i32 = arith.constant 0 : i32
    %c0_i32_0 = arith.constant 0 : i32
    %c0_i32_1 = arith.constant 0 : i32
    return %c0_i32, %c0_i32_0 : i32, i32
  }
  func.func @transform_6(%arg0: i32) -> (i32, i32) {
    %c0_i32 = arith.constant 0 : i32
    %c0_i32_0 = arith.constant 0 : i32
    %c0_i32_1 = arith.constant 0 : i32
    return %c0_i32, %c0_i32_0 : i32, i32
  }
  func.func @transform_8(%arg0: i32) -> (i32, i32) {
    %c0_i32 = arith.constant 0 : i32
    %c0_i32_0 = arith.constant 0 : i32
    %c0_i32_1 = arith.constant 0 : i32
    return %c0_i32, %c0_i32_0 : i32, i32
  }
  func.func @transform_10(%arg0: i32) -> (i32, i32) {
    %c0_i32 = arith.constant 0 : i32
    %c0_i32_0 = arith.constant 0 : i32
    %c0_i32_1 = arith.constant 0 : i32
    return %c0_i32, %c0_i32_0 : i32, i32
  }
  func.func @transform_11(%arg0: i32) -> (i32, i32) {
    %c0_i32 = arith.constant 0 : i32
    %c0_i32_0 = arith.constant 0 : i32
    %c0_i32_1 = arith.constant 0 : i32
    return %c0_i32, %c0_i32_0 : i32, i32
  }
  func.func @transform_12(%arg0: i32) -> (i32, i32) {
    %c0_i32 = arith.constant 0 : i32
    %c0_i32_0 = arith.constant 0 : i32
    %c0_i32_1 = arith.constant 0 : i32
    return %c0_i32, %c0_i32_0 : i32, i32
  }
  func.func @transform_13(%arg0: i32) -> (i32, i32) {
    %c0_i32 = arith.constant 0 : i32
    %c0_i32_0 = arith.constant 0 : i32
    %c0_i32_1 = arith.constant 0 : i32
    return %c0_i32, %c0_i32_0 : i32, i32
  }
  func.func @transform_14(%arg0: i32) -> (i32, i32) {
    %c0_i32 = arith.constant 0 : i32
    %c0_i32_0 = arith.constant 0 : i32
    %c0_i32_1 = arith.constant 0 : i32
    return %c0_i32, %c0_i32_0 : i32, i32
  }
  func.func @transform_15(%arg0: i32) -> (i32, i32) {
    %c0_i32 = arith.constant 0 : i32
    %c0_i32_0 = arith.constant 0 : i32
    %c0_i32_1 = arith.constant 0 : i32
    return %c0_i32, %c0_i32_0 : i32, i32
  }
  func.func @transform_16(%arg0: i32) -> (i32, i32) {
    %c0_i32 = arith.constant 0 : i32
    %c0_i32_0 = arith.constant 0 : i32
    %c0_i32_1 = arith.constant 0 : i32
    return %c0_i32, %c0_i32_0 : i32, i32
  }
  func.func @transform_17(%arg0: i32) -> (i32, i32) {
    %c0_i32 = arith.constant 0 : i32
    %c0_i32_0 = arith.constant 0 : i32
    %c0_i32_1 = arith.constant 0 : i32
    return %c0_i32, %c0_i32_0 : i32, i32
  }
  func.func @transform_18(%arg0: i32) -> (i32, i32) {
    %c0_i32 = arith.constant 0 : i32
    %c0_i32_0 = arith.constant 0 : i32
    %c0_i32_1 = arith.constant 0 : i32
    return %c0_i32, %c0_i32_0 : i32, i32
  }
}

</mosaic_0001>

<bundles_post_ra>
// kernel: mainnet_pallas.1
= control target key start
LH: loop header
LB: loop body
LE: loop exit
PB: predicated region body
PF: predicated region fallthrough
CT: control target
= control target key end

     0   :  { %s16087_s0 = inlined_call_operand.vmem [shape: f32[1,168], index: 0, kind: input, shape index: {}]   ;;  %s16088_s1 = inlined_call_operand.vmem [shape: bf16[32,7], index: 1, kind: input, shape index: {}]   ;;  %s16089_s2 = inlined_call_operand.vmem [shape: f32[32,1], index: 2, kind: input, shape index: {}]   ;;  %s16090_s3 = inlined_call_operand.vmem [shape: bf16[64,224], index: 3, kind: input, shape index: {}]   ;;  %s16091_s4 = inlined_call_operand.vmem [shape: f32[64,1], index: 4, kind: input, shape index: {}]   ;;  %s16092_s5 = inlined_call_operand.vmem [shape: bf16[128,320], index: 5, kind: input, shape index: {}]   ;;  %s16093_s6 = inlined_call_operand.vmem [shape: f32[128,1], index: 6, kind: input, shape index: {}]   ;;  %s16094_s7 = inlined_call_operand.vmem [shape: bf16[256,640], index: 7, kind: input, shape index: {}]   ;;  %s16095_s8 = inlined_call_operand.vmem [shape: f32[256,1], index: 8, kind: input, shape index: {}]   ;;  %s16096_s9 = inlined_call_operand.hbm [shape: bf16[512,768], index: 9, kind: input, shape index: {}]   ;;  %s16097_s10 = inlined_call_operand.vmem [shape: f32[512,1], index: 10, kind: input, shape index: {}]   ;;  %s16098_s11 = inlined_call_operand.vmem [shape: bf16[32,1536], index: 11, kind: input, shape index: {}]   ;;  %s16099_s12 = inlined_call_operand.vmem [shape: f32[32,1], index: 12, kind: input, shape index: {}]   ;;  %s16100_s13 = inlined_call_operand.vmem [shape: bf16[57,1024], index: 13, kind: input, shape index: {}]   ;;  %s16101_s14 = inlined_call_operand.hbm [shape: f32[64,1024], index: 14, kind: input, shape index: {}]   ;;  %s16102_s15 = inlined_call_operand.vmem [shape: f32[1,32], index: 15, kind: input, shape index: {}]   ;;  %s16103_s16 = inlined_call_operand.vmem [shape: f32[32,2], index: 16, kind: input, shape index: {}]   ;;  %s16104_s17 = inlined_call_operand.vmem [shape: f32[1,2], index: 17, kind: input, shape index: {}]   ;;  %s16105_s18 = inlined_call_operand.hbm [shape: f32[2,2], index: 18, kind: output, shape index: {}]  }
   0x1   :  { %16154 = sst [smem:[#allocation47_spill]] %s16087_s0 }
   0x2   :  { %16155 = sst [smem:[#allocation48_spill]] %s16088_s1 }
   0x3   :  { %16156 = sst [smem:[#allocation49_spill]] %s16089_s2 }
   0x4   :  { %23 = vsyncpa [#allocation6], 0 }
   0x5   :  { %24 = vsyncpa [#allocation7], 0  ;;  %s53_s29 = sshll.u32 %s16101_s14, 4  ;;  %s11197_s30 = smov [#allocation5]   ;;  %s54_s29 = int_to_ptr.hbm [resolvable:$true] %s53_s29 }
   0x6   :  { %s55_s0 = sshll.u32 %s11197_s30, 4  ;;  %s11198_s19 = smov 1024   ;;  %s56_s0 = int_to_ptr.vmem [resolvable:$true] %s55_s0 }
   0x7   :  { %s11199_s1 = smov 64  }
   0x8   :  { %61 = dma.hbm_to_vmem [thread:$0]  %s54_s29, 8192, %s56_s0, [#allocation6], %s11198_s19, %s11198_s19, %s11199_s1  }
   0x9   :  { %11189 = dma.done.wait [#allocation6], 8192  }
   0xa   :  { %11190 = vsyncadd [#allocation6], 4294959104  ;;  %v83_v0 = vld [vmem:[%s16094_s7] sm:$0xff]  ;;  %v85_v1 = vld [vmem:[%s16094_s7 + $0x8] sm:$0xff]  ;;  %s16157_s30 = sld [smem:[#allocation47_spill]] }
   0xb   :  { %v87_v2 = vld [vmem:[%s16094_s7 + $0x10] sm:$0xff]  ;;  %84 = vst [vmem:[#allocation2] sm:$0xff] %v83_v0  ;;  %v89_v3 = vld [vmem:[%s16094_s7 + $0x18] sm:$0xff]  ;;  %v91_v4 = vld [vmem:[%s16094_s7 + $0x20] sm:$0xff] }
   0xc   :  { %86 = vst [vmem:[#allocation2 + $0x8] sm:$0xff] %v85_v1  ;;  %v93_v5 = vld [vmem:[%s16094_s7 + $0x28] sm:$0xff]  ;;  %v95_v6 = vld [vmem:[%s16094_s7 + $0x30] sm:$0xff]  ;;  %v97_v7 = vld [vmem:[%s16094_s7 + $0x38] sm:$0xff] }
   0xd   :  { %88 = vst [vmem:[#allocation2 + $0x10] sm:$0xff] %v87_v2  ;;  %v99_v8 = vld [vmem:[%s16094_s7 + $0x40] sm:$0xff]  ;;  %v101_v9 = vld [vmem:[%s16094_s7 + $0x48] sm:$0xff]  ;;  %v103_v10 = vld [vmem:[%s16094_s7 + $0x50] sm:$0xff] }
   0xe   :  { %90 = vst [vmem:[#allocation2 + $0x18] sm:$0xff] %v89_v3  ;;  %v105_v11 = vld [vmem:[%s16094_s7 + $0x58] sm:$0xff]  ;;  %v107_v12 = vld [vmem:[%s16094_s7 + $0x60] sm:$0xff]  ;;  %v109_v13 = vld [vmem:[%s16094_s7 + $0x68] sm:$0xff] }
   0xf   :  { %92 = vst [vmem:[#allocation2 + $0x20] sm:$0xff] %v91_v4  ;;  %v111_v14 = vld [vmem:[%s16094_s7 + $0x70] sm:$0xff]  ;;  %v113_v15 = vld [vmem:[%s16094_s7 + $0x78] sm:$0xff]  ;;  %v115_v16 = vld [vmem:[%s16094_s7 + $0x80] sm:$0xff] }
  0x10   :  { %94 = vst [vmem:[#allocation2 + $0x28] sm:$0xff] %v93_v5  ;;  %v117_v17 = vld [vmem:[%s16094_s7 + $0x88] sm:$0xff]  ;;  %v119_v18 = vld [vmem:[%s16094_s7 + $0x90] sm:$0xff]  ;;  %v121_v19 = vld [vmem:[%s16094_s7 + $0x98] sm:$0xff] }
  0x11   :  { %96 = vst [vmem:[#allocation2 + $0x30] sm:$0xff] %v95_v6  ;;  %v123_v20 = vld [vmem:[%s16094_s7 + $0xa0] sm:$0xff]  ;;  %v125_v21 = vld [vmem:[%s16094_s7 + $0xa8] sm:$0xff]  ;;  %v127_v22 = vld [vmem:[%s16094_s7 + $0xb0] sm:$0xff] }
  0x12   :  { %98 = vst [vmem:[#allocation2 + $0x38] sm:$0xff] %v97_v7  ;;  %v129_v23 = vld [vmem:[%s16094_s7 + $0xb8] sm:$0xff]  ;;  %v131_v24 = vld [vmem:[%s16094_s7 + $0xc0] sm:$0xff]  ;;  %v133_v25 = vld [vmem:[%s16094_s7 + $0xc8] sm:$0xff] }
  0x13   :  { %100 = vst [vmem:[#allocation2 + $0x40] sm:$0xff] %v99_v8  ;;  %v135_v26 = vld [vmem:[%s16094_s7 + $0xd0] sm:$0xff]  ;;  %v137_v27 = vld [vmem:[%s16094_s7 + $0xd8] sm:$0xff]  ;;  %v139_v28 = vld [vmem:[%s16094_s7 + $0xe0] sm:$0xff] }
  0x14   :  { %102 = vst [vmem:[#allocation2 + $0x48] sm:$0xff] %v101_v9  ;;  %v141_v29 = vld [vmem:[%s16094_s7 + $0xe8] sm:$0xff]  ;;  %v143_v30 = vld [vmem:[%s16094_s7 + $0xf0] sm:$0xff]  ;;  %v145_v31 = vld [vmem:[%s16094_s7 + $0xf8] sm:$0xff] }
  0x15   :  { %104 = vst [vmem:[#allocation2 + $0x50] sm:$0xff] %v103_v10  ;;  %v147_v32 = vld [vmem:[%s16094_s7 + $0x100] sm:$0xff]  ;;  %v149_v33 = vld [vmem:[%s16094_s7 + $0x108] sm:$0xff]  ;;  %v151_v34 = vld [vmem:[%s16094_s7 + $0x110] sm:$0xff] }
  0x16   :  { %106 = vst [vmem:[#allocation2 + $0x58] sm:$0xff] %v105_v11  ;;  %v153_v35 = vld [vmem:[%s16094_s7 + $0x118] sm:$0xff]  ;;  %v155_v36 = vld [vmem:[%s16094_s7 + $0x120] sm:$0xff]  ;;  %v157_v37 = vld [vmem:[%s16094_s7 + $0x128] sm:$0xff] }
  0x17   :  { %108 = vst [vmem:[#allocation2 + $0x60] sm:$0xff] %v107_v12  ;;  %v159_v38 = vld [vmem:[%s16094_s7 + $0x130] sm:$0xff]  ;;  %v161_v39 = vld [vmem:[%s16094_s7 + $0x138] sm:$0xff]  ;;  %v163_v40 = vld [vmem:[%s16094_s7 + $0x140] sm:$0xff] }
  0x18   :  { %110 = vst [vmem:[#allocation2 + $0x68] sm:$0xff] %v109_v13  ;;  %v165_v41 = vld [vmem:[%s16094_s7 + $0x148] sm:$0xff]  ;;  %v167_v42 = vld [vmem:[%s16094_s7 + $0x150] sm:$0xff]  ;;  %v169_v43 = vld [vmem:[%s16094_s7 + $0x158] sm:$0xff] }
  0x19   :  { %112 = vst [vmem:[#allocation2 + $0x70] sm:$0xff] %v111_v14  ;;  %v171_v44 = vld [vmem:[%s16094_s7 + $0x160] sm:$0xff]  ;;  %v173_v45 = vld [vmem:[%s16094_s7 + $0x168] sm:$0xff]  ;;  %v175_v46 = vld [vmem:[%s16094_s7 + $0x170] sm:$0xff] }
  0x1a   :  { %114 = vst [vmem:[#allocation2 + $0x78] sm:$0xff] %v113_v15  ;;  %v177_v47 = vld [vmem:[%s16094_s7 + $0x178] sm:$0xff]  ;;  %v179_v48 = vld [vmem:[%s16094_s7 + $0x180] sm:$0xff]  ;;  %v181_v49 = vld [vmem:[%s16094_s7 + $0x188] sm:$0xff] }
  0x1b   :  { %116 = vst [vmem:[#allocation2 + $0x80] sm:$0xff] %v115_v16  ;;  %v183_v50 = vld [vmem:[%s16094_s7 + $0x190] sm:$0xff]  ;;  %v185_v51 = vld [vmem:[%s16094_s7 + $0x198] sm:$0xff]  ;;  %v187_v52 = vld [vmem:[%s16094_s7 + $0x1a0] sm:$0xff] }
  0x1c   :  { %118 = vst [vmem:[#allocation2 + $0x88] sm:$0xff] %v117_v17  ;;  %v189_v53 = vld [vmem:[%s16094_s7 + $0x1a8] sm:$0xff]  ;;  %v191_v54 = vld [vmem:[%s16094_s7 + $0x1b0] sm:$0xff]  ;;  %v193_v55 = vld [vmem:[%s16094_s7 + $0x1b8] sm:$0xff] }
  0x1d   :  { %120 = vst [vmem:[#allocation2 + $0x90] sm:$0xff] %v119_v18  ;;  %v195_v56 = vld [vmem:[%s16094_s7 + $0x1c0] sm:$0xff]  ;;  %v197_v57 = vld [vmem:[%s16094_s7 + $0x1c8] sm:$0xff]  ;;  %v199_v58 = vld [vmem:[%s16094_s7 + $0x1d0] sm:$0xff] }
  0x1e   :  { %122 = vst [vmem:[#allocation2 + $0x98] sm:$0xff] %v121_v19  ;;  %v201_v59 = vld [vmem:[%s16094_s7 + $0x1d8] sm:$0xff]  ;;  %v203_v60 = vld [vmem:[%s16094_s7 + $0x1e0] sm:$0xff]  ;;  %v205_v61 = vld [vmem:[%s16094_s7 + $0x1e8] sm:$0xff] }
  0x1f   :  { %124 = vst [vmem:[#allocation2 + $0xa0] sm:$0xff] %v123_v20  ;;  %v207_v62 = vld [vmem:[%s16094_s7 + $0x1f0] sm:$0xff]  ;;  %v209_v63 = vld [vmem:[%s16094_s7 + $0x1f8] sm:$0xff]  ;;  %v211_v0 = vld [vmem:[%s16094_s7 + $0x200] sm:$0xff] }
  0x20   :  { %126 = vst [vmem:[#allocation2 + $0xa8] sm:$0xff] %v125_v21  ;;  %v213_v1 = vld [vmem:[%s16094_s7 + $0x208] sm:$0xff]  ;;  %v215_v2 = vld [vmem:[%s16094_s7 + $0x210] sm:$0xff]  ;;  %v217_v3 = vld [vmem:[%s16094_s7 + $0x218] sm:$0xff] }
  0x21   :  { %128 = vst [vmem:[#allocation2 + $0xb0] sm:$0xff] %v127_v22  ;;  %v219_v4 = vld [vmem:[%s16094_s7 + $0x220] sm:$0xff]  ;;  %v221_v5 = vld [vmem:[%s16094_s7 + $0x228] sm:$0xff]  ;;  %v223_v6 = vld [vmem:[%s16094_s7 + $0x230] sm:$0xff] }
  0x22   :  { %130 = vst [vmem:[#allocation2 + $0xb8] sm:$0xff] %v129_v23  ;;  %v225_v7 = vld [vmem:[%s16094_s7 + $0x238] sm:$0xff]  ;;  %v227_v8 = vld [vmem:[%s16094_s7 + $0x240] sm:$0xff]  ;;  %v229_v9 = vld [vmem:[%s16094_s7 + $0x248] sm:$0xff] }
  0x23   :  { %132 = vst [vmem:[#allocation2 + $0xc0] sm:$0xff] %v131_v24  ;;  %v231_v10 = vld [vmem:[%s16094_s7 + $0x250] sm:$0xff]  ;;  %v233_v11 = vld [vmem:[%s16094_s7 + $0x258] sm:$0xff]  ;;  %v235_v12 = vld [vmem:[%s16094_s7 + $0x260] sm:$0xff] }
  0x24   :  { %134 = vst [vmem:[#allocation2 + $0xc8] sm:$0xff] %v133_v25  ;;  %v237_v13 = vld [vmem:[%s16094_s7 + $0x268] sm:$0xff]  ;;  %v239_v14 = vld [vmem:[%s16094_s7 + $0x270] sm:$0xff]  ;;  %v241_v15 = vld [vmem:[%s16094_s7 + $0x278] sm:$0xff] }
  0x25   :  { %136 = vst [vmem:[#allocation2 + $0xd0] sm:$0xff] %v135_v26  ;;  %v263_v16 = vld [vmem:[%s16157_s30] sm:$0x3] }
  0x26   :  { %138 = vst [vmem:[#allocation2 + $0xd8] sm:$0xff] %v137_v27 }
  0x27   :  { %140 = vst [vmem:[#allocation2 + $0xe0] sm:$0xff] %v139_v28 }
  0x28   :  { %142 = vst [vmem:[#allocation2 + $0xe8] sm:$0xff] %v141_v29 }
  0x29   :  { %144 = vst [vmem:[#allocation2 + $0xf0] sm:$0xff] %v143_v30 }
  0x2a   :  { %146 = vst [vmem:[#allocation2 + $0xf8] sm:$0xff] %v145_v31 }
  0x2b   :  { %148 = vst [vmem:[#allocation2 + $0x100] sm:$0xff] %v147_v32 }
  0x2c   :  { %150 = vst [vmem:[#allocation2 + $0x108] sm:$0xff] %v149_v33 }
  0x2d   :  { %152 = vst [vmem:[#allocation2 + $0x110] sm:$0xff] %v151_v34 }
  0x2e   :  { %154 = vst [vmem:[#allocation2 + $0x118] sm:$0xff] %v153_v35 }
  0x2f   :  { %156 = vst [vmem:[#allocation2 + $0x120] sm:$0xff] %v155_v36 }
  0x30   :  { %158 = vst [vmem:[#allocation2 + $0x128] sm:$0xff] %v157_v37 }
  0x31   :  { %160 = vst [vmem:[#allocation2 + $0x130] sm:$0xff] %v159_v38 }
  0x32   :  { %162 = vst [vmem:[#allocation2 + $0x138] sm:$0xff] %v161_v39 }
  0x33   :  { %164 = vst [vmem:[#allocation2 + $0x140] sm:$0xff] %v163_v40 }
  0x34   :  { %166 = vst [vmem:[#allocation2 + $0x148] sm:$0xff] %v165_v41 }
  0x35   :  { %168 = vst [vmem:[#allocation2 + $0x150] sm:$0xff] %v167_v42 }
  0x36   :  { %170 = vst [vmem:[#allocation2 + $0x158] sm:$0xff] %v169_v43 }
  0x37   :  { %172 = vst [vmem:[#allocation2 + $0x160] sm:$0xff] %v171_v44 }
  0x38   :  { %174 = vst [vmem:[#allocation2 + $0x168] sm:$0xff] %v173_v45 }
  0x39   :  { %176 = vst [vmem:[#allocation2 + $0x170] sm:$0xff] %v175_v46 }
  0x3a   :  { %178 = vst [vmem:[#allocation2 + $0x178] sm:$0xff] %v177_v47 }
  0x3b   :  { %180 = vst [vmem:[#allocation2 + $0x180] sm:$0xff] %v179_v48 }
  0x3c   :  { %182 = vst [vmem:[#allocation2 + $0x188] sm:$0xff] %v181_v49 }
  0x3d   :  { %184 = vst [vmem:[#allocation2 + $0x190] sm:$0xff] %v183_v50 }
  0x3e   :  { %186 = vst [vmem:[#allocation2 + $0x198] sm:$0xff] %v185_v51 }
  0x3f   :  { %188 = vst [vmem:[#allocation2 + $0x1a0] sm:$0xff] %v187_v52 }
  0x40   :  { %190 = vst [vmem:[#allocation2 + $0x1a8] sm:$0xff] %v189_v53 }
  0x41   :  { %192 = vst [vmem:[#allocation2 + $0x1b0] sm:$0xff] %v191_v54 }
  0x42   :  { %194 = vst [vmem:[#allocation2 + $0x1b8] sm:$0xff] %v193_v55 }
  0x43   :  { %196 = vst [vmem:[#allocation2 + $0x1c0] sm:$0xff] %v195_v56 }
  0x44   :  { %198 = vst [vmem:[#allocation2 + $0x1c8] sm:$0xff] %v197_v57 }
  0x45   :  { %200 = vst [vmem:[#allocation2 + $0x1d0] sm:$0xff] %v199_v58 }
  0x46   :  { %202 = vst [vmem:[#allocation2 + $0x1d8] sm:$0xff] %v201_v59 }
  0x47   :  { %204 = vst [vmem:[#allocation2 + $0x1e0] sm:$0xff] %v203_v60 }
  0x48   :  { %206 = vst [vmem:[#allocation2 + $0x1e8] sm:$0xff] %v205_v61 }
  0x49   :  { %208 = vst [vmem:[#allocation2 + $0x1f0] sm:$0xff] %v207_v62 }
  0x4a   :  { %210 = vst [vmem:[#allocation2 + $0x1f8] sm:$0xff] %v209_v63 }
  0x4b   :  { %212 = vst [vmem:[#allocation2 + $0x200] sm:$0xff] %v211_v0 }
  0x4c   :  { %214 = vst [vmem:[#allocation2 + $0x208] sm:$0xff] %v213_v1 }
  0x4d   :  { %216 = vst [vmem:[#allocation2 + $0x210] sm:$0xff] %v215_v2 }
  0x4e   :  { %218 = vst [vmem:[#allocation2 + $0x218] sm:$0xff] %v217_v3 }
  0x4f   :  { %220 = vst [vmem:[#allocation2 + $0x220] sm:$0xff] %v219_v4 }
  0x50   :  { %222 = vst [vmem:[#allocation2 + $0x228] sm:$0xff] %v221_v5 }
  0x51   :  { %224 = vst [vmem:[#allocation2 + $0x230] sm:$0xff] %v223_v6 }
  0x52   :  { %226 = vst [vmem:[#allocation2 + $0x238] sm:$0xff] %v225_v7 }
  0x53   :  { %228 = vst [vmem:[#allocation2 + $0x240] sm:$0xff] %v227_v8 }
  0x54   :  { %230 = vst [vmem:[#allocation2 + $0x248] sm:$0xff] %v229_v9 }
  0x55   :  { %232 = vst [vmem:[#allocation2 + $0x250] sm:$0xff] %v231_v10 }
  0x56   :  { %234 = vst [vmem:[#allocation2 + $0x258] sm:$0xff] %v233_v11 }
  0x57   :  { %236 = vst [vmem:[#allocation2 + $0x260] sm:$0xff] %v235_v12 }
  0x58   :  { %238 = vst [vmem:[#allocation2 + $0x268] sm:$0xff] %v237_v13 }
  0x59   :  { %240 = vst [vmem:[#allocation2 + $0x270] sm:$0xff] %v239_v14 }
  0x5a   :  { %242 = vst [vmem:[#allocation2 + $0x278] sm:$0xff] %v241_v15 }
  0x5b   :  { %248 = vsyncadd [#allocation4], 10240  ;;  %v265_v17 = vperm.slane %v263_v16, 0  ;;  %v266_v18 = vperm.slane %v263_v16, 1  ;;  %s11200_s7 = smov 126   ;;  %s11201_s0 = smov 124  }
  0x5c   :  { %s11202_s19 = smov 127   ;;  %s11203_s20 = smov 125   ;;  %vm296_vm0 = vcmask 1040384   ;;  %vm297_vm1 = vsmask.f32 256  ;;  %vm305_vm3 = vcmask 1041408  }
  0x5d   :  { %v269_v19 = vpack.c.bf16 %v266_v18, %v265_v17  ;;  %s11204_s21 = smov 122   ;;  %s11205_s22 = smov 123   ;;  %vm11564_vm2 = vmand %vm296_vm0, %vm297_vm1  ;;  %vm306_vm4 = vsmask.f32 1280  ;;  %vm331_vm5 = vcmask 1039360   ;;  %vm338_vm7 = vcmask 1031168  }
  0x5e   :  { %vm11571_vm6 = vmand %vm305_vm3, %vm306_vm4  ;;  %vm343_vm8 = vcmask 1022976   ;;  %vm314_vm9 = vcmask 1042432   ;;  %vm315_vm10 = vsmask.f32 2304  ;;  %vm350_vm11 = vcmask 1014784   ;;  %s16162_s14 = sld [smem:[#allocation49_spill]] }
  0x5f   :  { %v322_v20 = vunpack.c.h.b16 %v269_v19  ;;  %v271_v21 = vunpack.c.l.b16 %v269_v19  ;;  %vm362_vm12 = vcmask 998400   ;;  %vm316_vm13 = vmand %vm314_vm9, %vm315_vm10  ;;  %vm355_vm14 = vcmask 1006592   ;;  %s16163_s23 = sld [smem:[#allocation48_spill]]  ;;  %s257_s25 = sshll.u32 %s16096_s9, 4  ;;  %s258_s25 = int_to_ptr.hbm [resolvable:$true] %s257_s25 }
  0x60   :  { %v16109_v16 = vmov 0   ;;  %vm447_vm15 = vcmask 1043456   ;;  %vm399_vm1 = vcmask 637952   ;;  %vm804_vm4 = vcmask 785408   ;;  %s11208_s26 = smov [#allocation3]  }
  0x61   :  { %v323_v22 = vpack.c.b16 %v322_v20, %v322_v20  ;;  %v272_v23 = vpack.c.b16 %v271_v21, %v271_v21  ;;  %10968 = vset.pattern.permute.xlu1 %v16109_v16  ;;  %10966 = vset.pattern.permute.xlu2 %v16109_v16  ;;  %vm2358_vm10 = vcmask 515072  }
  0x62   :  { %10967 = vset.pattern.permute.xlu0 %v16109_v16 }
  0x63   :  { %v335_v24 = vrot.slane %v323_v22, 7  ;;  %v274_v25 = vshll.u32 %v272_v23, 16  ;;  %v327_v26 = vshll.u32 %v323_v22, 16  ;;  %v286_v27 = vrot.slane %v272_v23, 6 }
  0x64   :  { %v347_v32 = vrot.slane %v323_v22, 6  ;;  %v279_v33 = vrot.slane %v272_v23, 7  ;;  %v293_v36 = vrot.slane %v272_v23, 5  ;;  %v359_v37 = vrot.slane %v323_v22, 5  ;;  %v406_v15 = vld [vmem:[%s16162_s14] sm:$0xff]  ;;  %v408_v17 = vld [vmem:[%s16162_s14 + $0x10] sm:$0xff] }
  0x65   :  { %336 = vrot.lane.b32.xlu1 %v335_v24, %s11200_s7  ;;  %v10951_v28 = vpack.i.bf16 %v327_v26, %v274_v25  ;;  %v282_v29 = vrot.slane %v274_v25, 7  ;;  %v340_v30 = vrot.slane %v327_v26, 7  ;;  %287 = vrot.lane.b32.xlu2 %v286_v27, %s11201_s0  ;;  %v289_v34 = vrot.slane %v274_v25, 6  ;;  %v409_v18 = vld [vmem:[%s16162_s14 + $0x18] sm:$0xff] }
  0x66   :  { %v352_v35 = vrot.slane %v327_v26, 6 }
  0x67   :  { %10952 = vrot.lane.b32.xlu0 %v10951_v28, %s11202_s19  ;;  %v10956_v31 = vpack.i.bf16 %v340_v30, %v282_v29  ;;  %v10558_v28 = vld [vmem:[%s16163_s23] sm:$0xff] }
  0x68   :  { %v10961_v38 = vpack.i.bf16 %v352_v35, %v289_v34 }
  0x6d   :  { %10957 = vrot.lane.b32.xlu1 %v10956_v31, %s11203_s20  ;;  %348 = vrot.lane.b32.xlu2 %v347_v32, %s11201_s0  ;;  %v10559_v31 = vld [vmem:[%s16163_s23 + $0x8] sm:$0xff] }
  0x6f   :  { %280 = vrot.lane.b32.xlu0 %v279_v33, %s11200_s7 }
  0x75   :  { %294 = vrot.lane.b32.xlu1 %v293_v36, %s11204_s21  ;;  %360 = vrot.lane.b32.xlu2 %v359_v37, %s11204_s21 }
  0x77   :  { %10962 = vrot.lane.b32.xlu0 %v10961_v38, %s11205_s22 }
  0x7d   :  { %422 = vperm.xlu2 %10966, %v408_v17  }
  0xbf   :  { %v288_v39 = vpop.permute.xlu2 %287 }
  0xc7   :  { %v349_v47 = vpop.permute.xlu2 %348 }
  0xc8   :  { %v351_v5 = vsel %vm350_vm11, %v288_v39, %v349_v47 }
  0xcf   :  { %v361_v62 = vpop.permute.xlu2 %360 }
  0xd7   :  { %v337_v40 = vpop.permute.xlu1 %336  ;;  %v423_v32 = vpop.permute.xlu2 %422 }
  0xd9   :  { %v10953_v41 = vpop.permute.xlu0 %10952 }
  0xda   :  { %v10954_v43 = vunpack.i.l.bf16 %v10953_v41  ;;  %v10955_v45 = vunpack.i.h.bf16 %v10953_v41 }
  0xdc   :  { %v299_v44 = vsel %vm11564_vm2, %v269_v19, %v10954_v43  ;;  %v332_v51 = vsel %vm331_vm5, %v10954_v43, %v10955_v45  ;;  %v365_v56 = vsel %vm11564_vm2, %v323_v22, %v10955_v45  ;;  %v16108_v19 = vmov 65535   ;;  %v407_v22 = vld [vmem:[%s16162_s14 + $0x8] sm:$0xff] }
  0xdd   :  { %v364_v58 = vsel %vm11564_vm2, %v272_v23, %v332_v51  ;;  %v372_v61 = vsel %vm296_vm0, %v365_v56, %v337_v40  ;;  %v448_v20 = vsel %vm314_vm9, 4294967295, %v16108_v19  ;;  %417 = vperm.xlu2 %10966, %v407_v22   ;;  %vm440_vm2 = vcmask 56320  }
  0xde   :  { %v449_v21 = vsel %vm447_vm15, %v448_v20, 0 }
  0xdf   :  { %v10958_v46 = vpop.permute.xlu1 %10957 }
  0xe0   :  { %v10959_v48 = vunpack.i.l.bf16 %v10958_v46  ;;  %v10960_v52 = vunpack.i.h.bf16 %v10958_v46 }
  0xe1   :  { %v281_v50 = vpop.permute.xlu0 %280 }
  0xe2   :  { %v303_v53 = vsel %vm296_vm0, %v299_v44, %v281_v50  ;;  %v339_v55 = vsel %vm338_vm7, %v281_v50, %v337_v40  ;;  %v344_v59 = vsel %vm343_vm8, %v10959_v48, %v10960_v52  ;;  %v375_v0 = vsel %vm11571_vm6, %v372_v61, %v10960_v52 }
  0xe3   :  { %v308_v54 = vsel %vm11571_vm6, %v303_v53, %v10959_v48  ;;  %v368_v60 = vsel %vm296_vm0, %v364_v58, %v339_v55  ;;  %v382_v7 = vsel %vm305_vm3, %v375_v0, %v349_v47 }
  0xe4   :  { %v312_v57 = vsel %vm305_vm3, %v308_v54, %v288_v39  ;;  %v374_v1 = vsel %vm11571_vm6, %v368_v60, %v344_v59  ;;  %vm1278_vm6 = vcmask 547840  }
  0xe5   :  { %v378_v10 = vsel %vm305_vm3, %v374_v1, %v351_v5  ;;  %vm655_vm3 = vcmask 588800  }
  0xe7   :  { %v295_v63 = vpop.permute.xlu1 %294 }
  0xe8   :  { %v363_v6 = vsel %vm362_vm12, %v295_v63, %v361_v62 }
  0xe9   :  { %v10963_v2 = vpop.permute.xlu0 %10962 }
  0xea   :  { %v10965_v3 = vunpack.i.h.bf16 %v10963_v2  ;;  %v10964_v4 = vunpack.i.l.bf16 %v10963_v2 }
  0xec   :  { %v385_v8 = vsel %vm316_vm13, %v382_v7, %v10965_v3  ;;  %v356_v9 = vsel %vm355_vm14, %v10964_v4, %v10965_v3  ;;  %v317_v11 = vsel %vm316_vm13, %v312_v57, %v10964_v4 }
  0xed   :  { %v391_v12 = vsel %vm314_vm9, %v385_v8, %v361_v62  ;;  %v384_v13 = vsel %vm316_vm13, %v378_v10, %v356_v9  ;;  %v321_v27 = vsel %vm314_vm9, %v317_v11, %v295_v63 }
  0xee   :  { %396 = vrot.lane.b32.xlu1 %v391_v12, %s11204_s21  ;;  %v388_v14 = vsel %vm314_vm9, %v384_v13, %v363_v6  ;;  %vm1607_vm9 = vcmask 523264  }
  0xef   :  { %394 = vrot.lane.b32.xlu0 %v388_v14, %s11204_s21 }
  0xf6   :  { %412 = vperm.xlu1 %10968, %v406_v15  }
  0xf7   :  { %427 = vperm.xlu0 %10967, %v409_v18  }
 0x137   :  { %v418_v39 = vpop.permute.xlu2 %417 }
 0x160   :  { %v397_v23 = vpop.permute.xlu1 %396 }
 0x161   :  { %v395_v24 = vpop.permute.xlu0 %394  ;;  %v453_v25 = vand.u32 %v449_v21, %v397_v23 }
 0x162   :  { %v398_v26 = vsel %vm362_vm12, %v395_v24, %v397_v23 }
 0x163   :  { %481 = vmatpush.bf16.msra.mxu1 %v453_v25  ;;  %v401_v29 = vsel %vm399_vm1, %v321_v27, %v398_v26 }
 0x164   :  { %v450_v30 = vand.u32 %v449_v21, %v401_v29 }
 0x166   :  { %462 = vmatpush.bf16.msra.mxu0 %v450_v30  ;;  %9057 = vmatmul.msk.bf16.vlgmr.msra.gmra.mxu1 %vm440_vm2, %v10558_v28 }
 0x168   :  { %v413_v34 = vpop.permute.xlu1 %412 }
 0x169   :  { %9055 = vmatmul.msk.bf16.vlgmr.msra.gmra.mxu0 %vm440_vm2, %v10558_v28  ;;  %v428_v58 = vpop.permute.xlu0 %427 }
 0x176   :  { %9058 = vmatmul.msk.bf16.gmra.mxu1 %vm440_vm2, %v10559_v31 }
 0x179   :  { %9056 = vmatmul.msk.bf16.gmra.mxu0 %vm440_vm2, %v10559_v31 }
 0x1e3   :  { %v483_v33 = vpop.f32.mrf.mxu1 }
 0x1e4   :  { %v484_v36 = vadd.f32 %v483_v33, %v413_v34 }
 0x1e6   :  { %v464_v35 = vpop.f32.mrf.mxu0  ;;  %v494_v40 = vmax.f32 %v484_v36, 0.0 }
 0x1e7   :  { %v465_v37 = vadd.f32 %v464_v35, %v413_v34 }
 0x1e9   :  { %v493_v41 = vmax.f32 %v465_v37, 0.0 }
 0x1eb   :  { %v485_v38 = vpop.f32.mrf.mxu1  ;;  %v501_v45 = vpack.c.bf16 %v494_v40, %v493_v41 }
 0x1ec   :  { %v486_v42 = vadd.f32 %v485_v38, %v418_v39 }
 0x1ed   :  { %v509_v50 = vunpack.c.l.b16 %v501_v45  ;;  %v539_v51 = vunpack.c.h.b16 %v501_v45 }
 0x1ee   :  { %v466_v43 = vpop.f32.mrf.mxu0  ;;  %v496_v46 = vmax.f32 %v486_v42, 0.0 }
 0x1ef   :  { %v467_v44 = vadd.f32 %v466_v43, %v418_v39 }
 0x1f1   :  { %v495_v47 = vmax.f32 %v467_v44, 0.0 }
 0x1f3   :  { %v502_v48 = vpack.c.bf16 %v496_v46, %v495_v47  ;;  %v488_v49 = vpop.f32.mrf.mxu1  ;;  %v720_v46 = vld [vmem:[%s16091_s4] sm:$0xff] }
 0x1f4   :  { %v489_v63 = vadd.f32 %v488_v49, %v423_v32  ;;  %v726_v49 = vld [vmem:[%s16091_s4 + $0x30] sm:$0xff] }
 0x1f5   :  { %v510_v52 = vunpack.c.l.b16 %v502_v48  ;;  %v540_v53 = vunpack.c.h.b16 %v502_v48  ;;  %v723_v48 = vld [vmem:[%s16091_s4 + $0x18] sm:$0xff] }
 0x1f6   :  { %v469_v54 = vpop.f32.mrf.mxu0  ;;  %v498_v3 = vmax.f32 %v489_v63, 0.0 }
 0x1f7   :  { %v11628_v55 = vpack.c.b16 %v510_v52, %v509_v50  ;;  %v11630_v56 = vpack.c.b16 %v540_v53, %v539_v51  ;;  %v470_v62 = vadd.f32 %v469_v54, %v423_v32 }
 0x1f9   :  { %551 = vrot.lane.b32.xlu2 %v11630_v56, %s11200_s7  ;;  %557 = vrot.lane.b32.xlu1 %v11630_v56, %s11203_s20  ;;  %v497_v2 = vmax.f32 %v470_v62, 0.0 }
 0x1fa   :  { %523 = vrot.lane.b32.xlu0 %v11628_v55, %s11203_s20 }
 0x1fb   :  { %v490_v57 = vpop.f32.mrf.mxu1  ;;  %v503_v5 = vpack.c.bf16 %v498_v3, %v497_v2 }
 0x1fc   :  { %v491_v61 = vadd.f32 %v490_v57, %v428_v58 }
 0x1fd   :  { %v511_v8 = vunpack.c.l.b16 %v503_v5  ;;  %v541_v9 = vunpack.c.h.b16 %v503_v5  ;;  %v722_v5 = vld [vmem:[%s16091_s4 + $0x10] sm:$0xff] }
 0x1fe   :  { %v471_v59 = vpop.f32.mrf.mxu0  ;;  %v500_v1 = vmax.f32 %v491_v61, 0.0 }
 0x1ff   :  { %v472_v60 = vadd.f32 %v471_v59, %v428_v58 }
 0x201   :  { %515 = vrot.lane.b32.xlu2 %v11628_v55, %s11202_s19  ;;  %519 = vrot.lane.b32.xlu1 %v11628_v55, %s11200_s7  ;;  %v499_v0 = vmax.f32 %v472_v60, 0.0 }
 0x202   :  { %545 = vrot.lane.b32.xlu0 %v11630_v56, %s11202_s19 }
 0x203   :  { %v504_v4 = vpack.c.bf16 %v500_v1, %v499_v0 }
 0x205   :  { %v512_v6 = vunpack.c.l.b16 %v504_v4  ;;  %v542_v7 = vunpack.c.h.b16 %v504_v4 }
 0x207   :  { %v11650_v10 = vpack.c.b16 %v512_v6, %v511_v8  ;;  %v544_v11 = vpack.c.b16 %v542_v7, %v541_v9  ;;  %v721_v7 = vld [vmem:[%s16091_s4 + $0x8] sm:$0xff] }
 0x209   :  { %531 = vrot.lane.b32.xlu2 %v11628_v55, %s11205_s22  ;;  %575 = vrot.lane.b32.xlu1 %v11630_v56, %s11204_s21 }
 0x20a   :  { %535 = vrot.lane.b32.xlu0 %v11628_v55, %s11204_s21 }
 0x211   :  { %559 = vrot.lane.b32.xlu2 %v544_v11, %s11203_s20  ;;  %525 = vrot.lane.b32.xlu1 %v11650_v10, %s11203_s20 }
 0x212   :  { %569 = vrot.lane.b32.xlu0 %v11630_v56, %s11205_s22 }
 0x219   :  { %521 = vrot.lane.b32.xlu2 %v11650_v10, %s11200_s7  ;;  %547 = vrot.lane.b32.xlu1 %v544_v11, %s11202_s19 }
 0x21a   :  { %553 = vrot.lane.b32.xlu0 %v544_v11, %s11200_s7 }
 0x221   :  { %577 = vrot.lane.b32.xlu2 %v544_v11, %s11204_s21  ;;  %537 = vrot.lane.b32.xlu1 %v11650_v10, %s11204_s21 }
 0x222   :  { %517 = vrot.lane.b32.xlu0 %v11650_v10, %s11202_s19 }
 0x229   :  { %571 = vrot.lane.b32.xlu2 %v544_v11, %s11205_s22  ;;  %533 = vrot.lane.b32.xlu1 %v11650_v10, %s11205_s22 }
 0x22a   :  { %529 = vrot.lane.b32.xlu0 %v11650_v10, %s11201_s0 }
 0x231   :  { %565 = vrot.lane.b32.xlu1 %v544_v11, %s11201_s0 }
 0x253   :  { %v552_v12 = vpop.permute.xlu2 %551 }
 0x25b   :  { %v11672_v13 = vpop.permute.xlu2 %515 }
 0x263   :  { %v11674_v14 = vpop.permute.xlu2 %531 }
 0x26b   :  { %v558_v15 = vpop.permute.xlu1 %557  ;;  %v560_v21 = vpop.permute.xlu2 %559 }
 0x26c   :  { %v11676_v17 = vpop.permute.xlu0 %523  ;;  %599 = vrot.lane.b32.xlu1 %v558_v15, %s11204_s21 }
 0x26d   :  { %v561_v18 = vsel %vm343_vm8, %v11676_v17, %v558_v15 }
 0x26e   :  { %597 = vrot.lane.b32.xlu0 %v561_v18, %s11204_s21  ;;  %v724_v18 = vld [vmem:[%s16091_s4 + $0x20] sm:$0xff] }
 0x273   :  { %v11684_v22 = vpop.permute.xlu1 %519  ;;  %v11692_v27 = vpop.permute.xlu2 %521 }
 0x274   :  { %v546_v20 = vpop.permute.xlu0 %545  ;;  %527 = vrot.lane.b32.xlu1 %v11628_v55, %s11201_s0  ;;  %v555_v34 = vsel %vm338_vm7, %v11684_v22, %v552_v12 }
 0x275   :  { %v549_v40 = vsel %vm331_vm5, %v11672_v13, %v546_v20 }
 0x276   :  { %603 = vrot.lane.b32.xlu0 %v560_v21, %s11204_s21 }
 0x27b   :  { %v11690_v24 = vpop.permute.xlu1 %575  ;;  %v11714_v36 = vpop.permute.xlu2 %577 }
 0x27c   :  { %v11687_v23 = vpop.permute.xlu0 %535 }
 0x27d   :  { %v11726_v38 = vsel %vm362_vm12, %v11687_v23, %v11690_v24 }
 0x27e   :  { %591 = vrot.lane.b32.xlu0 %v552_v12, %s11204_s21 }
 0x283   :  { %v526_v26 = vpop.permute.xlu1 %525  ;;  %v572_v41 = vpop.permute.xlu2 %571 }
 0x284   :  { %v570_v25 = vpop.permute.xlu0 %569  ;;  %v562_v32 = vsel %vm343_vm8, %v526_v26, %v560_v21 }
 0x285   :  { %v573_v42 = vsel %vm355_vm14, %v11674_v14, %v570_v25 }
 0x28b   :  { %v548_v30 = vpop.permute.xlu1 %547 }
 0x28c   :  { %v554_v28 = vpop.permute.xlu0 %553 }
 0x28d   :  { %595 = vrot.lane.b32.xlu2 %v554_v28, %s11204_s21  ;;  %v556_v29 = vsel %vm338_vm7, %v11692_v27, %v554_v28  ;;  %v10561_v28 = vld [vmem:[%s16090_s3 + $0x4] sm:$0xf0] }
 0x28e   :  { %593 = vrot.lane.b32.xlu1 %v556_v29, %s11204_s21 }
 0x293   :  { %v11709_v35 = vpop.permute.xlu1 %537 }
 0x294   :  { %v11698_v31 = vpop.permute.xlu0 %517  ;;  %v11721_v37 = vsel %vm362_vm12, %v11709_v35, %v11714_v36 }
 0x295   :  { %601 = vrot.lane.b32.xlu2 %v562_v32, %s11204_s21  ;;  %v550_v33 = vsel %vm331_vm5, %v11698_v31, %v548_v30  ;;  %v662_v29 = vsel %vm655_vm3, %v11650_v10, %v11721_v37  ;;  %v10565_v32 = vld [vmem:[%s16090_s3 + $0x24] sm:$0xf0] }
 0x296   :  { %587 = vrot.lane.b32.xlu1 %v548_v30, %s11204_s21  ;;  %585 = vrot.lane.b32.xlu0 %v550_v33, %s11204_s21 }
 0x29b   :  { %v11732_v39 = vpop.permute.xlu1 %533 }
 0x29c   :  { %v11741_v44 = vpop.permute.xlu0 %529  ;;  %v574_v47 = vsel %vm355_vm14, %v11732_v39, %v572_v41 }
 0x29d   :  { %589 = vrot.lane.b32.xlu2 %v555_v34, %s11204_s21 }
 0x29e   :  { %623 = vrot.lane.b32.xlu1 %v11690_v24, %s11204_s21  ;;  %583 = vrot.lane.b32.xlu0 %v546_v20, %s11204_s21 }
 0x2a3   :  { %v566_v43 = vpop.permute.xlu1 %565 }
 0x2a4   :  { %v568_v45 = vsel %vm350_vm11, %v11741_v44, %v566_v43 }
 0x2a5   :  { %563 = vrot.lane.b32.xlu2 %v11630_v56, %s11201_s0 }
 0x2a6   :  { %625 = vrot.lane.b32.xlu1 %v11721_v37, %s11204_s21  ;;  %621 = vrot.lane.b32.xlu0 %v11726_v38, %s11204_s21  ;;  %v658_v37 = vsel %vm655_vm3, %v11628_v55, %v11726_v38 }
 0x2ad   :  { %581 = vrot.lane.b32.xlu2 %v549_v40, %s11204_s21 }
 0x2ae   :  { %613 = vrot.lane.b32.xlu1 %v573_v42, %s11204_s21  ;;  %619 = vrot.lane.b32.xlu0 %v572_v41, %s11204_s21 }
 0x2b5   :  { %627 = vrot.lane.b32.xlu2 %v11714_v36, %s11204_s21 }
 0x2b6   :  { %611 = vrot.lane.b32.xlu1 %v566_v43, %s11204_s21  ;;  %609 = vrot.lane.b32.xlu0 %v568_v45, %s11204_s21 }
 0x2bd   :  { %617 = vrot.lane.b32.xlu2 %v574_v47, %s11204_s21  ;;  %v9069_v47 = vld [vmem:[%s16090_s3 + $0x10] sm:$0xf] }
 0x2be   :  { %730 = vperm.xlu1 %10968, %v720_v46  }
 0x2c5   :  { %615 = vrot.lane.b32.xlu2 %v570_v25, %s11204_s21 }
 0x2c6   :  { %745 = vperm.xlu1 %10968, %v723_v48  }
 0x2ce   :  { %760 = vperm.xlu1 %10968, %v726_v49   ;;  %v9085_v49 = vld [vmem:[%s16090_s3 + $0x30] sm:$0xf] }
 0x2de   :  { %v600_v53 = vpop.permute.xlu1 %599 }
 0x2e0   :  { %v598_v50 = vpop.permute.xlu0 %597 }
 0x2e1   :  { %v633_v58 = vsel %vm362_vm12, %v598_v50, %v600_v53 }
 0x2e2   :  { %v682_v60 = vsel %vm655_vm3, %v11676_v17, %v633_v58  ;;  %v725_v17 = vld [vmem:[%s16091_s4 + $0x28] sm:$0xff] }
 0x2e6   :  { %v11767_v62 = vpop.permute.xlu1 %527 }
 0x2e7   :  { %v596_v51 = vpop.permute.xlu2 %595 }
 0x2e8   :  { %v604_v52 = vpop.permute.xlu0 %603 }
 0x2e9   :  { %875 = vmatpush.bf16.msrb.mxu0 %v604_v52 }
 0x2ed   :  { %876 = vmatpush.bf16.msrb.mxu0 %v600_v53 }
 0x2ef   :  { %v602_v54 = vpop.permute.xlu2 %601 }
 0x2f0   :  { %v634_v56 = vsel %vm362_vm12, %v602_v54, %v604_v52  ;;  %v592_v59 = vpop.permute.xlu0 %591 }
 0x2f1   :  { %877 = vmatpush.bf16.msrb.mxu0 %v596_v51  ;;  %v686_v57 = vsel %vm655_vm3, %v526_v26, %v634_v56 }
 0x2f2   :  { %817 = vmatpush.bf16.msrb.mxu1 %v686_v57  ;;  %10920 = vmatpush.bf16.msra.mxu2 %v686_v57  ;;  %v9063_v57 = vld [vmem:[%s16090_s3 + $0x8] sm:$0xf0] }
 0x2f5   :  { %878 = vmatpush.bf16.msrb.mxu0 %v592_v59 }
 0x2f6   :  { %818 = vmatpush.bf16.msrb.mxu1 %v682_v60  ;;  %10921 = vmatpush.bf16.msra.mxu2 %v682_v60 }
 0x2f7   :  { %v590_v61 = vpop.permute.xlu2 %589 }
 0x2f8   :  { %v631_v4 = vsel %vm362_vm12, %v590_v61, %v592_v59 }
 0x2f9   :  { %v674_v6 = vsel %vm655_vm3, %v11684_v22, %v631_v4  ;;  %v10566_v4 = vld [vmem:[%s16090_s3 + $0x34] sm:$0xf] }
 0x2ff   :  { %v564_v63 = vpop.permute.xlu2 %563 }
 0x300   :  { %v594_v0 = vpop.permute.xlu1 %593  ;;  %607 = vrot.lane.b32.xlu0 %v564_v63, %s11204_s21  ;;  %v567_v1 = vsel %vm350_vm11, %v11767_v62, %v564_v63  ;;  %v10562_v63 = vld [vmem:[%s16090_s3 + $0x14] sm:$0xf] }
 0x301   :  { %v632_v2 = vsel %vm362_vm12, %v594_v0, %v596_v51  ;;  %605 = vrot.lane.b32.xlu2 %v567_v1, %s11204_s21  ;;  %v9071_v0 = vld [vmem:[%s16090_s3 + $0x18] sm:$0xf0] }
 0x302   :  { %v678_v3 = vsel %vm655_vm3, %v11692_v27, %v632_v2  ;;  %v9061_v27 = vld [vmem:[%s16090_s3] sm:$0xf]  ;;  %v9074_v1 = vor.u32 %v10562_v63, %v9071_v0  ;;  %v9079_v2 = vld [vmem:[%s16090_s3 + $0x28] sm:$0xf0] }
 0x303   :  { %819 = vmatpush.bf16.msrb.mxu1 %v678_v3  ;;  %10922 = vmatpush.bf16.msra.mxu2 %v678_v3 }
 0x307   :  { %v582_v8 = vpop.permute.xlu2 %581  ;;  %820 = vmatpush.bf16.msrb.mxu1 %v674_v6  ;;  %10923 = vmatpush.bf16.msra.mxu2 %v674_v6 }
 0x308   :  { %v588_v9 = vpop.permute.xlu1 %587  ;;  %740 = vperm.xlu0 %10967, %v722_v5   ;;  %v586_v11 = vpop.permute.xlu0 %585  ;;  %v9087_v5 = vld [vmem:[%s16090_s3 + $0x38] sm:$0xf0] }
 0x309   :  { %v630_v12 = vsel %vm362_vm12, %v586_v11, %v588_v9  ;;  %735 = vperm.xlu2 %10966, %v721_v7   ;;  %879 = vmatpush.bf16.msrb.mxu0 %v588_v9  ;;  %v9090_v6 = vor.u32 %v10566_v4, %v9087_v5 }
 0x30a   :  { %v670_v15 = vsel %vm655_vm3, %v11698_v31, %v630_v12  ;;  %v9077_v31 = vld [vmem:[%s16090_s3 + $0x20] sm:$0xf] }
 0x30b   :  { %821 = vmatpush.bf16.msrb.mxu1 %v670_v15  ;;  %10924 = vmatpush.bf16.msra.mxu2 %v670_v15  ;;  %v9078_v41 = vor.u32 %v10565_v32, %v9077_v31 }
 0x30f   :  { %v628_v20 = vpop.permute.xlu2 %627 }
 0x310   :  { %v624_v21 = vpop.permute.xlu1 %623  ;;  %755 = vperm.xlu0 %10967, %v725_v17   ;;  %v584_v22 = vpop.permute.xlu0 %583 }
 0x311   :  { %750 = vperm.xlu2 %10966, %v724_v18   ;;  %880 = vmatpush.bf16.msrb.mxu0 %v584_v22  ;;  %v629_v25 = vsel %vm362_vm12, %v582_v8, %v584_v22 }
 0x312   :  { %v666_v26 = vsel %vm655_vm3, %v11672_v13, %v629_v25  ;;  %v727_v13 = vld [vmem:[%s16091_s4 + $0x38] sm:$0xff] }
 0x313   :  { %822 = vmatpush.bf16.msrb.mxu1 %v666_v26  ;;  %10925 = vmatpush.bf16.msra.mxu2 %v666_v26 }
 0x315   :  { %881 = vmatpush.bf16.msrb.mxu0 %v11714_v36  ;;  %v9062_v36 = vor.u32 %v10561_v28, %v9061_v27 }
 0x317   :  { %v618_v30 = vpop.permute.xlu2 %617  ;;  %823 = vmatpush.bf16.msrb.mxu1 %v662_v29  ;;  %10926 = vmatpush.bf16.msra.mxu2 %v662_v29 }
 0x318   :  { %v626_v33 = vpop.permute.xlu1 %625  ;;  %v622_v34 = vpop.permute.xlu0 %621 }
 0x319   :  { %v640_v10 = vsel %vm362_vm12, %v626_v33, %v628_v20  ;;  %765 = vperm.xlu2 %10966, %v727_v13   ;;  %882 = vmatpush.bf16.msrb.mxu0 %v11690_v24  ;;  %v639_v42 = vsel %vm362_vm12, %v622_v34, %v624_v21 }
 0x31a   :  { %v710_v40 = vsel %vm655_vm3, %v11709_v35, %v640_v10  ;;  %v706_v24 = vsel %vm655_vm3, %v11687_v23, %v639_v42  ;;  %v10563_v23 = vld [vmem:[%s16090_s3 + $0x14] sm:$0xf0] }
 0x31b   :  { %824 = vmatpush.bf16.msrb.mxu1 %v658_v37  ;;  %10927 = vmatpush.bf16.msra.mxu2 %v658_v37  ;;  %v9070_v52 = vor.u32 %v10563_v23, %v9069_v47 }
 0x31c   :  { %848 = vmatpush.bf16.msra.mxu3 %v710_v40  ;;  %883 = vmatmul.bf16.vlgmr.msrb.gmra.mxu0 %v9062_v36 }
 0x31e   :  { %825 = vmatmul.bf16.vlgmr.msrb.gmra.mxu1 %v9062_v36  ;;  %835 = vmatmul.bf16.vlgmr.msra.gmra.mxu2 %v9078_v41 }
 0x31f   :  { %906 = vmatpush.bf16.msra.mxu1 %v628_v20  ;;  %v616_v55 = vpop.permute.xlu2 %615 }
 0x320   :  { %849 = vmatpush.bf16.msra.mxu3 %v706_v24  ;;  %v614_v43 = vpop.permute.xlu1 %613  ;;  %v620_v45 = vpop.permute.xlu0 %619 }
 0x321   :  { %v638_v35 = vsel %vm362_vm12, %v618_v30, %v620_v45  ;;  %v637_v46 = vsel %vm362_vm12, %v614_v43, %v616_v55 }
 0x322   :  { %v702_v38 = vsel %vm655_vm3, %v11732_v39, %v638_v35  ;;  %v698_v48 = vsel %vm655_vm3, %v11674_v14, %v637_v46  ;;  %v10567_v39 = vld [vmem:[%s16090_s3 + $0x34] sm:$0xf0]  ;;  %v10560_v14 = vld [vmem:[%s16090_s3 + $0x4] sm:$0xf] }
 0x323   :  { %907 = vmatpush.bf16.msra.mxu1 %v624_v21  ;;  %v9086_v56 = vor.u32 %v10567_v39, %v9085_v49  ;;  %v9066_v60 = vor.u32 %v10560_v14, %v9063_v57 }
 0x324   :  { %850 = vmatpush.bf16.msra.mxu3 %v702_v38 }
 0x327   :  { %908 = vmatpush.bf16.msra.mxu1 %v620_v45 }
 0x328   :  { %851 = vmatpush.bf16.msra.mxu3 %v698_v48  ;;  %v612_v50 = vpop.permute.xlu1 %611  ;;  %v610_v51 = vpop.permute.xlu0 %609 }
 0x329   :  { %v636_v53 = vsel %vm362_vm12, %v610_v51, %v612_v50 }
 0x32a   :  { %v694_v54 = vsel %vm655_vm3, %v11741_v44, %v636_v53 }
 0x32b   :  { %909 = vmatpush.bf16.msra.mxu1 %v616_v55 }
 0x32c   :  { %852 = vmatpush.bf16.msra.mxu3 %v694_v54  ;;  %888 = vmatmul.bf16.gmra.mxu0 %v9070_v52 }
 0x32e   :  { %830 = vmatmul.bf16.gmra.mxu1 %v9070_v52  ;;  %840 = vmatmul.bf16.gmra.mxu2 %v9086_v56 }
 0x32f   :  { %910 = vmatpush.bf16.msra.mxu1 %v612_v50 }
 0x330   :  { %v731_v18 = vpop.permute.xlu1 %730 }
 0x338   :  { %v746_v49 = vpop.permute.xlu1 %745 }
 0x33c   :  { %893 = vmatmul.bf16.gmra.mxu0 %v9078_v41 }
 0x34c   :  { %898 = vmatmul.bf16.gmra.mxu0 %v9086_v56 }
 0x35b   :  { %v606_v58 = vpop.permute.xlu2 %605 }
 0x363   :  { %v736_v30 = vpop.permute.xlu2 %735 }
 0x372   :  { %v608_v59 = vpop.permute.xlu0 %607 }
 0x373   :  { %911 = vmatpush.bf16.msra.mxu1 %v608_v59  ;;  %v635_v44 = vsel %vm362_vm12, %v606_v58, %v608_v59 }
 0x374   :  { %v690_v61 = vsel %vm655_vm3, %v11767_v62, %v635_v44  ;;  %v10564_v62 = vld [vmem:[%s16090_s3 + $0x24] sm:$0xf]  ;;  %s259_s3 = sshll.u32 %s11208_s26, 4  ;;  %s260_s3 = int_to_ptr.vmem [resolvable:$true] %s259_s3 }
 0x375   :  { %853 = vmatpush.bf16.msra.mxu3 %v690_v61  ;;  %v9082_v3 = vor.u32 %v10564_v62, %v9079_v2  ;;  %262 = dma.hbm_to_vmem [thread:$0]  %s258_s25, 24576, %s260_s3, [#allocation4 + $0x1] }
 0x376   :  { %9095 = vmatmul.msk.bf16.vlgmr.msra.gmra.mxu1 %vm804_vm4, %v9066_v60 }
 0x378   :  { %9091 = vmatmul.msk.bf16.vlgmr.msra.gmra.mxu3 %vm804_vm4, %v9066_v60  ;;  %v751_v60 = vpop.permute.xlu2 %750 }
 0x37a   :  { %v741_v24 = vpop.permute.xlu0 %740 }
 0x386   :  { %9096 = vmatmul.msk.bf16.gmra.mxu1 %vm804_vm4, %v9074_v1 }
 0x388   :  { %9092 = vmatmul.msk.bf16.gmra.mxu3 %vm804_vm4, %v9074_v1 }
 0x396   :  { %9097 = vmatmul.msk.bf16.gmra.mxu1 %vm804_vm4, %v9082_v3 }
 0x398   :  { %9093 = vmatmul.msk.bf16.gmra.mxu3 %vm804_vm4, %v9082_v3 }
 0x399   :  { %v884_v11 = vpop.f32.mrf.mxu0 }
 0x39a   :  { %v885_v20 = vadd.f32 %v884_v11, %v731_v18 }
 0x39b   :  { %v826_v7 = vpop.f32.mrf.mxu1 }
 0x39c   :  { %v827_v21 = vadd.f32 %v826_v7, %v731_v18  ;;  %v756_v7 = vpop.permute.xlu0 %755 }
 0x3a1   :  { %v886_v15 = vpop.f32.mrf.mxu0  ;;  %v836_v50 = vpop.f32.mrf.mxu2 }
 0x3a2   :  { %v887_v31 = vadd.f32 %v886_v15, %v736_v30  ;;  %v837_v0 = vadd.f32 %v836_v50, %v751_v60 }
 0x3a3   :  { %v828_v8 = vpop.f32.mrf.mxu1 }
 0x3a4   :  { %v829_v33 = vadd.f32 %v828_v8, %v736_v30 }
 0x3a6   :  { %9098 = vmatmul.msk.bf16.gmra.mxu1 %vm804_vm4, %v9090_v6 }
 0x3a8   :  { %9094 = vmatmul.msk.bf16.gmra.mxu3 %vm804_vm4, %v9090_v6 }
 0x3a9   :  { %v889_v22 = vpop.f32.mrf.mxu0  ;;  %v838_v1 = vpop.f32.mrf.mxu2 }
 0x3aa   :  { %v890_v43 = vadd.f32 %v889_v22, %v741_v24  ;;  %v839_v11 = vadd.f32 %v838_v1, %v756_v7 }
 0x3ab   :  { %v831_v9 = vpop.f32.mrf.mxu1 }
 0x3ac   :  { %v832_v55 = vadd.f32 %v831_v9, %v741_v24  ;;  %v766_v24 = vpop.permute.xlu2 %765 }
 0x3b1   :  { %v891_v40 = vpop.f32.mrf.mxu0 }
 0x3b2   :  { %v892_v51 = vadd.f32 %v891_v40, %v746_v49 }
 0x3b3   :  { %v833_v12 = vpop.f32.mrf.mxu1 }
 0x3b4   :  { %v834_v53 = vadd.f32 %v833_v12, %v746_v49 }
 0x3b9   :  { %v894_v39 = vpop.f32.mrf.mxu0 }
 0x3ba   :  { %v895_v44 = vadd.f32 %v894_v39, %v751_v60 }
 0x3c1   :  { %v896_v63 = vpop.f32.mrf.mxu0 }
 0x3c2   :  { %v897_v8 = vadd.f32 %v896_v63, %v756_v7 }
 0x3c9   :  { %v899_v15 = vpop.f32.mrf.mxu0 }
 0x3d1   :  { %v901_v40 = vpop.f32.mrf.mxu0 }
 0x3f3   :  { %v913_v17 = vpop.f32.mrf.mxu1 }
 0x3f4   :  { %v11882_v25 = vadd.f32 %v913_v17, %v885_v20  ;;  %v841_v20 = vpop.f32.mrf.mxu2 }
 0x3f6   :  { %v934_v29 = vmax.f32 %v11882_v25, 0.0 }
 0x3fb   :  { %v855_v26 = vpop.f32.mrf.mxu3  ;;  %v915_v27 = vpop.f32.mrf.mxu1 }
 0x3fc   :  { %v11884_v28 = vadd.f32 %v855_v26, %v827_v21  ;;  %v11892_v34 = vadd.f32 %v915_v27, %v887_v31  ;;  %v761_v27 = vpop.permute.xlu1 %760 }
 0x3fd   :  { %v900_v30 = vadd.f32 %v899_v15, %v761_v27 }
 0x3fe   :  { %v933_v13 = vmax.f32 %v11884_v28, 0.0  ;;  %v936_v41 = vmax.f32 %v11892_v34, 0.0 }
 0x400   :  { %v10969_v32 = vpack.i.bf16 %v934_v29, %v933_v13 }
 0x402   :  { %10970 = vrot.lane.b32.xlu0 %v10969_v32, %s11202_s19  ;;  %v842_v32 = vadd.f32 %v841_v20, %v761_v27 }
 0x403   :  { %v857_v36 = vpop.f32.mrf.mxu3  ;;  %v918_v10 = vpop.f32.mrf.mxu1 }
 0x404   :  { %v11895_v37 = vadd.f32 %v857_v36, %v829_v33  ;;  %v11903_v35 = vadd.f32 %v918_v10, %v890_v43 }
 0x406   :  { %v935_v42 = vmax.f32 %v11895_v37, 0.0  ;;  %v938_v23 = vmax.f32 %v11903_v35, 0.0 }
 0x408   :  { %v10974_v45 = vpack.i.bf16 %v936_v41, %v935_v42 }
 0x40a   :  { %10975 = vrot.lane.b32.xlu1 %v10974_v45, %s11202_s19 }
 0x40b   :  { %v860_v38 = vpop.f32.mrf.mxu3  ;;  %v920_v46 = vpop.f32.mrf.mxu1 }
 0x40c   :  { %v11906_v47 = vadd.f32 %v860_v38, %v832_v55  ;;  %v11914_v54 = vadd.f32 %v920_v46, %v892_v51  ;;  %v843_v55 = vpop.f32.mrf.mxu2  ;;  %v902_v46 = vadd.f32 %v901_v40, %v766_v24 }
 0x40d   :  { %v844_v39 = vadd.f32 %v843_v55, %v766_v24 }
 0x40e   :  { %v937_v48 = vmax.f32 %v11906_v47, 0.0  ;;  %v940_v58 = vmax.f32 %v11914_v54, 0.0 }
 0x410   :  { %v10979_v52 = vpack.i.bf16 %v938_v23, %v937_v48 }
 0x412   :  { %10980 = vrot.lane.b32.xlu2 %v10979_v52, %s11202_s19 }
 0x413   :  { %v862_v56 = vpop.f32.mrf.mxu3  ;;  %v923_v14 = vpop.f32.mrf.mxu1 }
 0x414   :  { %v11917_v57 = vadd.f32 %v862_v56, %v834_v53  ;;  %v11925_v62 = vadd.f32 %v923_v14, %v895_v44 }
 0x416   :  { %v939_v59 = vmax.f32 %v11917_v57, 0.0  ;;  %v942_v5 = vmax.f32 %v11925_v62, 0.0 }
 0x418   :  { %v10984_v61 = vpack.i.bf16 %v940_v58, %v939_v59 }
 0x41a   :  { %10985 = vrot.lane.b32.xlu0 %v10984_v61, %s11202_s19 }
 0x41b   :  { %v865_v2 = vpop.f32.mrf.mxu3  ;;  %v925_v3 = vpop.f32.mrf.mxu1 }
 0x41c   :  { %v11928_v4 = vadd.f32 %v865_v2, %v837_v0  ;;  %v11936_v12 = vadd.f32 %v925_v3, %v897_v8 }
 0x41e   :  { %v941_v6 = vmax.f32 %v11928_v4, 0.0  ;;  %v944_v22 = vmax.f32 %v11936_v12, 0.0 }
 0x420   :  { %v10989_v9 = vpack.i.bf16 %v942_v5, %v941_v6 }
 0x422   :  { %10990 = vrot.lane.b32.xlu1 %v10989_v9, %s11202_s19 }
 0x423   :  { %v867_v17 = vpop.f32.mrf.mxu3  ;;  %v928_v21 = vpop.f32.mrf.mxu1 }
 0x424   :  { %v11939_v18 = vadd.f32 %v867_v17, %v839_v11  ;;  %v11947_v33 = vadd.f32 %v928_v21, %v900_v30 }
 0x426   :  { %v943_v26 = vmax.f32 %v11939_v18, 0.0  ;;  %v946_v43 = vmax.f32 %v11947_v33, 0.0 }
 0x428   :  { %v10994_v31 = vpack.i.bf16 %v944_v22, %v943_v26 }
 0x42a   :  { %10995 = vrot.lane.b32.xlu2 %v10994_v31, %s11202_s19 }
 0x42b   :  { %v870_v36 = vpop.f32.mrf.mxu3  ;;  %v930_v38 = vpop.f32.mrf.mxu1 }
 0x42c   :  { %v11950_v10 = vadd.f32 %v870_v36, %v842_v32  ;;  %v11958_v50 = vadd.f32 %v930_v38, %v902_v46 }
 0x42e   :  { %v945_v45 = vmax.f32 %v11950_v10, 0.0  ;;  %v948_v53 = vmax.f32 %v11958_v50, 0.0 }
 0x430   :  { %v10999_v49 = vpack.i.bf16 %v946_v43, %v945_v45 }
 0x432   :  { %11000 = vrot.lane.b32.xlu0 %v10999_v49, %s11202_s19 }
 0x433   :  { %v872_v51 = vpop.f32.mrf.mxu3 }
 0x434   :  { %v11961_v52 = vadd.f32 %v872_v51, %v844_v39 }
 0x436   :  { %v947_v56 = vmax.f32 %v11961_v52, 0.0 }
 0x438   :  { %v11004_v14 = vpack.i.bf16 %v948_v53, %v947_v56 }
 0x43a   :  { %11005 = vrot.lane.b32.xlu1 %v11004_v14, %s11202_s19 }
 0x46c   :  { %v10981_v28 = vpop.permute.xlu2 %10980 }
 0x46d   :  { %v10983_v37 = vunpack.i.h.bf16 %v10981_v28 }
 0x46f   :  { %v1027_v24 = vmax.f32 %v938_v23, %v10983_v37 }
 0x474   :  { %v10971_v60 = vpop.permute.xlu0 %10970 }
 0x475   :  { %v10973_v44 = vunpack.i.h.bf16 %v10971_v60  ;;  %v10972_v61 = vunpack.i.l.bf16 %v10971_v60 }
 0x477   :  { %v998_v63 = vsel %vm331_vm5, %v10972_v61, %v10973_v44  ;;  %v1023_v0 = vmax.f32 %v934_v29, %v10973_v44 }
 0x478   :  { %v1022_v1 = vmax.f32 %v933_v13, %v998_v63 }
 0x47a   :  { %v1038_v11 = vpack.c.bf16 %v1023_v0, %v1022_v1 }
 0x47c   :  { %v10976_v2 = vpop.permute.xlu1 %10975  ;;  %v1054_v20 = vunpack.c.l.b16 %v1038_v11  ;;  %v1098_v13 = vunpack.c.h.b16 %v1038_v11 }
 0x47d   :  { %v10978_v3 = vunpack.i.h.bf16 %v10976_v2  ;;  %v10977_v7 = vunpack.i.l.bf16 %v10976_v2 }
 0x47f   :  { %v1025_v8 = vmax.f32 %v936_v41, %v10978_v3  ;;  %v999_v9 = vsel %vm331_vm5, %v10977_v7, %v10978_v3  ;;  %v10982_v41 = vunpack.i.l.bf16 %v10981_v28 }
 0x480   :  { %v1024_v15 = vmax.f32 %v935_v42, %v999_v9 }
 0x481   :  { %v1000_v32 = vsel %vm331_vm5, %v10982_v41, %v10983_v37 }
 0x482   :  { %v1039_v17 = vpack.c.bf16 %v1025_v8, %v1024_v15  ;;  %v1026_v55 = vmax.f32 %v937_v48, %v1000_v32 }
 0x484   :  { %v1055_v21 = vunpack.c.l.b16 %v1039_v17  ;;  %v1099_v29 = vunpack.c.h.b16 %v1039_v17  ;;  %v1040_v46 = vpack.c.bf16 %v1027_v24, %v1026_v55  ;;  %v10996_v23 = vpop.permute.xlu2 %10995 }
 0x485   :  { %v10998_v39 = vunpack.i.h.bf16 %v10996_v23  ;;  %v10997_v51 = vunpack.i.l.bf16 %v10996_v23 }
 0x486   :  { %v11980_v25 = vpack.c.b16 %v1055_v21, %v1054_v20  ;;  %v1106_v30 = vpack.c.b16 %v1099_v29, %v1098_v13  ;;  %v1100_v48 = vunpack.c.h.b16 %v1040_v46 }
 0x487   :  { %v1003_v44 = vsel %vm331_vm5, %v10997_v51, %v10998_v39  ;;  %v1033_v0 = vmax.f32 %v944_v22, %v10998_v39 }
 0x488   :  { %1082 = vrot.lane.b32.xlu1 %v11980_v25, %s11203_s20  ;;  %1074 = vrot.lane.b32.xlu0 %v11980_v25, %s11200_s7  ;;  %v1032_v1 = vmax.f32 %v943_v26, %v1003_v44 }
 0x489   :  { %1066 = vrot.lane.b32.xlu2 %v11980_v25, %s11202_s19 }
 0x48a   :  { %v1043_v3 = vpack.c.bf16 %v1033_v0, %v1032_v1 }
 0x48c   :  { %v10986_v34 = vpop.permute.xlu0 %10985  ;;  %v1059_v62 = vunpack.c.l.b16 %v1043_v3 }
 0x48d   :  { %v10988_v42 = vunpack.i.h.bf16 %v10986_v34  ;;  %v10987_v27 = vunpack.i.l.bf16 %v10986_v34 }
 0x48f   :  { %v1001_v31 = vsel %vm331_vm5, %v10987_v27, %v10988_v42  ;;  %v1029_v36 = vmax.f32 %v940_v58, %v10988_v42  ;;  %v1056_v58 = vunpack.c.l.b16 %v1040_v46 }
 0x490   :  { %1122 = vrot.lane.b32.xlu1 %v1106_v30, %s11200_s7  ;;  %1110 = vrot.lane.b32.xlu0 %v1106_v30, %s11202_s19  ;;  %v1028_v40 = vmax.f32 %v939_v59, %v1001_v31 }
 0x491   :  { %1090 = vrot.lane.b32.xlu2 %v11980_v25, %s11201_s0 }
 0x492   :  { %v1041_v38 = vpack.c.bf16 %v1029_v36, %v1028_v40 }
 0x494   :  { %v1057_v54 = vunpack.c.l.b16 %v1041_v38  ;;  %v10991_v35 = vpop.permute.xlu1 %10990  ;;  %v1101_v47 = vunpack.c.h.b16 %v1041_v38 }
 0x495   :  { %v10993_v57 = vunpack.i.h.bf16 %v10991_v35  ;;  %v10992_v59 = vunpack.i.l.bf16 %v10991_v35 }
 0x496   :  { %v12006_v49 = vpack.c.b16 %v1057_v54, %v1056_v58  ;;  %v1107_v14 = vpack.c.b16 %v1101_v47, %v1100_v48 }
 0x497   :  { %v1002_v60 = vsel %vm331_vm5, %v10992_v59, %v10993_v57  ;;  %v1031_v61 = vmax.f32 %v942_v5, %v10993_v57 }
 0x498   :  { %1158 = vrot.lane.b32.xlu1 %v11980_v25, %s11205_s22  ;;  %1146 = vrot.lane.b32.xlu0 %v1106_v30, %s11201_s0  ;;  %v1030_v63 = vmax.f32 %v941_v6, %v1002_v60  ;;  %v1103_v6 = vunpack.c.h.b16 %v1043_v3 }
 0x499   :  { %1134 = vrot.lane.b32.xlu2 %v1106_v30, %s11203_s20 }
 0x49a   :  { %v1042_v2 = vpack.c.bf16 %v1031_v61, %v1030_v63 }
 0x49c   :  { %v1058_v7 = vunpack.c.l.b16 %v1042_v2  ;;  %v1102_v4 = vunpack.c.h.b16 %v1042_v2 }
 0x49e   :  { %v12031_v5 = vpack.c.b16 %v1059_v62, %v1058_v7  ;;  %v1108_v12 = vpack.c.b16 %v1103_v6, %v1102_v4 }
 0x4a0   :  { %1076 = vrot.lane.b32.xlu1 %v12006_v49, %s11200_s7  ;;  %1068 = vrot.lane.b32.xlu0 %v12006_v49, %s11202_s19 }
 0x4a1   :  { %1160 = vrot.lane.b32.xlu2 %v1106_v30, %s11205_s22 }
 0x4a4   :  { %v11001_v22 = vpop.permute.xlu0 %11000 }
 0x4a5   :  { %v11003_v9 = vunpack.i.h.bf16 %v11001_v22  ;;  %v11002_v11 = vunpack.i.l.bf16 %v11001_v22 }
 0x4a7   :  { %v1004_v17 = vsel %vm331_vm5, %v11002_v11, %v11003_v9  ;;  %v1035_v28 = vmax.f32 %v946_v43, %v11003_v9 }
 0x4a8   :  { %1112 = vrot.lane.b32.xlu1 %v1107_v14, %s11202_s19  ;;  %1092 = vrot.lane.b32.xlu0 %v12006_v49, %s11201_s0  ;;  %v1034_v29 = vmax.f32 %v945_v45, %v1004_v17 }
 0x4a9   :  { %1084 = vrot.lane.b32.xlu2 %v12006_v49, %s11203_s20 }
 0x4aa   :  { %v1044_v34 = vpack.c.bf16 %v1035_v28, %v1034_v29  ;;  %v1391_v28 = vld [vmem:[%s16093_s6] sm:$0xff] }
 0x4ac   :  { %v11006_v18 = vpop.permute.xlu1 %11005  ;;  %v1104_v10 = vunpack.c.h.b16 %v1044_v34 }
 0x4ad   :  { %v11008_v26 = vunpack.i.h.bf16 %v11006_v18  ;;  %v11007_v8 = vunpack.i.l.bf16 %v11006_v18 }
 0x4af   :  { %v1005_v15 = vsel %vm331_vm5, %v11007_v8, %v11008_v26  ;;  %v1037_v20 = vmax.f32 %v948_v53, %v11008_v26  ;;  %v1060_v53 = vunpack.c.l.b16 %v1044_v34  ;;  %v1394_v34 = vld [vmem:[%s16093_s6 + $0x18] sm:$0xff] }
 0x4b0   :  { %1148 = vrot.lane.b32.xlu1 %v1107_v14, %s11201_s0  ;;  %1136 = vrot.lane.b32.xlu0 %v1107_v14, %s11203_s20  ;;  %v1036_v21 = vmax.f32 %v947_v56, %v1005_v15 }
 0x4b1   :  { %1124 = vrot.lane.b32.xlu2 %v1107_v14, %s11200_s7 }
 0x4b2   :  { %v1045_v13 = vpack.c.bf16 %v1037_v20, %v1036_v21 }
 0x4b4   :  { %v1061_v50 = vunpack.c.l.b16 %v1045_v13  ;;  %v1105_v33 = vunpack.c.h.b16 %v1045_v13 }
 0x4b6   :  { %v12061_v37 = vpack.c.b16 %v1061_v50, %v1060_v53  ;;  %v1109_v43 = vpack.c.b16 %v1105_v33, %v1104_v10  ;;  %v1397_v50 = vld [vmem:[%s16093_s6 + $0x30] sm:$0xff]  ;;  %v1392_v53 = vld [vmem:[%s16093_s6 + $0x8] sm:$0xff] }
 0x4b7   :  { %v1400_v10 = vld [vmem:[%s16093_s6 + $0x48] sm:$0xff] }
 0x4b8   :  { %1164 = vrot.lane.b32.xlu1 %v1107_v14, %s11205_s22  ;;  %1162 = vrot.lane.b32.xlu0 %v12006_v49, %s11205_s22 }
 0x4b9   :  { %1078 = vrot.lane.b32.xlu2 %v12031_v5, %s11200_s7 }
 0x4c0   :  { %1070 = vrot.lane.b32.xlu1 %v12031_v5, %s11202_s19  ;;  %1086 = vrot.lane.b32.xlu0 %v12031_v5, %s11203_s20 }
 0x4c1   :  { %1114 = vrot.lane.b32.xlu2 %v1108_v12, %s11202_s19 }
 0x4c8   :  { %1094 = vrot.lane.b32.xlu1 %v12031_v5, %s11201_s0  ;;  %1126 = vrot.lane.b32.xlu0 %v1108_v12, %s11200_s7 }
 0x4c9   :  { %1150 = vrot.lane.b32.xlu2 %v1108_v12, %s11201_s0 }
 0x4d0   :  { %1138 = vrot.lane.b32.xlu1 %v1108_v12, %s11203_s20  ;;  %1168 = vrot.lane.b32.xlu0 %v1108_v12, %s11205_s22 }
 0x4d1   :  { %1166 = vrot.lane.b32.xlu2 %v12031_v5, %s11205_s22 }
 0x4d8   :  { %1088 = vrot.lane.b32.xlu1 %v12061_v37, %s11203_s20  ;;  %1080 = vrot.lane.b32.xlu0 %v12061_v37, %s11200_s7 }
 0x4d9   :  { %1072 = vrot.lane.b32.xlu2 %v12061_v37, %s11202_s19 }
 0x4e0   :  { %1128 = vrot.lane.b32.xlu1 %v1109_v43, %s11200_s7  ;;  %1116 = vrot.lane.b32.xlu0 %v1109_v43, %s11202_s19 }
 0x4e1   :  { %1096 = vrot.lane.b32.xlu2 %v12061_v37, %s11201_s0 }
 0x4e3   :  { %v12073_v45 = vpop.permute.xlu2 %1066 }
 0x4e8   :  { %1170 = vrot.lane.b32.xlu1 %v12061_v37, %s11205_s22  ;;  %1152 = vrot.lane.b32.xlu0 %v1109_v43, %s11201_s0 }
 0x4e9   :  { %1140 = vrot.lane.b32.xlu2 %v1109_v43, %s11203_s20 }
 0x4eb   :  { %v12079_v52 = vpop.permute.xlu2 %1090 }
 0x4f1   :  { %1172 = vrot.lane.b32.xlu2 %v1109_v43, %s11205_s22  ;;  %v1395_v43 = vld [vmem:[%s16093_s6 + $0x20] sm:$0xff] }
 0x4f3   :  { %v12082_v56 = vpop.permute.xlu2 %1134 }
 0x4fa   :  { %v12084_v41 = vpop.permute.xlu1 %1082  ;;  %v12086_v42 = vpop.permute.xlu0 %1074 }
 0x4fb   :  { %v12088_v27 = vpop.permute.xlu2 %1160  ;;  %v1142_v21 = vsel %vm343_vm8, %v12084_v41, %v12082_v56 }
 0x502   :  { %v1123_v30 = vpop.permute.xlu1 %1122  ;;  %v1111_v31 = vpop.permute.xlu0 %1110 }
 0x503   :  { %v12090_v32 = vpop.permute.xlu2 %1084  ;;  %1192 = vrot.lane.b32.xlu0 %v1123_v30, %s11205_s22  ;;  %1176 = vrot.lane.b32.xlu1 %v1111_v31, %s11205_s22  ;;  %v1130_v36 = vsel %vm338_vm7, %v12086_v42, %v1123_v30  ;;  %v1118_v55 = vsel %vm331_vm5, %v12073_v45, %v1111_v31  ;;  %v1393_v30 = vld [vmem:[%s16093_s6 + $0x10] sm:$0xff]  ;;  %v1403_v31 = vld [vmem:[%s16093_s6 + $0x60] sm:$0xff] }
 0x504   :  { %1190 = vrot.lane.b32.xlu2 %v1130_v36, %s11205_s22  ;;  %v1398_v36 = vld [vmem:[%s16093_s6 + $0x38] sm:$0xff] }
 0x50a   :  { %v12097_v40 = vpop.permute.xlu1 %1158  ;;  %v12099_v24 = vpop.permute.xlu0 %1146 }
 0x50b   :  { %v1125_v38 = vpop.permute.xlu2 %1124  ;;  %1174 = vrot.lane.b32.xlu0 %v1118_v55, %s11205_s22  ;;  %v1154_v13 = vsel %vm350_vm11, %v12079_v52, %v12099_v24  ;;  %v1406_v55 = vld [vmem:[%s16093_s6 + $0x78] sm:$0xff] }
 0x50c   :  { %1196 = vrot.lane.b32.xlu2 %v1125_v38, %s11205_s22 }
 0x512   :  { %v12105_v46 = vpop.permute.xlu1 %1076  ;;  %v12107_v54 = vpop.permute.xlu0 %1068 }
 0x513   :  { %v1131_v58 = vsel %vm338_vm7, %v12105_v46, %v1125_v38  ;;  %v12112_v35 = vpop.permute.xlu2 %1078  ;;  %v1401_v38 = vld [vmem:[%s16093_s6 + $0x50] sm:$0xff] }
 0x514   :  { %1194 = vrot.lane.b32.xlu1 %v1131_v58, %s11205_s22 }
 0x51a   :  { %v1113_v47 = vpop.permute.xlu1 %1112  ;;  %v12114_v23 = vpop.permute.xlu0 %1092 }
 0x51b   :  { %1180 = vrot.lane.b32.xlu0 %v1113_v47, %s11205_s22  ;;  %v1119_v48 = vsel %vm331_vm5, %v12107_v54, %v1113_v47  ;;  %v1115_v39 = vpop.permute.xlu2 %1114  ;;  %v1399_v47 = vld [vmem:[%s16093_s6 + $0x40] sm:$0xff] }
 0x51c   :  { %1178 = vrot.lane.b32.xlu2 %v1119_v48, %s11205_s22 }
 0x522   :  { %v1149_v57 = vpop.permute.xlu1 %1148  ;;  %v1137_v59 = vpop.permute.xlu0 %1136 }
 0x523   :  { %v1151_v60 = vpop.permute.xlu2 %1150  ;;  %v1143_v17 = vsel %vm343_vm8, %v12090_v32, %v1137_v59  ;;  %v1155_v20 = vsel %vm350_vm11, %v12114_v23, %v1149_v57 }
 0x524   :  { %1184 = vrot.lane.b32.xlu2 %v1115_v39, %s11205_s22 }
 0x52a   :  { %v12121_v51 = vpop.permute.xlu1 %1164  ;;  %v12123_v14 = vpop.permute.xlu0 %1162 }
 0x52b   :  { %v12134_v2 = vpop.permute.xlu2 %1166 }
 0x532   :  { %v12125_v44 = vpop.permute.xlu1 %1070  ;;  %v12127_v61 = vpop.permute.xlu0 %1086 }
 0x533   :  { %v1120_v63 = vsel %vm331_vm5, %v12125_v44, %v1115_v39  ;;  %v12142_v4 = vpop.permute.xlu2 %1072 }
 0x534   :  { %1182 = vrot.lane.b32.xlu1 %v1120_v63, %s11205_s22  ;;  %v1404_v63 = vld [vmem:[%s16093_s6 + $0x68] sm:$0xff] }
 0x53a   :  { %v12132_v0 = vpop.permute.xlu1 %1094  ;;  %v1127_v1 = vpop.permute.xlu0 %1126 }
 0x53b   :  { %v12149_v18 = vpop.permute.xlu2 %1096  ;;  %v1132_v29 = vsel %vm338_vm7, %v12112_v35, %v1127_v1  ;;  %v1156_v33 = vsel %vm350_vm11, %v12132_v0, %v1151_v60 }
 0x542   :  { %v1139_v3 = vpop.permute.xlu1 %1138  ;;  %v12136_v7 = vpop.permute.xlu0 %1168 }
 0x543   :  { %1216 = vrot.lane.b32.xlu0 %v1139_v3, %s11205_s22  ;;  %v1144_v62 = vsel %vm343_vm8, %v12127_v61, %v1139_v3  ;;  %v1141_v11 = vpop.permute.xlu2 %1140 }
 0x544   :  { %1214 = vrot.lane.b32.xlu2 %v1144_v62, %s11205_s22 }
 0x54a   :  { %v12144_v6 = vpop.permute.xlu1 %1088  ;;  %v12146_v12 = vpop.permute.xlu0 %1080 }
 0x54b   :  { %v1145_v15 = vsel %vm343_vm8, %v12144_v6, %v1141_v11  ;;  %v1173_v58 = vpop.permute.xlu2 %1172 }
 0x54c   :  { %1212 = vrot.lane.b32.xlu2 %v1137_v59, %s11205_s22 }
 0x552   :  { %v1129_v22 = vpop.permute.xlu1 %1128  ;;  %v1117_v26 = vpop.permute.xlu0 %1116 }
 0x553   :  { %1188 = vrot.lane.b32.xlu1 %v1117_v26, %s11205_s22  ;;  %v1133_v8 = vsel %vm338_vm7, %v12146_v12, %v1129_v22  ;;  %v1121_v9 = vsel %vm331_vm5, %v12142_v4, %v1117_v26 }
 0x554   :  { %1202 = vrot.lane.b32.xlu2 %v1133_v8, %s11205_s22  ;;  %1186 = vrot.lane.b32.xlu0 %v1121_v9, %s11205_s22 }
 0x55a   :  { %v1171_v39 = vpop.permute.xlu1 %1170 }
 0x55b   :  { %1220 = vrot.lane.b32.xlu1 %v1141_v11, %s11205_s22 }
 0x55c   :  { %1200 = vrot.lane.b32.xlu2 %v1127_v1, %s11205_s22  ;;  %1218 = vrot.lane.b32.xlu0 %v1145_v15, %s11205_s22 }
 0x55e   :  { %v12230_v48 = vpop.permute.xlu2 %1190 }
 0x563   :  { %1210 = vrot.lane.b32.xlu1 %v1143_v17, %s11205_s22 }
 0x564   :  { %1226 = vrot.lane.b32.xlu2 %v1155_v20, %s11205_s22  ;;  %1206 = vrot.lane.b32.xlu0 %v1142_v21, %s11205_s22 }
 0x566   :  { %v12243_v1 = vpop.permute.xlu2 %1196 }
 0x56b   :  { %1208 = vrot.lane.b32.xlu1 %v12082_v56, %s11205_s22  ;;  %v1153_v56 = vpop.permute.xlu0 %1152 }
 0x56c   :  { %1232 = vrot.lane.b32.xlu2 %v1151_v60, %s11205_s22  ;;  %1204 = vrot.lane.b32.xlu0 %v1129_v22, %s11205_s22  ;;  %v1402_v60 = vld [vmem:[%s16093_s6 + $0x58] sm:$0xff]  ;;  %v1405_v22 = vld [vmem:[%s16093_s6 + $0x70] sm:$0xff] }
 0x573   :  { %1198 = vrot.lane.b32.xlu1 %v1132_v29, %s11205_s22 }
 0x574   :  { %1409 = vperm.xlu2 %10966, %v1391_v28   ;;  %1222 = vrot.lane.b32.xlu0 %v1154_v13, %s11205_s22 }
 0x575   :  { %v12234_v59 = vpop.permute.xlu0 %1192  ;;  %v1177_v3 = vpop.permute.xlu1 %1176 }
 0x576   :  { %v1179_v26 = vpop.permute.xlu2 %1178 }
 0x57b   :  { %1224 = vrot.lane.b32.xlu1 %v12099_v24, %s11205_s22  ;;  %v1396_v24 = vld [vmem:[%s16093_s6 + $0x28] sm:$0xff] }
 0x57c   :  { %1424 = vperm.xlu2 %10966, %v1394_v34   ;;  %1228 = vrot.lane.b32.xlu0 %v1149_v57, %s11205_s22  ;;  %v1157_v57 = vsel %vm350_vm11, %v12149_v18, %v1153_v56 }
 0x57d   :  { %v1175_v62 = vpop.permute.xlu0 %1174 }
 0x57e   :  { %v1185_v17 = vpop.permute.xlu2 %1184 }
 0x583   :  { %1230 = vrot.lane.b32.xlu1 %v1156_v33, %s11205_s22 }
 0x584   :  { %1439 = vperm.xlu2 %10966, %v1397_v50   ;;  %1414 = vperm.xlu0 %10967, %v1392_v53  }
 0x586   :  { %v12248_v8 = vpop.permute.xlu1 %1194 }
 0x58b   :  { %1236 = vrot.lane.b32.xlu1 %v1153_v56, %s11205_s22 }
 0x58c   :  { %1454 = vperm.xlu2 %10966, %v1400_v10   ;;  %1429 = vperm.xlu0 %10967, %v1395_v43  }
 0x58d   :  { %v1181_v9 = vpop.permute.xlu0 %1180 }
 0x58e   :  { %v1243_v53 = vsel %vm355_vm14, %v1179_v26, %v1181_v9 }
 0x593   :  { %1419 = vperm.xlu1 %10968, %v1393_v30   ;;  %v1242_v30 = vsel %vm355_vm14, %v1175_v62, %v1177_v3 }
 0x594   :  { %1469 = vperm.xlu2 %10966, %v1403_v31   ;;  %1444 = vperm.xlu0 %10967, %v1398_v36   ;;  %v1297_v36 = vsel %vm1278_vm6, %v12073_v45, %v1242_v30  ;;  %v9137_v30 = vld [vmem:[%s16092_s5 + $0x48] sm:$0xf] }
 0x59b   :  { %1434 = vperm.xlu1 %10968, %v1396_v24   ;;  %v1241_v24 = vsel %vm355_vm14, %v1171_v39, %v1173_v58 }
 0x59c   :  { %1484 = vperm.xlu2 %10966, %v1406_v55   ;;  %1459 = vperm.xlu0 %10967, %v1401_v38   ;;  %v1293_v45 = vsel %vm1278_vm6, %v12061_v37, %v1241_v24  ;;  %v9127_v24 = vld [vmem:[%s16092_s5 + $0x3c] sm:$0xf0] }
 0x59e   :  { %v1215_v28 = vpop.permute.xlu2 %1214 }
 0x5a3   :  { %1449 = vperm.xlu1 %10968, %v1399_v47  }
 0x5a4   :  { %1234 = vrot.lane.b32.xlu0 %v1157_v57, %s11205_s22  ;;  %v1240_v57 = vsel %vm355_vm14, %v12134_v2, %v12136_v7 }
 0x5a5   :  { %v1289_v39 = vsel %vm1278_vm6, %v12031_v5, %v1240_v57  ;;  %v10569_v5 = vld [vmem:[%s16092_s5 + $0x8] sm:$0xf0] }
 0x5a6   :  { %v1183_v11 = vpop.permute.xlu1 %1182 }
 0x5a7   :  { %v1244_v34 = vsel %vm355_vm14, %v1183_v11, %v1185_v17 }
 0x5a8   :  { %v1305_v50 = vsel %vm1278_vm6, %v12125_v44, %v1244_v34  ;;  %v12268_v44 = vpop.permute.xlu2 %1212 }
 0x5ab   :  { %1464 = vperm.xlu1 %10968, %v1402_v60  }
 0x5ac   :  { %1474 = vperm.xlu0 %10967, %v1404_v63  }
 0x5b3   :  { %1479 = vperm.xlu1 %10968, %v1405_v22  }
 0x5b5   :  { %v12250_v15 = vpop.permute.xlu0 %1216 }
 0x5b6   :  { %v1252_v31 = vsel %vm355_vm14, %v1215_v28, %v12250_v15 }
 0x5c5   :  { %v1189_v20 = vpop.permute.xlu1 %1188 }
 0x5c6   :  { %1779 = vmatpush.bf16.msrb.mxu1 %v1189_v20  ;;  %v1187_v21 = vpop.permute.xlu0 %1186 }
 0x5c7   :  { %v1245_v29 = vsel %vm355_vm14, %v1187_v21, %v1189_v20  ;;  %v1246_v21 = vsel %vm355_vm14, %v12230_v48, %v12234_v59  ;;  %v9125_v48 = vld [vmem:[%s16092_s5 + $0x30] sm:$0xf] }
 0x5c8   :  { %v1309_v13 = vsel %vm1278_vm6, %v12142_v4, %v1245_v29  ;;  %v1301_v4 = vsel %vm1278_vm6, %v12107_v54, %v1243_v53  ;;  %v10575_v29 = vld [vmem:[%s16092_s5 + $0x38] sm:$0xf0] }
 0x5c9   :  { %1632 = vmatpush.bf16.msra.mxu0 %v1309_v13  ;;  %10928 = vmatpush.bf16.msrb.mxu3 %v1309_v13  ;;  %v9126_v13 = vor.u32 %v10575_v29, %v9125_v48  ;;  %v9145_v29 = vld [vmem:[%s16092_s5 + $0x50] sm:$0xf] }
 0x5ca   :  { %1780 = vmatpush.bf16.msrb.mxu1 %v1185_v17 }
 0x5cd   :  { %v12259_v33 = vpop.permute.xlu1 %1220  ;;  %1633 = vmatpush.bf16.msra.mxu0 %v1305_v50  ;;  %10929 = vmatpush.bf16.msrb.mxu3 %v1305_v50 }
 0x5ce   :  { %v1219_v10 = vpop.permute.xlu0 %1218  ;;  %1781 = vmatpush.bf16.msrb.mxu1 %v1181_v9 }
 0x5cf   :  { %v1253_v43 = vsel %vm355_vm14, %v1219_v10, %v12259_v33  ;;  %v9115_v10 = vld [vmem:[%s16092_s5 + $0x24] sm:$0xf0] }
 0x5d0   :  { %v1341_v56 = vsel %vm1278_vm6, %v12144_v6, %v1253_v43  ;;  %v1337_v6 = vsel %vm1278_vm6, %v12127_v61, %v1252_v31  ;;  %v1203_v61 = vpop.permute.xlu2 %1202 }
 0x5d1   :  { %1634 = vmatpush.bf16.msra.mxu0 %v1301_v4  ;;  %10930 = vmatpush.bf16.msrb.mxu3 %v1301_v4 }
 0x5d2   :  { %1681 = vmatpush.bf16.msrb.mxu2 %v1341_v56  ;;  %1782 = vmatpush.bf16.msrb.mxu1 %v1177_v3  ;;  %v10572_v3 = vld [vmem:[%s16092_s5 + $0x20] sm:$0xf0] }
 0x5d5   :  { %v1211_v54 = vpop.permute.xlu1 %1210  ;;  %1635 = vmatpush.bf16.msra.mxu0 %v1297_v36  ;;  %10931 = vmatpush.bf16.msrb.mxu3 %v1297_v36  ;;  %v10574_v36 = vld [vmem:[%s16092_s5 + $0x34] sm:$0xf] }
 0x5d6   :  { %v1251_v55 = vsel %vm355_vm14, %v1211_v54, %v12268_v44  ;;  %1682 = vmatpush.bf16.msrb.mxu2 %v1337_v6  ;;  %v1207_v38 = vpop.permute.xlu0 %1206  ;;  %1783 = vmatpush.bf16.msrb.mxu1 %v1173_v58  ;;  %v12386_v54 = vor.u32 %v10574_v36, %v9127_v24  ;;  %v9149_v6 = vld [vmem:[%s16092_s5 + $0x60] sm:$0xf] }
 0x5d7   :  { %v1333_v47 = vsel %vm1278_vm6, %v12090_v32, %v1251_v55  ;;  %v1239_v32 = vsel %vm355_vm14, %v12123_v14, %v12121_v51  ;;  %v10581_v55 = vld [vmem:[%s16092_s5 + $0x68] sm:$0xf0] }
 0x5d8   :  { %v1285_v14 = vsel %vm1278_vm6, %v12006_v49, %v1239_v32  ;;  %v1201_v26 = vpop.permute.xlu2 %1200 }
 0x5d9   :  { %1636 = vmatpush.bf16.msra.mxu0 %v1293_v45  ;;  %10932 = vmatpush.bf16.msrb.mxu3 %v1293_v45 }
 0x5da   :  { %1683 = vmatpush.bf16.msrb.mxu2 %v1333_v47  ;;  %1784 = vmatpush.bf16.msrb.mxu1 %v12136_v7  ;;  %v9101_v7 = vld [vmem:[%s16092_s5] sm:$0xf] }
 0x5db   :  { %v9102_v62 = vor.u32 %v10569_v5, %v9101_v7  ;;  %v10584_v7 = vld [vmem:[%s16092_s5 + $0x80] sm:$0xf0]  ;;  %v9109_v5 = vld [vmem:[%s16092_s5 + $0x8] sm:$0xf] }
 0x5dd   :  { %v1209_v58 = vpop.permute.xlu1 %1208  ;;  %1637 = vmatpush.bf16.msra.mxu0 %v1289_v39  ;;  %10933 = vmatpush.bf16.msrb.mxu3 %v1289_v39 }
 0x5de   :  { %v1205_v37 = vpop.permute.xlu0 %1204  ;;  %1785 = vmatpush.bf16.msrb.mxu1 %v12121_v51  ;;  %v1250_v2 = vsel %vm355_vm14, %v1207_v38, %v1209_v58  ;;  %v1238_v51 = vsel %vm355_vm14, %v12097_v40, %v12088_v27  ;;  %v9150_v38 = vor.u32 %v10581_v55, %v9149_v6 }
 0x5df   :  { %v1329_v60 = vsel %vm1278_vm6, %v12084_v41, %v1250_v2  ;;  %v1249_v63 = vsel %vm355_vm14, %v1203_v61, %v1205_v37  ;;  %v9113_v41 = vld [vmem:[%s16092_s5 + $0x18] sm:$0xf]  ;;  %v1281_v40 = vsel %vm1278_vm6, %v11980_v25, %v1238_v51  ;;  %v1247_v25 = vsel %vm355_vm14, %v12248_v8, %v12243_v1  ;;  %v9103_v8 = vld [vmem:[%s16092_s5 + $0xc] sm:$0xf0] }
 0x5e0   :  { %1684 = vmatpush.bf16.msrb.mxu2 %v1329_v60  ;;  %v1325_v49 = vsel %vm1278_vm6, %v12146_v12, %v1249_v63  ;;  %v9114_v22 = vor.u32 %v10572_v3, %v9113_v41  ;;  %v1317_v12 = vsel %vm1278_vm6, %v12105_v46, %v1247_v25  ;;  %v1313_v46 = vsel %vm1278_vm6, %v12086_v42, %v1246_v21  ;;  %v1227_v42 = vpop.permute.xlu2 %1226  ;;  %v10580_v41 = vld [vmem:[%s16092_s5 + $0x64] sm:$0xf]  ;;  %v9151_v3 = vld [vmem:[%s16092_s5 + $0x6c] sm:$0xf0]  ;;  %v9185_v25 = vld [vmem:[%s16092_s5 + $0xa8] sm:$0xf] }
 0x5e1   :  { %1638 = vmatpush.bf16.msra.mxu0 %v1285_v14  ;;  %10934 = vmatpush.bf16.msrb.mxu3 %v1285_v14  ;;  %v10576_v21 = vld [vmem:[%s16092_s5 + $0x40] sm:$0xf0] }
 0x5e2   :  { %1786 = vmatpush.bf16.msrb.mxu1 %v12088_v27 }
 0x5e4   :  { %1685 = vmatpush.bf16.msrb.mxu2 %v1325_v49  ;;  %v10587_v49 = vld [vmem:[%s16092_s5 + $0x98] sm:$0xf0] }
 0x5e5   :  { %v1199_v9 = vpop.permute.xlu1 %1198  ;;  %1639 = vmatpush.bf16.msra.mxu0 %v1281_v40  ;;  %10935 = vmatpush.bf16.msrb.mxu3 %v1281_v40  ;;  %v9121_v40 = vld [vmem:[%s16092_s5 + $0x20] sm:$0xf] }
 0x5e6   :  { %v1248_v11 = vsel %vm355_vm14, %v1199_v9, %v1201_v26  ;;  %1787 = vmatmul.bf16.vlgmr.msrb.gmra.mxu1 %v9102_v62  ;;  %v12320_v17 = vpop.permute.xlu0 %1222 }
 0x5e7   :  { %v1321_v27 = vsel %vm1278_vm6, %v12112_v35, %v1248_v11  ;;  %v10568_v35 = vld [vmem:[%s16092_s5 + $0x4] sm:$0xf]  ;;  %v10583_v11 = vld [vmem:[%s16092_s5 + $0x7c] sm:$0xf] }
 0x5e8   :  { %1640 = vmatmul.bf16.vlgmr.msra.gmra.mxu0 %v9102_v62  ;;  %1645 = vmatmul.bf16.vlgmr.msrb.gmra.mxu3 %v9114_v22  ;;  %v1233_v56 = vpop.permute.xlu2 %1232  ;;  %v12437_v62 = vor.u32 %v10580_v41, %v9151_v3 }
 0x5e9   :  { %1828 = vmatpush.bf16.msra.mxu3 %v12259_v33  ;;  %1686 = vmatpush.bf16.msrb.mxu2 %v1321_v27  ;;  %v10571_v33 = vld [vmem:[%s16092_s5 + $0x1c] sm:$0xf] }
 0x5ea   :  { %v12365_v4 = vor.u32 %v10571_v33, %v9115_v10  ;;  %v9157_v10 = vld [vmem:[%s16092_s5 + $0x68] sm:$0xf] }
 0x5ed   :  { %1829 = vmatpush.bf16.msra.mxu3 %v12250_v15  ;;  %1687 = vmatpush.bf16.msrb.mxu2 %v1317_v12  ;;  %v12331_v20 = vpop.permute.xlu1 %1224  ;;  %v12345_v15 = vor.u32 %v10568_v35, %v9103_v8  ;;  %v10590_v12 = vld [vmem:[%s16092_s5 + $0xb0] sm:$0xf0] }
 0x5ee   :  { %v1229_v28 = vpop.permute.xlu0 %1228  ;;  %v1254_v60 = vsel %vm355_vm14, %v12320_v17, %v12331_v20  ;;  %v9163_v17 = vld [vmem:[%s16092_s5 + $0x84] sm:$0xf0]  ;;  %v9186_v35 = vor.u32 %v10590_v12, %v9185_v25 }
 0x5ef   :  { %v1255_v32 = vsel %vm355_vm14, %v1227_v42, %v1229_v28  ;;  %v1345_v14 = vsel %vm1278_vm6, %v12079_v52, %v1254_v60  ;;  %v9173_v52 = vld [vmem:[%s16092_s5 + $0x90] sm:$0xf]  ;;  %v12459_v27 = vor.u32 %v10583_v11, %v9163_v17  ;;  %v10589_v42 = vld [vmem:[%s16092_s5 + $0xac] sm:$0xf] }
 0x5f1   :  { %1830 = vmatpush.bf16.msra.mxu3 %v12268_v44  ;;  %1688 = vmatpush.bf16.msrb.mxu2 %v1313_v46  ;;  %v10578_v44 = vld [vmem:[%s16092_s5 + $0x50] sm:$0xf0]  ;;  %v9175_v46 = vld [vmem:[%s16092_s5 + $0x9c] sm:$0xf0] }
 0x5f2   :  { %v9138_v31 = vor.u32 %v10578_v44, %v9137_v30  ;;  %v9169_v44 = vld [vmem:[%s16092_s5 + $0x80] sm:$0xf] }
 0x5f4   :  { %1689 = vmatmul.bf16.vlgmr.msrb.gmra.mxu2 %v12345_v15 }
 0x5f5   :  { %1831 = vmatpush.bf16.msra.mxu3 %v1209_v58  ;;  %v1231_v34 = vpop.permute.xlu1 %1230  ;;  %v10577_v58 = vld [vmem:[%s16092_s5 + $0x4c] sm:$0xf] }
 0x5f6   :  { %1792 = vmatmul.bf16.gmra.mxu1 %v9114_v22  ;;  %v12354_v50 = vpop.permute.xlu0 %1414  ;;  %v1256_v61 = vsel %vm355_vm14, %v1231_v34, %v1233_v56  ;;  %v10573_v22 = vld [vmem:[%s16092_s5 + $0x28] sm:$0xf0] }
 0x5f7   :  { %v1353_v39 = vsel %vm1278_vm6, %v12132_v0, %v1256_v61  ;;  %v9161_v0 = vld [vmem:[%s16092_s5 + $0x78] sm:$0xf]  ;;  %v9122_v9 = vor.u32 %v10573_v22, %v9121_v40 }
 0x5f8   :  { %1650 = vmatmul.bf16.gmra.mxu3 %v9126_v13  ;;  %v9162_v63 = vor.u32 %v10584_v7, %v9161_v0 }
 0x5f9   :  { %1832 = vmatpush.bf16.msra.mxu3 %v1205_v37  ;;  %v9139_v37 = vld [vmem:[%s16092_s5 + $0x54] sm:$0xf0] }
 0x5fa   :  { %v12410_v2 = vor.u32 %v10577_v58, %v9139_v37 }
 0x5fd   :  { %1833 = vmatpush.bf16.msra.mxu3 %v1201_v26  ;;  %v1237_v53 = vpop.permute.xlu1 %1236  ;;  %v9174_v26 = vor.u32 %v10587_v49, %v9173_v52 }
 0x5fe   :  { %v12362_v43 = vpop.permute.xlu0 %1429  ;;  %1881 = vmatpush.bf16.msra.mxu2 %v1237_v53 }
 0x601   :  { %1834 = vmatpush.bf16.msra.mxu3 %v12243_v1 }
 0x602   :  { %1882 = vmatpush.bf16.msra.mxu2 %v1233_v56  ;;  %v10582_v56 = vld [vmem:[%s16092_s5 + $0x70] sm:$0xf0] }
 0x604   :  { %1694 = vmatmul.bf16.gmra.mxu2 %v12365_v4 }
 0x605   :  { %1835 = vmatpush.bf16.msra.mxu3 %v12234_v59 }
 0x606   :  { %1797 = vmatmul.bf16.gmra.mxu1 %v9126_v13  ;;  %v12375_v1 = vpop.permute.xlu0 %1444  ;;  %1883 = vmatpush.bf16.msra.mxu2 %v1229_v28  ;;  %v10586_v28 = vld [vmem:[%s16092_s5 + $0x94] sm:$0xf]  ;;  %v10579_v13 = vld [vmem:[%s16092_s5 + $0x58] sm:$0xf0] }
 0x607   :  { %v12481_v48 = vor.u32 %v10586_v28, %v9175_v46  ;;  %v9146_v34 = vor.u32 %v10579_v13, %v9145_v29 }
 0x608   :  { %1655 = vmatmul.bf16.gmra.mxu3 %v9138_v31 }
 0x60a   :  { %1884 = vmatpush.bf16.msra.mxu2 %v12331_v20  ;;  %v9133_v20 = vld [vmem:[%s16092_s5 + $0x38] sm:$0xf] }
 0x60b   :  { %v9134_v8 = vor.u32 %v10576_v21, %v9133_v20 }
 0x60e   :  { %v12384_v59 = vpop.permute.xlu0 %1459 }
 0x614   :  { %1699 = vmatmul.bf16.gmra.mxu2 %v12386_v54 }
 0x616   :  { %1802 = vmatmul.bf16.gmra.mxu1 %v9138_v31  ;;  %v1235_v47 = vpop.permute.xlu0 %1234  ;;  %v10585_v31 = vld [vmem:[%s16092_s5 + $0x88] sm:$0xf0] }
 0x617   :  { %v1257_v45 = vsel %vm355_vm14, %v1235_v47, %v1237_v53  ;;  %v9187_v53 = vld [vmem:[%s16092_s5 + $0xb4] sm:$0xf0]  ;;  %v12516_v24 = vor.u32 %v10585_v31, %v9169_v44  ;;  %v10588_v47 = vld [vmem:[%s16092_s5 + $0xa0] sm:$0xf0] }
 0x618   :  { %1660 = vmatmul.bf16.gmra.mxu3 %v9150_v38  ;;  %v1357_v57 = vsel %vm1278_vm6, %v12149_v18, %v1257_v45  ;;  %v1349_v18 = vsel %vm1278_vm6, %v12114_v23, %v1255_v32  ;;  %v10570_v23 = vld [vmem:[%s16092_s5 + $0x10] sm:$0xf0]  ;;  %v12498_v33 = vor.u32 %v10589_v42, %v9187_v53  ;;  %v12531_v45 = vpop.permute.xlu2 %1409 }
 0x619   :  { %1734 = vmatpush.bf16.msrb.mxu0 %v1357_v57  ;;  %v9110_v51 = vor.u32 %v10570_v23, %v9109_v5  ;;  %v9193_v5 = vld [vmem:[%s16092_s5 + $0xb0] sm:$0xf]  ;;  %v10591_v23 = vld [vmem:[%s16092_s5 + $0xb8] sm:$0xf0] }
 0x61d   :  { %1735 = vmatpush.bf16.msrb.mxu0 %v1353_v39  ;;  %v12536_v39 = vpop.permute.xlu1 %1419 }
 0x621   :  { %1736 = vmatpush.bf16.msrb.mxu0 %v1349_v18  ;;  %v12544_v18 = vpop.permute.xlu2 %1424 }
 0x624   :  { %1704 = vmatmul.bf16.gmra.mxu2 %v12410_v2 }
 0x625   :  { %1737 = vmatpush.bf16.msrb.mxu0 %v1345_v14  ;;  %v12564_v52 = vpop.permute.xlu1 %1434 }
 0x626   :  { %1807 = vmatmul.bf16.gmra.mxu1 %v9150_v38  ;;  %v9181_v38 = vld [vmem:[%s16092_s5 + $0x98] sm:$0xf] }
 0x627   :  { %v12534_v61 = vor.u32 %v10588_v47, %v9181_v38 }
 0x628   :  { %1665 = vmatmul.bf16.gmra.mxu3 %v9162_v63  ;;  %9195 = vmatmul.msk.bf16.vlgmr.msrb.gmra.mxu0 %vm1607_vm9, %v9110_v51 }
 0x634   :  { %1709 = vmatmul.bf16.gmra.mxu2 %v12437_v62 }
 0x636   :  { %1812 = vmatmul.bf16.gmra.mxu1 %v9162_v63 }
 0x638   :  { %1670 = vmatmul.bf16.gmra.mxu3 %v9174_v26  ;;  %9196 = vmatmul.msk.bf16.gmra.mxu0 %vm1607_vm9, %v9122_v9 }
 0x644   :  { %1714 = vmatmul.bf16.gmra.mxu2 %v12459_v27 }
 0x646   :  { %1817 = vmatmul.bf16.gmra.mxu1 %v9174_v26 }
 0x648   :  { %1675 = vmatmul.bf16.gmra.mxu3 %v9186_v35  ;;  %9197 = vmatmul.msk.bf16.gmra.mxu0 %vm1607_vm9, %v9134_v8 }
 0x654   :  { %1719 = vmatmul.bf16.gmra.mxu2 %v12481_v48 }
 0x656   :  { %1822 = vmatmul.bf16.gmra.mxu1 %v9186_v35 }
 0x658   :  { %9198 = vmatmul.msk.bf16.gmra.mxu0 %vm1607_vm9, %v9146_v34  ;;  %1836 = vmatmul.bf16.vlgmr.msra.gmra.mxu3 %v12345_v15  ;;  %v9158_v15 = vor.u32 %v10582_v56, %v9157_v10 }
 0x664   :  { %1724 = vmatmul.bf16.gmra.mxu2 %v12498_v33 }
 0x665   :  { %v1641_v10 = vpop.f32.mrf.mxu0 }
 0x668   :  { %9199 = vmatmul.msk.bf16.gmra.mxu0 %vm1607_vm9, %v9158_v15  ;;  %1841 = vmatmul.bf16.gmra.mxu3 %v12365_v4 }
 0x66b   :  { %v1646_v30 = vpop.f32.mrf.mxu3 }
 0x66d   :  { %v1643_v31 = vpop.f32.mrf.mxu0 }
 0x673   :  { %v1648_v36 = vpop.f32.mrf.mxu3 }
 0x674   :  { %9203 = vmatmul.msk.bf16.vlgmr.msra.gmra.mxu2 %vm1607_vm9, %v9110_v51  ;;  %v1649_v0 = vadd.f32 %v1648_v36, %v12544_v18 }
 0x677   :  { %v12518_v6 = vpop.f32.mrf.mxu2 }
 0x678   :  { %9200 = vmatmul.msk.bf16.gmra.mxu0 %vm1607_vm9, %v12516_v24  ;;  %1846 = vmatmul.bf16.gmra.mxu3 %v12386_v54  ;;  %v1647_v54 = vadd.f32 %v1646_v30, %v12536_v39 }
 0x67b   :  { %v1651_v4 = vpop.f32.mrf.mxu3 }
 0x67c   :  { %v1652_v63 = vadd.f32 %v1651_v4, %v12362_v43 }
 0x67f   :  { %v12523_v55 = vpop.f32.mrf.mxu2 }
 0x683   :  { %v1653_v57 = vpop.f32.mrf.mxu3 }
 0x684   :  { %9204 = vmatmul.msk.bf16.gmra.mxu2 %vm1607_vm9, %v9122_v9  ;;  %v1654_v49 = vadd.f32 %v1653_v57, %v12564_v52  ;;  %v12570_v9 = vpop.permute.xlu2 %1439  ;;  %v1788_v57 = vpop.f32.mrf.mxu1 }
 0x687   :  { %v1695_v32 = vpop.f32.mrf.mxu2 }
 0x688   :  { %v12539_v58 = vadd.f32 %v1695_v32, %v1647_v54  ;;  %9201 = vmatmul.msk.bf16.gmra.mxu0 %vm1607_vm9, %v12534_v61  ;;  %1851 = vmatmul.bf16.gmra.mxu3 %v12410_v2  ;;  %v12556_v2 = vor.u32 %v10591_v23, %v9193_v5  ;;  %v12609_v5 = vpop.permute.xlu0 %1474 }
 0x68b   :  { %v1656_v37 = vpop.f32.mrf.mxu3 }
 0x68c   :  { %v1657_v11 = vadd.f32 %v1656_v37, %v12570_v9  ;;  %v1790_v23 = vpop.f32.mrf.mxu1 }
 0x68f   :  { %v1697_v60 = vpop.f32.mrf.mxu2 }
 0x690   :  { %v12547_v7 = vadd.f32 %v1697_v60, %v1649_v0 }
 0x693   :  { %v1658_v14 = vpop.f32.mrf.mxu3 }
 0x694   :  { %9205 = vmatmul.msk.bf16.gmra.mxu2 %vm1607_vm9, %v9134_v8  ;;  %v1659_v12 = vadd.f32 %v1658_v14, %v12375_v1  ;;  %v12580_v8 = vpop.permute.xlu1 %1449 }
 0x697   :  { %v1700_v51 = vpop.f32.mrf.mxu2 }
 0x698   :  { %v12559_v41 = vadd.f32 %v1700_v51, %v1652_v63  ;;  %9202 = vmatmul.msk.bf16.gmra.mxu0 %vm1607_vm9, %v12556_v2  ;;  %1856 = vmatmul.bf16.gmra.mxu3 %v12437_v62 }
 0x69b   :  { %v1661_v3 = vpop.f32.mrf.mxu3 }
 0x69c   :  { %v1662_v28 = vadd.f32 %v1661_v3, %v12580_v8  ;;  %v12597_v36 = vpop.permute.xlu1 %1464 }
 0x69f   :  { %v1702_v40 = vpop.f32.mrf.mxu2 }
 0x6a0   :  { %v12567_v22 = vadd.f32 %v1702_v40, %v1654_v49 }
 0x6a3   :  { %v1663_v26 = vpop.f32.mrf.mxu3 }
 0x6a4   :  { %9206 = vmatmul.msk.bf16.gmra.mxu2 %vm1607_vm9, %v9146_v34 }
 0x6a5   :  { %v1739_v32 = vpop.f32.mrf.mxu0 }
 0x6a7   :  { %v1705_v17 = vpop.f32.mrf.mxu2 }
 0x6a8   :  { %v12573_v25 = vadd.f32 %v1705_v17, %v1657_v11  ;;  %1861 = vmatmul.bf16.gmra.mxu3 %v12459_v27  ;;  %v12586_v27 = vpop.permute.xlu2 %1454 }
 0x6a9   :  { %v1664_v34 = vadd.f32 %v1663_v26, %v12586_v27  ;;  %v1793_v26 = vpop.f32.mrf.mxu1 }
 0x6ab   :  { %v1666_v62 = vpop.f32.mrf.mxu3 }
 0x6ad   :  { %v1741_v14 = vpop.f32.mrf.mxu0 }
 0x6af   :  { %v1707_v20 = vpop.f32.mrf.mxu2 }
 0x6b0   :  { %v12577_v21 = vadd.f32 %v1707_v20, %v1659_v12 }
 0x6b3   :  { %v1668_v35 = vpop.f32.mrf.mxu3 }
 0x6b4   :  { %9207 = vmatmul.msk.bf16.gmra.mxu2 %vm1607_vm9, %v9158_v15  ;;  %v1667_v15 = vadd.f32 %v1666_v62, %v12384_v59  ;;  %v1669_v4 = vadd.f32 %v1668_v35, %v12597_v36 }
 0x6b5   :  { %v1744_v17 = vpop.f32.mrf.mxu0 }
 0x6b7   :  { %v1710_v46 = vpop.f32.mrf.mxu2 }
 0x6b8   :  { %v12583_v29 = vadd.f32 %v1710_v46, %v1662_v28  ;;  %1866 = vmatmul.bf16.gmra.mxu3 %v12481_v48 }
 0x6bb   :  { %v1671_v13 = vpop.f32.mrf.mxu3 }
 0x6bf   :  { %v1712_v42 = vpop.f32.mrf.mxu2 }
 0x6c0   :  { %v12589_v53 = vadd.f32 %v1712_v42, %v1664_v34  ;;  %v1746_v34 = vpop.f32.mrf.mxu0  ;;  %v1789_v42 = vadd.f32 %v1788_v57, %v12531_v45 }
 0x6c3   :  { %v1673_v56 = vpop.f32.mrf.mxu3 }
 0x6c4   :  { %9208 = vmatmul.msk.bf16.gmra.mxu2 %vm1607_vm9, %v12516_v24  ;;  %v12604_v24 = vpop.permute.xlu2 %1469  ;;  %v1674_v63 = vadd.f32 %v1673_v56, %v12609_v5 }
 0x6c5   :  { %v1672_v37 = vadd.f32 %v1671_v13, %v12604_v24  ;;  %v1795_v13 = vpop.f32.mrf.mxu1 }
 0x6c7   :  { %v1715_v30 = vpop.f32.mrf.mxu2 }
 0x6c8   :  { %v12594_v44 = vadd.f32 %v1715_v30, %v1667_v15  ;;  %1871 = vmatmul.bf16.gmra.mxu3 %v12498_v33  ;;  %v1642_v15 = vadd.f32 %v1641_v10, %v12531_v45 }
 0x6cb   :  { %v1676_v48 = vpop.f32.mrf.mxu3 }
 0x6cc   :  { %v12621_v20 = vpop.permute.xlu2 %1484 }
 0x6cf   :  { %v1717_v38 = vpop.f32.mrf.mxu2 }
 0x6d0   :  { %v12600_v47 = vadd.f32 %v1717_v38, %v1669_v4  ;;  %v1691_v4 = vadd.f32 %v12518_v6, %v1642_v15 }
 0x6d3   :  { %v1678_v54 = vpop.f32.mrf.mxu3 }
 0x6d4   :  { %9209 = vmatmul.msk.bf16.gmra.mxu2 %vm1607_vm9, %v12534_v61  ;;  %v12616_v61 = vpop.permute.xlu1 %1479  ;;  %v1679_v35 = vadd.f32 %v1678_v54, %v12621_v20  ;;  %v1791_v54 = vadd.f32 %v1790_v23, %v12354_v50 }
 0x6d5   :  { %v1677_v40 = vadd.f32 %v1676_v48, %v12616_v61  ;;  %v1644_v48 = vadd.f32 %v1643_v31, %v12354_v50 }
 0x6d7   :  { %v1720_v33 = vpop.f32.mrf.mxu2 }
 0x6d8   :  { %v12607_v0 = vadd.f32 %v1720_v33, %v1672_v37  ;;  %v1798_v37 = vpop.f32.mrf.mxu1  ;;  %v1693_v33 = vadd.f32 %v12523_v55, %v1644_v48 }
 0x6db   :  { %v1837_v60 = vpop.f32.mrf.mxu3 }
 0x6dc   :  { %v1838_v30 = vadd.f32 %v1837_v60, %v1789_v42 }
 0x6df   :  { %v1722_v51 = vpop.f32.mrf.mxu2 }
 0x6e0   :  { %v12612_v3 = vadd.f32 %v1722_v51, %v1674_v63  ;;  %v1740_v63 = vadd.f32 %v1739_v32, %v1691_v4  ;;  %v12632_v51 = vpop.f32.mrf.mxu0  ;;  %v1800_v15 = vpop.f32.mrf.mxu1 }
 0x6e2   :  { %v1926_v45 = vmax.f32 %v1740_v63, 0.0 }
 0x6e3   :  { %v1839_v49 = vpop.f32.mrf.mxu3 }
 0x6e4   :  { %9210 = vmatmul.msk.bf16.gmra.mxu2 %vm1607_vm9, %v12556_v2  ;;  %v1840_v57 = vadd.f32 %v1839_v49, %v1791_v54 }
 0x6e7   :  { %v1725_v11 = vpop.f32.mrf.mxu2 }
 0x6e8   :  { %v12619_v62 = vadd.f32 %v1725_v11, %v1677_v40  ;;  %v1742_v11 = vadd.f32 %v1741_v14, %v1693_v33  ;;  %v1751_v50 = vpop.f32.mrf.mxu0  ;;  %v1747_v33 = vadd.f32 %v1746_v34, %v12547_v7 }
 0x6ea   :  { %v1928_v60 = vmax.f32 %v1742_v11, 0.0  ;;  %v1803_v11 = vpop.f32.mrf.mxu1 }
 0x6eb   :  { %v1842_v12 = vpop.f32.mrf.mxu3 }
 0x6ef   :  { %v1727_v28 = vpop.f32.mrf.mxu2 }
 0x6f0   :  { %v12624_v46 = vadd.f32 %v1727_v28, %v1679_v35 }
 0x6f3   :  { %v1844_v2 = vpop.f32.mrf.mxu3 }
 0x6f7   :  { %v1886_v56 = vpop.f32.mrf.mxu2 }
 0x6f8   :  { %v1887_v38 = vadd.f32 %v1886_v56, %v1838_v30  ;;  %v1794_v56 = vadd.f32 %v1793_v26, %v12536_v39  ;;  %v1796_v39 = vadd.f32 %v1795_v13, %v12544_v18  ;;  %v1745_v26 = vadd.f32 %v1744_v17, %v12539_v58 }
 0x6f9   :  { %v1799_v18 = vadd.f32 %v1798_v37, %v12362_v43  ;;  %v1801_v43 = vadd.f32 %v1800_v15, %v12564_v52  ;;  %v1750_v37 = vadd.f32 %v12632_v51, %v12559_v41  ;;  %v1804_v51 = vadd.f32 %v1803_v11, %v12570_v9 }
 0x6fa   :  { %v1927_v35 = vmax.f32 %v1887_v38, 0.0  ;;  %v1843_v14 = vadd.f32 %v1842_v12, %v1794_v56  ;;  %v1845_v12 = vadd.f32 %v1844_v2, %v1796_v39 }
 0x6fb   :  { %v1847_v40 = vpop.f32.mrf.mxu3 }
 0x6fc   :  { %v1958_v31 = vpack.c.bf16 %v1927_v35, %v1926_v45  ;;  %v1930_v35 = vmax.f32 %v1745_v26, 0.0  ;;  %v1934_v26 = vmax.f32 %v1750_v37, 0.0 }
 0x6fe   :  { %v1990_v23 = vunpack.c.l.b16 %v1958_v31  ;;  %v2078_v55 = vunpack.c.h.b16 %v1958_v31 }
 0x6ff   :  { %v1888_v28 = vpop.f32.mrf.mxu2 }
 0x700   :  { %v1889_v10 = vadd.f32 %v1888_v28, %v1840_v57  ;;  %v1754_v28 = vpop.f32.mrf.mxu0 }
 0x701   :  { %v1755_v9 = vadd.f32 %v1754_v28, %v12573_v25 }
 0x702   :  { %v1929_v42 = vmax.f32 %v1889_v10, 0.0 }
 0x703   :  { %v1849_v48 = vpop.f32.mrf.mxu3 }
 0x704   :  { %v1959_v6 = vpack.c.bf16 %v1929_v42, %v1928_v60  ;;  %v1932_v60 = vmax.f32 %v1747_v33, 0.0 }
 0x706   :  { %v1991_v32 = vunpack.c.l.b16 %v1959_v6  ;;  %v2079_v30 = vunpack.c.h.b16 %v1959_v6  ;;  %v1848_v6 = vadd.f32 %v1847_v40, %v1799_v18  ;;  %v1752_v40 = vadd.f32 %v1751_v50, %v12567_v22 }
 0x707   :  { %v1891_v4 = vpop.f32.mrf.mxu2 }
 0x708   :  { %v12635_v49 = vpack.c.b16 %v1991_v32, %v1990_v23  ;;  %v2094_v38 = vpack.c.b16 %v2079_v30, %v2078_v55  ;;  %v1892_v54 = vadd.f32 %v1891_v4, %v1843_v14  ;;  %v1805_v55 = vpop.f32.mrf.mxu1  ;;  %v1756_v32 = vpop.f32.mrf.mxu0  ;;  %v1850_v14 = vadd.f32 %v1849_v48, %v1801_v43 }
 0x709   :  { %v1806_v18 = vadd.f32 %v1805_v55, %v12375_v1 }
 0x70a   :  { %2046 = vrot.lane.b32.xlu1 %v12635_v49, %s11203_s20  ;;  %2030 = vrot.lane.b32.xlu2 %v12635_v49, %s11200_s7  ;;  %v1931_v63 = vmax.f32 %v1892_v54, 0.0 }
 0x70b   :  { %2014 = vrot.lane.b32.xlu0 %v12635_v49, %s11202_s19  ;;  %v1852_v10 = vpop.f32.mrf.mxu3 }
 0x70c   :  { %v1960_v31 = vpack.c.bf16 %v1931_v63, %v1930_v35 }
 0x70e   :  { %v1992_v7 = vunpack.c.l.b16 %v1960_v31  ;;  %v2080_v17 = vunpack.c.h.b16 %v1960_v31 }
 0x70f   :  { %v1893_v57 = vpop.f32.mrf.mxu2 }
 0x710   :  { %v1894_v45 = vadd.f32 %v1893_v57, %v1845_v12  ;;  %v1936_v12 = vmax.f32 %v1752_v40, 0.0  ;;  %v1808_v52 = vpop.f32.mrf.mxu1  ;;  %v1759_v41 = vpop.f32.mrf.mxu0 }
 0x711   :  { %v1809_v25 = vadd.f32 %v1808_v52, %v12580_v8 }
 0x712   :  { %v1933_v42 = vmax.f32 %v1894_v45, 0.0  ;;  %2126 = vrot.lane.b32.xlu1 %v2094_v38, %s11200_s7  ;;  %2102 = vrot.lane.b32.xlu2 %v2094_v38, %s11202_s19 }
 0x713   :  { %2062 = vrot.lane.b32.xlu0 %v12635_v49, %s11201_s0  ;;  %v1854_v4 = vpop.f32.mrf.mxu3 }
 0x714   :  { %v1961_v58 = vpack.c.bf16 %v1933_v42, %v1932_v60  ;;  %v1853_v60 = vadd.f32 %v1852_v10, %v1804_v51 }
 0x716   :  { %v1993_v13 = vunpack.c.l.b16 %v1961_v58  ;;  %v2081_v34 = vunpack.c.h.b16 %v1961_v58 }
 0x717   :  { %v1896_v2 = vpop.f32.mrf.mxu2 }
 0x718   :  { %v12651_v56 = vpack.c.b16 %v1993_v13, %v1992_v7  ;;  %v2095_v23 = vpack.c.b16 %v2081_v34, %v2080_v17  ;;  %v1897_v30 = vadd.f32 %v1896_v2, %v1848_v6  ;;  %v1810_v11 = vpop.f32.mrf.mxu1  ;;  %v1757_v7 = vadd.f32 %v1756_v32, %v12577_v21  ;;  %v1761_v17 = vpop.f32.mrf.mxu0 }
 0x719   :  { %v1855_v13 = vadd.f32 %v1854_v4, %v1806_v18  ;;  %v1938_v6 = vmax.f32 %v1755_v9, 0.0  ;;  %v1811_v8 = vadd.f32 %v1810_v11, %v12586_v27 }
 0x71a   :  { %2174 = vrot.lane.b32.xlu2 %v2094_v38, %s11201_s0  ;;  %2016 = vrot.lane.b32.xlu1 %v12651_v56, %s11202_s19  ;;  %v1935_v54 = vmax.f32 %v1897_v30, 0.0  ;;  %v1940_v43 = vmax.f32 %v1757_v7, 0.0 }
 0x71b   :  { %2150 = vrot.lane.b32.xlu0 %v2094_v38, %s11203_s20  ;;  %v1857_v15 = vpop.f32.mrf.mxu3 }
 0x71c   :  { %v1962_v63 = vpack.c.bf16 %v1935_v54, %v1934_v26 }
 0x71e   :  { %v1994_v50 = vunpack.c.l.b16 %v1962_v63  ;;  %v2082_v48 = vunpack.c.h.b16 %v1962_v63 }
 0x71f   :  { %v1898_v39 = vpop.f32.mrf.mxu2 }
 0x720   :  { %v1899_v33 = vadd.f32 %v1898_v39, %v1850_v14  ;;  %v1813_v4 = vpop.f32.mrf.mxu1  ;;  %v1764_v54 = vpop.f32.mrf.mxu0  ;;  %v1858_v39 = vadd.f32 %v1857_v15, %v1809_v25 }
 0x721   :  { %v1814_v27 = vadd.f32 %v1813_v4, %v12384_v59 }
 0x722   :  { %v1937_v57 = vmax.f32 %v1899_v33, 0.0  ;;  %2048 = vrot.lane.b32.xlu2 %v12651_v56, %s11203_s20  ;;  %2064 = vrot.lane.b32.xlu1 %v12651_v56, %s11201_s0 }
 0x723   :  { %2032 = vrot.lane.b32.xlu0 %v12651_v56, %s11200_s7  ;;  %v1859_v34 = vpop.f32.mrf.mxu3 }
 0x724   :  { %v1963_v22 = vpack.c.bf16 %v1937_v57, %v1936_v12  ;;  %v1762_v57 = vadd.f32 %v1761_v17, %v12589_v53  ;;  %v1860_v52 = vadd.f32 %v1859_v34, %v1811_v8  ;;  %v1765_v34 = vadd.f32 %v1764_v54, %v12594_v44 }
 0x726   :  { %v1995_v38 = vunpack.c.l.b16 %v1963_v22  ;;  %v2083_v35 = vunpack.c.h.b16 %v1963_v22 }
 0x727   :  { %v1901_v45 = vpop.f32.mrf.mxu2 }
 0x728   :  { %v12668_v31 = vpack.c.b16 %v1995_v38, %v1994_v50  ;;  %v2096_v42 = vpack.c.b16 %v2083_v35, %v2082_v48  ;;  %v1902_v58 = vadd.f32 %v1901_v45, %v1853_v60  ;;  %v1815_v48 = vpop.f32.mrf.mxu1  ;;  %v1944_v38 = vmax.f32 %v1762_v57, 0.0  ;;  %v1766_v35 = vpop.f32.mrf.mxu0 }
 0x729   :  { %v1816_v59 = vadd.f32 %v1815_v48, %v12597_v36 }
 0x72a   :  { %2128 = vrot.lane.b32.xlu2 %v2095_v23, %s11200_s7  ;;  %2152 = vrot.lane.b32.xlu1 %v2095_v23, %s11203_s20  ;;  %v1939_v10 = vmax.f32 %v1902_v58, 0.0 }
 0x72b   :  { %2104 = vrot.lane.b32.xlu0 %v2095_v23, %s11202_s19  ;;  %v1862_v12 = vpop.f32.mrf.mxu3 }
 0x72c   :  { %v1964_v37 = vpack.c.bf16 %v1939_v10, %v1938_v6  ;;  %v1863_v7 = vadd.f32 %v1862_v12, %v1814_v27 }
 0x72e   :  { %v1996_v21 = vunpack.c.l.b16 %v1964_v37  ;;  %v2084_v28 = vunpack.c.h.b16 %v1964_v37 }
 0x72f   :  { %v1903_v2 = vpop.f32.mrf.mxu2 }
 0x730   :  { %v1904_v30 = vadd.f32 %v1903_v2, %v1855_v13  ;;  %v1769_v2 = vpop.f32.mrf.mxu0 }
 0x732   :  { %v1941_v40 = vmax.f32 %v1904_v30, 0.0  ;;  %2018 = vrot.lane.b32.xlu2 %v12668_v31, %s11202_s19  ;;  %2034 = vrot.lane.b32.xlu1 %v12668_v31, %s11200_s7  ;;  %v1767_v30 = vadd.f32 %v1766_v35, %v12600_v47 }
 0x733   :  { %2176 = vrot.lane.b32.xlu0 %v2095_v23, %s11201_s0  ;;  %v1760_v23 = vadd.f32 %v1759_v41, %v12583_v29  ;;  %v1864_v58 = vpop.f32.mrf.mxu3 }
 0x734   :  { %v1965_v1 = vpack.c.bf16 %v1941_v40, %v1940_v43  ;;  %v1865_v43 = vadd.f32 %v1864_v58, %v1816_v59 }
 0x735   :  { %v1942_v15 = vmax.f32 %v1760_v23, 0.0 }
 0x736   :  { %v1997_v55 = vunpack.c.l.b16 %v1965_v1  ;;  %v2085_v32 = vunpack.c.h.b16 %v1965_v1  ;;  %v1946_v1 = vmax.f32 %v1765_v34, 0.0 }
 0x737   :  { %v1906_v14 = vpop.f32.mrf.mxu2 }
 0x738   :  { %v12682_v26 = vpack.c.b16 %v1997_v55, %v1996_v21  ;;  %v12684_v33 = vpack.c.b16 %v2085_v32, %v2084_v28  ;;  %v1907_v63 = vadd.f32 %v1906_v14, %v1858_v39  ;;  %v1948_v21 = vmax.f32 %v1767_v30, 0.0  ;;  %v1771_v32 = vpop.f32.mrf.mxu0 }
 0x73a   :  { %2066 = vrot.lane.b32.xlu2 %v12668_v31, %s11201_s0  ;;  %2106 = vrot.lane.b32.xlu1 %v2096_v42, %s11202_s19  ;;  %v1943_v22 = vmax.f32 %v1907_v63, 0.0 }
 0x73b   :  { %2050 = vrot.lane.b32.xlu0 %v12668_v31, %s11203_s20  ;;  %v1867_v6 = vpop.f32.mrf.mxu3 }
 0x73c   :  { %v1966_v45 = vpack.c.bf16 %v1943_v22, %v1942_v15  ;;  %v1770_v22 = vadd.f32 %v1769_v2, %v12607_v0 }
 0x73e   :  { %v1998_v53 = vunpack.c.l.b16 %v1966_v45  ;;  %v2086_v41 = vunpack.c.h.b16 %v1966_v45  ;;  %v1950_v35 = vmax.f32 %v1770_v22, 0.0 }
 0x73f   :  { %v1908_v51 = vpop.f32.mrf.mxu2 }
 0x740   :  { %v1909_v50 = vadd.f32 %v1908_v51, %v1860_v52  ;;  %v1772_v51 = vadd.f32 %v1771_v32, %v12612_v3 }
 0x742   :  { %v1945_v60 = vmax.f32 %v1909_v50, 0.0  ;;  %2154 = vrot.lane.b32.xlu2 %v2096_v42, %s11203_s20  ;;  %2178 = vrot.lane.b32.xlu1 %v2096_v42, %s11201_s0 }
 0x743   :  { %2130 = vrot.lane.b32.xlu0 %v2096_v42, %s11200_s7  ;;  %v1818_v42 = vpop.f32.mrf.mxu1  ;;  %v1869_v12 = vpop.f32.mrf.mxu3 }
 0x744   :  { %v1967_v29 = vpack.c.bf16 %v1945_v60, %v1944_v38  ;;  %v1819_v36 = vadd.f32 %v1818_v42, %v12604_v24  ;;  %v1774_v60 = vpop.f32.mrf.mxu0 }
 0x745   :  { %v1775_v30 = vadd.f32 %v1774_v60, %v12619_v62 }
 0x746   :  { %v1999_v18 = vunpack.c.l.b16 %v1967_v29  ;;  %v2087_v9 = vunpack.c.h.b16 %v1967_v29  ;;  %v1868_v8 = vadd.f32 %v1867_v6, %v1819_v36  ;;  %v1952_v29 = vmax.f32 %v1772_v51, 0.0 }
 0x747   :  { %v1911_v11 = vpop.f32.mrf.mxu2 }
 0x748   :  { %v12698_v17 = vpack.c.b16 %v1999_v18, %v1998_v53  ;;  %v12700_v13 = vpack.c.b16 %v2087_v9, %v2086_v41  ;;  %v1912_v10 = vadd.f32 %v1911_v11, %v1863_v7 }
 0x74a   :  { %2052 = vrot.lane.b32.xlu1 %v12682_v26, %s11203_s20  ;;  %2036 = vrot.lane.b32.xlu2 %v12682_v26, %s11200_s7  ;;  %v1947_v37 = vmax.f32 %v1912_v10, 0.0 }
 0x74b   :  { %2020 = vrot.lane.b32.xlu0 %v12682_v26, %s11202_s19  ;;  %v1820_v47 = vpop.f32.mrf.mxu1  ;;  %v1872_v58 = vpop.f32.mrf.mxu3 }
 0x74c   :  { %v1968_v28 = vpack.c.bf16 %v1947_v37, %v1946_v1  ;;  %v1821_v24 = vadd.f32 %v1820_v47, %v12609_v5  ;;  %v1776_v2 = vpop.f32.mrf.mxu0 }
 0x74d   :  { %v1777_v37 = vadd.f32 %v1776_v2, %v12624_v46 }
 0x74e   :  { %v2000_v4 = vunpack.c.l.b16 %v1968_v28  ;;  %v2088_v14 = vunpack.c.h.b16 %v1968_v28  ;;  %v1870_v15 = vadd.f32 %v1869_v12, %v1821_v24 }
 0x74f   :  { %v1913_v40 = vpop.f32.mrf.mxu2 }
 0x750   :  { %v1914_v25 = vadd.f32 %v1913_v40, %v1865_v43 }
 0x752   :  { %v1949_v55 = vmax.f32 %v1914_v25, 0.0  ;;  %2132 = vrot.lane.b32.xlu1 %v12684_v33, %s11200_s7  ;;  %2108 = vrot.lane.b32.xlu2 %v12684_v33, %s11202_s19 }
 0x753   :  { %2068 = vrot.lane.b32.xlu0 %v12682_v26, %s11201_s0  ;;  %v1823_v48 = vpop.f32.mrf.mxu1  ;;  %v1874_v6 = vpop.f32.mrf.mxu3 }
 0x754   :  { %v1969_v44 = vpack.c.bf16 %v1949_v55, %v1948_v21  ;;  %v1824_v3 = vadd.f32 %v1823_v48, %v12616_v61  ;;  %v1954_v21 = vmax.f32 %v1775_v30, 0.0  ;;  %v1956_v55 = vmax.f32 %v1777_v37, 0.0 }
 0x756   :  { %v2001_v54 = vunpack.c.l.b16 %v1969_v44  ;;  %v2089_v39 = vunpack.c.h.b16 %v1969_v44  ;;  %v1873_v7 = vadd.f32 %v1872_v58, %v1824_v3 }
 0x757   :  { %v1916_v63 = vpop.f32.mrf.mxu2 }
 0x758   :  { %v12718_v23 = vpack.c.b16 %v2001_v54, %v2000_v4  ;;  %v12720_v57 = vpack.c.b16 %v2089_v39, %v2088_v14  ;;  %v1917_v52 = vadd.f32 %v1916_v63, %v1868_v8 }
 0x75a   :  { %2180 = vrot.lane.b32.xlu2 %v12684_v33, %s11201_s0  ;;  %2022 = vrot.lane.b32.xlu1 %v12698_v17, %s11202_s19  ;;  %v1951_v50 = vmax.f32 %v1917_v52, 0.0 }
 0x75b   :  { %2156 = vrot.lane.b32.xlu0 %v12684_v33, %s11203_s20  ;;  %v1825_v59 = vpop.f32.mrf.mxu1 }
 0x75c   :  { %v1970_v27 = vpack.c.bf16 %v1951_v50, %v1950_v35  ;;  %v1826_v61 = vadd.f32 %v1825_v59, %v12621_v20 }
 0x75e   :  { %v2002_v33 = vunpack.c.l.b16 %v1970_v27  ;;  %v2090_v41 = vunpack.c.h.b16 %v1970_v27  ;;  %v1875_v40 = vadd.f32 %v1874_v6, %v1826_v61 }
 0x75f   :  { %v1918_v38 = vpop.f32.mrf.mxu2 }
 0x760   :  { %v1919_v45 = vadd.f32 %v1918_v38, %v1870_v15 }
 0x762   :  { %v1953_v53 = vmax.f32 %v1919_v45, 0.0  ;;  %2054 = vrot.lane.b32.xlu2 %v12698_v17, %s11203_s20  ;;  %2070 = vrot.lane.b32.xlu1 %v12698_v17, %s11201_s0 }
 0x763   :  { %2038 = vrot.lane.b32.xlu0 %v12698_v17, %s11200_s7 }
 0x764   :  { %v1971_v0 = vpack.c.bf16 %v1953_v53, %v1952_v29  ;;  %v12737_v5 = vpop.permute.xlu2 %2030 }
 0x766   :  { %v2003_v18 = vunpack.c.l.b16 %v1971_v0  ;;  %v2091_v9 = vunpack.c.h.b16 %v1971_v0 }
 0x767   :  { %v1921_v11 = vpop.f32.mrf.mxu2 }
 0x768   :  { %v12740_v10 = vpack.c.b16 %v2003_v18, %v2002_v33  ;;  %v2100_v42 = vpack.c.b16 %v2091_v9, %v2090_v41  ;;  %v1922_v34 = vadd.f32 %v1921_v11, %v1873_v7 }
 0x76a   :  { %2134 = vrot.lane.b32.xlu2 %v12700_v13, %s11200_s7  ;;  %2158 = vrot.lane.b32.xlu1 %v12700_v13, %s11203_s20  ;;  %v1955_v1 = vmax.f32 %v1922_v34, 0.0 }
 0x76b   :  { %2110 = vrot.lane.b32.xlu0 %v12700_v13, %s11202_s19 }
 0x76c   :  { %v12750_v43 = vpop.permute.xlu2 %2102  ;;  %v1972_v44 = vpack.c.bf16 %v1955_v1, %v1954_v21 }
 0x76e   :  { %v2004_v46 = vunpack.c.l.b16 %v1972_v44  ;;  %v2092_v47 = vunpack.c.h.b16 %v1972_v44 }
 0x76f   :  { %v1923_v25 = vpop.f32.mrf.mxu2 }
 0x770   :  { %v1924_v28 = vadd.f32 %v1923_v25, %v1875_v40 }
 0x772   :  { %v1957_v36 = vmax.f32 %v1924_v28, 0.0  ;;  %2024 = vrot.lane.b32.xlu2 %v12718_v23, %s11202_s19  ;;  %2040 = vrot.lane.b32.xlu1 %v12718_v23, %s11200_s7 }
 0x773   :  { %2182 = vrot.lane.b32.xlu0 %v12700_v13, %s11201_s0 }
 0x774   :  { %v1973_v62 = vpack.c.bf16 %v1957_v36, %v1956_v55  ;;  %v12759_v20 = vpop.permute.xlu2 %2174 }
 0x776   :  { %v2005_v32 = vunpack.c.l.b16 %v1973_v62  ;;  %v2093_v4 = vunpack.c.h.b16 %v1973_v62 }
 0x778   :  { %v12761_v14 = vpack.c.b16 %v2005_v32, %v2004_v46  ;;  %v2101_v54 = vpack.c.b16 %v2093_v4, %v2092_v47 }
 0x77a   :  { %2072 = vrot.lane.b32.xlu2 %v12718_v23, %s11201_s0  ;;  %2112 = vrot.lane.b32.xlu1 %v12720_v57, %s11202_s19 }
 0x77b   :  { %2056 = vrot.lane.b32.xlu0 %v12718_v23, %s11203_s20 }
 0x77c   :  { %v12769_v13 = vpop.permute.xlu1 %2046  ;;  %v12771_v39 = vpop.permute.xlu2 %2048 }
 0x77d   :  { %v12773_v12 = vpop.permute.xlu0 %2014 }
 0x77e   :  { %v2118_v7 = vsel %vm331_vm5, %v12773_v12, %v12750_v43 }
 0x782   :  { %2160 = vrot.lane.b32.xlu2 %v12720_v57, %s11203_s20  ;;  %2184 = vrot.lane.b32.xlu1 %v12720_v57, %s11201_s0 }
 0x783   :  { %2136 = vrot.lane.b32.xlu0 %v12720_v57, %s11200_s7 }
 0x784   :  { %v2127_v63 = vpop.permute.xlu1 %2126  ;;  %v12781_v8 = vpop.permute.xlu2 %2128 }
 0x785   :  { %v12783_v52 = vpop.permute.xlu0 %2062 }
 0x786   :  { %v2190_v24 = vsel %vm350_vm11, %v12783_v52, %v12759_v20 }
 0x787   :  { %v12790_v22 = vsel %vm2358_vm10, %v12635_v49, %v2190_v24 }
 0x788   :  { %16164 = vst [vmem:[#allocation18_spill] sm:$0xff] %v12790_v22 }
 0x78a   :  { %2058 = vrot.lane.b32.xlu1 %v12740_v10, %s11203_s20  ;;  %2042 = vrot.lane.b32.xlu2 %v12740_v10, %s11200_s7 }
 0x78b   :  { %2026 = vrot.lane.b32.xlu0 %v12740_v10, %s11202_s19 }
 0x78c   :  { %v12798_v57 = vpop.permute.xlu1 %2016  ;;  %v12800_v51 = vpop.permute.xlu2 %2018 }
 0x78d   :  { %v2151_v15 = vpop.permute.xlu0 %2150 }
 0x78e   :  { %v2166_v2 = vsel %vm343_vm8, %v12769_v13, %v2151_v15 }
 0x792   :  { %2138 = vrot.lane.b32.xlu1 %v2100_v42, %s11200_s7  ;;  %2114 = vrot.lane.b32.xlu2 %v2100_v42, %s11202_s19 }
 0x793   :  { %2074 = vrot.lane.b32.xlu0 %v12740_v10, %s11201_s0 }
 0x794   :  { %v12806_v49 = vpop.permute.xlu1 %2064  ;;  %v12808_v50 = vpop.permute.xlu2 %2066 }
 0x795   :  { %v12810_v48 = vpop.permute.xlu0 %2032 }
 0x796   :  { %v2143_v36 = vsel %vm338_vm7, %v12810_v48, %v12781_v8 }
 0x79a   :  { %2186 = vrot.lane.b32.xlu2 %v2100_v42, %s11201_s0  ;;  %2028 = vrot.lane.b32.xlu1 %v12761_v14, %s11202_s19 }
 0x79b   :  { %2162 = vrot.lane.b32.xlu0 %v2100_v42, %s11203_s20 }
 0x79c   :  { %v2153_v38 = vpop.permute.xlu1 %2152  ;;  %v12816_v35 = vpop.permute.xlu2 %2154 }
 0x79d   :  { %v2105_v45 = vpop.permute.xlu0 %2104  ;;  %v2167_v21 = vsel %vm343_vm8, %v12771_v39, %v2153_v38 }
 0x79e   :  { %v2119_v28 = vsel %vm331_vm5, %v12798_v57, %v2105_v45 }
 0x7a2   :  { %2060 = vrot.lane.b32.xlu2 %v12761_v14, %s11203_s20  ;;  %2076 = vrot.lane.b32.xlu1 %v12761_v14, %s11201_s0 }
 0x7a3   :  { %2044 = vrot.lane.b32.xlu0 %v12761_v14, %s11200_s7 }
 0x7a4   :  { %v12824_v60 = vpop.permute.xlu1 %2034  ;;  %v12826_v58 = vpop.permute.xlu2 %2036 }
 0x7a5   :  { %v2177_v29 = vpop.permute.xlu0 %2176 }
 0x7a6   :  { %v2191_v27 = vsel %vm350_vm11, %v12806_v49, %v2177_v29 }
 0x7a7   :  { %v12832_v53 = vsel %vm2358_vm10, %v12651_v56, %v2191_v27 }
 0x7a8   :  { %16165 = vst [vmem:[#allocation19_spill] sm:$0xff] %v12832_v53 }
 0x7aa   :  { %2140 = vrot.lane.b32.xlu2 %v2101_v54, %s11200_s7  ;;  %2164 = vrot.lane.b32.xlu1 %v2101_v54, %s11203_s20 }
 0x7ab   :  { %2116 = vrot.lane.b32.xlu0 %v2101_v54, %s11202_s19 }
 0x7ac   :  { %v2107_v0 = vpop.permute.xlu1 %2106  ;;  %v12837_v3 = vpop.permute.xlu2 %2108 }
 0x7ad   :  { %v12839_v33 = vpop.permute.xlu0 %2050  ;;  %v2120_v47 = vsel %vm331_vm5, %v12800_v51, %v2107_v0 }
 0x7b2   :  { %2264 = vrot.lane.b32.xlu1 %v2151_v15, %s11201_s0  ;;  %2200 = vrot.lane.b32.xlu2 %v12750_v43, %s11201_s0 }
 0x7b3   :  { %2188 = vrot.lane.b32.xlu0 %v2101_v54, %s11201_s0 }
 0x7b4   :  { %v2179_v56 = vpop.permute.xlu1 %2178  ;;  %v12845_v41 = vpop.permute.xlu2 %2180 }
 0x7b5   :  { %v2131_v18 = vpop.permute.xlu0 %2130  ;;  %v2192_v9 = vsel %vm350_vm11, %v12808_v50, %v2179_v56 }
 0x7b6   :  { %v12851_v11 = vsel %vm2358_vm10, %v12668_v31, %v2192_v9  ;;  %v2142_v31 = vsel %vm338_vm7, %v12737_v5, %v2127_v63 }
 0x7ba   :  { %2198 = vrot.lane.b32.xlu1 %v2118_v7, %s11201_s0  ;;  %2296 = vrot.lane.b32.xlu2 %v12759_v20, %s11201_s0 }
 0x7bb   :  { %2232 = vrot.lane.b32.xlu0 %v2127_v63, %s11201_s0 }
 0x7bc   :  { %v12860_v42 = vpop.permute.xlu1 %2052  ;;  %v12862_v59 = vpop.permute.xlu2 %2054 }
 0x7bd   :  { %v12864_v34 = vpop.permute.xlu0 %2020 }
 0x7c2   :  { %2294 = vrot.lane.b32.xlu1 %v2190_v24, %s11201_s0  ;;  %2230 = vrot.lane.b32.xlu2 %v2142_v31, %s11201_s0  ;;  %v2168_v24 = vsel %vm343_vm8, %v12839_v33, %v12816_v35 }
 0x7c3   :  { %2262 = vrot.lane.b32.xlu0 %v2166_v2, %s11201_s0 }
 0x7c4   :  { %v2133_v6 = vpop.permute.xlu1 %2132  ;;  %v12873_v61 = vpop.permute.xlu2 %2134 }
 0x7c5   :  { %v12875_v30 = vpop.permute.xlu0 %2068 }
 0x7c6   :  { %v2193_v43 = vsel %vm350_vm11, %v12875_v30, %v12845_v41 }
 0x7c7   :  { %v12882_v37 = vsel %vm2358_vm10, %v12682_v26, %v2193_v43 }
 0x7ca   :  { %2204 = vrot.lane.b32.xlu1 %v2105_v45, %s11201_s0  ;;  %2236 = vrot.lane.b32.xlu2 %v12781_v8, %s11201_s0 }
 0x7cb   :  { %2268 = vrot.lane.b32.xlu0 %v2153_v38, %s11201_s0 }
 0x7cc   :  { %v12888_v40 = vpop.permute.xlu1 %2022  ;;  %v12890_v1 = vpop.permute.xlu2 %2024 }
 0x7cd   :  { %v2157_v25 = vpop.permute.xlu0 %2156 }
 0x7ce   :  { %v2169_v2 = vsel %vm343_vm8, %v12860_v42, %v2157_v25 }
 0x7d2   :  { %2300 = vrot.lane.b32.xlu1 %v2177_v29, %s11201_s0  ;;  %2266 = vrot.lane.b32.xlu2 %v2167_v21, %s11201_s0  ;;  %v2144_v29 = vsel %vm338_vm7, %v12824_v60, %v2131_v18 }
 0x7d3   :  { %2202 = vrot.lane.b32.xlu0 %v2119_v28, %s11201_s0 }
 0x7d4   :  { %v12899_v26 = vpop.permute.xlu1 %2070  ;;  %v12901_v55 = vpop.permute.xlu2 %2072 }
 0x7d5   :  { %v12903_v44 = vpop.permute.xlu0 %2038 }
 0x7da   :  { %2234 = vrot.lane.b32.xlu1 %v2143_v36, %s11201_s0  ;;  %2272 = vrot.lane.b32.xlu2 %v12816_v35, %s11201_s0 }
 0x7db   :  { %2298 = vrot.lane.b32.xlu0 %v2191_v27, %s11201_s0 }
 0x7dc   :  { %v2159_v62 = vpop.permute.xlu1 %2158  ;;  %v12912_v20 = vpop.permute.xlu2 %2160 }
 0x7dd   :  { %v2111_v46 = vpop.permute.xlu0 %2110 }
 0x7e2   :  { %2240 = vrot.lane.b32.xlu1 %v2131_v18, %s11201_s0  ;;  %2206 = vrot.lane.b32.xlu2 %v2120_v47, %s11201_s0  ;;  %v2121_v18 = vsel %vm331_vm5, %v12864_v34, %v12837_v3  ;;  %v2170_v47 = vsel %vm343_vm8, %v12862_v59, %v2159_v62 }
 0x7e3   :  { %2208 = vrot.lane.b32.xlu0 %v2107_v0, %s11201_s0 }
 0x7e4   :  { %v12919_v32 = vpop.permute.xlu1 %2040  ;;  %v12921_v4 = vpop.permute.xlu2 %2042 }
 0x7e5   :  { %v2183_v54 = vpop.permute.xlu0 %2182 }
 0x7e6   :  { %v2194_v63 = vsel %vm350_vm11, %v12899_v26, %v2183_v54 }
 0x7e7   :  { %v12927_v8 = vsel %vm2358_vm10, %v12698_v17, %v2194_v63 }
 0x7ea   :  { %2270 = vrot.lane.b32.xlu1 %v2168_v24, %s11201_s0  ;;  %2302 = vrot.lane.b32.xlu2 %v2192_v9, %s11201_s0  ;;  %v2122_v24 = vsel %vm331_vm5, %v12888_v40, %v2111_v46 }
 0x7eb   :  { %2304 = vrot.lane.b32.xlu0 %v2179_v56, %s11201_s0 }
 0x7ec   :  { %v2113_v15 = vpop.permute.xlu1 %2112  ;;  %v12935_v38 = vpop.permute.xlu2 %2114 }
 0x7ed   :  { %v12937_v45 = vpop.permute.xlu0 %2056 }
 0x7f2   :  { %2276 = vrot.lane.b32.xlu1 %v2157_v25, %s11201_s0  ;;  %2212 = vrot.lane.b32.xlu2 %v12837_v3, %s11201_s0 }
 0x7f3   :  { %2238 = vrot.lane.b32.xlu0 %v2144_v29, %s11201_s0 }
 0x7f4   :  { %v2185_v17 = vpop.permute.xlu1 %2184  ;;  %v12945_v35 = vpop.permute.xlu2 %2186 }
 0x7f5   :  { %v2137_v27 = vpop.permute.xlu0 %2136  ;;  %v2195_v0 = vsel %vm350_vm11, %v12901_v55, %v2185_v17 }
 0x7f6   :  { %v12951_v56 = vsel %vm2358_vm10, %v12718_v23, %v2195_v0  ;;  %v2145_v23 = vsel %vm338_vm7, %v12826_v58, %v2133_v6 }
 0x7fa   :  { %2210 = vrot.lane.b32.xlu1 %v2121_v18, %s11201_s0  ;;  %2308 = vrot.lane.b32.xlu2 %v12845_v41, %s11201_s0 }
 0x7fb   :  { %2244 = vrot.lane.b32.xlu0 %v2133_v6, %s11201_s0 }
 0x7fc   :  { %v12960_v9 = vpop.permute.xlu1 %2058  ;;  %v12962_v7 = vpop.permute.xlu2 %2060 }
 0x7fd   :  { %v12964_v31 = vpop.permute.xlu0 %2026 }
 0x802   :  { %2306 = vrot.lane.b32.xlu1 %v2193_v43, %s11201_s0  ;;  %2242 = vrot.lane.b32.xlu2 %v2145_v23, %s11201_s0  ;;  %v2146_v23 = vsel %vm338_vm7, %v12903_v44, %v12873_v61 }
 0x803   :  { %2274 = vrot.lane.b32.xlu0 %v2169_v2, %s11201_s0  ;;  %v2123_v2 = vsel %vm331_vm5, %v12890_v1, %v2113_v15 }
 0x804   :  { %v2139_v3 = vpop.permute.xlu1 %2138  ;;  %v12973_v41 = vpop.permute.xlu2 %2140 }
 0x805   :  { %v12975_v21 = vpop.permute.xlu0 %2074 }
 0x806   :  { %v12980_v28 = vsel %vm350_vm11, %v12975_v21, %v12945_v35 }
 0x807   :  { %v12985_v6 = vsel %vm2358_vm10, %v12740_v10, %v12980_v28 }
 0x80a   :  { %2216 = vrot.lane.b32.xlu1 %v2111_v46, %s11201_s0  ;;  %2248 = vrot.lane.b32.xlu2 %v12873_v61, %s11201_s0 }
 0x80b   :  { %2280 = vrot.lane.b32.xlu0 %v2159_v62, %s11201_s0 }
 0x80c   :  { %v12991_v43 = vpop.permute.xlu1 %2028  ;;  %v2201_v25 = vpop.permute.xlu2 %2200 }
 0x80d   :  { %v2163_v36 = vpop.permute.xlu0 %2162 }
 0x812   :  { %2312 = vrot.lane.b32.xlu1 %v2183_v54, %s11201_s0  ;;  %2278 = vrot.lane.b32.xlu2 %v2170_v47, %s11201_s0 }
 0x813   :  { %2214 = vrot.lane.b32.xlu0 %v2122_v24, %s11201_s0 }
 0x814   :  { %v13000_v10 = vpop.permute.xlu1 %2076  ;;  %v2297_v29 = vpop.permute.xlu2 %2296 }
 0x815   :  { %v13002_v18 = vpop.permute.xlu0 %2044 }
 0x81a   :  { %2246 = vrot.lane.b32.xlu1 %v2146_v23, %s11201_s0  ;;  %2284 = vrot.lane.b32.xlu2 %v12912_v20, %s11201_s0 }
 0x81b   :  { %2310 = vrot.lane.b32.xlu0 %v2194_v63, %s11201_s0 }
 0x81c   :  { %v2165_v62 = vpop.permute.xlu1 %2164  ;;  %v2231_v46 = vpop.permute.xlu2 %2230 }
 0x81d   :  { %v13011_v54 = vpop.permute.xlu0 %2116 }
 0x822   :  { %2252 = vrot.lane.b32.xlu1 %v2137_v27, %s11201_s0  ;;  %2218 = vrot.lane.b32.xlu2 %v2123_v2, %s11201_s0  ;;  %v2171_v2 = vsel %vm343_vm8, %v12937_v45, %v12912_v20 }
 0x823   :  { %2220 = vrot.lane.b32.xlu0 %v2113_v15, %s11201_s0 }
 0x824   :  { %v2265_v61 = vpop.permute.xlu1 %2264  ;;  %v2237_v47 = vpop.permute.xlu2 %2236 }
 0x825   :  { %v13018_v24 = vpop.permute.xlu0 %2188 }
 0x826   :  { %v13023_v63 = vsel %vm350_vm11, %v13000_v10, %v13018_v24 }
 0x827   :  { %v13028_v23 = vsel %vm2358_vm10, %v12761_v14, %v13023_v63 }
 0x828   :  { %3227 = vmatpush.bf16.msra.mxu0 %v13028_v23 }
 0x82a   :  { %2282 = vrot.lane.b32.xlu1 %v2171_v2, %s11201_s0  ;;  %2314 = vrot.lane.b32.xlu2 %v2195_v0, %s11201_s0  ;;  %v2147_v0 = vsel %vm338_vm7, %v12919_v32, %v2137_v27  ;;  %v2124_v27 = vsel %vm331_vm5, %v12964_v31, %v12935_v38 }
 0x82b   :  { %2316 = vrot.lane.b32.xlu0 %v2185_v17, %s11201_s0 }
 0x82c   :  { %v2199_v15 = vpop.permute.xlu1 %2198  ;;  %v2267_v19 = vpop.permute.xlu2 %2266 }
 0x82d   :  { %v2233_v16 = vpop.permute.xlu0 %2232  ;;  %v2326_v22 = vsel %vm350_vm11, %v2199_v15, %v2201_v25 }
 0x82e   :  { %v2334_v53 = vsel %vm350_vm11, %v2231_v46, %v2233_v16  ;;  %v13040_v14 = vsel %vm2358_vm10, %v12773_v12, %v2326_v22  ;;  %v2148_v46 = vsel %vm338_vm7, %v12921_v4, %v2139_v3 }
 0x82f   :  { %v13044_v20 = vsel %vm2358_vm10, %v12737_v5, %v2334_v53 }
 0x832   :  { %2288 = vrot.lane.b32.xlu1 %v2163_v36, %s11201_s0  ;;  %2224 = vrot.lane.b32.xlu2 %v12935_v38, %s11201_s0  ;;  %v2172_v38 = vsel %vm343_vm8, %v12960_v9, %v2163_v36  ;;  %v2173_v36 = vsel %vm343_vm8, %v12962_v7, %v2165_v62 }
 0x833   :  { %2250 = vrot.lane.b32.xlu0 %v2147_v0, %s11201_s0 }
 0x834   :  { %v2295_v17 = vpop.permute.xlu1 %2294  ;;  %v2273_v16 = vpop.permute.xlu2 %2272 }
 0x835   :  { %v2263_v25 = vpop.permute.xlu0 %2262  ;;  %v2350_v12 = vsel %vm350_vm11, %v2295_v17, %v2297_v29 }
 0x836   :  { %v2342_v22 = vsel %vm350_vm11, %v2263_v25, %v2265_v61  ;;  %v13056_v5 = vsel %vm2358_vm10, %v12783_v52, %v2350_v12 }
 0x837   :  { %v13060_v53 = vsel %vm2358_vm10, %v12769_v13, %v2342_v22 }
 0x83a   :  { %2222 = vrot.lane.b32.xlu1 %v2124_v27, %s11201_s0  ;;  %2254 = vrot.lane.b32.xlu2 %v2148_v46, %s11201_s0  ;;  %v2125_v27 = vsel %vm331_vm5, %v12991_v43, %v13011_v54 }
 0x83b   :  { %2256 = vrot.lane.b32.xlu0 %v2139_v3, %s11201_s0 }
 0x83c   :  { %v2205_v29 = vpop.permute.xlu1 %2204  ;;  %v2207_v52 = vpop.permute.xlu2 %2206 }
 0x83d   :  { %v2269_v61 = vpop.permute.xlu0 %2268 }
 0x83e   :  { %v2343_v2 = vsel %vm350_vm11, %v2267_v19, %v2269_v61 }
 0x83f   :  { %v13073_v13 = vsel %vm2358_vm10, %v12771_v39, %v2343_v2 }
 0x842   :  { %2318 = vrot.lane.b32.xlu1 %v12980_v28, %s11201_s0  ;;  %2260 = vrot.lane.b32.xlu2 %v12973_v41, %s11201_s0 }
 0x843   :  { %2286 = vrot.lane.b32.xlu0 %v2172_v38, %s11201_s0 }
 0x844   :  { %v2301_v3 = vpop.permute.xlu1 %2300  ;;  %v2303_v15 = vpop.permute.xlu2 %2302 }
 0x845   :  { %v2203_v0 = vpop.permute.xlu0 %2202 }
 0x846   :  { %v2327_v19 = vsel %vm350_vm11, %v2203_v0, %v2205_v29 }
 0x847   :  { %v13085_v39 = vsel %vm2358_vm10, %v12798_v57, %v2327_v19 }
 0x84a   :  { %2228 = vrot.lane.b32.xlu1 %v13011_v54, %s11201_s0  ;;  %2290 = vrot.lane.b32.xlu2 %v2173_v36, %s11201_s0 }
 0x84b   :  { %2292 = vrot.lane.b32.xlu0 %v2165_v62, %s11201_s0 }
 0x84c   :  { %v2235_v28 = vpop.permute.xlu1 %2234  ;;  %v2213_v17 = vpop.permute.xlu2 %2212 }
 0x84d   :  { %v2299_v25 = vpop.permute.xlu0 %2298  ;;  %v2335_v12 = vsel %vm350_vm11, %v2235_v28, %v2237_v47  ;;  %v2149_v47 = vsel %vm338_vm7, %v13002_v18, %v12973_v41 }
 0x84e   :  { %v2351_v57 = vsel %vm350_vm11, %v2299_v25, %v2301_v3  ;;  %v13100_v22 = vsel %vm2358_vm10, %v12810_v48, %v2335_v12 }
 0x84f   :  { %v13104_v62 = vsel %vm2358_vm10, %v12806_v49, %v2351_v57 }
 0x852   :  { %2258 = vrot.lane.b32.xlu1 %v2149_v47, %s11201_s0  ;;  %2320 = vrot.lane.b32.xlu2 %v12945_v35, %s11201_s0 }
 0x853   :  { %2226 = vrot.lane.b32.xlu0 %v2125_v27, %s11201_s0 }
 0x854   :  { %v2241_v48 = vpop.permute.xlu1 %2240  ;;  %v2309_v46 = vpop.permute.xlu2 %2308 }
 0x855   :  { %v2209_v49 = vpop.permute.xlu0 %2208 }
 0x856   :  { %v2328_v29 = vsel %vm350_vm11, %v2207_v52, %v2209_v49 }
 0x857   :  { %v13119_v61 = vsel %vm2358_vm10, %v12800_v51, %v2328_v29 }
 0x85a   :  { %2324 = vrot.lane.b32.xlu1 %v13018_v24, %s11201_s0 }
 0x85b   :  { %2322 = vrot.lane.b32.xlu0 %v13023_v63, %s11201_s0 }
 0x85c   :  { %v2271_v41 = vpop.permute.xlu1 %2270  ;;  %v2243_v54 = vpop.permute.xlu2 %2242 }
 0x85d   :  { %v2305_v35 = vpop.permute.xlu0 %2304  ;;  %v2344_v2 = vsel %vm350_vm11, %v2271_v41, %v2273_v16 }
 0x85e   :  { %v2352_v38 = vsel %vm350_vm11, %v2303_v15, %v2305_v35  ;;  %v13129_v52 = vsel %vm2358_vm10, %v12839_v33, %v2344_v2 }
 0x85f   :  { %v13133_v51 = vsel %vm2358_vm10, %v12808_v50, %v2352_v38 }
 0x864   :  { %v2277_v3 = vpop.permute.xlu1 %2276  ;;  %v2249_v24 = vpop.permute.xlu2 %2248 }
 0x865   :  { %v2239_v0 = vpop.permute.xlu0 %2238 }
 0x866   :  { %v2336_v63 = vsel %vm350_vm11, %v2239_v0, %v2241_v48 }
 0x867   :  { %v13138_v19 = vsel %vm2358_vm10, %v12824_v60, %v2336_v63 }
 0x86c   :  { %v2211_v16 = vpop.permute.xlu1 %2210  ;;  %v2279_v36 = vpop.permute.xlu2 %2278 }
 0x86d   :  { %v2245_v15 = vpop.permute.xlu0 %2244  ;;  %v2329_v28 = vsel %vm350_vm11, %v2211_v16, %v2213_v17 }
 0x86e   :  { %v2337_v33 = vsel %vm350_vm11, %v2243_v54, %v2245_v15  ;;  %v13144_v50 = vsel %vm2358_vm10, %v12864_v34, %v2329_v28 }
 0x86f   :  { %v13148_v25 = vsel %vm2358_vm10, %v12826_v58, %v2337_v33 }
 0x874   :  { %v2307_v12 = vpop.permute.xlu1 %2306  ;;  %v2285_v57 = vpop.permute.xlu2 %2284 }
 0x875   :  { %v2275_v47 = vpop.permute.xlu0 %2274  ;;  %v2353_v60 = vsel %vm350_vm11, %v2307_v12, %v2309_v46 }
 0x876   :  { %v2345_v27 = vsel %vm350_vm11, %v2275_v47, %v2277_v3  ;;  %v13154_v17 = vsel %vm2358_vm10, %v12875_v30, %v2353_v60 }
 0x877   :  { %v13158_v48 = vsel %vm2358_vm10, %v12860_v42, %v2345_v27 }
 0x87c   :  { %v2217_v34 = vpop.permute.xlu1 %2216  ;;  %v2219_v49 = vpop.permute.xlu2 %2218 }
 0x87d   :  { %v2281_v29 = vpop.permute.xlu0 %2280 }
 0x87e   :  { %v2346_v58 = vsel %vm350_vm11, %v2279_v36, %v2281_v29 }
 0x87f   :  { %v13163_v41 = vsel %vm2358_vm10, %v12862_v59, %v2346_v58 }
 0x884   :  { %v2313_v46 = vpop.permute.xlu1 %2312  ;;  %v2315_v54 = vpop.permute.xlu2 %2314 }
 0x885   :  { %v2215_v35 = vpop.permute.xlu0 %2214 }
 0x886   :  { %v2330_v2 = vsel %vm350_vm11, %v2215_v35, %v2217_v34 }
 0x887   :  { %v13168_v30 = vsel %vm2358_vm10, %v12888_v40, %v2330_v2 }
 0x88c   :  { %v2247_v42 = vpop.permute.xlu1 %2246  ;;  %v2225_v38 = vpop.permute.xlu2 %2224 }
 0x88d   :  { %v2311_v3 = vpop.permute.xlu0 %2310  ;;  %v2338_v0 = vsel %vm350_vm11, %v2247_v42, %v2249_v24 }
 0x88e   :  { %v2354_v63 = vsel %vm350_vm11, %v2311_v3, %v2313_v46  ;;  %v13174_v59 = vsel %vm2358_vm10, %v12903_v44, %v2338_v0 }
 0x88f   :  { %v13178_v16 = vsel %vm2358_vm10, %v12899_v26, %v2354_v63 }
 0x894   :  { %v2253_v36 = vpop.permute.xlu1 %2252  ;;  %v2255_v28 = vpop.permute.xlu2 %2254 }
 0x895   :  { %v2221_v15 = vpop.permute.xlu0 %2220 }
 0x896   :  { %v2331_v40 = vsel %vm350_vm11, %v2219_v49, %v2221_v15 }
 0x897   :  { %v2413_v33 = vsel %vm2358_vm10, %v12890_v1, %v2331_v40 }
 0x89c   :  { %v2283_v12 = vpop.permute.xlu1 %2282  ;;  %v2261_v27 = vpop.permute.xlu2 %2260 }
 0x89d   :  { %v2317_v24 = vpop.permute.xlu0 %2316  ;;  %v2347_v47 = vsel %vm350_vm11, %v2283_v12, %v2285_v57 }
 0x89e   :  { %v2355_v60 = vsel %vm350_vm11, %v2315_v54, %v2317_v24  ;;  %v2477_v44 = vsel %vm2358_vm10, %v12937_v45, %v2347_v47 }
 0x89f   :  { %v13189_v26 = vsel %vm2358_vm10, %v12901_v55, %v2355_v60 }
 0x8a4   :  { %v2289_v34 = vpop.permute.xlu1 %2288  ;;  %v2291_v58 = vpop.permute.xlu2 %2290 }
 0x8a5   :  { %v2251_v49 = vpop.permute.xlu0 %2250 }
 0x8a6   :  { %v2339_v29 = vsel %vm350_vm11, %v2251_v49, %v2253_v36 }
 0x8a7   :  { %v2445_v1 = vsel %vm2358_vm10, %v12919_v32, %v2339_v29 }
 0x8ac   :  { %v2223_v46 = vpop.permute.xlu1 %2222  ;;  %v2321_v2 = vpop.permute.xlu2 %2320 }
 0x8ad   :  { %v2257_v57 = vpop.permute.xlu0 %2256  ;;  %v2332_v54 = vsel %vm350_vm11, %v2223_v46, %v2225_v38 }
 0x8ae   :  { %v2340_v35 = vsel %vm350_vm11, %v2255_v28, %v2257_v57  ;;  %v2417_v45 = vsel %vm2358_vm10, %v12964_v31, %v2332_v54 }
 0x8af   :  { %v2449_v55 = vsel %vm2358_vm10, %v12921_v4, %v2340_v35 }
 0x8b4   :  { %v2319_v42 = vpop.permute.xlu1 %2318 }
 0x8b5   :  { %v2287_v3 = vpop.permute.xlu0 %2286  ;;  %v2356_v0 = vsel %vm350_vm11, %v2319_v42, %v2321_v2 }
 0x8b6   :  { %v2348_v32 = vsel %vm350_vm11, %v2287_v3, %v2289_v34  ;;  %v13204_v63 = vsel %vm2358_vm10, %v12975_v21, %v2356_v0 }
 0x8b7   :  { %v2481_v38 = vsel %vm2358_vm10, %v12960_v9, %v2348_v32 }
 0x8bc   :  { %v2229_v36 = vpop.permute.xlu1 %2228 }
 0x8bd   :  { %v2293_v15 = vpop.permute.xlu0 %2292 }
 0x8be   :  { %v2349_v31 = vsel %vm350_vm11, %v2291_v58, %v2293_v15 }
 0x8bf   :  { %v2485_v4 = vsel %vm2358_vm10, %v12962_v7, %v2349_v31 }
 0x8c4   :  { %v2259_v40 = vpop.permute.xlu1 %2258 }
 0x8c5   :  { %v2227_v28 = vpop.permute.xlu0 %2226  ;;  %v2341_v12 = vsel %vm350_vm11, %v2259_v40, %v2261_v27 }
 0x8c6   :  { %v2333_v24 = vsel %vm350_vm11, %v2227_v28, %v2229_v36  ;;  %v2453_v21 = vsel %vm2358_vm10, %v13002_v18, %v2341_v12 }
 0x8c7   :  { %v2421_v47 = vsel %vm2358_vm10, %v12991_v43, %v2333_v24  ;;  %3405 = vmatpush.bf16.msrb.mxu3 %v2453_v21 }
 0x8cc   :  { %v2325_v9 = vpop.permute.xlu1 %2324 }
 0x8cd   :  { %v2323_v60 = vpop.permute.xlu0 %2322 }
 0x8ce   :  { %v2357_v34 = vsel %vm350_vm11, %v2323_v60, %v2325_v9 }
 0x8cf   :  { %v2517_v49 = vsel %vm2358_vm10, %v13000_v10, %v2357_v34 }
 0x8d0   :  { %11191 = dma.done.wait [#allocation4], 10240 }
 0x8d1   :  { %11192 = vsyncadd [#allocation4], 4294957056  ;;  %3316 = vmatpush.bf16.msra.mxu1 %v2421_v47  ;;  %3494 = vmatpush.bf16.msrb.mxu2 %v2485_v4  ;;  %v16166_v7 = vmov 0   ;;  %v2619_v43 = vld [vmem:[%s16095_s8] sm:$0xff]  ;;  %v16167_v10 = vld [vmem:[#allocation19_spill] sm:$0xff]  ;;  %vm4136_vm5 = vcmask 490496  }
 0x8d2   :  { %11009 = vset.pattern.permute.xlu0 %v16166_v7  ;;  %11010 = vset.pattern.permute.xlu1 %v16166_v7  ;;  %v9221_v18 = vld [vmem:[#allocation2 + $0x8] sm:$0xf]  ;;  %v10595_v23 = vld [vmem:[#allocation2 + $0x18] sm:$0xf0]  ;;  %v10604_v46 = vld [vmem:[#allocation2 + $0x60] sm:$0xf0] }
 0x8d3   :  { %11011 = vset.pattern.permute.xlu2 %v16166_v7  ;;  %3228 = vmatpush.bf16.msra.mxu0 %v12985_v6  ;;  %v2621_v6 = vld [vmem:[%s16095_s8 + $0x10] sm:$0xff]  ;;  %v9261_v57 = vld [vmem:[#allocation2 + $0x58] sm:$0xf]  ;;  %v10605_v54 = vld [vmem:[#allocation2 + $0x68] sm:$0xf0] }
 0x8d4   :  { %3406 = vmatpush.bf16.msrb.mxu3 %v2449_v55  ;;  %2653 = vperm.xlu0 %11009, %v2619_v43   ;;  %v10602_v35 = vld [vmem:[#allocation2 + $0x54] sm:$0xf]  ;;  %v9263_v55 = vld [vmem:[#allocation2 + $0x6c] sm:$0xf0]  ;;  %v9262_v42 = vor.u32 %v10605_v54, %v9261_v57  ;;  %v9273_v32 = vld [vmem:[#allocation2 + $0x78] sm:$0xf] }
 0x8d5   :  { %3317 = vmatpush.bf16.msra.mxu1 %v2417_v45  ;;  %3495 = vmatpush.bf16.msrb.mxu2 %v2481_v38  ;;  %v9255_v45 = vld [vmem:[#allocation2 + $0x64] sm:$0xf0]  ;;  %v9281_v38 = vld [vmem:[#allocation2 + $0x80] sm:$0xf]  ;;  %v10610_v36 = vld [vmem:[#allocation2 + $0x90] sm:$0xf0] }
 0x8d6   :  { %2663 = vperm.xlu1 %11010, %v2621_v6   ;;  %v9258_v3 = vor.u32 %v10602_v35, %v9255_v45  ;;  %v10607_v15 = vld [vmem:[#allocation2 + $0x7c] sm:$0xf]  ;;  %v9275_v31 = vld [vmem:[#allocation2 + $0x8c] sm:$0xf0]  ;;  %v10608_v4 = vld [vmem:[#allocation2 + $0x84] sm:$0xf]  ;;  %v9282_v12 = vor.u32 %v10610_v36, %v9281_v38 }
 0x8d7   :  { %3229 = vmatpush.bf16.msra.mxu0 %v12951_v56  ;;  %v2620_v56 = vld [vmem:[%s16095_s8 + $0x8] sm:$0xff]  ;;  %v9283_v40 = vld [vmem:[#allocation2 + $0x94] sm:$0xf0]  ;;  %v9278_v24 = vor.u32 %v10607_v15, %v9275_v31  ;;  %v2629_v9 = vld [vmem:[%s16095_s8 + $0x50] sm:$0xff] }
 0x8d8   :  { %3407 = vmatpush.bf16.msrb.mxu3 %v2445_v1  ;;  %v9286_v21 = vor.u32 %v10608_v4, %v9283_v40  ;;  %v2628_v47 = vld [vmem:[%s16095_s8 + $0x48] sm:$0xff]  ;;  %v9293_v60 = vld [vmem:[#allocation2 + $0xa0] sm:$0xf]  ;;  %v10614_v34 = vld [vmem:[#allocation2 + $0xb0] sm:$0xf0] }
 0x8d9   :  { %3318 = vmatpush.bf16.msra.mxu1 %v2413_v33  ;;  %3496 = vmatpush.bf16.msrb.mxu2 %v2477_v44  ;;  %v10598_v33 = vld [vmem:[#allocation2 + $0x34] sm:$0xf]  ;;  %v9243_v44 = vld [vmem:[#allocation2 + $0x44] sm:$0xf0]  ;;  %v10615_v43 = vld [vmem:[#allocation2 + $0xb8] sm:$0xf0] }
 0x8da   :  { %v9246_v58 = vor.u32 %v10598_v33, %v9243_v44  ;;  %v9295_v6 = vld [vmem:[#allocation2 + $0xb4] sm:$0xf0]  ;;  %v9333_v44 = vld [vmem:[#allocation2 + $0xf0] sm:$0xf]  ;;  %v9373_v4 = vld [vmem:[#allocation2 + $0x140] sm:$0xf] }
 0x8db   :  { %3230 = vmatpush.bf16.msra.mxu0 %v12927_v8  ;;  %v10594_v8 = vld [vmem:[#allocation2 + $0x10] sm:$0xf0]  ;;  %v2630_v33 = vld [vmem:[%s16095_s8 + $0x58] sm:$0xff] }
 0x8dc   :  { %3408 = vmatpush.bf16.msrb.mxu3 %v13174_v59  ;;  %2658 = vperm.xlu0 %11009, %v2620_v56   ;;  %v10597_v59 = vld [vmem:[#allocation2 + $0x2c] sm:$0xf]  ;;  %v10612_v56 = vld [vmem:[#allocation2 + $0xa4] sm:$0xf]  ;;  %v2633_v31 = vld [vmem:[%s16095_s8 + $0x70] sm:$0xff] }
 0x8dd   :  { %3319 = vmatpush.bf16.msra.mxu1 %v13168_v30  ;;  %3497 = vmatpush.bf16.msrb.mxu2 %v13163_v41  ;;  %v16168_v41 = vld [vmem:[#allocation18_spill] sm:$0xff]  ;;  %v10634_v40 = vld [vmem:[#allocation2 + $0x150] sm:$0xf0] }
 0x8df   :  { %3231 = vmatpush.bf16.msra.mxu0 %v12882_v37  ;;  %v9213_v37 = vld [vmem:[#allocation2] sm:$0xf] }
 0x8e0   :  { %3409 = vmatpush.bf16.msrb.mxu3 %v13148_v25  ;;  %v10593_v25 = vld [vmem:[#allocation2 + $0xc] sm:$0xf] }
 0x8e1   :  { %3320 = vmatpush.bf16.msra.mxu1 %v13144_v50  ;;  %3498 = vmatpush.bf16.msrb.mxu2 %v13158_v48  ;;  %v10592_v50 = vld [vmem:[#allocation2 + $0x4] sm:$0xf]  ;;  %v9214_v48 = vor.u32 %v10594_v8, %v9213_v37  ;;  %v10613_v37 = vld [vmem:[#allocation2 + $0xac] sm:$0xf]  ;;  %v9303_v8 = vld [vmem:[#allocation2 + $0xbc] sm:$0xf0] }
 0x8e3   :  { %3232 = vmatpush.bf16.msra.mxu0 %v12851_v11  ;;  %v9215_v11 = vld [vmem:[#allocation2 + $0x14] sm:$0xf0] }
 0x8e4   :  { %3410 = vmatpush.bf16.msrb.mxu3 %v13138_v19  ;;  %v9223_v19 = vld [vmem:[#allocation2 + $0x1c] sm:$0xf0] }
 0x8e5   :  { %3321 = vmatpush.bf16.msra.mxu1 %v13119_v61  ;;  %3499 = vmatpush.bf16.msrb.mxu2 %v13129_v52  ;;  %v9222_v61 = vor.u32 %v10595_v23, %v9221_v18  ;;  %v9218_v52 = vor.u32 %v10592_v50, %v9215_v11  ;;  %v9226_v30 = vor.u32 %v10593_v25, %v9223_v19  ;;  %v2627_v11 = vld [vmem:[%s16095_s8 + $0x40] sm:$0xff]  ;;  %v9313_v19 = vld [vmem:[#allocation2 + $0xc8] sm:$0xf] }
 0x8e6   :  { %v9298_v23 = vor.u32 %v10612_v56, %v9295_v6  ;;  %v9306_v50 = vor.u32 %v10613_v37, %v9303_v8  ;;  %v2631_v25 = vld [vmem:[%s16095_s8 + $0x60] sm:$0xff] }
 0x8e7   :  { %3233 = vmatpush.bf16.msra.mxu0 %v16167_v10  ;;  %v9294_v10 = vor.u32 %v10614_v34, %v9293_v60  ;;  %v10633_v60 = vld [vmem:[#allocation2 + $0x14c] sm:$0xf]  ;;  %v9383_v34 = vld [vmem:[#allocation2 + $0x15c] sm:$0xf0] }
 0x8e8   :  { %3411 = vmatpush.bf16.msrb.mxu3 %v13100_v22  ;;  %v9241_v22 = vld [vmem:[#allocation2 + $0x30] sm:$0xf]  ;;  %v9386_v37 = vor.u32 %v10633_v60, %v9383_v34 }
 0x8e9   :  { %3322 = vmatpush.bf16.msra.mxu1 %v13085_v39  ;;  %3500 = vmatpush.bf16.msrb.mxu2 %v13073_v13  ;;  %v2622_v13 = vld [vmem:[%s16095_s8 + $0x18] sm:$0xff] }
 0x8ea   :  { %2668 = vperm.xlu1 %11010, %v2622_v13   ;;  %v10599_v39 = vld [vmem:[#allocation2 + $0x38] sm:$0xf0]  ;;  %v10618_v13 = vld [vmem:[#allocation2 + $0xd4] sm:$0xf] }
 0x8eb   :  { %3234 = vmatpush.bf16.msra.mxu0 %v16168_v41  ;;  %v10620_v41 = vld [vmem:[#allocation2 + $0xe0] sm:$0xf0] }
 0x8ec   :  { %3412 = vmatpush.bf16.msrb.mxu3 %v13044_v20  ;;  %v9233_v20 = vld [vmem:[#allocation2 + $0x28] sm:$0xf] }
 0x8ed   :  { %3323 = vmatpush.bf16.msra.mxu1 %v13040_v14  ;;  %3501 = vmatpush.bf16.msrb.mxu2 %v13060_v53  ;;  %v10600_v14 = vld [vmem:[#allocation2 + $0x40] sm:$0xf0]  ;;  %v9235_v53 = vld [vmem:[#allocation2 + $0x3c] sm:$0xf0]  ;;  %v9234_v27 = vor.u32 %v10599_v39, %v9233_v20  ;;  %v9323_v20 = vld [vmem:[#allocation2 + $0xe4] sm:$0xf0] }
 0x8ee   :  { %3235 = vmatmul.bf16.vlgmr.msra.gmra.mxu0 %v9214_v48  ;;  %v9242_v29 = vor.u32 %v10600_v14, %v9241_v22  ;;  %v9238_v1 = vor.u32 %v10597_v59, %v9235_v53  ;;  %v10619_v48 = vld [vmem:[#allocation2 + $0xd8] sm:$0xf0]  ;;  %v9326_v59 = vor.u32 %v10618_v13, %v9323_v20  ;;  %v2632_v53 = vld [vmem:[%s16095_s8 + $0x68] sm:$0xff] }
 0x8ef   :  { %3583 = vmatpush.bf16.msrb.mxu0 %v2517_v49  ;;  %3413 = vmatmul.bf16.vlgmr.msrb.gmra.mxu3 %v9222_v61  ;;  %v9301_v49 = vld [vmem:[#allocation2 + $0xa8] sm:$0xf]  ;;  %v9321_v61 = vld [vmem:[#allocation2 + $0xd0] sm:$0xf]  ;;  %v9314_v39 = vor.u32 %v10619_v48, %v9313_v19  ;;  %v10639_v20 = vld [vmem:[#allocation2 + $0x178] sm:$0xf0] }
 0x8f0   :  { %3324 = vmatmul.bf16.vlgmr.msra.gmra.mxu1 %v9218_v52  ;;  %3502 = vmatmul.bf16.vlgmr.msrb.gmra.mxu2 %v9226_v30  ;;  %v9302_v18 = vor.u32 %v10615_v43, %v9301_v49  ;;  %v10617_v52 = vld [vmem:[#allocation2 + $0xcc] sm:$0xf]  ;;  %v9315_v30 = vld [vmem:[#allocation2 + $0xdc] sm:$0xf0]  ;;  %v9322_v22 = vor.u32 %v10620_v41, %v9321_v61  ;;  %v9374_v49 = vor.u32 %v10634_v40, %v9373_v4  ;;  %v9393_v13 = vld [vmem:[#allocation2 + $0x168] sm:$0xf] }
 0x8f1   :  { %v9318_v14 = vor.u32 %v10617_v52, %v9315_v30  ;;  %v9421_v40 = vld [vmem:[#allocation2 + $0x198] sm:$0xf] }
 0x8f3   :  { %3584 = vmatpush.bf16.msrb.mxu0 %v13204_v63  ;;  %v10609_v63 = vld [vmem:[#allocation2 + $0x88] sm:$0xf0] }
 0x8f4   :  { %v9274_v28 = vor.u32 %v10609_v63, %v9273_v32  ;;  %v9363_v32 = vld [vmem:[#allocation2 + $0x134] sm:$0xf0] }
 0x8f7   :  { %3585 = vmatpush.bf16.msrb.mxu0 %v13189_v26  ;;  %v2625_v26 = vld [vmem:[%s16095_s8 + $0x30] sm:$0xff] }
 0x8f8   :  { %2683 = vperm.xlu0 %11009, %v2625_v26   ;;  %v9335_v26 = vld [vmem:[#allocation2 + $0x104] sm:$0xf0] }
 0x8fb   :  { %3586 = vmatpush.bf16.msrb.mxu0 %v13178_v16  ;;  %v9253_v16 = vld [vmem:[#allocation2 + $0x50] sm:$0xf] }
 0x8fc   :  { %v9254_v2 = vor.u32 %v10604_v46, %v9253_v16  ;;  %v10623_v16 = vld [vmem:[#allocation2 + $0xfc] sm:$0xf]  ;;  %v9343_v46 = vld [vmem:[#allocation2 + $0x10c] sm:$0xf0] }
 0x8fd   :  { %v9346_v45 = vor.u32 %v10623_v16, %v9343_v46 }
 0x8fe   :  { %3240 = vmatmul.bf16.gmra.mxu0 %v9234_v27  ;;  %v10624_v27 = vld [vmem:[#allocation2 + $0x100] sm:$0xf0] }
 0x8ff   :  { %3587 = vmatpush.bf16.msrb.mxu0 %v13154_v17  ;;  %3418 = vmatmul.bf16.gmra.mxu3 %v9242_v29  ;;  %v10603_v17 = vld [vmem:[#allocation2 + $0x5c] sm:$0xf]  ;;  %v9341_v29 = vld [vmem:[#allocation2 + $0xf8] sm:$0xf]  ;;  %v9334_v57 = vor.u32 %v10624_v27, %v9333_v44  ;;  %v10638_v44 = vld [vmem:[#allocation2 + $0x174] sm:$0xf] }
 0x900   :  { %3329 = vmatmul.bf16.gmra.mxu1 %v9238_v1  ;;  %3507 = vmatmul.bf16.gmra.mxu2 %v9246_v58  ;;  %v9266_v0 = vor.u32 %v10603_v17, %v9263_v55  ;;  %v10625_v1 = vld [vmem:[#allocation2 + $0x108] sm:$0xf0]  ;;  %v10622_v58 = vld [vmem:[#allocation2 + $0xf4] sm:$0xf]  ;;  %v2634_v17 = vld [vmem:[%s16095_s8 + $0x78] sm:$0xff] }
 0x901   :  { %2698 = vperm.xlu0 %11009, %v2628_v47   ;;  %v9342_v54 = vor.u32 %v10625_v1, %v9341_v29  ;;  %v9338_v35 = vor.u32 %v10622_v58, %v9335_v26  ;;  %v9353_v55 = vld [vmem:[#allocation2 + $0x118] sm:$0xf]  ;;  %v10632_v47 = vld [vmem:[#allocation2 + $0x144] sm:$0xf]  ;;  %v9403_v27 = vld [vmem:[#allocation2 + $0x184] sm:$0xf0]  ;;  %v9394_v26 = vor.u32 %v10639_v20, %v9393_v13 }
 0x903   :  { %3588 = vmatpush.bf16.msrb.mxu0 %v13133_v51  ;;  %v2626_v51 = vld [vmem:[%s16095_s8 + $0x38] sm:$0xff] }
 0x904   :  { %2688 = vperm.xlu1 %11010, %v2626_v51   ;;  %v9355_v51 = vld [vmem:[#allocation2 + $0x12c] sm:$0xf0] }
 0x907   :  { %3589 = vmatpush.bf16.msrb.mxu0 %v13104_v62  ;;  %v2623_v62 = vld [vmem:[%s16095_s8 + $0x20] sm:$0xff] }
 0x908   :  { %2673 = vperm.xlu2 %11011, %v2623_v62   ;;  %v10627_v62 = vld [vmem:[#allocation2 + $0x11c] sm:$0xf] }
 0x909   :  { %2713 = vperm.xlu0 %11009, %v2631_v25   ;;  %v9358_v36 = vor.u32 %v10627_v62, %v9355_v51 }
 0x90b   :  { %3590 = vmatpush.bf16.msrb.mxu0 %v13056_v5  ;;  %v2624_v5 = vld [vmem:[%s16095_s8 + $0x28] sm:$0xff] }
 0x90c   :  { %2703 = vperm.xlu1 %11010, %v2629_v9   ;;  %v9375_v9 = vld [vmem:[#allocation2 + $0x154] sm:$0xf0] }
 0x90d   :  { %v9378_v6 = vor.u32 %v10632_v47, %v9375_v9  ;;  %v9423_v47 = vld [vmem:[#allocation2 + $0x1ac] sm:$0xf0] }
 0x90e   :  { %3245 = vmatmul.bf16.gmra.mxu0 %v9254_v2  ;;  %v10629_v2 = vld [vmem:[#allocation2 + $0x128] sm:$0xf0] }
 0x90f   :  { %3423 = vmatmul.bf16.gmra.mxu3 %v9262_v42  ;;  %v2635_v42 = vld [vmem:[%s16095_s8 + $0x80] sm:$0xff]  ;;  %v9354_v63 = vor.u32 %v10629_v2, %v9353_v55  ;;  %v2640_v2 = vld [vmem:[%s16095_s8 + $0xa8] sm:$0xff] }
 0x910   :  { %3334 = vmatmul.bf16.gmra.mxu1 %v9258_v3  ;;  %3512 = vmatmul.bf16.gmra.mxu2 %v9266_v0  ;;  %v9361_v3 = vld [vmem:[#allocation2 + $0x120] sm:$0xf]  ;;  %v10630_v0 = vld [vmem:[#allocation2 + $0x130] sm:$0xf0] }
 0x911   :  { %2678 = vperm.xlu2 %11011, %v2624_v5   ;;  %2728 = vperm.xlu0 %11009, %v2634_v17   ;;  %v10628_v5 = vld [vmem:[#allocation2 + $0x124] sm:$0xf]  ;;  %v9362_v38 = vor.u32 %v10630_v0, %v9361_v3 }
 0x912   :  { %v9366_v15 = vor.u32 %v10628_v5, %v9363_v32 }
 0x914   :  { %2718 = vperm.xlu1 %11010, %v2632_v53   ;;  %v10637_v53 = vld [vmem:[#allocation2 + $0x16c] sm:$0xf] }
 0x919   :  { %2693 = vperm.xlu2 %11011, %v2627_v11  }
 0x91c   :  { %2733 = vperm.xlu1 %11010, %v2635_v42  }
 0x91e   :  { %3250 = vmatmul.bf16.gmra.mxu0 %v9274_v28  ;;  %v2637_v28 = vld [vmem:[%s16095_s8 + $0x90] sm:$0xff] }
 0x91f   :  { %3428 = vmatmul.bf16.gmra.mxu3 %v9282_v12  ;;  %2743 = vperm.xlu0 %11009, %v2637_v28   ;;  %v10645_v28 = vld [vmem:[#allocation2 + $0x1a8] sm:$0xf0] }
 0x920   :  { %3339 = vmatmul.bf16.gmra.mxu1 %v9278_v24  ;;  %3517 = vmatmul.bf16.gmra.mxu2 %v9286_v21  ;;  %v9381_v24 = vld [vmem:[#allocation2 + $0x148] sm:$0xf]  ;;  %v10635_v21 = vld [vmem:[#allocation2 + $0x158] sm:$0xf0] }
 0x921   :  { %2708 = vperm.xlu2 %11011, %v2630_v33   ;;  %v9382_v43 = vor.u32 %v10635_v21, %v9381_v24  ;;  %v9395_v33 = vld [vmem:[#allocation2 + $0x17c] sm:$0xf0]  ;;  %v9415_v24 = vld [vmem:[#allocation2 + $0x1a4] sm:$0xf0]  ;;  %v10643_v21 = vld [vmem:[#allocation2 + $0x19c] sm:$0xf] }
 0x927   :  { %2758 = vperm.xlu0 %11009, %v2640_v2  }
 0x929   :  { %2723 = vperm.xlu2 %11011, %v2633_v31   ;;  %v2641_v31 = vld [vmem:[%s16095_s8 + $0xb0] sm:$0xff] }
 0x92e   :  { %3255 = vmatmul.bf16.gmra.mxu0 %v9294_v10 }
 0x92f   :  { %3433 = vmatmul.bf16.gmra.mxu3 %v9302_v18 }
 0x930   :  { %3344 = vmatmul.bf16.gmra.mxu1 %v9298_v23  ;;  %3522 = vmatmul.bf16.gmra.mxu2 %v9306_v50  ;;  %v2638_v23 = vld [vmem:[%s16095_s8 + $0x98] sm:$0xff] }
 0x931   :  { %2748 = vperm.xlu1 %11010, %v2638_v23  }
 0x939   :  { %2763 = vperm.xlu1 %11010, %v2641_v31  }
 0x93e   :  { %3260 = vmatmul.bf16.gmra.mxu0 %v9314_v39  ;;  %v2636_v39 = vld [vmem:[%s16095_s8 + $0x88] sm:$0xff] }
 0x93f   :  { %3438 = vmatmul.bf16.gmra.mxu3 %v9322_v22  ;;  %2738 = vperm.xlu2 %11011, %v2636_v39   ;;  %v9433_v39 = vld [vmem:[#allocation2 + $0x1b8] sm:$0xf] }
 0x940   :  { %3349 = vmatmul.bf16.gmra.mxu1 %v9318_v14  ;;  %3527 = vmatmul.bf16.gmra.mxu2 %v9326_v59  ;;  %v9401_v14 = vld [vmem:[#allocation2 + $0x170] sm:$0xf]  ;;  %v10640_v59 = vld [vmem:[#allocation2 + $0x180] sm:$0xf0] }
 0x941   :  { %v9402_v16 = vor.u32 %v10640_v59, %v9401_v14  ;;  %v2643_v14 = vld [vmem:[%s16095_s8 + $0xc0] sm:$0xff] }
 0x942   :  { %v9441_v59 = vld [vmem:[#allocation2 + $0x1c0] sm:$0xf]  ;;  %2773 = vperm.xlu0 %11009, %v2643_v14   ;;  %v9483_v14 = vld [vmem:[#allocation2 + $0x224] sm:$0xf0] }
 0x946   :  { %v2654_v12 = vpop.permute.xlu0 %2653 }
 0x948   :  { %v2664_v22 = vpop.permute.xlu1 %2663 }
 0x94e   :  { %3265 = vmatmul.bf16.gmra.mxu0 %v9334_v57  ;;  %v2659_v11 = vpop.permute.xlu0 %2658  ;;  %v9398_v57 = vor.u32 %v10637_v53, %v9395_v33  ;;  %v10650_v53 = vld [vmem:[#allocation2 + $0x1d0] sm:$0xf0]  ;;  %v10647_v33 = vld [vmem:[#allocation2 + $0x1bc] sm:$0xf] }
 0x94f   :  { %3443 = vmatmul.bf16.gmra.mxu3 %v9342_v54  ;;  %v9406_v54 = vor.u32 %v10638_v44, %v9403_v27  ;;  %v9435_v44 = vld [vmem:[#allocation2 + $0x1cc] sm:$0xf0]  ;;  %v10648_v27 = vld [vmem:[#allocation2 + $0x1c4] sm:$0xf] }
 0x950   :  { %3354 = vmatmul.bf16.gmra.mxu1 %v9338_v35  ;;  %3532 = vmatmul.bf16.gmra.mxu2 %v9346_v45 }
 0x95c   :  { %v2669_v3 = vpop.permute.xlu1 %2668 }
 0x95e   :  { %3270 = vmatmul.bf16.gmra.mxu0 %v9354_v63 }
 0x95f   :  { %3448 = vmatmul.bf16.gmra.mxu3 %v9362_v38 }
 0x960   :  { %3359 = vmatmul.bf16.gmra.mxu1 %v9358_v36  ;;  %3537 = vmatmul.bf16.gmra.mxu2 %v9366_v15  ;;  %v9413_v36 = vld [vmem:[#allocation2 + $0x190] sm:$0xf]  ;;  %v10644_v15 = vld [vmem:[#allocation2 + $0x1a0] sm:$0xf0] }
 0x962   :  { %v2674_v4 = vpop.permute.xlu2 %2673 }
 0x96b   :  { %v3236_v56 = vpop.f32.mrf.mxu0 }
 0x96c   :  { %v3237_v8 = vadd.f32 %v3236_v56, %v2654_v12  ;;  %v10642_v12 = vld [vmem:[#allocation2 + $0x194] sm:$0xf] }
 0x96d   :  { %v3325_v10 = vpop.f32.mrf.mxu1 }
 0x96e   :  { %v3326_v18 = vadd.f32 %v3325_v10, %v3237_v8  ;;  %3275 = vmatmul.bf16.gmra.mxu0 %v9374_v49  ;;  %v9414_v49 = vor.u32 %v10644_v15, %v9413_v36 }
 0x96f   :  { %3453 = vmatmul.bf16.gmra.mxu3 %v9382_v43  ;;  %v9422_v43 = vor.u32 %v10645_v28, %v9421_v40  ;;  %v9453_v40 = vld [vmem:[#allocation2 + $0x1e0] sm:$0xf]  ;;  %v10654_v28 = vld [vmem:[#allocation2 + $0x1f0] sm:$0xf0] }
 0x970   :  { %3364 = vmatmul.bf16.gmra.mxu1 %v9378_v6  ;;  %3542 = vmatmul.bf16.gmra.mxu2 %v9386_v37  ;;  %v9418_v6 = vor.u32 %v10642_v12, %v9415_v24  ;;  %v9426_v37 = vor.u32 %v10643_v21, %v9423_v47  ;;  %v2642_v12 = vld [vmem:[%s16095_s8 + $0xb8] sm:$0xff]  ;;  %v9461_v24 = vld [vmem:[#allocation2 + $0x1e8] sm:$0xf]  ;;  %v10652_v47 = vld [vmem:[#allocation2 + $0x1e4] sm:$0xf] }
 0x971   :  { %v10655_v21 = vld [vmem:[#allocation2 + $0x1f8] sm:$0xf0] }
 0x972   :  { %v3414_v50 = vpop.f32.mrf.mxu3 }
 0x973   :  { %v3415_v25 = vadd.f32 %v3414_v50, %v3326_v18  ;;  %v3503_v19 = vpop.f32.mrf.mxu2  ;;  %v3238_v48 = vpop.f32.mrf.mxu0  ;;  %v2639_v50 = vld [vmem:[%s16095_s8 + $0xa0] sm:$0xff] }
 0x974   :  { %v3239_v61 = vadd.f32 %v3238_v48, %v2659_v11  ;;  %2753 = vperm.xlu2 %11011, %v2639_v50  }
 0x975   :  { %v13310_v41 = vadd.f32 %v3503_v19, %v3415_v25  ;;  %v3327_v52 = vpop.f32.mrf.mxu1  ;;  %v2679_v25 = vpop.permute.xlu2 %2678 }
 0x976   :  { %v3328_v30 = vadd.f32 %v3327_v52, %v3239_v61 }
 0x97a   :  { %v3416_v29 = vpop.f32.mrf.mxu3 }
 0x97b   :  { %v3417_v1 = vadd.f32 %v3416_v29, %v3328_v30  ;;  %v3505_v58 = vpop.f32.mrf.mxu2  ;;  %v3241_v46 = vpop.f32.mrf.mxu0  ;;  %v9443_v29 = vld [vmem:[#allocation2 + $0x1d4] sm:$0xf0] }
 0x97c   :  { %v3242_v35 = vadd.f32 %v3241_v46, %v2664_v22  ;;  %v10649_v22 = vld [vmem:[#allocation2 + $0x1c8] sm:$0xf0]  ;;  %2768 = vperm.xlu2 %11011, %v2642_v12   ;;  %v9515_v12 = vld [vmem:[#allocation2 + $0x26c] sm:$0xf0] }
 0x97d   :  { %v13315_v45 = vadd.f32 %v3505_v58, %v3417_v1  ;;  %v3330_v17 = vpop.f32.mrf.mxu1  ;;  %v2684_v58 = vpop.permute.xlu0 %2683  ;;  %v9434_v46 = vor.u32 %v10649_v22, %v9433_v39  ;;  %v9475_v39 = vld [vmem:[#allocation2 + $0x21c] sm:$0xf0]  ;;  %v10658_v22 = vld [vmem:[#allocation2 + $0x214] sm:$0xf] }
 0x97e   :  { %v3331_v55 = vadd.f32 %v3330_v17, %v3242_v35  ;;  %3280 = vmatmul.bf16.gmra.mxu0 %v9394_v26  ;;  %v9438_v35 = vor.u32 %v10647_v33, %v9435_v44  ;;  %v9446_v17 = vor.u32 %v10648_v27, %v9443_v29  ;;  %v9486_v27 = vor.u32 %v10658_v22, %v9483_v14  ;;  %v2645_v29 = vld [vmem:[%s16095_s8 + $0xd0] sm:$0xff] }
 0x97f   :  { %3458 = vmatmul.bf16.gmra.mxu3 %v9402_v16 }
 0x980   :  { %3369 = vmatmul.bf16.gmra.mxu1 %v9398_v57  ;;  %3547 = vmatmul.bf16.gmra.mxu2 %v9406_v54  ;;  %v9442_v57 = vor.u32 %v10650_v53, %v9441_v59 }
 0x982   :  { %v3419_v42 = vpop.f32.mrf.mxu3 }
 0x983   :  { %v3420_v0 = vadd.f32 %v3419_v42, %v3331_v55  ;;  %v3508_v62 = vpop.f32.mrf.mxu2  ;;  %v3243_v51 = vpop.f32.mrf.mxu0 }
 0x984   :  { %v3244_v5 = vadd.f32 %v3243_v51, %v2669_v3  ;;  %v2689_v51 = vpop.permute.xlu1 %2688  ;;  %2783 = vperm.xlu2 %11011, %v2645_v29  }
 0x985   :  { %v13320_v32 = vadd.f32 %v3508_v62, %v3420_v0  ;;  %v3332_v63 = vpop.f32.mrf.mxu1  ;;  %v2644_v0 = vld [vmem:[%s16095_s8 + $0xc8] sm:$0xff] }
 0x986   :  { %v3333_v38 = vadd.f32 %v3332_v63, %v3244_v5  ;;  %2778 = vperm.xlu1 %11010, %v2644_v0  }
 0x98a   :  { %v3421_v9 = vpop.f32.mrf.mxu3 }
 0x98b   :  { %v3422_v60 = vadd.f32 %v3421_v9, %v3333_v38  ;;  %v3510_v34 = vpop.f32.mrf.mxu2  ;;  %v3246_v56 = vpop.f32.mrf.mxu0  ;;  %v9455_v9 = vld [vmem:[#allocation2 + $0x1f4] sm:$0xf0] }
 0x98c   :  { %v3247_v8 = vadd.f32 %v3246_v56, %v2674_v4 }
 0x98d   :  { %v13325_v10 = vadd.f32 %v3510_v34, %v3422_v60  ;;  %v3335_v18 = vpop.f32.mrf.mxu1  ;;  %v10653_v60 = vld [vmem:[#allocation2 + $0x1ec] sm:$0xf]  ;;  %v9463_v34 = vld [vmem:[#allocation2 + $0x1fc] sm:$0xf0] }
 0x98e   :  { %v3336_v23 = vadd.f32 %v3335_v18, %v3247_v8  ;;  %3285 = vmatmul.bf16.gmra.mxu0 %v9414_v49  ;;  %v9458_v18 = vor.u32 %v10652_v47, %v9455_v9 }
 0x98f   :  { %3463 = vmatmul.bf16.gmra.mxu3 %v9422_v43 }
 0x990   :  { %3374 = vmatmul.bf16.gmra.mxu1 %v9418_v6  ;;  %3552 = vmatmul.bf16.gmra.mxu2 %v9426_v37  ;;  %v9454_v6 = vor.u32 %v10654_v28, %v9453_v40  ;;  %v9462_v37 = vor.u32 %v10655_v21, %v9461_v24  ;;  %v10670_v40 = vld [vmem:[#allocation2 + $0x270] sm:$0xf0]  ;;  %v10667_v28 = vld [vmem:[#allocation2 + $0x25c] sm:$0xf]  ;;  %v10668_v24 = vld [vmem:[#allocation2 + $0x264] sm:$0xf] }
 0x991   :  { %v9523_v21 = vld [vmem:[#allocation2 + $0x274] sm:$0xf0] }
 0x992   :  { %v3424_v11 = vpop.f32.mrf.mxu3 }
 0x993   :  { %v3425_v19 = vadd.f32 %v3424_v11, %v3336_v23  ;;  %v3513_v48 = vpop.f32.mrf.mxu2  ;;  %v3248_v61 = vpop.f32.mrf.mxu0  ;;  %v9466_v23 = vor.u32 %v10653_v60, %v9463_v34  ;;  %v2646_v11 = vld [vmem:[%s16095_s8 + $0xd8] sm:$0xff]  ;;  %v9518_v34 = vor.u32 %v10667_v28, %v9515_v12 }
 0x994   :  { %v3249_v52 = vadd.f32 %v3248_v61, %v2679_v25  ;;  %2788 = vperm.xlu0 %11009, %v2646_v11   ;;  %v2647_v61 = vld [vmem:[%s16095_s8 + $0xe0] sm:$0xff] }
 0x995   :  { %v13330_v30 = vadd.f32 %v3513_v48, %v3425_v19  ;;  %v3337_v13 = vpop.f32.mrf.mxu1  ;;  %v9473_v19 = vld [vmem:[#allocation2 + $0x208] sm:$0xf]  ;;  %v10659_v48 = vld [vmem:[#allocation2 + $0x218] sm:$0xf0]  ;;  %2793 = vperm.xlu1 %11010, %v2647_v61   ;;  %v10601_v61 = vld [vmem:[#allocation2 + $0x48] sm:$0xf0] }
 0x996   :  { %v3338_v20 = vadd.f32 %v3337_v13, %v3249_v52  ;;  %v9481_v52 = vld [vmem:[#allocation2 + $0x210] sm:$0xf]  ;;  %v10660_v13 = vld [vmem:[#allocation2 + $0x220] sm:$0xf0]  ;;  %v9474_v59 = vor.u32 %v10659_v48, %v9473_v19  ;;  %v9249_v48 = vld [vmem:[#allocation2 + $0x38] sm:$0xf] }
 0x997   :  { %v9482_v53 = vor.u32 %v10660_v13, %v9481_v52  ;;  %v9250_v13 = vor.u32 %v10601_v61, %v9249_v48 }
 0x99a   :  { %v3426_v1 = vpop.f32.mrf.mxu3 }
 0x99b   :  { %v3427_v26 = vadd.f32 %v3426_v1, %v3338_v20  ;;  %v3515_v16 = vpop.f32.mrf.mxu2  ;;  %v3251_v54 = vpop.f32.mrf.mxu0  ;;  %v10657_v20 = vld [vmem:[#allocation2 + $0x20c] sm:$0xf] }
 0x99c   :  { %v3252_v55 = vadd.f32 %v3251_v54, %v2684_v58  ;;  %v9478_v44 = vor.u32 %v10657_v20, %v9475_v39  ;;  %v9493_v58 = vld [vmem:[#allocation2 + $0x230] sm:$0xf]  ;;  %v10662_v54 = vld [vmem:[#allocation2 + $0x234] sm:$0xf]  ;;  %v13393_v39 = vpop.permute.xlu0 %2698 }
 0x99d   :  { %v13335_v2 = vadd.f32 %v3515_v16, %v3427_v26  ;;  %v3340_v42 = vpop.f32.mrf.mxu1  ;;  %v10664_v26 = vld [vmem:[#allocation2 + $0x240] sm:$0xf0]  ;;  %v2649_v16 = vld [vmem:[%s16095_s8 + $0xf0] sm:$0xff] }
 0x99e   :  { %v3341_v3 = vadd.f32 %v3340_v42, %v3252_v55  ;;  %3290 = vmatmul.bf16.gmra.mxu0 %v9434_v46  ;;  %v9501_v46 = vld [vmem:[#allocation2 + $0x238] sm:$0xf]  ;;  %2803 = vperm.xlu0 %11009, %v2649_v16   ;;  %v9503_v55 = vld [vmem:[#allocation2 + $0x24c] sm:$0xf0]  ;;  %v9494_v42 = vor.u32 %v10664_v26, %v9493_v58 }
 0x99f   :  { %3468 = vmatmul.bf16.gmra.mxu3 %v9442_v57  ;;  %v10665_v57 = vld [vmem:[#allocation2 + $0x248] sm:$0xf0] }
 0x9a0   :  { %3379 = vmatmul.bf16.gmra.mxu1 %v9438_v35  ;;  %3557 = vmatmul.bf16.gmra.mxu2 %v9446_v17  ;;  %v9495_v35 = vld [vmem:[#allocation2 + $0x244] sm:$0xf0]  ;;  %v10663_v17 = vld [vmem:[#allocation2 + $0x23c] sm:$0xf] }
 0x9a2   :  { %v3429_v62 = vpop.f32.mrf.mxu3 }
 0x9a3   :  { %v3430_v5 = vadd.f32 %v3429_v62, %v3341_v3  ;;  %v3518_v63 = vpop.f32.mrf.mxu2  ;;  %v3253_v38 = vpop.f32.mrf.mxu0  ;;  %v9502_v3 = vor.u32 %v10665_v57, %v9501_v46  ;;  %v9498_v62 = vor.u32 %v10662_v54, %v9495_v35  ;;  %v9289_v57 = vld [vmem:[#allocation2 + $0x88] sm:$0xf]  ;;  %v10611_v54 = vld [vmem:[#allocation2 + $0x98] sm:$0xf0] }
 0x9a4   :  { %v3254_v36 = vadd.f32 %v3253_v38, %v2689_v51  ;;  %v9506_v51 = vor.u32 %v10663_v17, %v9503_v55  ;;  %v9513_v38 = vld [vmem:[#allocation2 + $0x258] sm:$0xf]  ;;  %v13407_v35 = vpop.permute.xlu1 %2703  ;;  %v9290_v55 = vor.u32 %v10611_v54, %v9289_v57 }
 0x9a5   :  { %v13340_v15 = vadd.f32 %v3518_v63, %v3430_v5  ;;  %v3342_v31 = vpop.f32.mrf.mxu1  ;;  %v2650_v5 = vld [vmem:[%s16095_s8 + $0xf8] sm:$0xff] }
 0x9a6   :  { %v3343_v4 = vadd.f32 %v3342_v31, %v3254_v36  ;;  %2808 = vperm.xlu1 %11010, %v2650_v5   ;;  %v10669_v36 = vld [vmem:[#allocation2 + $0x268] sm:$0xf0] }
 0x9a7   :  { %v2648_v31 = vld [vmem:[%s16095_s8 + $0xe8] sm:$0xff]  ;;  %v9514_v47 = vor.u32 %v10669_v36, %v9513_v38  ;;  %v9309_v36 = vld [vmem:[#allocation2 + $0xb0] sm:$0xf] }
 0x9a8   :  { %2798 = vperm.xlu2 %11011, %v2648_v31   ;;  %v10616_v31 = vld [vmem:[#allocation2 + $0xc0] sm:$0xf0] }
 0x9a9   :  { %v9310_v28 = vor.u32 %v10616_v31, %v9309_v36  ;;  %v10631_v36 = vld [vmem:[#allocation2 + $0x138] sm:$0xf0] }
 0x9aa   :  { %v3431_v49 = vpop.f32.mrf.mxu3 }
 0x9ab   :  { %v3432_v43 = vadd.f32 %v3431_v49, %v3343_v4  ;;  %v3520_v56 = vpop.f32.mrf.mxu2  ;;  %v13345_v8 = vpop.f32.mrf.mxu0  ;;  %v9521_v4 = vld [vmem:[#allocation2 + $0x260] sm:$0xf]  ;;  %v9526_v49 = vor.u32 %v10668_v24, %v9523_v21 }
 0x9ac   :  { %v9522_v9 = vor.u32 %v10670_v40, %v9521_v4 }
 0x9ad   :  { %v13347_v50 = vadd.f32 %v3520_v56, %v3432_v43  ;;  %v9229_v56 = vld [vmem:[#allocation2 + $0x10] sm:$0xf] }
 0x9ae   :  { %3295 = vmatmul.bf16.gmra.mxu0 %v9454_v6  ;;  %v10596_v6 = vld [vmem:[#allocation2 + $0x20] sm:$0xf0] }
 0x9af   :  { %3473 = vmatmul.bf16.gmra.mxu3 %v9462_v37  ;;  %v13381_v37 = vpop.permute.xlu2 %2693 }
 0x9b0   :  { %3384 = vmatmul.bf16.gmra.mxu1 %v9458_v18  ;;  %3562 = vmatmul.bf16.gmra.mxu2 %v9466_v23  ;;  %v9230_v18 = vor.u32 %v10596_v6, %v9229_v56 }
 0x9b3   :  { %v13352_v25 = vpop.f32.mrf.mxu0 }
 0x9b7   :  { %v13385_v11 = vpop.permute.xlu2 %2708 }
 0x9bb   :  { %v13357_v33 = vpop.f32.mrf.mxu0 }
 0x9be   :  { %3300 = vmatmul.bf16.gmra.mxu0 %v9474_v59  ;;  %v9269_v59 = vld [vmem:[#allocation2 + $0x60] sm:$0xf] }
 0x9bf   :  { %3478 = vmatmul.bf16.gmra.mxu3 %v9482_v53  ;;  %v13389_v52 = vpop.permute.xlu2 %2723  ;;  %v10606_v53 = vld [vmem:[#allocation2 + $0x70] sm:$0xf0] }
 0x9c0   :  { %3389 = vmatmul.bf16.gmra.mxu1 %v9478_v44  ;;  %3567 = vmatmul.bf16.gmra.mxu2 %v9486_v27  ;;  %v13399_v44 = vpop.permute.xlu0 %2713  ;;  %v9270_v29 = vor.u32 %v10606_v53, %v9269_v59 }
 0x9c3   :  { %v13362_v1 = vpop.f32.mrf.mxu0 }
 0x9c7   :  { %v13395_v22 = vpop.permute.xlu2 %2738 }
 0x9c8   :  { %v13403_v16 = vpop.permute.xlu0 %2728 }
 0x9cb   :  { %v13367_v0 = vpop.f32.mrf.mxu0 }
 0x9ce   :  { %3305 = vmatmul.bf16.gmra.mxu0 %v9494_v42 }
 0x9cf   :  { %3483 = vmatmul.bf16.gmra.mxu3 %v9502_v3  ;;  %v2754_v27 = vpop.permute.xlu2 %2753  ;;  %v13413_v3 = vpop.permute.xlu1 %2718 }
 0x9d0   :  { %3394 = vmatmul.bf16.gmra.mxu1 %v9498_v62  ;;  %3572 = vmatmul.bf16.gmra.mxu2 %v9506_v51  ;;  %v13409_v17 = vpop.permute.xlu0 %2743 }
 0x9d3   :  { %v13372_v63 = vpop.f32.mrf.mxu0 }
 0x9d7   :  { %v2769_v51 = vpop.permute.xlu2 %2768  ;;  %v13419_v4 = vpop.permute.xlu1 %2733 }
 0x9d8   :  { %v13415_v62 = vpop.permute.xlu0 %2758 }
 0x9db   :  { %v13377_v60 = vpop.f32.mrf.mxu0 }
 0x9de   :  { %3310 = vmatmul.bf16.gmra.mxu0 %v9514_v47 }
 0x9df   :  { %3488 = vmatmul.bf16.gmra.mxu3 %v9522_v9  ;;  %v13423_v21 = vpop.permute.xlu1 %2748  ;;  %v9329_v9 = vld [vmem:[#allocation2 + $0xd8] sm:$0xf]  ;;  %v2784_v56 = vpop.permute.xlu2 %2783 }
 0x9e0   :  { %3399 = vmatmul.bf16.gmra.mxu1 %v9518_v34  ;;  %3577 = vmatmul.bf16.gmra.mxu2 %v9526_v49  ;;  %v2774_v40 = vpop.permute.xlu0 %2773  ;;  %v10621_v34 = vld [vmem:[#allocation2 + $0xe8] sm:$0xf0] }
 0x9e1   :  { %v9330_v6 = vor.u32 %v10621_v34, %v9329_v9  ;;  %v10636_v9 = vld [vmem:[#allocation2 + $0x160] sm:$0xf0] }
 0x9e3   :  { %v13379_v43 = vpop.f32.mrf.mxu0 }
 0x9e7   :  { %v13427_v49 = vpop.permute.xlu1 %2763 }
 0x9e8   :  { %16174 = vst [vmem:[#allocation23_spill] sm:$0xff] %v13427_v49 }
 0x9eb   :  { %v13383_v23 = vpop.f32.mrf.mxu0 }
 0x9ee   :  { %3591 = vmatmul.bf16.vlgmr.msrb.gmra.mxu0 %v9230_v18 }
 0x9f3   :  { %v13387_v19 = vpop.f32.mrf.mxu0 }
 0x9f8   :  { %v13431_v61 = vpop.permute.xlu1 %2778 }
 0x9f9   :  { %16176 = vst [vmem:[#allocation25_spill] sm:$0xff] %v13431_v61 }
 0x9fb   :  { %v13391_v20 = vpop.f32.mrf.mxu0 }
 0x9fe   :  { %3596 = vmatmul.bf16.gmra.mxu0 %v9250_v13 }
 0xa03   :  { %v13397_v14 = vpop.f32.mrf.mxu0 }
 0xa06   :  { %v2789_v13 = vpop.permute.xlu0 %2788 }
 0xa0b   :  { %v3286_v58 = vpop.f32.mrf.mxu0 }
 0xa0c   :  { %v13401_v26 = vadd.f32 %v3286_v58, %v2754_v27  ;;  %v9349_v27 = vld [vmem:[#allocation2 + $0x100] sm:$0xf]  ;;  %v2794_v58 = vpop.permute.xlu1 %2793 }
 0xa0e   :  { %16169 = vst [vmem:[#allocation19_spill] sm:$0xff] %v13401_v26  ;;  %3601 = vmatmul.bf16.gmra.mxu0 %v9270_v29  ;;  %v10626_v29 = vld [vmem:[#allocation2 + $0x110] sm:$0xf0] }
 0xa0f   :  { %v9350_v57 = vor.u32 %v10626_v29, %v9349_v27  ;;  %v13449_v27 = vpop.f32.mrf.mxu3 }
 0xa13   :  { %v13405_v46 = vpop.f32.mrf.mxu0 }
 0xa1b   :  { %v13411_v42 = vpop.f32.mrf.mxu0 }
 0xa1c   :  { %16170 = vst [vmem:[#allocation18_spill] sm:$0xff] %v13411_v42 }
 0xa1e   :  { %3606 = vmatmul.bf16.gmra.mxu0 %v9290_v55 }
 0xa23   :  { %v3293_v5 = vpop.f32.mrf.mxu0 }
 0xa24   :  { %v13417_v38 = vadd.f32 %v3293_v5, %v2769_v51  ;;  %v9369_v5 = vld [vmem:[#allocation2 + $0x128] sm:$0xf] }
 0xa25   :  { %v9370_v31 = vor.u32 %v10631_v36, %v9369_v5 }
 0xa26   :  { %16171 = vst [vmem:[#allocation20_spill] sm:$0xff] %v13417_v38 }
 0xa2b   :  { %v3296_v12 = vpop.f32.mrf.mxu0 }
 0xa2c   :  { %v13421_v24 = vadd.f32 %v3296_v12, %v2774_v40  ;;  %v9389_v12 = vld [vmem:[#allocation2 + $0x150] sm:$0xf] }
 0xa2d   :  { %v9390_v34 = vor.u32 %v10636_v9, %v9389_v12  ;;  %v3436_v12 = vpop.f32.mrf.mxu3 }
 0xa2e   :  { %16172 = vst [vmem:[#allocation21_spill] sm:$0xff] %v13421_v24  ;;  %3611 = vmatmul.bf16.gmra.mxu0 %v9310_v28 }
 0xa33   :  { %v13425_v47 = vpop.f32.mrf.mxu0 }
 0xa34   :  { %16173 = vst [vmem:[#allocation22_spill] sm:$0xff] %v13425_v47 }
 0xa3b   :  { %v3301_v18 = vpop.f32.mrf.mxu0 }
 0xa3c   :  { %v13429_v48 = vadd.f32 %v3301_v18, %v2784_v56  ;;  %v3345_v18 = vpop.f32.mrf.mxu1 }
 0xa3e   :  { %16175 = vst [vmem:[#allocation24_spill] sm:$0xff] %v13429_v48  ;;  %3616 = vmatmul.bf16.gmra.mxu0 %v9330_v6  ;;  %v9449_v48 = vld [vmem:[#allocation2 + $0x1c8] sm:$0xf] }
 0xa43   :  { %v3303_v59 = vpop.f32.mrf.mxu0 }
 0xa44   :  { %v13433_v53 = vadd.f32 %v3303_v59, %v2789_v13 }
 0xa46   :  { %16177 = vst [vmem:[#allocation26_spill] sm:$0xff] %v13433_v53 }
 0xa4b   :  { %v3306_v54 = vpop.f32.mrf.mxu0 }
 0xa4c   :  { %v13435_v55 = vadd.f32 %v3306_v54, %v2794_v58  ;;  %v10641_v54 = vld [vmem:[#allocation2 + $0x188] sm:$0xf0] }
 0xa4e   :  { %16178 = vst [vmem:[#allocation27_spill] sm:$0xff] %v13435_v55  ;;  %3621 = vmatmul.bf16.gmra.mxu0 %v9350_v57  ;;  %v9409_v57 = vld [vmem:[#allocation2 + $0x178] sm:$0xf] }
 0xa4f   :  { %v9410_v36 = vor.u32 %v10641_v54, %v9409_v57  ;;  %v10646_v57 = vld [vmem:[#allocation2 + $0x1b0] sm:$0xf0] }
 0xa53   :  { %v13437_v51 = vpop.f32.mrf.mxu0 }
 0xa54   :  { %16179 = vst [vmem:[#allocation28_spill] sm:$0xff] %v13437_v51 }
 0xa5b   :  { %v13439_v40 = vpop.f32.mrf.mxu0 }
 0xa5c   :  { %16180 = vst [vmem:[#allocation29_spill] sm:$0xff] %v13439_v40 }
 0xa5e   :  { %3626 = vmatmul.bf16.gmra.mxu0 %v9370_v31  ;;  %v3347_v31 = vpop.f32.mrf.mxu1 }
 0xa63   :  { %v13441_v28 = vpop.f32.mrf.mxu0 }
 0xa64   :  { %16181 = vst [vmem:[#allocation30_spill] sm:$0xff] %v13441_v28 }
 0xa6b   :  { %v3592_v56 = vpop.f32.mrf.mxu0 }
 0xa6c   :  { %v13444_v6 = vadd.f32 %v3592_v56, %v13310_v41  ;;  %v13457_v41 = vpop.f32.mrf.mxu2 }
 0xa6e   :  { %3631 = vmatmul.bf16.gmra.mxu0 %v9390_v34  ;;  %v16112_v29 = vmax.f32 %v13444_v6, 0.0 }
 0xa73   :  { %v3594_v13 = vpop.f32.mrf.mxu0 }
 0xa74   :  { %v13447_v59 = vadd.f32 %v3594_v13, %v13315_v45  ;;  %v3525_v56 = vpop.f32.mrf.mxu2 }
 0xa76   :  { %v16113_v58 = vmax.f32 %v13447_v59, 0.0 }
 0xa78   :  { %v11012_v5 = vpack.i.bf16 %v16113_v58, %v16112_v29  ;;  %v13468_v58 = vpop.f32.mrf.mxu1 }
 0xa7a   :  { %11013 = vrot.lane.b32.xlu2 %v11012_v5, %s11202_s19  ;;  %v9429_v5 = vld [vmem:[#allocation2 + $0x1a0] sm:$0xf] }
 0xa7b   :  { %v3597_v45 = vpop.f32.mrf.mxu0 }
 0xa7c   :  { %v13461_v9 = vadd.f32 %v3597_v45, %v13320_v32  ;;  %v13474_v32 = vpop.f32.mrf.mxu3  ;;  %v13477_v45 = vpop.f32.mrf.mxu2 }
 0xa7e   :  { %3636 = vmatmul.bf16.gmra.mxu0 %v9410_v36  ;;  %v16114_v7 = vmax.f32 %v13461_v9, 0.0  ;;  %v9430_v36 = vor.u32 %v10646_v57, %v9429_v5 }
 0xa83   :  { %v3599_v34 = vpop.f32.mrf.mxu0 }
 0xa84   :  { %v13464_v13 = vadd.f32 %v3599_v34, %v13325_v10  ;;  %v3352_v34 = vpop.f32.mrf.mxu1  ;;  %v3441_v55 = vpop.f32.mrf.mxu3 }
 0xa85   :  { %v3530_v5 = vpop.f32.mrf.mxu2 }
 0xa86   :  { %v16115_v29 = vmax.f32 %v13464_v13, 0.0 }
 0xa88   :  { %v11017_v54 = vpack.i.bf16 %v16115_v29, %v16114_v7 }
 0xa8a   :  { %11018 = vrot.lane.b32.xlu0 %v11017_v54, %s11202_s19  ;;  %v10651_v54 = vld [vmem:[#allocation2 + $0x1d8] sm:$0xf0] }
 0xa8b   :  { %v3602_v10 = vpop.f32.mrf.mxu0 }
 0xa8c   :  { %v13480_v40 = vadd.f32 %v3602_v10, %v13330_v30  ;;  %v9450_v30 = vor.u32 %v10651_v54, %v9449_v48  ;;  %v3257_v48 = vadd.f32 %v13345_v8, %v13381_v37 }
 0xa8e   :  { %3641 = vmatmul.bf16.gmra.mxu0 %v9430_v36  ;;  %v16116_v7 = vmax.f32 %v13480_v40, 0.0  ;;  %v13492_v36 = vpop.f32.mrf.mxu1 }
 0xa93   :  { %v3604_v28 = vpop.f32.mrf.mxu0 }
 0xa94   :  { %v13483_v51 = vadd.f32 %v3604_v28, %v13335_v2  ;;  %v13494_v2 = vpop.f32.mrf.mxu3  ;;  %v13496_v28 = vpop.f32.mrf.mxu2 }
 0xa96   :  { %v16117_v29 = vmax.f32 %v13483_v51, 0.0  ;;  %v13504_v61 = vpop.f32.mrf.mxu1 }
 0xa98   :  { %v11022_v57 = vpack.i.bf16 %v16117_v29, %v16116_v7  ;;  %v9469_v7 = vld [vmem:[#allocation2 + $0x1f0] sm:$0xf]  ;;  %v3259_v29 = vadd.f32 %v13352_v25, %v13393_v39 }
 0xa9a   :  { %11023 = vrot.lane.b32.xlu1 %v11022_v57, %s11202_s19  ;;  %v3348_v38 = vadd.f32 %v3347_v31, %v3259_v29  ;;  %v9489_v31 = vld [vmem:[#allocation2 + $0x218] sm:$0xf] }
 0xa9b   :  { %v3607_v10 = vpop.f32.mrf.mxu0 }
 0xa9c   :  { %v13499_v53 = vadd.f32 %v3607_v10, %v13340_v15  ;;  %v3446_v15 = vpop.f32.mrf.mxu3  ;;  %v3535_v42 = vpop.f32.mrf.mxu2  ;;  %v3437_v49 = vadd.f32 %v3436_v12, %v3348_v38  ;;  %v10661_v12 = vld [vmem:[#allocation2 + $0x228] sm:$0xf0] }
 0xa9e   :  { %3646 = vmatmul.bf16.gmra.mxu0 %v9450_v30  ;;  %16182 = vst [vmem:[#allocation31_spill] sm:$0xff] %v13499_v53  ;;  %v3678_v54 = vmax.f32 %v13499_v53, 0.0  ;;  %v10656_v30 = vld [vmem:[#allocation2 + $0x200] sm:$0xf0]  ;;  %v13518_v26 = vpop.f32.mrf.mxu1  ;;  %v3526_v39 = vadd.f32 %v3525_v56, %v3437_v49  ;;  %v3264_v49 = vadd.f32 %v13362_v1, %v13385_v11 }
 0xa9f   :  { %v9470_v10 = vor.u32 %v10656_v30, %v9469_v7  ;;  %v3262_v7 = vadd.f32 %v13357_v33, %v13407_v35  ;;  %v9490_v35 = vor.u32 %v10661_v12, %v9489_v31  ;;  %v10666_v31 = vld [vmem:[#allocation2 + $0x250] sm:$0xf0] }
 0xaa1   :  { %v3351_v33 = vadd.f32 %v13468_v58, %v3262_v7  ;;  %v3267_v7 = vadd.f32 %v13367_v0, %v13399_v44 }
 0xaa3   :  { %v3609_v24 = vpop.f32.mrf.mxu0 }
 0xaa4   :  { %v13502_v47 = vadd.f32 %v3609_v24, %v13347_v50  ;;  %v3346_v24 = vadd.f32 %v3345_v18, %v3257_v48  ;;  %v13521_v53 = vpop.f32.mrf.mxu3 }
 0xaa6   :  { %16183 = vst [vmem:[#allocation32_spill] sm:$0xff] %v13502_v47  ;;  %v3679_v57 = vmax.f32 %v13502_v47, 0.0  ;;  %v3435_v37 = vadd.f32 %v13449_v27, %v3346_v24  ;;  %v13529_v27 = vpop.f32.mrf.mxu2  ;;  %v13539_v56 = vpop.f32.mrf.mxu1  ;;  %v3353_v24 = vadd.f32 %v3352_v34, %v3264_v49  ;;  %v3356_v49 = vadd.f32 %v13492_v36, %v3267_v7 }
 0xaa8   :  { %v11027_v50 = vpack.i.bf16 %v3679_v57, %v3678_v54  ;;  %v3524_v25 = vadd.f32 %v13457_v41, %v3435_v37 }
 0xaaa   :  { %11028 = vrot.lane.b32.xlu2 %v11027_v50, %s11202_s19  ;;  %v3440_v50 = vadd.f32 %v13474_v32, %v3351_v33  ;;  %v3445_v33 = vadd.f32 %v13494_v2, %v3356_v49 }
 0xaab   :  { %v3612_v8 = vpop.f32.mrf.mxu0 }
 0xaac   :  { %v13523_v47 = vadd.f32 %v3612_v8, %v3524_v25  ;;  %v3442_v8 = vadd.f32 %v3441_v55, %v3353_v24  ;;  %v3529_v1 = vadd.f32 %v13477_v45, %v3440_v50  ;;  %v9509_v45 = vld [vmem:[#allocation2 + $0x240] sm:$0xf]  ;;  %v3534_v50 = vadd.f32 %v13496_v28, %v3445_v33 }
 0xaad   :  { %v9510_v0 = vor.u32 %v10666_v31, %v9509_v45  ;;  %v3274_v33 = vadd.f32 %v13379_v43, %v13403_v16 }
 0xaae   :  { %3651 = vmatmul.bf16.gmra.mxu0 %v9470_v10  ;;  %v3680_v38 = vmax.f32 %v13523_v47, 0.0  ;;  %v3451_v10 = vpop.f32.mrf.mxu3  ;;  %v13545_v11 = vpop.f32.mrf.mxu2  ;;  %v3531_v37 = vadd.f32 %v3530_v5, %v3442_v8  ;;  %v3269_v5 = vadd.f32 %v13372_v63, %v13413_v3 }
 0xaaf   :  { %v3363_v43 = vadd.f32 %v13539_v56, %v3274_v33 }
 0xab3   :  { %v3614_v18 = vpop.f32.mrf.mxu0 }
 0xab4   :  { %v13525_v48 = vadd.f32 %v3614_v18, %v3526_v39  ;;  %v13549_v39 = vpop.f32.mrf.mxu1 }
 0xab6   :  { %v3681_v29 = vmax.f32 %v13525_v48, 0.0  ;;  %v13555_v32 = vpop.f32.mrf.mxu3 }
 0xab8   :  { %v11032_v41 = vpack.i.bf16 %v3681_v29, %v3680_v38 }
 0xaba   :  { %11033 = vrot.lane.b32.xlu0 %v11032_v41, %s11202_s19  ;;  %v13566_v41 = vpop.f32.mrf.mxu2 }
 0xabb   :  { %v3617_v30 = vpop.f32.mrf.mxu0 }
 0xabc   :  { %v13547_v25 = vadd.f32 %v3617_v30, %v3529_v1  ;;  %v13571_v30 = vpop.permute.xlu2 %2798  ;;  %v3367_v63 = vpop.f32.mrf.mxu1 }
 0xabe   :  { %3656 = vmatmul.bf16.gmra.mxu0 %v9490_v35  ;;  %v3682_v55 = vmax.f32 %v13547_v25, 0.0  ;;  %v3358_v35 = vadd.f32 %v13504_v61, %v3269_v5  ;;  %v3456_v24 = vpop.f32.mrf.mxu3  ;;  %v3272_v61 = vadd.f32 %v13377_v60, %v13389_v52 }
 0xac0   :  { %v3447_v3 = vadd.f32 %v3446_v15, %v3358_v35 }
 0xac2   :  { %v3536_v8 = vadd.f32 %v3535_v42, %v3447_v3  ;;  %v16184_v42 = vmax.f32 %v13447_v59, 0.0  ;;  %v3361_v3 = vadd.f32 %v13518_v26, %v3272_v61 }
 0xac3   :  { %v3619_v58 = vpop.f32.mrf.mxu0 }
 0xac4   :  { %v13551_v18 = vadd.f32 %v3619_v58, %v3531_v37  ;;  %v3545_v37 = vpop.f32.mrf.mxu2  ;;  %v13582_v5 = vpop.f32.mrf.mxu1 }
 0xac6   :  { %v3683_v34 = vmax.f32 %v13551_v18, 0.0 }
 0xac8   :  { %v11037_v12 = vpack.i.bf16 %v3683_v34, %v3682_v55 }
 0xaca   :  { %11038 = vrot.lane.b32.xlu1 %v11037_v12, %s11202_s19  ;;  %v16185_v12 = vmax.f32 %v13444_v6, 0.0 }
 0xacb   :  { %v3622_v44 = vpop.f32.mrf.mxu0 }
 0xacc   :  { %v13574_v36 = vadd.f32 %v3622_v44, %v3534_v50  ;;  %v10671_v44 = vld [vmem:[#allocation2 + $0x278] sm:$0xf0]  ;;  %v3459_v50 = vpop.f32.mrf.mxu3  ;;  %v3372_v61 = vpop.f32.mrf.mxu1 }
 0xace   :  { %3661 = vmatmul.bf16.gmra.mxu0 %v9510_v0  ;;  %v3684_v31 = vmax.f32 %v13574_v36, 0.0  ;;  %v9529_v0 = vld [vmem:[#allocation2 + $0x268] sm:$0xf]  ;;  %v16201_v36 = vld [vmem:[#allocation28_spill] sm:$0xff] }
 0xacf   :  { %v9530_v59 = vor.u32 %v10671_v44, %v9529_v0 }
 0xad3   :  { %v3624_v1 = vpop.f32.mrf.mxu0 }
 0xad4   :  { %v13576_v58 = vadd.f32 %v3624_v1, %v3536_v8  ;;  %v11014_v7 = vpop.permute.xlu2 %11013  ;;  %v3461_v56 = vpop.f32.mrf.mxu3 }
 0xad5   :  { %v11016_v45 = vunpack.i.h.bf16 %v11014_v7  ;;  %v11015_v2 = vunpack.i.l.bf16 %v11014_v7  ;;  %v3450_v7 = vadd.f32 %v13521_v53, %v3361_v3 }
 0xad6   :  { %v3685_v15 = vmax.f32 %v13576_v58, 0.0  ;;  %v3309_v58 = vadd.f32 %v16201_v36, %v13571_v30 }
 0xad7   :  { %v3833_v28 = vmax.f32 %v16184_v42, %v11016_v45  ;;  %v3832_v49 = vmax.f32 %v16185_v12, %v11015_v2  ;;  %v3452_v45 = vadd.f32 %v3451_v10, %v3363_v43  ;;  %v3548_v2 = vpop.f32.mrf.mxu2  ;;  %v3539_v26 = vadd.f32 %v13529_v27, %v3450_v7 }
 0xad8   :  { %v11042_v60 = vpack.i.bf16 %v3685_v15, %v3684_v31  ;;  %v3277_v10 = vadd.f32 %v13383_v23, %v13419_v4  ;;  %v3279_v27 = vadd.f32 %v13387_v19, %v13395_v22  ;;  %v3282_v43 = vadd.f32 %v13391_v20, %v13409_v17 }
 0xad9   :  { %v3865_v52 = vpack.c.bf16 %v3833_v28, %v3833_v28  ;;  %v3864_v35 = vpack.c.bf16 %v3832_v49, %v3832_v49  ;;  %v3541_v42 = vadd.f32 %v13545_v11, %v3452_v45 }
 0xada   :  { %11043 = vrot.lane.b32.xlu2 %v11042_v60, %s11202_s19  ;;  %v3366_v33 = vadd.f32 %v13549_v39, %v3277_v10  ;;  %v13622_v60 = vpop.f32.mrf.mxu1 }
 0xadb   :  { %v3929_v6 = vunpack.c.l.b16 %v3865_v52  ;;  %v3928_v8 = vunpack.c.l.b16 %v3864_v35  ;;  %v3627_v1 = vpop.f32.mrf.mxu0  ;;  %v3368_v52 = vadd.f32 %v3367_v63, %v3279_v27 }
 0xadc   :  { %v13604_v28 = vadd.f32 %v3627_v1, %v3539_v26  ;;  %v3455_v4 = vadd.f32 %v13555_v32, %v3366_v33  ;;  %v13625_v3 = vpop.f32.mrf.mxu3 }
 0xadd   :  { %v13598_v16 = vpack.c.b16 %v3929_v6, %v3928_v8  ;;  %v3457_v35 = vadd.f32 %v3456_v24, %v3368_v52  ;;  %v13634_v8 = vpop.permute.xlu0 %2803 }
 0xade   :  { %3666 = vmatmul.bf16.gmra.mxu0 %v9530_v59  ;;  %v3686_v49 = vmax.f32 %v13604_v28, 0.0  ;;  %v3544_v19 = vadd.f32 %v13566_v41, %v3455_v4  ;;  %v16186_v4 = vmax.f32 %v13464_v13, 0.0 }
 0xadf   :  { %4008 = vrot.lane.b32.xlu1 %v13598_v16, %s11200_s7  ;;  %v3550_v11 = vpop.f32.mrf.mxu2  ;;  %v3546_v22 = vadd.f32 %v3545_v37, %v3457_v35  ;;  %v3284_v37 = vadd.f32 %v13397_v14, %v13423_v21  ;;  %v16187_v14 = vmax.f32 %v13461_v9, 0.0 }
 0xae2   :  { %4040 = vrot.lane.b32.xlu2 %v13598_v16, %s11203_s20  ;;  %v3377_v32 = vpop.f32.mrf.mxu1 }
 0xae3   :  { %v3629_v53 = vpop.f32.mrf.mxu0 }
 0xae4   :  { %v13608_v12 = vadd.f32 %v3629_v53, %v3541_v42  ;;  %v3466_v7 = vpop.f32.mrf.mxu3  ;;  %v3373_v53 = vadd.f32 %v3372_v61, %v3284_v37  ;;  %v13656_v37 = vpop.permute.xlu1 %2808 }
 0xae6   :  { %v3687_v0 = vmax.f32 %v13608_v12, 0.0  ;;  %v3462_v33 = vadd.f32 %v3461_v56, %v3373_v53 }
 0xae7   :  { %v13628_v59 = vpop.f32.mrf.mxu2 }
 0xae8   :  { %v11047_v44 = vpack.i.bf16 %v3687_v0, %v3686_v49 }
 0xaea   :  { %11048 = vrot.lane.b32.xlu0 %v11047_v44, %s11202_s19  ;;  %v3371_v44 = vadd.f32 %v13582_v5, %v3282_v43 }
 0xaeb   :  { %v3632_v23 = vpop.f32.mrf.mxu0 }
 0xaec   :  { %v13630_v6 = vadd.f32 %v3632_v23, %v3544_v19  ;;  %v13650_v23 = vpop.f32.mrf.mxu1  ;;  %v3460_v35 = vadd.f32 %v3459_v50, %v3371_v44  ;;  %v3469_v17 = vpop.f32.mrf.mxu3 }
 0xaee   :  { %v3688_v63 = vmax.f32 %v13630_v6, 0.0  ;;  %v3549_v5 = vadd.f32 %v3548_v2, %v3460_v35  ;;  %v16188_v35 = vmax.f32 %v13483_v51, 0.0 }
 0xaef   :  { %v3555_v26 = vpop.f32.mrf.mxu2 }
 0xaf2   :  { %3976 = vrot.lane.b32.xlu0 %v13598_v16, %s11202_s19 }
 0xaf3   :  { %v3634_v39 = vpop.f32.mrf.mxu0 }
 0xaf4   :  { %v13636_v1 = vadd.f32 %v3634_v39, %v3546_v22  ;;  %v3551_v22 = vadd.f32 %v3550_v11, %v3462_v33  ;;  %v3382_v9 = vpop.f32.mrf.mxu1  ;;  %v3289_v11 = vadd.f32 %v13405_v46, %v13415_v62  ;;  %v16189_v46 = vmax.f32 %v13480_v40, 0.0 }
 0xaf6   :  { %v3689_v24 = vmax.f32 %v13636_v1, 0.0 }
 0xaf7   :  { %v3558_v13 = vpop.f32.mrf.mxu2 }
 0xaf8   :  { %v11052_v41 = vpack.i.bf16 %v3689_v24, %v3688_v63 }
 0xafa   :  { %11053 = vrot.lane.b32.xlu1 %v11052_v41, %s11202_s19 }
 0xafb   :  { %v3637_v45 = vpop.f32.mrf.mxu0 }
 0xafc   :  { %v11019_v42 = vpop.permute.xlu0 %11018 }
 0xafd   :  { %v11021_v10 = vunpack.i.h.bf16 %v11019_v42  ;;  %v11020_v27 = vunpack.i.l.bf16 %v11019_v42  ;;  %v13662_v42 = vadd.f32 %v3637_v45, %v3549_v5 }
 0xaff   :  { %v3835_v52 = vmax.f32 %v16186_v4, %v11021_v10  ;;  %v3834_v21 = vmax.f32 %v16187_v14, %v11020_v27  ;;  %v16120_v53 = vmax.f32 %v13662_v42, 0.0  ;;  %v3471_v10 = vpop.f32.mrf.mxu3  ;;  %v16205_v1 = vmax.f32 %v13662_v42, 0.0 }
 0xb01   :  { %v3867_v19 = vpack.c.bf16 %v3835_v52, %v3835_v52  ;;  %v3866_v20 = vpack.c.bf16 %v3834_v21, %v3834_v21  ;;  %v3378_v21 = vadd.f32 %v3377_v32, %v3289_v11 }
 0xb03   :  { %v3931_v39 = vunpack.c.l.b16 %v3867_v19  ;;  %v3930_v61 = vunpack.c.l.b16 %v3866_v20  ;;  %v3639_v41 = vpop.f32.mrf.mxu0  ;;  %v16190_v20 = vld [vmem:[#allocation19_spill] sm:$0xff] }
 0xb04   :  { %v13660_v43 = vadd.f32 %v3639_v41, %v3551_v22  ;;  %v11029_v2 = vpop.permute.xlu2 %11028  ;;  %v3376_v22 = vadd.f32 %v13622_v60, %v16190_v20  ;;  %v16195_v41 = vld [vmem:[#allocation20_spill] sm:$0xff] }
 0xb05   :  { %v13658_v56 = vpack.c.b16 %v3931_v39, %v3930_v61  ;;  %v11031_v27 = vunpack.i.h.bf16 %v11029_v2  ;;  %v11030_v33 = vunpack.i.l.bf16 %v11029_v2  ;;  %v3467_v39 = vadd.f32 %v3466_v7, %v3378_v21  ;;  %v3560_v61 = vpop.f32.mrf.mxu2  ;;  %v16193_v21 = vld [vmem:[#allocation23_spill] sm:$0xff] }
 0xb06   :  { %v3691_v50 = vmax.f32 %v13660_v43, 0.0  ;;  %v3465_v51 = vadd.f32 %v13625_v3, %v3376_v22 }
 0xb07   :  { %4010 = vrot.lane.b32.xlu2 %v13658_v56, %s11200_s7  ;;  %3978 = vrot.lane.b32.xlu1 %v13658_v56, %s11202_s19  ;;  %v3839_v5 = vmax.f32 %v3679_v57, %v11031_v27  ;;  %v16194_v57 = vld [vmem:[#allocation18_spill] sm:$0xff]  ;;  %v3474_v20 = vpop.f32.mrf.mxu3 }
 0xb08   :  { %4042 = vrot.lane.b32.xlu0 %v13658_v56, %s11203_s20  ;;  %v11057_v14 = vpack.i.bf16 %v3691_v50, %v16120_v53  ;;  %v3554_v7 = vadd.f32 %v13628_v59, %v3465_v51  ;;  %v3292_v27 = vadd.f32 %v16194_v57, %v16193_v21 }
 0xb0a   :  { %v3381_v59 = vadd.f32 %v13650_v23, %v3292_v27 }
 0xb0b   :  { %v3642_v45 = vpop.f32.mrf.mxu0 }
 0xb0c   :  { %v11024_v44 = vpop.permute.xlu1 %11023  ;;  %v13701_v3 = vadd.f32 %v3642_v45, %v3554_v7 }
 0xb0d   :  { %v11026_v4 = vunpack.i.h.bf16 %v11024_v44  ;;  %v11025_v52 = vunpack.i.l.bf16 %v11024_v44  ;;  %v3838_v44 = vmax.f32 %v3678_v54, %v11030_v33 }
 0xb0e   :  { %v16123_v2 = vmax.f32 %v13701_v3, 0.0 }
 0xb0f   :  { %v3837_v19 = vmax.f32 %v16188_v35, %v11026_v4  ;;  %v3836_v62 = vmax.f32 %v16189_v46, %v11025_v52  ;;  %11058 = vrot.lane.b32.xlu2 %v11057_v14, %s11202_s19  ;;  %v3385_v4 = vpop.f32.mrf.mxu1  ;;  %v3556_v14 = vadd.f32 %v3555_v26, %v3467_v39  ;;  %v3871_v46 = vpack.c.bf16 %v3839_v5, %v3839_v5 }
 0xb10   :  { %v3870_v53 = vpack.c.bf16 %v3838_v44, %v3838_v44  ;;  %v3470_v39 = vadd.f32 %v3469_v17, %v3381_v59  ;;  %v3383_v5 = vadd.f32 %v3382_v9, %v16195_v41  ;;  %v3476_v17 = vpop.f32.mrf.mxu3 }
 0xb11   :  { %v3869_v32 = vpack.c.bf16 %v3837_v19, %v3837_v19  ;;  %v3868_v11 = vpack.c.bf16 %v3836_v62, %v3836_v62  ;;  %v3935_v26 = vunpack.c.l.b16 %v3871_v46  ;;  %v3563_v19 = vpop.f32.mrf.mxu2  ;;  %v16197_v46 = vld [vmem:[#allocation22_spill] sm:$0xff] }
 0xb12   :  { %v3934_v33 = vunpack.c.l.b16 %v3870_v53  ;;  %v3472_v45 = vadd.f32 %v3471_v10, %v3383_v5  ;;  %v3559_v23 = vadd.f32 %v3558_v13, %v3470_v39  ;;  %v16198_v39 = vld [vmem:[#allocation21_spill] sm:$0xff] }
 0xb13   :  { %v3933_v40 = vunpack.c.l.b16 %v3869_v32  ;;  %v3932_v52 = vunpack.c.l.b16 %v3868_v11  ;;  %v3644_v35 = vpop.f32.mrf.mxu0  ;;  %v3386_v41 = vadd.f32 %v3385_v4, %v16198_v39  ;;  %v16199_v39 = vld [vmem:[#allocation26_spill] sm:$0xff] }
 0xb14   :  { %v13695_v54 = vadd.f32 %v3644_v35, %v3556_v14  ;;  %v13709_v32 = vpack.c.b16 %v3935_v26, %v3934_v33  ;;  %v3561_v9 = vadd.f32 %v3560_v61, %v3472_v45  ;;  %v16196_v61 = vld [vmem:[#allocation25_spill] sm:$0xff] }
 0xb15   :  { %v13690_v60 = vpack.c.b16 %v3933_v40, %v3932_v52  ;;  %v3299_v7 = vadd.f32 %v16197_v46, %v16196_v61 }
 0xb16   :  { %v3693_v62 = vmax.f32 %v13695_v54, 0.0 }
 0xb17   :  { %3980 = vrot.lane.b32.xlu2 %v13690_v60, %s11202_s19  ;;  %4044 = vrot.lane.b32.xlu1 %v13690_v60, %s11203_s20  ;;  %v3387_v44 = vpop.f32.mrf.mxu1 }
 0xb18   :  { %4012 = vrot.lane.b32.xlu0 %v13690_v60, %s11200_s7  ;;  %v11062_v53 = vpack.i.bf16 %v3693_v62, %v16123_v2  ;;  %v3479_v21 = vpop.f32.mrf.mxu3  ;;  %v3388_v26 = vadd.f32 %v3387_v44, %v3299_v7 }
 0xb19   :  { %v3565_v10 = vpop.f32.mrf.mxu2 }
 0xb1a   :  { %v3477_v5 = vadd.f32 %v3476_v17, %v3388_v26 }
 0xb1b   :  { %v3647_v22 = vpop.f32.mrf.mxu0 }
 0xb1c   :  { %v13720_v11 = vadd.f32 %v3647_v22, %v3559_v23  ;;  %v3475_v23 = vadd.f32 %v3474_v20, %v3386_v41 }
 0xb1e   :  { %v16121_v52 = vmax.f32 %v13720_v11, 0.0 }
 0xb1f   :  { %4046 = vrot.lane.b32.xlu2 %v13709_v32, %s11203_s20  ;;  %4014 = vrot.lane.b32.xlu1 %v13709_v32, %s11200_s7  ;;  %v3390_v14 = vpop.f32.mrf.mxu1 }
 0xb20   :  { %11063 = vrot.lane.b32.xlu0 %v11062_v53, %s11202_s19  ;;  %v3481_v7 = vpop.f32.mrf.mxu3 }
 0xb21   :  { %v3568_v22 = vpop.f32.mrf.mxu2 }
 0xb23   :  { %v3649_v51 = vpop.f32.mrf.mxu0 }
 0xb24   :  { %v13722_v40 = vadd.f32 %v3649_v51, %v3561_v9 }
 0xb26   :  { %v16122_v35 = vmax.f32 %v13722_v40, 0.0  ;;  %v16207_v54 = vmax.f32 %v13722_v40, 0.0 }
 0xb27   :  { %v3392_v9 = vpop.f32.mrf.mxu1 }
 0xb28   :  { %3982 = vrot.lane.b32.xlu0 %v13709_v32, %s11202_s19  ;;  %v11067_v13 = vpack.i.bf16 %v16122_v35, %v16121_v52  ;;  %v3564_v35 = vadd.f32 %v3563_v19, %v3475_v23  ;;  %v3393_v41 = vadd.f32 %v3392_v9, %v16199_v39  ;;  %v16200_v23 = vld [vmem:[#allocation24_spill] sm:$0xff] }
 0xb29   :  { %v3570_v47 = vpop.f32.mrf.mxu2 }
 0xb2a   :  { %11068 = vrot.lane.b32.xlu1 %v11067_v13, %s11202_s19  ;;  %v3566_v13 = vadd.f32 %v3565_v10, %v3477_v5  ;;  %v3484_v5 = vpop.f32.mrf.mxu3 }
 0xb2b   :  { %v3652_v57 = vpop.f32.mrf.mxu0 }
 0xb2c   :  { %v11034_v27 = vpop.permute.xlu0 %11033  ;;  %v13744_v48 = vadd.f32 %v3652_v57, %v3564_v35 }
 0xb2d   :  { %v11036_v33 = vunpack.i.h.bf16 %v11034_v27  ;;  %v11035_v59 = vunpack.i.l.bf16 %v11034_v27 }
 0xb2e   :  { %v3696_v20 = vmax.f32 %v13744_v48, 0.0 }
 0xb2f   :  { %v3841_v45 = vmax.f32 %v3681_v29, %v11036_v33  ;;  %v3840_v53 = vmax.f32 %v3680_v38, %v11035_v59  ;;  %v3395_v29 = vpop.f32.mrf.mxu1 }
 0xb31   :  { %v3873_v51 = vpack.c.bf16 %v3841_v45, %v3841_v45  ;;  %v3872_v61 = vpack.c.bf16 %v3840_v53, %v3840_v53 }
 0xb33   :  { %v3937_v46 = vunpack.c.l.b16 %v3873_v51  ;;  %v3936_v52 = vunpack.c.l.b16 %v3872_v61  ;;  %v3654_v44 = vpop.f32.mrf.mxu0  ;;  %v3391_v51 = vadd.f32 %v3390_v14, %v16200_v23 }
 0xb34   :  { %v11044_v27 = vpop.permute.xlu2 %11043  ;;  %v13742_v4 = vadd.f32 %v3654_v44, %v3566_v13 }
 0xb35   :  { %v13740_v2 = vpack.c.b16 %v3937_v46, %v3936_v52  ;;  %v11046_v17 = vunpack.i.h.bf16 %v11044_v27  ;;  %v11045_v10 = vunpack.i.l.bf16 %v11044_v27  ;;  %v3480_v44 = vadd.f32 %v3479_v21, %v3391_v51  ;;  %v3573_v27 = vpop.f32.mrf.mxu2 }
 0xb36   :  { %v3697_v38 = vmax.f32 %v13742_v4, 0.0 }
 0xb37   :  { %4016 = vrot.lane.b32.xlu2 %v13740_v2, %s11200_s7  ;;  %3984 = vrot.lane.b32.xlu1 %v13740_v2, %s11202_s19  ;;  %v3845_v61 = vmax.f32 %v3685_v15, %v11046_v17  ;;  %v3844_v13 = vmax.f32 %v3684_v31, %v11045_v10  ;;  %v3569_v14 = vadd.f32 %v3568_v22, %v3480_v44  ;;  %v3486_v31 = vpop.f32.mrf.mxu3 }
 0xb38   :  { %4048 = vrot.lane.b32.xlu0 %v13740_v2, %s11203_s20  ;;  %v11072_v59 = vpack.i.bf16 %v3697_v38, %v3696_v20 }
 0xb3b   :  { %v3657_v19 = vpop.f32.mrf.mxu0 }
 0xb3c   :  { %v11039_v52 = vpop.permute.xlu1 %11038  ;;  %v4041_v35 = vpop.permute.xlu2 %4040  ;;  %v13783_v15 = vadd.f32 %v3657_v19, %v3569_v14 }
 0xb3d   :  { %v11041_v57 = vunpack.i.h.bf16 %v11039_v52  ;;  %v11040_v26 = vunpack.i.l.bf16 %v11039_v52  ;;  %v13756_v33 = vsel %vm4136_vm5, %v13598_v16, %v4041_v35  ;;  %v3482_v16 = vadd.f32 %v3481_v7, %v3393_v41  ;;  %v3397_v7 = vpop.f32.mrf.mxu1 }
 0xb3e   :  { %v3876_v35 = vpack.c.bf16 %v3844_v13, %v3844_v13  ;;  %v3398_v41 = vadd.f32 %v3397_v7, %v3309_v58 }
 0xb3f   :  { %v3843_v45 = vmax.f32 %v3683_v34, %v11041_v57  ;;  %v3842_v53 = vmax.f32 %v3682_v55, %v11040_v26  ;;  %11073 = vrot.lane.b32.xlu2 %v11072_v59, %s11202_s19  ;;  %v3571_v25 = vadd.f32 %v3570_v47, %v3482_v16  ;;  %v3877_v55 = vpack.c.bf16 %v3845_v61, %v3845_v61  ;;  %v16202_v47 = vld [vmem:[#allocation27_spill] sm:$0xff]  ;;  %v3489_v16 = vpop.f32.mrf.mxu3 }
 0xb40   :  { %v3940_v22 = vunpack.c.l.b16 %v3876_v35  ;;  %v3396_v17 = vadd.f32 %v3395_v29, %v16202_v47  ;;  %v3487_v30 = vadd.f32 %v3486_v31, %v3398_v41 }
 0xb41   :  { %v3875_v46 = vpack.c.bf16 %v3843_v45, %v3843_v45  ;;  %v3874_v9 = vpack.c.bf16 %v3842_v53, %v3842_v53  ;;  %v3941_v21 = vunpack.c.l.b16 %v3877_v55  ;;  %v3575_v45 = vpop.f32.mrf.mxu2  ;;  %v3698_v53 = vmax.f32 %v13783_v15, 0.0  ;;  %v16204_v55 = vld [vmem:[#allocation29_spill] sm:$0xff] }
 0xb42   :  { %v3485_v39 = vadd.f32 %v3484_v5, %v3396_v17  ;;  %v3576_v51 = vadd.f32 %v3575_v45, %v3487_v30  ;;  %v3312_v35 = vadd.f32 %v16204_v55, %v13634_v8 }
 0xb43   :  { %v3939_v18 = vunpack.c.l.b16 %v3875_v46  ;;  %v3938_v34 = vunpack.c.l.b16 %v3874_v9  ;;  %v3659_v52 = vpop.f32.mrf.mxu0  ;;  %v13790_v23 = vpack.c.b16 %v3941_v21, %v3940_v22 }
 0xb44   :  { %v13775_v26 = vadd.f32 %v3659_v52, %v3571_v25  ;;  %v3574_v29 = vadd.f32 %v3573_v27, %v3485_v39 }
 0xb45   :  { %v13773_v57 = vpack.c.b16 %v3939_v18, %v3938_v34  ;;  %v3400_v5 = vpop.f32.mrf.mxu1  ;;  %v16203_v34 = vld [vmem:[#allocation30_spill] sm:$0xff] }
 0xb46   :  { %v3699_v10 = vmax.f32 %v13775_v26, 0.0  ;;  %v3314_v52 = vadd.f32 %v16203_v34, %v13656_v37  ;;  %v3401_v22 = vadd.f32 %v3400_v5, %v3312_v35 }
 0xb47   :  { %3986 = vrot.lane.b32.xlu2 %v13773_v57, %s11202_s19  ;;  %4050 = vrot.lane.b32.xlu1 %v13773_v57, %s11203_s20  ;;  %v3491_v7 = vpop.f32.mrf.mxu3 }
 0xb48   :  { %4018 = vrot.lane.b32.xlu0 %v13773_v57, %s11200_s7  ;;  %v11077_v19 = vpack.i.bf16 %v3699_v10, %v3698_v53  ;;  %v3490_v39 = vadd.f32 %v3489_v16, %v3401_v22 }
 0xb49   :  { %v3578_v9 = vpop.f32.mrf.mxu2 }
 0xb4a   :  { %v3579_v5 = vadd.f32 %v3578_v9, %v3490_v39 }
 0xb4b   :  { %v3662_v59 = vpop.f32.mrf.mxu0 }
 0xb4c   :  { %v13801_v61 = vadd.f32 %v3662_v59, %v3574_v29 }
 0xb4d   :  { %v3402_v25 = vpop.f32.mrf.mxu1 }
 0xb4e   :  { %v3700_v44 = vmax.f32 %v13801_v61, 0.0  ;;  %v3403_v58 = vadd.f32 %v3402_v25, %v3314_v52 }
 0xb4f   :  { %4052 = vrot.lane.b32.xlu2 %v13790_v23, %s11203_s20  ;;  %4020 = vrot.lane.b32.xlu1 %v13790_v23, %s11200_s7 }
 0xb50   :  { %11078 = vrot.lane.b32.xlu0 %v11077_v19, %s11202_s19  ;;  %v3492_v47 = vadd.f32 %v3491_v7, %v3403_v58 }
 0xb51   :  { %v3580_v59 = vpop.f32.mrf.mxu2 }
 0xb52   :  { %v3581_v8 = vadd.f32 %v3580_v59, %v3492_v47 }
 0xb53   :  { %v3664_v13 = vpop.f32.mrf.mxu0 }
 0xb54   :  { %v13803_v46 = vadd.f32 %v3664_v13, %v3576_v51  ;;  %v13824_v13 = vpop.permute.xlu1 %4008 }
 0xb56   :  { %v3701_v18 = vmax.f32 %v13803_v46, 0.0 }
 0xb58   :  { %3988 = vrot.lane.b32.xlu0 %v13790_v23, %s11202_s19  ;;  %v11082_v27 = vpack.i.bf16 %v3701_v18, %v3700_v44 }
 0xb5a   :  { %11083 = vrot.lane.b32.xlu1 %v11082_v27, %s11202_s19 }
 0xb5b   :  { %v3667_v14 = vpop.f32.mrf.mxu0 }
 0xb5c   :  { %v11049_v36 = vpop.permute.xlu0 %11048 }
 0xb5d   :  { %v11051_v31 = vunpack.i.h.bf16 %v11049_v36  ;;  %v11050_v21 = vunpack.i.l.bf16 %v11049_v36 }
 0xb5f   :  { %v3847_v17 = vmax.f32 %v3687_v0, %v11051_v31  ;;  %v3846_v37 = vmax.f32 %v3686_v49, %v11050_v21  ;;  %v13830_v0 = vadd.f32 %v3667_v14, %v3579_v5 }
 0xb61   :  { %v3879_v41 = vpack.c.bf16 %v3847_v17, %v3847_v17  ;;  %v3878_v45 = vpack.c.bf16 %v3846_v37, %v3846_v37  ;;  %v13822_v30 = vpop.permute.xlu2 %4010  ;;  %v3702_v16 = vmax.f32 %v13830_v0, 0.0 }
 0xb63   :  { %v3943_v19 = vunpack.c.l.b16 %v3879_v41  ;;  %v3942_v29 = vunpack.c.l.b16 %v3878_v45  ;;  %v3669_v51 = vpop.f32.mrf.mxu0 }
 0xb64   :  { %v13828_v12 = vadd.f32 %v3669_v51, %v3581_v8  ;;  %v13844_v14 = vpop.permute.xlu0 %3976 }
 0xb65   :  { %v13826_v27 = vpack.c.b16 %v3943_v19, %v3942_v29 }
 0xb66   :  { %v3703_v28 = vmax.f32 %v13828_v12, 0.0 }
 0xb67   :  { %4022 = vrot.lane.b32.xlu2 %v13826_v27, %s11200_s7  ;;  %3990 = vrot.lane.b32.xlu1 %v13826_v27, %s11202_s19 }
 0xb68   :  { %4054 = vrot.lane.b32.xlu0 %v13826_v27, %s11203_s20  ;;  %v11087_v25 = vpack.i.bf16 %v3703_v28, %v3702_v16 }
 0xb69   :  { %v11059_v49 = vpop.permute.xlu2 %11058 }
 0xb6a   :  { %v11061_v55 = vunpack.i.h.bf16 %v11059_v49  ;;  %v11060_v35 = vunpack.i.l.bf16 %v11059_v49 }
 0xb6c   :  { %v11054_v9 = vpop.permute.xlu1 %11053  ;;  %v3851_v22 = vmax.f32 %v3691_v50, %v11061_v55 }
 0xb6d   :  { %v11056_v34 = vunpack.i.h.bf16 %v11054_v9  ;;  %v11055_v52 = vunpack.i.l.bf16 %v11054_v9 }
 0xb6e   :  { %v3883_v17 = vpack.c.bf16 %v3851_v22, %v3851_v22 }
 0xb6f   :  { %v3849_v7 = vmax.f32 %v3689_v24, %v11056_v34  ;;  %v3848_v36 = vmax.f32 %v3688_v63, %v11055_v52  ;;  %11088 = vrot.lane.b32.xlu2 %v11087_v25, %s11202_s19  ;;  %4104 = vrot.lane.b32.xlu1 %v13824_v13, %s11203_s20  ;;  %v3850_v24 = vmax.f32 %v16205_v1, %v11060_v35 }
 0xb70   :  { %4072 = vrot.lane.b32.xlu0 %v13844_v14, %s11203_s20  ;;  %v3947_v50 = vunpack.c.l.b16 %v3883_v17 }
 0xb71   :  { %v3881_v58 = vpack.c.bf16 %v3849_v7, %v3849_v7  ;;  %v3880_v31 = vpack.c.bf16 %v3848_v36, %v3848_v36  ;;  %v13855_v21 = vpop.permute.xlu2 %3980  ;;  %v3882_v37 = vpack.c.bf16 %v3850_v24, %v3850_v24 }
 0xb73   :  { %v3945_v6 = vunpack.c.l.b16 %v3881_v58  ;;  %v3944_v63 = vunpack.c.l.b16 %v3880_v31  ;;  %v3946_v59 = vunpack.c.l.b16 %v3882_v37 }
 0xb75   :  { %v13861_v47 = vpack.c.b16 %v3945_v6, %v3944_v63  ;;  %v13877_v45 = vpack.c.b16 %v3947_v50, %v3946_v59 }
 0xb77   :  { %4056 = vrot.lane.b32.xlu1 %v13861_v47, %s11203_s20  ;;  %3992 = vrot.lane.b32.xlu2 %v13861_v47, %s11202_s19 }
 0xb78   :  { %4024 = vrot.lane.b32.xlu0 %v13861_v47, %s11200_s7 }
 0xb79   :  { %v4047_v43 = vpop.permute.xlu2 %4046  ;;  %v13879_v8 = vpop.permute.xlu1 %3978 }
 0xb7a   :  { %v13871_v42 = vsel %vm4136_vm5, %v13709_v32, %v4047_v43  ;;  %v4043_v39 = vpop.permute.xlu0 %4042 }
 0xb7b   :  { %v13875_v41 = vsel %vm4136_vm5, %v13658_v56, %v4043_v39 }
 0xb7f   :  { %4074 = vrot.lane.b32.xlu1 %v13879_v8, %s11203_s20  ;;  %4106 = vrot.lane.b32.xlu2 %v13822_v30, %s11203_s20 }
 0xb80   :  { %3994 = vrot.lane.b32.xlu0 %v13877_v45, %s11202_s19 }
 0xb87   :  { %4026 = vrot.lane.b32.xlu1 %v13877_v45, %s11200_s7  ;;  %4058 = vrot.lane.b32.xlu2 %v13877_v45, %s11203_s20 }
 0xb89   :  { %v4045_v56 = vpop.permute.xlu1 %4044 }
 0xb8a   :  { %v13893_v32 = vsel %vm4136_vm5, %v13690_v60, %v4045_v56  ;;  %v13895_v19 = vpop.permute.xlu0 %4012  ;;  %v16206_v60 = vmax.f32 %v13701_v3, 0.0 }
 0xb8b   :  { %4108 = vrot.lane.b32.xlu0 %v13895_v19, %s11203_s20 }
 0xb8f   :  { %4076 = vrot.lane.b32.xlu2 %v13855_v21, %s11203_s20 }
 0xb91   :  { %v13901_v29 = vpop.permute.xlu2 %4016  ;;  %v13903_v9 = vpop.permute.xlu1 %4014 }
 0xb92   :  { %v11064_v51 = vpop.permute.xlu0 %11063 }
 0xb93   :  { %v11066_v5 = vunpack.i.h.bf16 %v11064_v51  ;;  %v11065_v49 = vunpack.i.l.bf16 %v11064_v51 }
 0xb95   :  { %v3853_v34 = vmax.f32 %v3693_v62, %v11066_v5  ;;  %v3852_v52 = vmax.f32 %v16206_v60, %v11065_v49  ;;  %v16208_v62 = vmax.f32 %v13720_v11, 0.0 }
 0xb97   :  { %v3885_v25 = vpack.c.bf16 %v3853_v34, %v3853_v34  ;;  %v3884_v55 = vpack.c.bf16 %v3852_v52, %v3852_v52 }
 0xb99   :  { %v3949_v35 = vunpack.c.l.b16 %v3885_v25  ;;  %v3948_v7 = vunpack.c.l.b16 %v3884_v55  ;;  %v11074_v36 = vpop.permute.xlu2 %11073 }
 0xb9a   :  { %v13923_v37 = vpop.permute.xlu0 %3982  ;;  %v11076_v43 = vunpack.i.h.bf16 %v11074_v36  ;;  %v11075_v50 = vunpack.i.l.bf16 %v11074_v36 }
 0xb9b   :  { %v13909_v58 = vpack.c.b16 %v3949_v35, %v3948_v7 }
 0xb9c   :  { %v11069_v31 = vpop.permute.xlu1 %11068  ;;  %v3857_v11 = vmax.f32 %v3697_v38, %v11076_v43  ;;  %v3856_v40 = vmax.f32 %v3696_v20, %v11075_v50 }
 0xb9d   :  { %v11071_v22 = vunpack.i.h.bf16 %v11069_v31  ;;  %v11070_v1 = vunpack.i.l.bf16 %v11069_v31  ;;  %4060 = vrot.lane.b32.xlu0 %v13909_v58, %s11203_s20  ;;  %4028 = vrot.lane.b32.xlu2 %v13909_v58, %s11200_s7 }
 0xb9e   :  { %3996 = vrot.lane.b32.xlu1 %v13909_v58, %s11202_s19  ;;  %v3889_v34 = vpack.c.bf16 %v3857_v11, %v3857_v11  ;;  %v3888_v60 = vpack.c.bf16 %v3856_v40, %v3856_v40 }
 0xb9f   :  { %v3855_v3 = vmax.f32 %v16207_v54, %v11071_v22  ;;  %v3854_v24 = vmax.f32 %v16208_v62, %v11070_v1 }
 0xba0   :  { %v3953_v4 = vunpack.c.l.b16 %v3889_v34  ;;  %v3952_v48 = vunpack.c.l.b16 %v3888_v60 }
 0xba1   :  { %v3887_v6 = vpack.c.bf16 %v3855_v3, %v3855_v3  ;;  %v3886_v63 = vpack.c.bf16 %v3854_v24, %v3854_v24  ;;  %v13921_v17 = vpop.permute.xlu2 %3986 }
 0xba2   :  { %v13953_v20 = vpack.c.b16 %v3953_v4, %v3952_v48 }
 0xba3   :  { %v3951_v59 = vunpack.c.l.b16 %v3887_v6  ;;  %v3950_v39 = vunpack.c.l.b16 %v3886_v63 }
 0xba5   :  { %v13925_v56 = vpack.c.b16 %v3951_v59, %v3950_v39  ;;  %4078 = vrot.lane.b32.xlu0 %v13923_v37, %s11203_s20 }
 0xba6   :  { %4110 = vrot.lane.b32.xlu1 %v13903_v9, %s11203_s20 }
 0xba7   :  { %3998 = vrot.lane.b32.xlu2 %v13925_v56, %s11202_s19 }
 0xba9   :  { %v4053_v51 = vpop.permute.xlu2 %4052  ;;  %v13951_v38 = vpop.permute.xlu1 %3984 }
 0xbaa   :  { %v13939_v5 = vsel %vm4136_vm5, %v13790_v23, %v4053_v51  ;;  %v4049_v49 = vpop.permute.xlu0 %4048 }
 0xbab   :  { %v13943_v52 = vsel %vm4136_vm5, %v13740_v2, %v4049_v49 }
 0xbad   :  { %4030 = vrot.lane.b32.xlu0 %v13925_v56, %s11200_s7 }
 0xbae   :  { %4062 = vrot.lane.b32.xlu1 %v13925_v56, %s11203_s20 }
 0xbaf   :  { %4112 = vrot.lane.b32.xlu2 %v13901_v29, %s11203_s20 }
 0xbb5   :  { %4000 = vrot.lane.b32.xlu0 %v13953_v20, %s11202_s19 }
 0xbb6   :  { %4080 = vrot.lane.b32.xlu1 %v13951_v38, %s11203_s20 }
 0xbb7   :  { %4064 = vrot.lane.b32.xlu2 %v13953_v20, %s11203_s20 }
 0xbb9   :  { %v4051_v2 = vpop.permute.xlu1 %4050 }
 0xbba   :  { %v13963_v23 = vsel %vm4136_vm5, %v13773_v57, %v4051_v2  ;;  %v13965_v25 = vpop.permute.xlu0 %4018 }
 0xbbd   :  { %4114 = vrot.lane.b32.xlu0 %v13965_v25, %s11203_s20 }
 0xbbe   :  { %4032 = vrot.lane.b32.xlu1 %v13953_v20, %s11200_s7 }
 0xbbf   :  { %4082 = vrot.lane.b32.xlu2 %v13921_v17, %s11203_s20 }
 0xbc1   :  { %v13973_v55 = vpop.permute.xlu2 %4022  ;;  %v13975_v31 = vpop.permute.xlu1 %4020 }
 0xbc2   :  { %v11079_v35 = vpop.permute.xlu0 %11078 }
 0xbc3   :  { %v11081_v7 = vunpack.i.h.bf16 %v11079_v35  ;;  %v11080_v36 = vunpack.i.l.bf16 %v11079_v35 }
 0xbc5   :  { %v3859_v57 = vmax.f32 %v3699_v10, %v11081_v7  ;;  %v3858_v22 = vmax.f32 %v3698_v53, %v11080_v36 }
 0xbc7   :  { %v3891_v1 = vpack.c.bf16 %v3859_v57, %v3859_v57  ;;  %v3890_v54 = vpack.c.bf16 %v3858_v22, %v3858_v22 }
 0xbc9   :  { %v3955_v3 = vunpack.c.l.b16 %v3891_v1  ;;  %v3954_v62 = vunpack.c.l.b16 %v3890_v54  ;;  %v11089_v24 = vpop.permute.xlu2 %11088 }
 0xbca   :  { %v13995_v39 = vpop.permute.xlu0 %3988  ;;  %v11091_v11 = vunpack.i.h.bf16 %v11089_v24  ;;  %v11090_v40 = vunpack.i.l.bf16 %v11089_v24 }
 0xbcb   :  { %v13981_v6 = vpack.c.b16 %v3955_v3, %v3954_v62 }
 0xbcc   :  { %v11084_v63 = vpop.permute.xlu1 %11083  ;;  %v3863_v61 = vmax.f32 %v3703_v28, %v11091_v11  ;;  %v3862_v46 = vmax.f32 %v3702_v16, %v11090_v40 }
 0xbcd   :  { %v11086_v43 = vunpack.i.h.bf16 %v11084_v63  ;;  %v11085_v50 = vunpack.i.l.bf16 %v11084_v63  ;;  %4066 = vrot.lane.b32.xlu0 %v13981_v6, %s11203_s20  ;;  %4034 = vrot.lane.b32.xlu2 %v13981_v6, %s11200_s7 }
 0xbce   :  { %4002 = vrot.lane.b32.xlu1 %v13981_v6, %s11202_s19  ;;  %v3895_v48 = vpack.c.bf16 %v3863_v61, %v3863_v61  ;;  %v3894_v2 = vpack.c.bf16 %v3862_v46, %v3862_v46 }
 0xbcf   :  { %v3861_v26 = vmax.f32 %v3701_v18, %v11086_v43  ;;  %v3860_v15 = vmax.f32 %v3700_v44, %v11085_v50 }
 0xbd0   :  { %v3959_v0 = vunpack.c.l.b16 %v3895_v48  ;;  %v3958_v28 = vunpack.c.l.b16 %v3894_v2 }
 0xbd1   :  { %v3893_v10 = vpack.c.bf16 %v3861_v26, %v3861_v26  ;;  %v3892_v53 = vpack.c.bf16 %v3860_v15, %v3860_v15  ;;  %v13993_v59 = vpop.permute.xlu2 %3992 }
 0xbd2   :  { %v14033_v36 = vpack.c.b16 %v3959_v0, %v3958_v28 }
 0xbd3   :  { %v3957_v51 = vunpack.c.l.b16 %v3893_v10  ;;  %v3956_v49 = vunpack.c.l.b16 %v3892_v53 }
 0xbd5   :  { %v13997_v34 = vpack.c.b16 %v3957_v51, %v3956_v49  ;;  %4084 = vrot.lane.b32.xlu0 %v13995_v39, %s11203_s20 }
 0xbd6   :  { %4116 = vrot.lane.b32.xlu1 %v13975_v31, %s11203_s20 }
 0xbd7   :  { %4004 = vrot.lane.b32.xlu2 %v13997_v34, %s11202_s19 }
 0xbd9   :  { %v14009_v44 = vpop.permute.xlu1 %3990  ;;  %v4107_v18 = vpop.permute.xlu2 %4106 }
 0xbda   :  { %v14013_v60 = vsel %vm4136_vm5, %v13822_v30, %v4107_v18  ;;  %v4055_v4 = vpop.permute.xlu0 %4054 }
 0xbdb   :  { %v14017_v12 = vsel %vm4136_vm5, %v13826_v27, %v4055_v4 }
 0xbdc   :  { %5869 = vmatpush.bf16.msrb.mxu1 %v14017_v12 }
 0xbdd   :  { %4036 = vrot.lane.b32.xlu0 %v13997_v34, %s11200_s7 }
 0xbde   :  { %4068 = vrot.lane.b32.xlu1 %v13997_v34, %s11203_s20 }
 0xbdf   :  { %4118 = vrot.lane.b32.xlu2 %v13973_v55, %s11203_s20 }
 0xbe1   :  { %v4105_v30 = vpop.permute.xlu1 %4104  ;;  %v4059_v16 = vpop.permute.xlu2 %4058 }
 0xbe2   :  { %v14027_v35 = vsel %vm4136_vm5, %v13824_v13, %v4105_v30  ;;  %v14031_v27 = vsel %vm4136_vm5, %v13877_v45, %v4059_v16  ;;  %v4073_v7 = vpop.permute.xlu0 %4072 }
 0xbe3   :  { %v14037_v57 = vsel %vm4136_vm5, %v13844_v14, %v4073_v7 }
 0xbe5   :  { %4006 = vrot.lane.b32.xlu0 %v14033_v36, %s11202_s19 }
 0xbe6   :  { %4086 = vrot.lane.b32.xlu1 %v14009_v44, %s11203_s20 }
 0xbe7   :  { %4070 = vrot.lane.b32.xlu2 %v14033_v36, %s11203_s20 }
 0xbe9   :  { %v4057_v13 = vpop.permute.xlu1 %4056  ;;  %v4077_v22 = vpop.permute.xlu2 %4076 }
 0xbea   :  { %v14047_v45 = vsel %vm4136_vm5, %v13861_v47, %v4057_v13  ;;  %v14051_v1 = vsel %vm4136_vm5, %v13855_v21, %v4077_v22  ;;  %v14053_v14 = vpop.permute.xlu0 %4024 }
 0xbed   :  { %4120 = vrot.lane.b32.xlu0 %v14053_v14, %s11203_s20 }
 0xbee   :  { %4038 = vrot.lane.b32.xlu1 %v14033_v36, %s11200_s7 }
 0xbef   :  { %4088 = vrot.lane.b32.xlu2 %v13993_v59, %s11203_s20 }
 0xbf1   :  { %v4075_v54 = vpop.permute.xlu1 %4074 }
 0xbf2   :  { %v14063_v47 = vsel %vm4136_vm5, %v13879_v8, %v4075_v54  ;;  %v14065_v3 = vpop.permute.xlu0 %3994 }
 0xbf5   :  { %4090 = vrot.lane.b32.xlu0 %v14065_v3, %s11203_s20 }
 0xbf7   :  { %v4029_v21 = vpop.permute.xlu2 %4028 }
 0xbf8   :  { %4124 = vrot.lane.b32.xlu2 %v4029_v21, %s11203_s20 }
 0xbf9   :  { %v14070_v62 = vpop.permute.xlu1 %4026 }
 0xbfa   :  { %4122 = vrot.lane.b32.xlu1 %v14070_v62, %s11203_s20 }
 0xbfd   :  { %v4109_v24 = vpop.permute.xlu0 %4108 }
 0xbfe   :  { %v14076_v63 = vsel %vm4136_vm5, %v13895_v19, %v4109_v24 }
 0xc01   :  { %v3999_v8 = vpop.permute.xlu2 %3998 }
 0xc02   :  { %4094 = vrot.lane.b32.xlu2 %v3999_v8, %s11203_s20 }
 0xc09   :  { %v4113_v43 = vpop.permute.xlu2 %4112 }
 0xc0a   :  { %v14081_v50 = vsel %vm4136_vm5, %v13901_v29, %v4113_v43 }
 0xc0f   :  { %v4061_v26 = vpop.permute.xlu0 %4060 }
 0xc10   :  { %v14085_v15 = vsel %vm4136_vm5, %v13909_v58, %v4061_v26  ;;  %v3997_v10 = vpop.permute.xlu1 %3996 }
 0xc11   :  { %4092 = vrot.lane.b32.xlu1 %v3997_v10, %s11203_s20  ;;  %v4065_v53 = vpop.permute.xlu2 %4064 }
 0xc12   :  { %v14090_v19 = vsel %vm4136_vm5, %v13953_v20, %v4065_v53 }
 0xc17   :  { %v4079_v11 = vpop.permute.xlu0 %4078 }
 0xc18   :  { %v14094_v40 = vsel %vm4136_vm5, %v13923_v37, %v4079_v11  ;;  %v4111_v29 = vpop.permute.xlu1 %4110 }
 0xc19   :  { %v14098_v51 = vsel %vm4136_vm5, %v13903_v9, %v4111_v29  ;;  %v4083_v58 = vpop.permute.xlu2 %4082 }
 0xc1a   :  { %v14102_v49 = vsel %vm4136_vm5, %v13921_v17, %v4083_v58 }
 0xc1f   :  { %v4031_v61 = vpop.permute.xlu0 %4030 }
 0xc20   :  { %v4063_v46 = vpop.permute.xlu1 %4062  ;;  %4126 = vrot.lane.b32.xlu0 %v4031_v61, %s11203_s20 }
 0xc21   :  { %v14107_v20 = vsel %vm4136_vm5, %v13925_v56, %v4063_v46 }
 0xc27   :  { %v4001_v37 = vpop.permute.xlu0 %4000  ;;  %v4035_v4 = vpop.permute.xlu2 %4034 }
 0xc28   :  { %v4081_v18 = vpop.permute.xlu1 %4080  ;;  %4096 = vrot.lane.b32.xlu0 %v4001_v37, %s11203_s20 }
 0xc29   :  { %v14112_v9 = vsel %vm4136_vm5, %v13951_v38, %v4081_v18 }
 0xc2f   :  { %v4115_v48 = vpop.permute.xlu0 %4114 }
 0xc30   :  { %v14116_v17 = vsel %vm4136_vm5, %v13965_v25, %v4115_v48  ;;  %v4033_v2 = vpop.permute.xlu1 %4032 }
 0xc31   :  { %4128 = vrot.lane.b32.xlu1 %v4033_v2, %s11203_s20  ;;  %v4005_v0 = vpop.permute.xlu2 %4004 }
 0xc32   :  { %4100 = vrot.lane.b32.xlu2 %v4005_v0, %s11203_s20 }
 0xc39   :  { %v4119_v56 = vpop.permute.xlu2 %4118 }
 0xc3a   :  { %v14122_v28 = vsel %vm4136_vm5, %v13973_v55, %v4119_v56  ;;  %4130 = vrot.lane.b32.xlu2 %v4035_v4, %s11203_s20 }
 0xc3f   :  { %v4067_v38 = vpop.permute.xlu0 %4066 }
 0xc40   :  { %v14127_v30 = vsel %vm4136_vm5, %v13981_v6, %v4067_v38  ;;  %v4003_v25 = vpop.permute.xlu1 %4002 }
 0xc41   :  { %4098 = vrot.lane.b32.xlu1 %v4003_v25, %s11203_s20  ;;  %v4071_v16 = vpop.permute.xlu2 %4070 }
 0xc42   :  { %v4199_v7 = vsel %vm4136_vm5, %v14033_v36, %v4071_v16 }
 0xc43   :  { %6038 = vmatpush.bf16.msra.mxu3 %v4199_v7 }
 0xc47   :  { %v4085_v13 = vpop.permute.xlu0 %4084 }
 0xc48   :  { %v4227_v22 = vsel %vm4136_vm5, %v13995_v39, %v4085_v13  ;;  %v4117_v55 = vpop.permute.xlu1 %4116 }
 0xc49   :  { %v14136_v54 = vsel %vm4136_vm5, %v13975_v31, %v4117_v55  ;;  %v4089_v24 = vpop.permute.xlu2 %4088 }
 0xc4a   :  { %v14140_v6 = vsel %vm4136_vm5, %v13993_v59, %v4089_v24 }
 0xc4f   :  { %v4037_v43 = vpop.permute.xlu0 %4036 }
 0xc50   :  { %v4069_v26 = vpop.permute.xlu1 %4068 }
 0xc51   :  { %v4195_v53 = vsel %vm4136_vm5, %v13997_v34, %v4069_v26 }
 0xc52   :  { %v4125_v36 = vpop.permute.xlu2 %4124 }
 0xc53   :  { %v14145_v11 = vsel %vm4136_vm5, %v4029_v21, %v4125_v36 }
 0xc57   :  { %v4007_v39 = vpop.permute.xlu0 %4006 }
 0xc58   :  { %v4087_v29 = vpop.permute.xlu1 %4086  ;;  %4102 = vrot.lane.b32.xlu0 %v4007_v39, %s11203_s20 }
 0xc59   :  { %v4231_v31 = vsel %vm4136_vm5, %v14009_v44, %v4087_v29 }
 0xc5c   :  { %v4095_v58 = vpop.permute.xlu2 %4094 }
 0xc5d   :  { %v14151_v59 = vsel %vm4136_vm5, %v3999_v8, %v4095_v58 }
 0xc5f   :  { %v4121_v46 = vpop.permute.xlu0 %4120 }
 0xc60   :  { %v14155_v18 = vsel %vm4136_vm5, %v14053_v14, %v4121_v46  ;;  %v4039_v34 = vpop.permute.xlu1 %4038  ;;  %4132 = vrot.lane.b32.xlu0 %v4037_v43, %s11203_s20 }
 0xc61   :  { %4134 = vrot.lane.b32.xlu1 %v4039_v34, %s11203_s20 }
 0xc67   :  { %v4091_v21 = vpop.permute.xlu0 %4090 }
 0xc68   :  { %v14161_v48 = vsel %vm4136_vm5, %v14065_v3, %v4091_v21 }
 0xc6c   :  { %v4123_v44 = vpop.permute.xlu1 %4122 }
 0xc6d   :  { %v14165_v8 = vsel %vm4136_vm5, %v14070_v62, %v4123_v44 }
 0xc83   :  { %v4093_v56 = vpop.permute.xlu1 %4092 }
 0xc84   :  { %v4243_v38 = vsel %vm4136_vm5, %v3997_v10, %v4093_v56 }
 0xc8c   :  { %v4101_v14 = vpop.permute.xlu2 %4100 }
 0xc8d   :  { %v4259_v16 = vsel %vm4136_vm5, %v4005_v0, %v4101_v14 }
 0xc92   :  { %v4127_v13 = vpop.permute.xlu0 %4126 }
 0xc93   :  { %v14170_v55 = vsel %vm4136_vm5, %v4031_v61, %v4127_v13 }
 0xc94   :  { %v4131_v24 = vpop.permute.xlu2 %4130 }
 0xc95   :  { %v14173_v26 = vsel %vm4136_vm5, %v4035_v4, %v4131_v24 }
 0xc9a   :  { %v4097_v3 = vpop.permute.xlu0 %4096 }
 0xc9b   :  { %v4251_v36 = vsel %vm4136_vm5, %v4001_v37, %v4097_v3 }
 0xca3   :  { %v4129_v29 = vpop.permute.xlu1 %4128 }
 0xca4   :  { %v14177_v62 = vsel %vm4136_vm5, %v4033_v2, %v4129_v29 }
 0xcb3   :  { %v4099_v58 = vpop.permute.xlu1 %4098 }
 0xcb4   :  { %v4255_v10 = vsel %vm4136_vm5, %v4003_v25, %v4099_v58 }
 0xcca   :  { %v4103_v46 = vpop.permute.xlu0 %4102 }
 0xccb   :  { %v4263_v0 = vsel %vm4136_vm5, %v4007_v39, %v4103_v46 }
 0xcd2   :  { %v4133_v21 = vpop.permute.xlu0 %4132 }
 0xcd3   :  { %v14182_v61 = vsel %vm4136_vm5, %v4037_v43, %v4133_v21  ;;  %v4135_v44 = vpop.permute.xlu1 %4134 }
 0xcd4   :  { %v14185_v4 = vsel %vm4136_vm5, %v4039_v34, %v4135_v44 }
 0xcd5   :  { %11193 = dma.done.wait [#allocation4 + $0x1], 24576 }
 0xcd6   :  { %11194 = vsyncadd [#allocation4 + $0x1], 4294942720  ;;  %6207 = vmatpush.bf16.msra.mxu2 %v4231_v31  ;;  %v16209_v37 = vmov 0   ;;  %6376 = vmatpush.bf16.msra.mxu0 %v4263_v0  ;;  %v4539_v12 = vld [vmem:[%s16097_s10 + $0x70] sm:$0xff]  ;;  %v4537_v2 = vld [vmem:[%s16097_s10 + $0x60] sm:$0xff]  ;;  %vm7427_vm7 = vcmask 474112  }
 0xcd7   :  { %11092 = vset.pattern.permute.xlu0 %v16209_v37  ;;  %11093 = vset.pattern.permute.xlu1 %v16209_v37  ;;  %v10673_v25 = vld [vmem:[#allocation3 + $0xc] sm:$0xf]  ;;  %v4528_v31 = vld [vmem:[%s16097_s10 + $0x18] sm:$0xff]  ;;  %v10682_v34 = vld [vmem:[#allocation3 + $0x4c] sm:$0xf0]  ;;  %vm8417_vm8 = vcmask 1044480  }
 0xcd8   :  { %11094 = vset.pattern.permute.xlu2 %v16209_v37  ;;  %5870 = vmatpush.bf16.msrb.mxu1 %v13939_v5  ;;  %v4535_v5 = vld [vmem:[%s16097_s10 + $0x50] sm:$0xff]  ;;  %v9559_v39 = vld [vmem:[#allocation3 + $0x48] sm:$0xf0]  ;;  %v10687_v24 = vld [vmem:[#allocation3 + $0x74] sm:$0xf0]  ;;  %s11209_s20 = smov 70  }
 0xcd9   :  { %6039 = vmatpush.bf16.msra.mxu3 %v4195_v53  ;;  %4661 = vperm.xlu0 %11092, %v4539_v12   ;;  %v10678_v53 = vld [vmem:[#allocation3 + $0x34] sm:$0xf]  ;;  %v4526_v13 = vld [vmem:[%s16097_s10 + $0x8] sm:$0xff]  ;;  %v9583_v3 = vld [vmem:[#allocation3 + $0x78] sm:$0xf0]  ;;  %vm8404_vm11 = vcmask 465920  }
 0xcda   :  { %6208 = vmatpush.bf16.msra.mxu2 %v4227_v22  ;;  %6377 = vmatpush.bf16.msra.mxu0 %v4259_v16  ;;  %v9567_v56 = vld [vmem:[#allocation3 + $0x50] sm:$0xf0]  ;;  %v9591_v29 = vld [vmem:[#allocation3 + $0x80] sm:$0xf0]  ;;  %v9607_v46 = vld [vmem:[#allocation3 + $0xa8] sm:$0xf0] }
 0xcdb   :  { %4651 = vperm.xlu1 %11093, %v4537_v2   ;;  %4641 = vperm.xlu2 %11094, %v4535_v5   ;;  %v9613_v0 = vld [vmem:[#allocation3 + $0x98] sm:$0xf]  ;;  %v10694_v21 = vld [vmem:[#allocation3 + $0xac] sm:$0xf0]  ;;  %v9615_v44 = vld [vmem:[#allocation3 + $0xb0] sm:$0xf0] }
 0xcdc   :  { %5871 = vmatpush.bf16.msrb.mxu1 %v13963_v23  ;;  %v4540_v23 = vld [vmem:[%s16097_s10 + $0x78] sm:$0xff]  ;;  %v9614_v37 = vor.u32 %v10694_v21, %v9613_v0  ;;  %v9629_v12 = vld [vmem:[#allocation3 + $0xc0] sm:$0xf]  ;;  %v10696_v5 = vld [vmem:[#allocation3 + $0xc4] sm:$0xf]  ;;  %s11210_s25 = smov 96  }
 0xcdd   :  { %6040 = vmatpush.bf16.msra.mxu3 %v14127_v30  ;;  %v10676_v30 = vld [vmem:[#allocation3 + $0x1c] sm:$0xf0]  ;;  %v10699_v2 = vld [vmem:[#allocation3 + $0xd4] sm:$0xf0]  ;;  %s11211_s28 = smov [#allocation8]   ;;  %vm9011_vm12 = vcmask 9216  }
 0xcde   :  { %6209 = vmatpush.bf16.msra.mxu2 %v14102_v49  ;;  %6378 = vmatpush.bf16.msra.mxu0 %v4255_v10  ;;  %v4538_v49 = vld [vmem:[%s16097_s10 + $0x68] sm:$0xff]  ;;  %v10690_v10 = vld [vmem:[#allocation3 + $0x94] sm:$0xf]  ;;  %s9018_s29 = sshll.u32 %s11211_s28, 4  ;;  %s9019_s29 = int_to_ptr.vmem [resolvable:$true] %s9018_s29 }
 0xce0   :  { %5872 = vmatpush.bf16.msrb.mxu1 %v13943_v52  ;;  %v4536_v52 = vld [vmem:[%s16097_s10 + $0x58] sm:$0xff] }
 0xce1   :  { %6041 = vmatpush.bf16.msra.mxu3 %v14090_v19  ;;  %4666 = vperm.xlu0 %11092, %v4540_v23   ;;  %v9533_v19 = vld [vmem:[#allocation3] sm:$0xf]  ;;  %v9631_v23 = vld [vmem:[#allocation3 + $0xd8] sm:$0xf0] }
 0xce2   :  { %6210 = vmatpush.bf16.msra.mxu2 %v14112_v9  ;;  %6379 = vmatpush.bf16.msra.mxu0 %v4251_v36  ;;  %v10672_v9 = vld [vmem:[#allocation3 + $0x4] sm:$0xf]  ;;  %v10688_v36 = vld [vmem:[#allocation3 + $0x7c] sm:$0xf0] }
 0xce3   :  { %4656 = vperm.xlu1 %11093, %v4538_v49   ;;  %4646 = vperm.xlu2 %11094, %v4536_v52   ;;  %v9637_v49 = vld [vmem:[#allocation3 + $0xc8] sm:$0xf]  ;;  %v10700_v52 = vld [vmem:[#allocation3 + $0xdc] sm:$0xf0] }
 0xce4   :  { %5873 = vmatpush.bf16.msrb.mxu1 %v13871_v42  ;;  %v4533_v42 = vld [vmem:[%s16097_s10 + $0x40] sm:$0xff] }
 0xce5   :  { %6042 = vmatpush.bf16.msra.mxu3 %v14107_v20  ;;  %v10675_v20 = vld [vmem:[#allocation3 + $0x14] sm:$0xf0] }
 0xce6   :  { %6211 = vmatpush.bf16.msra.mxu2 %v14094_v40  ;;  %6380 = vmatpush.bf16.msra.mxu0 %v14151_v59  ;;  %v9535_v40 = vld [vmem:[#allocation3 + $0x18] sm:$0xf0]  ;;  %v9534_v7 = vor.u32 %v10675_v20, %v9533_v19  ;;  %v9565_v59 = vld [vmem:[#allocation3 + $0x38] sm:$0xf]  ;;  %v9639_v19 = vld [vmem:[#allocation3 + $0xe0] sm:$0xf0]  ;;  %v9630_v20 = vor.u32 %v10699_v2, %v9629_v12 }
 0xce7   :  { %v9566_v14 = vor.u32 %v10682_v34, %v9565_v59  ;;  %v9679_v59 = vld [vmem:[#allocation3 + $0x138] sm:$0xf0]  ;;  %v9685_v34 = vld [vmem:[#allocation3 + $0x128] sm:$0xf] }
 0xce8   :  { %5874 = vmatpush.bf16.msrb.mxu1 %v13893_v32  ;;  %v4534_v32 = vld [vmem:[%s16097_s10 + $0x48] sm:$0xff] }
 0xce9   :  { %6043 = vmatpush.bf16.msra.mxu3 %v14085_v15  ;;  %4631 = vperm.xlu0 %11092, %v4533_v42   ;;  %v9541_v15 = vld [vmem:[#allocation3 + $0x8] sm:$0xf]  ;;  %v10697_v42 = vld [vmem:[#allocation3 + $0xcc] sm:$0xf] }
 0xcea   :  { %6212 = vmatpush.bf16.msra.mxu2 %v14051_v1  ;;  %6381 = vmatpush.bf16.msra.mxu0 %v4243_v38  ;;  %v4531_v1 = vld [vmem:[%s16097_s10 + $0x30] sm:$0xff]  ;;  %v9542_v22 = vor.u32 %v10676_v30, %v9541_v15  ;;  %v9562_v38 = vor.u32 %v10678_v53, %v9559_v39  ;;  %v10705_v30 = vld [vmem:[#allocation3 + $0x104] sm:$0xf0]  ;;  %v4549_v53 = vld [vmem:[%s16097_s10 + $0xc0] sm:$0xff] }
 0xceb   :  { %4636 = vperm.xlu1 %11093, %v4534_v32   ;;  %4621 = vperm.xlu2 %11094, %v4531_v1   ;;  %v9642_v32 = vor.u32 %v10697_v42, %v9639_v19  ;;  %v4555_v1 = vld [vmem:[%s16097_s10 + $0xf0] sm:$0xff]  ;;  %v9677_v39 = vld [vmem:[#allocation3 + $0x120] sm:$0xf]  ;;  %v10723_v42 = vld [vmem:[#allocation3 + $0x194] sm:$0xf0] }
 0xcec   :  { %5875 = vmatpush.bf16.msrb.mxu1 %v13875_v41  ;;  %v9543_v41 = vld [vmem:[#allocation3 + $0x20] sm:$0xf0]  ;;  %v9653_v15 = vld [vmem:[#allocation3 + $0xf0] sm:$0xf] }
 0xced   :  { %6044 = vmatpush.bf16.msra.mxu3 %v14031_v27  ;;  %v9538_v27 = vor.u32 %v10672_v9, %v9535_v40  ;;  %v9546_v43 = vor.u32 %v10673_v25, %v9543_v41  ;;  %v9634_v9 = vor.u32 %v10696_v5, %v9631_v23  ;;  %v9638_v40 = vor.u32 %v10700_v52, %v9637_v49  ;;  %v10702_v25 = vld [vmem:[#allocation3 + $0xf4] sm:$0xf]  ;;  %v9655_v41 = vld [vmem:[#allocation3 + $0x108] sm:$0xf0]  ;;  %v9725_v5 = vld [vmem:[#allocation3 + $0x180] sm:$0xf] }
 0xcee   :  { %6213 = vmatpush.bf16.msra.mxu2 %v14063_v47  ;;  %6382 = vmatpush.bf16.msra.mxu0 %v14161_v48  ;;  %v4532_v47 = vld [vmem:[%s16097_s10 + $0x38] sm:$0xff]  ;;  %v4553_v23 = vld [vmem:[%s16097_s10 + $0xe0] sm:$0xff] }
 0xcef   :  { %v10679_v48 = vld [vmem:[#allocation3 + $0x3c] sm:$0xf]  ;;  %v4545_v49 = vld [vmem:[%s16097_s10 + $0xa0] sm:$0xff] }
 0xcf0   :  { %5876 = vmatpush.bf16.msrb.mxu1 %v13756_v33  ;;  %v4529_v33 = vld [vmem:[%s16097_s10 + $0x20] sm:$0xff]  ;;  %v9570_v16 = vor.u32 %v10679_v48, %v9567_v56  ;;  %v10709_v56 = vld [vmem:[#allocation3 + $0x12c] sm:$0xf] }
 0xcf1   :  { %6045 = vmatpush.bf16.msra.mxu3 %v14047_v45  ;;  %4626 = vperm.xlu0 %11092, %v4532_v47   ;;  %v4527_v45 = vld [vmem:[%s16097_s10 + $0x10] sm:$0xff]  ;;  %v9654_v47 = vor.u32 %v10705_v30, %v9653_v15  ;;  %v10712_v48 = vld [vmem:[#allocation3 + $0x13c] sm:$0xf0]  ;;  %v10720_v19 = vld [vmem:[#allocation3 + $0x184] sm:$0xf]  ;;  %v9726_v15 = vor.u32 %v10723_v42, %v9725_v5 }
 0xcf2   :  { %6214 = vmatpush.bf16.msra.mxu2 %v14037_v57  ;;  %6383 = vmatpush.bf16.msra.mxu0 %v14140_v6  ;;  %v4530_v57 = vld [vmem:[%s16097_s10 + $0x28] sm:$0xff] }
 0xcf3   :  { %5877 = vmatmul.bf16.vlgmr.msrb.gmra.mxu1 %v9534_v7  ;;  %4611 = vperm.xlu1 %11093, %v4529_v33   ;;  %v10681_v6 = vld [vmem:[#allocation3 + $0x44] sm:$0xf0]  ;;  %v9661_v7 = vld [vmem:[#allocation3 + $0xf8] sm:$0xf]  ;;  %v9658_v33 = vor.u32 %v10702_v25, %v9655_v41 }
 0xcf4   :  { %6545 = vmatpush.bf16.msra.mxu1 %v14122_v28  ;;  %6046 = vmatmul.bf16.vlgmr.msra.gmra.mxu3 %v9538_v27  ;;  %v9557_v28 = vld [vmem:[#allocation3 + $0x30] sm:$0xf]  ;;  %v4546_v5 = vld [vmem:[%s16097_s10 + $0xa8] sm:$0xff] }
 0xcf5   :  { %6714 = vmatpush.bf16.msrb.mxu3 %v14185_v4  ;;  %6215 = vmatmul.bf16.vlgmr.msra.gmra.mxu2 %v9542_v22  ;;  %v10706_v27 = vld [vmem:[#allocation3 + $0x10c] sm:$0xf0]  ;;  %v10703_v22 = vld [vmem:[#allocation3 + $0xfc] sm:$0xf] }
 0xcf6   :  { %6384 = vmatmul.bf16.vlgmr.msra.gmra.mxu0 %v9546_v43  ;;  %4616 = vperm.xlu2 %11094, %v4530_v57   ;;  %v9663_v43 = vld [vmem:[#allocation3 + $0x110] sm:$0xf0]  ;;  %v4554_v57 = vld [vmem:[%s16097_s10 + $0xe8] sm:$0xff] }
 0xcf8   :  { %6546 = vmatpush.bf16.msra.mxu1 %v14136_v54  ;;  %v4525_v54 = vld [vmem:[%s16097_s10] sm:$0xff] }
 0xcf9   :  { %6715 = vmatpush.bf16.msrb.mxu3 %v14182_v61  ;;  %4601 = vperm.xlu0 %11092, %v4527_v45   ;;  %v10691_v61 = vld [vmem:[#allocation3 + $0x9c] sm:$0xf]  ;;  %v9662_v45 = vor.u32 %v10706_v27, %v9661_v7 }
 0xcfb   :  { %4606 = vperm.xlu1 %11093, %v4528_v31   ;;  %v10711_v31 = vld [vmem:[#allocation3 + $0x134] sm:$0xf0] }
 0xcfc   :  { %6547 = vmatpush.bf16.msra.mxu1 %v14116_v17  ;;  %v9558_v17 = vor.u32 %v10681_v6, %v9557_v28  ;;  %v9666_v28 = vor.u32 %v10703_v22, %v9663_v43 }
 0xcfd   :  { %6716 = vmatpush.bf16.msrb.mxu3 %v14173_v26  ;;  %v10684_v26 = vld [vmem:[#allocation3 + $0x64] sm:$0xf] }
 0xcfe   :  { %4591 = vperm.xlu2 %11094, %v4525_v54   ;;  %v10708_v54 = vld [vmem:[#allocation3 + $0x124] sm:$0xf] }
 0xd00   :  { %6548 = vmatpush.bf16.msra.mxu1 %v14081_v50  ;;  %v9581_v50 = vld [vmem:[#allocation3 + $0x60] sm:$0xf] }
 0xd01   :  { %6717 = vmatpush.bf16.msrb.mxu3 %v14177_v62  ;;  %4596 = vperm.xlu0 %11092, %v4526_v13   ;;  %v9582_v62 = vor.u32 %v10687_v24, %v9581_v50  ;;  %v9686_v13 = vor.u32 %v10712_v48, %v9685_v34  ;;  %v4548_v50 = vld [vmem:[%s16097_s10 + $0xb8] sm:$0xff] }
 0xd03   :  { %5882 = vmatmul.bf16.gmra.mxu1 %v9558_v17  ;;  %4741 = vperm.xlu1 %11093, %v4555_v1   ;;  %v9687_v17 = vld [vmem:[#allocation3 + $0x140] sm:$0xf0] }
 0xd04   :  { %6549 = vmatpush.bf16.msra.mxu1 %v14098_v51  ;;  %6051 = vmatmul.bf16.gmra.mxu3 %v9562_v38  ;;  %v10685_v51 = vld [vmem:[#allocation3 + $0x6c] sm:$0xf]  ;;  %v9735_v1 = vld [vmem:[#allocation3 + $0x1a0] sm:$0xf0] }
 0xd05   :  { %6718 = vmatpush.bf16.msrb.mxu3 %v14170_v55  ;;  %6220 = vmatmul.bf16.gmra.mxu2 %v9566_v14  ;;  %v9589_v55 = vld [vmem:[#allocation3 + $0x68] sm:$0xf]  ;;  %v9678_v14 = vor.u32 %v10711_v31, %v9677_v39 }
 0xd06   :  { %6389 = vmatmul.bf16.gmra.mxu0 %v9570_v16  ;;  %v9590_v58 = vor.u32 %v10688_v36, %v9589_v55  ;;  %v9682_v16 = vor.u32 %v10708_v54, %v9679_v59  ;;  %v4543_v36 = vld [vmem:[%s16097_s10 + $0x90] sm:$0xff] }
 0xd08   :  { %6550 = vmatpush.bf16.msra.mxu1 %v14076_v63  ;;  %v9586_v63 = vor.u32 %v10684_v26, %v9583_v3  ;;  %v9690_v26 = vor.u32 %v10709_v56, %v9687_v17  ;;  %v4556_v3 = vld [vmem:[%s16097_s10 + $0xf8] sm:$0xff]  ;;  %v9749_v56 = vld [vmem:[#allocation3 + $0x1b0] sm:$0xf] }
 0xd09   :  { %6719 = vmatpush.bf16.msrb.mxu3 %v14145_v11  ;;  %v9594_v11 = vor.u32 %v10685_v51, %v9591_v29  ;;  %4746 = vperm.xlu2 %11094, %v4556_v3   ;;  %v9701_v51 = vld [vmem:[#allocation3 + $0x150] sm:$0xf]  ;;  %v9757_v3 = vld [vmem:[#allocation3 + $0x1b8] sm:$0xf] }
 0xd0a   :  { %4731 = vperm.xlu0 %11092, %v4553_v23   ;;  %v4547_v17 = vld [vmem:[%s16097_s10 + $0xb0] sm:$0xff] }
 0xd0b   :  { %4736 = vperm.xlu1 %11093, %v4554_v57   ;;  %v4544_v57 = vld [vmem:[%s16097_s10 + $0x98] sm:$0xff] }
 0xd0c   :  { %6551 = vmatpush.bf16.msra.mxu1 %v14013_v60  ;;  %v9605_v60 = vld [vmem:[#allocation3 + $0x90] sm:$0xf] }
 0xd0d   :  { %6720 = vmatpush.bf16.msrb.mxu3 %v14165_v8  ;;  %v10693_v8 = vld [vmem:[#allocation3 + $0xa4] sm:$0xf0] }
 0xd0e   :  { %v9606_v4 = vor.u32 %v10693_v8, %v9605_v60  ;;  %v9709_v60 = vld [vmem:[#allocation3 + $0x158] sm:$0xf]  ;;  %v10718_v8 = vld [vmem:[#allocation3 + $0x16c] sm:$0xf0] }
 0xd10   :  { %6552 = vmatpush.bf16.msra.mxu1 %v14027_v35  ;;  %v9610_v35 = vor.u32 %v10690_v10, %v9607_v46  ;;  %v10715_v10 = vld [vmem:[#allocation3 + $0x15c] sm:$0xf]  ;;  %v9711_v46 = vld [vmem:[#allocation3 + $0x170] sm:$0xf0] }
 0xd11   :  { %6721 = vmatpush.bf16.msrb.mxu3 %v14155_v18  ;;  %v9618_v18 = vor.u32 %v10691_v61, %v9615_v44  ;;  %v9710_v44 = vor.u32 %v10718_v8, %v9709_v60 }
 0xd13   :  { %5887 = vmatmul.bf16.gmra.mxu1 %v9582_v62  ;;  %4711 = vperm.xlu1 %11093, %v4549_v53   ;;  %v4551_v62 = vld [vmem:[%s16097_s10 + $0xd0] sm:$0xff] }
 0xd14   :  { %6056 = vmatmul.bf16.gmra.mxu3 %v9586_v63  ;;  %v10717_v63 = vld [vmem:[#allocation3 + $0x164] sm:$0xf0]  ;;  %4721 = vperm.xlu2 %11094, %v4551_v62   ;;  %v10727_v62 = vld [vmem:[#allocation3 + $0x1bc] sm:$0xf] }
 0xd15   :  { %6225 = vmatmul.bf16.gmra.mxu2 %v9590_v58  ;;  %v10714_v58 = vld [vmem:[#allocation3 + $0x154] sm:$0xf]  ;;  %v9702_v21 = vor.u32 %v10717_v63, %v9701_v51 }
 0xd16   :  { %6394 = vmatmul.bf16.gmra.mxu0 %v9594_v11  ;;  %v9703_v11 = vld [vmem:[#allocation3 + $0x168] sm:$0xf0]  ;;  %v9759_v63 = vld [vmem:[#allocation3 + $0x1d0] sm:$0xf0] }
 0xd17   :  { %v9706_v61 = vor.u32 %v10714_v58, %v9703_v11 }
 0xd1b   :  { %4706 = vperm.xlu1 %11093, %v4548_v50   ;;  %v9751_v50 = vld [vmem:[#allocation3 + $0x1c8] sm:$0xf0] }
 0xd23   :  { %5892 = vmatmul.bf16.gmra.mxu1 %v9606_v4  ;;  %4681 = vperm.xlu1 %11093, %v4543_v36   ;;  %v9714_v4 = vor.u32 %v10715_v10, %v9711_v46  ;;  %v10730_v36 = vld [vmem:[#allocation3 + $0x1cc] sm:$0xf0] }
 0xd24   :  { %6061 = vmatmul.bf16.gmra.mxu3 %v9610_v35  ;;  %v4541_v35 = vld [vmem:[%s16097_s10 + $0x80] sm:$0xff] }
 0xd25   :  { %6230 = vmatmul.bf16.gmra.mxu2 %v9614_v37 }
 0xd26   :  { %6399 = vmatmul.bf16.gmra.mxu0 %v9618_v18  ;;  %v4550_v18 = vld [vmem:[%s16097_s10 + $0xc8] sm:$0xff] }
 0xd27   :  { %4716 = vperm.xlu2 %11094, %v4550_v18  }
 0xd2b   :  { %4671 = vperm.xlu1 %11093, %v4541_v35  }
 0xd2f   :  { %4691 = vperm.xlu2 %11094, %v4545_v49  }
 0xd33   :  { %5897 = vmatmul.bf16.gmra.mxu1 %v9630_v20  ;;  %v9727_v20 = vld [vmem:[#allocation3 + $0x198] sm:$0xf0] }
 0xd34   :  { %6066 = vmatmul.bf16.gmra.mxu3 %v9634_v9  ;;  %v9733_v9 = vld [vmem:[#allocation3 + $0x188] sm:$0xf]  ;;  %v9730_v30 = vor.u32 %v10720_v19, %v9727_v20 }
 0xd35   :  { %6235 = vmatmul.bf16.gmra.mxu2 %v9638_v40  ;;  %v14283_v6 = vpop.permute.xlu2 %4641  ;;  %v10724_v40 = vld [vmem:[#allocation3 + $0x19c] sm:$0xf0] }
 0xd36   :  { %6404 = vmatmul.bf16.gmra.mxu0 %v9642_v32  ;;  %v10721_v32 = vld [vmem:[#allocation3 + $0x18c] sm:$0xf]  ;;  %v9734_v27 = vor.u32 %v10724_v40, %v9733_v9 }
 0xd37   :  { %v9738_v22 = vor.u32 %v10721_v32, %v9735_v1  ;;  %4686 = vperm.xlu2 %11094, %v4544_v57   ;;  %v9773_v1 = vld [vmem:[#allocation3 + $0x1e0] sm:$0xf] }
 0xd3d   :  { %v14293_v24 = vpop.permute.xlu2 %4646 }
 0xd43   :  { %5902 = vmatmul.bf16.gmra.mxu1 %v9654_v47 }
 0xd44   :  { %6071 = vmatmul.bf16.gmra.mxu3 %v9658_v33  ;;  %v4552_v33 = vld [vmem:[%s16097_s10 + $0xd8] sm:$0xff] }
 0xd45   :  { %6240 = vmatmul.bf16.gmra.mxu2 %v9662_v45  ;;  %v14303_v29 = vpop.permute.xlu2 %4621  ;;  %4726 = vperm.xlu0 %11092, %v4552_v33  }
 0xd46   :  { %6409 = vmatmul.bf16.gmra.mxu0 %v9666_v28 }
 0xd4b   :  { %v14288_v38 = vpop.permute.xlu0 %4661 }
 0xd4d   :  { %v14313_v37 = vpop.permute.xlu1 %4651  ;;  %4701 = vperm.xlu0 %11092, %v4547_v17  }
 0xd50   :  { %v14318_v12 = vpop.permute.xlu2 %4616 }
 0xd53   :  { %5907 = vmatmul.bf16.gmra.mxu1 %v9678_v14  ;;  %v14298_v55 = vpop.permute.xlu0 %4666  ;;  %v4542_v14 = vld [vmem:[%s16097_s10 + $0x88] sm:$0xff] }
 0xd54   :  { %6076 = vmatmul.bf16.gmra.mxu3 %v9682_v16  ;;  %v10729_v16 = vld [vmem:[#allocation3 + $0x1c4] sm:$0xf0]  ;;  %4676 = vperm.xlu2 %11094, %v4542_v14  }
 0xd55   :  { %6245 = vmatmul.bf16.gmra.mxu2 %v9686_v13  ;;  %v14328_v52 = vpop.permute.xlu1 %4656  ;;  %v10726_v13 = vld [vmem:[#allocation3 + $0x1b4] sm:$0xf]  ;;  %v9750_v60 = vor.u32 %v10729_v16, %v9749_v56  ;;  %4696 = vperm.xlu0 %11092, %v4546_v5  }
 0xd56   :  { %6414 = vmatmul.bf16.gmra.mxu0 %v9690_v26  ;;  %v9754_v8 = vor.u32 %v10726_v13, %v9751_v50 }
 0xd58   :  { %v4592_v25 = vpop.permute.xlu2 %4591 }
 0xd5b   :  { %v14308_v0 = vpop.permute.xlu0 %4631 }
 0xd5d   :  { %v14336_v28 = vpop.permute.xlu1 %4636 }
 0xd63   :  { %5912 = vmatmul.bf16.gmra.mxu1 %v9702_v21  ;;  %v14320_v2 = vpop.permute.xlu0 %4626  ;;  %v9758_v21 = vor.u32 %v10730_v36, %v9757_v3 }
 0xd64   :  { %6081 = vmatmul.bf16.gmra.mxu3 %v9706_v61 }
 0xd65   :  { %6250 = vmatmul.bf16.gmra.mxu2 %v9710_v44  ;;  %v4612_v10 = vpop.permute.xlu1 %4611  ;;  %v9762_v44 = vor.u32 %v10727_v62, %v9759_v63  ;;  %v10741_v62 = vld [vmem:[#allocation3 + $0x224] sm:$0xf0]  ;;  %v10738_v63 = vld [vmem:[#allocation3 + $0x214] sm:$0xf] }
 0xd66   :  { %6419 = vmatmul.bf16.gmra.mxu0 %v9714_v4 }
 0xd6b   :  { %v4602_v41 = vpop.permute.xlu0 %4601 }
 0xd6d   :  { %v4607_v9 = vpop.permute.xlu1 %4606 }
 0xd70   :  { %v5878_v7 = vpop.f32.mrf.mxu1 }
 0xd71   :  { %v5879_v47 = vadd.f32 %v5878_v7, %v4592_v25  ;;  %v9775_v25 = vld [vmem:[#allocation3 + $0x1f8] sm:$0xf0]  ;;  %v9781_v7 = vld [vmem:[#allocation3 + $0x1e8] sm:$0xf] }
 0xd73   :  { %v6385_v43 = vpop.f32.mrf.mxu0  ;;  %5917 = vmatmul.bf16.gmra.mxu1 %v9726_v15  ;;  %v4597_v59 = vpop.permute.xlu0 %4596  ;;  %v10735_v15 = vld [vmem:[#allocation3 + $0x1f4] sm:$0xf0] }
 0xd74   :  { %6086 = vmatmul.bf16.gmra.mxu3 %v9730_v30  ;;  %v10732_v30 = vld [vmem:[#allocation3 + $0x1e4] sm:$0xf] }
 0xd75   :  { %6255 = vmatmul.bf16.gmra.mxu2 %v9734_v27  ;;  %v10736_v27 = vld [vmem:[#allocation3 + $0x1fc] sm:$0xf0] }
 0xd76   :  { %6424 = vmatmul.bf16.gmra.mxu0 %v9738_v22 }
 0xd77   :  { %v6047_v45 = vpop.f32.mrf.mxu3 }
 0xd78   :  { %v6048_v53 = vadd.f32 %v6047_v45, %v5879_v47  ;;  %v6216_v39 = vpop.f32.mrf.mxu2  ;;  %v5880_v31 = vpop.f32.mrf.mxu1  ;;  %v9783_v47 = vld [vmem:[#allocation3 + $0x200] sm:$0xf0]  ;;  %v9774_v45 = vor.u32 %v10735_v15, %v9773_v1 }
 0xd79   :  { %v5881_v26 = vadd.f32 %v5880_v31, %v4597_v59  ;;  %v9782_v31 = vor.u32 %v10736_v27, %v9781_v7  ;;  %v10747_v27 = vld [vmem:[#allocation3 + $0x254] sm:$0xf0] }
 0xd7a   :  { %v6217_v54 = vadd.f32 %v6216_v39, %v6048_v53  ;;  %v9778_v53 = vor.u32 %v10732_v30, %v9775_v25  ;;  %v4571_v25 = vld [vmem:[%s16097_s10 + $0x170] sm:$0xff] }
 0xd7b   :  { %v6387_v34 = vpop.f32.mrf.mxu0  ;;  %4821 = vperm.xlu1 %11093, %v4571_v25  }
 0xd7c   :  { %v14338_v48 = vadd.f32 %v6385_v43, %v6217_v54  ;;  %v10733_v43 = vld [vmem:[#allocation3 + $0x1ec] sm:$0xf] }
 0xd7d   :  { %v9786_v59 = vor.u32 %v10733_v43, %v9783_v47  ;;  %v9823_v43 = vld [vmem:[#allocation3 + $0x258] sm:$0xf0] }
 0xd7f   :  { %v6049_v51 = vpop.f32.mrf.mxu3 }
 0xd80   :  { %v6050_v58 = vadd.f32 %v6049_v51, %v5881_v26  ;;  %v6218_v11 = vpop.f32.mrf.mxu2  ;;  %v5883_v46 = vpop.f32.mrf.mxu1  ;;  %v9797_v51 = vld [vmem:[#allocation3 + $0x210] sm:$0xf] }
 0xd81   :  { %v5884_v35 = vadd.f32 %v5883_v46, %v4602_v41  ;;  %v10739_v46 = vld [vmem:[#allocation3 + $0x21c] sm:$0xf] }
 0xd82   :  { %v6219_v61 = vadd.f32 %v6218_v11, %v6050_v58  ;;  %v9799_v58 = vld [vmem:[#allocation3 + $0x228] sm:$0xf0] }
 0xd83   :  { %v6390_v4 = vpop.f32.mrf.mxu0  ;;  %5922 = vmatmul.bf16.gmra.mxu1 %v9750_v60  ;;  %v9805_v60 = vld [vmem:[#allocation3 + $0x218] sm:$0xf] }
 0xd84   :  { %v14346_v18 = vadd.f32 %v6387_v34, %v6219_v61  ;;  %6091 = vmatmul.bf16.gmra.mxu3 %v9754_v8  ;;  %v10742_v8 = vld [vmem:[#allocation3 + $0x22c] sm:$0xf0] }
 0xd85   :  { %6260 = vmatmul.bf16.gmra.mxu2 %v9758_v21  ;;  %v9807_v21 = vld [vmem:[#allocation3 + $0x230] sm:$0xf0] }
 0xd86   :  { %6429 = vmatmul.bf16.gmra.mxu0 %v9762_v44 }
 0xd87   :  { %v6052_v23 = vpop.f32.mrf.mxu3 }
 0xd88   :  { %v6053_v49 = vadd.f32 %v6052_v23, %v5884_v35  ;;  %v6221_v42 = vpop.f32.mrf.mxu2  ;;  %v5885_v19 = vpop.f32.mrf.mxu1  ;;  %v9802_v35 = vor.u32 %v10738_v63, %v9799_v58  ;;  %v9806_v23 = vor.u32 %v10742_v8, %v9805_v60  ;;  %v4567_v60 = vld [vmem:[%s16097_s10 + $0x150] sm:$0xff] }
 0xd89   :  { %v5886_v41 = vadd.f32 %v5885_v19, %v4607_v9 }
 0xd8a   :  { %v6222_v20 = vadd.f32 %v6221_v42, %v6053_v49  ;;  %v9810_v42 = vor.u32 %v10739_v46, %v9807_v21  ;;  %v10753_v46 = vld [vmem:[#allocation3 + $0x284] sm:$0xf0]  ;;  %v10750_v21 = vld [vmem:[#allocation3 + $0x274] sm:$0xf] }
 0xd8b   :  { %v6392_v40 = vpop.f32.mrf.mxu0 }
 0xd8c   :  { %v14351_v32 = vadd.f32 %v6390_v4, %v6222_v20  ;;  %v9798_v4 = vor.u32 %v10741_v62, %v9797_v51 }
 0xd8f   :  { %v6054_v22 = vpop.f32.mrf.mxu3 }
 0xd90   :  { %v6055_v33 = vadd.f32 %v6054_v22, %v5886_v41  ;;  %v6223_v57 = vpop.f32.mrf.mxu2  ;;  %v5888_v39 = vpop.f32.mrf.mxu1  ;;  %v10744_v22 = vld [vmem:[#allocation3 + $0x244] sm:$0xf] }
 0xd91   :  { %v5889_v56 = vadd.f32 %v5888_v39, %v4612_v10  ;;  %v9831_v39 = vld [vmem:[#allocation3 + $0x260] sm:$0xf0] }
 0xd92   :  { %v6224_v54 = vadd.f32 %v6223_v57, %v6055_v33  ;;  %v9829_v33 = vld [vmem:[#allocation3 + $0x248] sm:$0xf]  ;;  %v10748_v57 = vld [vmem:[#allocation3 + $0x25c] sm:$0xf0] }
 0xd93   :  { %v6395_v34 = vpop.f32.mrf.mxu0  ;;  %5927 = vmatmul.bf16.gmra.mxu1 %v9774_v45 }
 0xd94   :  { %v14353_v17 = vadd.f32 %v6392_v40, %v6224_v54  ;;  %6096 = vmatmul.bf16.gmra.mxu3 %v9778_v53  ;;  %v10745_v53 = vld [vmem:[#allocation3 + $0x24c] sm:$0xf] }
 0xd95   :  { %6265 = vmatmul.bf16.gmra.mxu2 %v9782_v31 }
 0xd96   :  { %6434 = vmatmul.bf16.gmra.mxu0 %v9786_v59 }
 0xd97   :  { %v6057_v14 = vpop.f32.mrf.mxu3 }
 0xd98   :  { %v6058_v16 = vadd.f32 %v6057_v14, %v5889_v56  ;;  %v6226_v13 = vpop.f32.mrf.mxu2  ;;  %v5890_v50 = vpop.f32.mrf.mxu1  ;;  %v9830_v14 = vor.u32 %v10748_v57, %v9829_v33 }
 0xd99   :  { %v5891_v11 = vadd.f32 %v5890_v50, %v14318_v12  ;;  %v4569_v50 = vld [vmem:[%s16097_s10 + $0x160] sm:$0xff]  ;;  %v14390_v57 = vpop.permute.xlu2 %4746 }
 0xd9a   :  { %v6227_v26 = vadd.f32 %v6226_v13, %v6058_v16  ;;  %v9834_v13 = vor.u32 %v10745_v53, %v9831_v39  ;;  %4811 = vperm.xlu1 %11093, %v4569_v50   ;;  %v4563_v39 = vld [vmem:[%s16097_s10 + $0x130] sm:$0xff]  ;;  %v9877_v50 = vld [vmem:[#allocation3 + $0x2a8] sm:$0xf] }
 0xd9b   :  { %v6397_v3 = vpop.f32.mrf.mxu0 }
 0xd9c   :  { %v14355_v36 = vadd.f32 %v6395_v34, %v6227_v26  ;;  %v9826_v34 = vor.u32 %v10744_v22, %v9823_v43  ;;  %v4572_v22 = vld [vmem:[%s16097_s10 + $0x178] sm:$0xff] }
 0xd9d   :  { %4826 = vperm.xlu2 %11094, %v4572_v22   ;;  %v9895_v22 = vld [vmem:[#allocation3 + $0x2e8] sm:$0xf0] }
 0xd9f   :  { %v6059_v10 = vpop.f32.mrf.mxu3 }
 0xda0   :  { %v6060_v61 = vadd.f32 %v6059_v10, %v5891_v11  ;;  %v6228_v44 = vpop.f32.mrf.mxu2  ;;  %v5893_v5 = vpop.f32.mrf.mxu1 }
 0xda1   :  { %v5894_v20 = vadd.f32 %v5893_v5, %v14303_v29  ;;  %v9821_v29 = vld [vmem:[#allocation3 + $0x240] sm:$0xf] }
 0xda2   :  { %v6229_v49 = vadd.f32 %v6228_v44, %v6060_v61  ;;  %v9822_v59 = vor.u32 %v10747_v27, %v9821_v29  ;;  %4801 = vperm.xlu1 %11093, %v4567_v60   ;;  %v9847_v61 = vld [vmem:[#allocation3 + $0x288] sm:$0xf0] }
 0xda3   :  { %v6400_v19 = vpop.f32.mrf.mxu0  ;;  %5932 = vmatmul.bf16.gmra.mxu1 %v9798_v4  ;;  %v9853_v4 = vld [vmem:[#allocation3 + $0x278] sm:$0xf] }
 0xda4   :  { %v14359_v9 = vadd.f32 %v6397_v3, %v6229_v49  ;;  %6101 = vmatmul.bf16.gmra.mxu3 %v9802_v35  ;;  %v10754_v35 = vld [vmem:[#allocation3 + $0x28c] sm:$0xf0]  ;;  %v10751_v49 = vld [vmem:[#allocation3 + $0x27c] sm:$0xf] }
 0xda5   :  { %6270 = vmatmul.bf16.gmra.mxu2 %v9806_v23  ;;  %v14379_v23 = vpop.permute.xlu1 %4741 }
 0xda6   :  { %6439 = vmatmul.bf16.gmra.mxu0 %v9810_v42  ;;  %v9855_v42 = vld [vmem:[#allocation3 + $0x290] sm:$0xf0] }
 0xda7   :  { %v6062_v12 = vpop.f32.mrf.mxu3  ;;  %v9858_v25 = vor.u32 %v10751_v49, %v9855_v42  ;;  %v4568_v49 = vld [vmem:[%s16097_s10 + $0x158] sm:$0xff] }
 0xda8   :  { %v6063_v40 = vadd.f32 %v6062_v12, %v5894_v20  ;;  %v6231_v1 = vpop.f32.mrf.mxu2  ;;  %v5895_v15 = vpop.f32.mrf.mxu1 }
 0xda9   :  { %v5896_v47 = vadd.f32 %v5895_v15, %v14320_v2  ;;  %v9854_v15 = vor.u32 %v10754_v35, %v9853_v4 }
 0xdaa   :  { %v6232_v30 = vadd.f32 %v6231_v1, %v6063_v40  ;;  %v9850_v40 = vor.u32 %v10750_v21, %v9847_v61  ;;  %v14403_v21 = vpop.permute.xlu2 %4721 }
 0xdab   :  { %v6402_v41 = vpop.f32.mrf.mxu0 }
 0xdac   :  { %v14364_v7 = vadd.f32 %v6400_v19, %v6232_v30 }
 0xdad   :  { %v14392_v53 = vpop.permute.xlu1 %4736 }
 0xdaf   :  { %v6064_v45 = vpop.f32.mrf.mxu3 }
 0xdb0   :  { %v6065_v31 = vadd.f32 %v6064_v45, %v5896_v47  ;;  %v6233_v54 = vpop.f32.mrf.mxu2  ;;  %v5898_v56 = vpop.f32.mrf.mxu1 }
 0xdb1   :  { %v5899_v2 = vadd.f32 %v5898_v56, %v14308_v0  ;;  %v9845_v0 = vld [vmem:[#allocation3 + $0x270] sm:$0xf]  ;;  %v10759_v56 = vld [vmem:[#allocation3 + $0x2b4] sm:$0xf0] }
 0xdb2   :  { %v6234_v16 = vadd.f32 %v6233_v54, %v6065_v31  ;;  %v9846_v12 = vor.u32 %v10753_v46, %v9845_v0 }
 0xdb3   :  { %v6405_v26 = vpop.f32.mrf.mxu0  ;;  %5937 = vmatmul.bf16.gmra.mxu1 %v9822_v59  ;;  %v9869_v59 = vld [vmem:[#allocation3 + $0x2a0] sm:$0xf] }
 0xdb4   :  { %v14371_v3 = vadd.f32 %v6402_v41, %v6234_v16  ;;  %6106 = vmatmul.bf16.gmra.mxu3 %v9826_v34  ;;  %v4565_v41 = vld [vmem:[%s16097_s10 + $0x140] sm:$0xff]  ;;  %v4570_v34 = vld [vmem:[%s16097_s10 + $0x168] sm:$0xff]  ;;  %v9871_v16 = vld [vmem:[#allocation3 + $0x2b8] sm:$0xf0] }
 0xdb5   :  { %6275 = vmatmul.bf16.gmra.mxu2 %v9830_v14  ;;  %4791 = vperm.xlu1 %11093, %v4565_v41   ;;  %v10756_v14 = vld [vmem:[#allocation3 + $0x2a4] sm:$0xf]  ;;  %v14408_v4 = vpop.permute.xlu1 %4711  ;;  %v4566_v41 = vld [vmem:[%s16097_s10 + $0x148] sm:$0xff] }
 0xdb6   :  { %6444 = vmatmul.bf16.gmra.mxu0 %v9834_v13  ;;  %4816 = vperm.xlu2 %11094, %v4570_v34   ;;  %v9874_v60 = vor.u32 %v10756_v14, %v9871_v16 }
 0xdb7   :  { %v6067_v51 = vpop.f32.mrf.mxu3 }
 0xdb8   :  { %v6068_v62 = vadd.f32 %v6067_v51, %v5899_v2  ;;  %v6236_v63 = vpop.f32.mrf.mxu2  ;;  %v5900_v58 = vpop.f32.mrf.mxu1  ;;  %v10757_v51 = vld [vmem:[#allocation3 + $0x2ac] sm:$0xf] }
 0xdb9   :  { %v5901_v44 = vadd.f32 %v5900_v58, %v14336_v28 }
 0xdba   :  { %v6237_v11 = vadd.f32 %v6236_v63, %v6068_v62  ;;  %v9879_v62 = vld [vmem:[#allocation3 + $0x2c0] sm:$0xf0] }
 0xdbb   :  { %v6407_v8 = vpop.f32.mrf.mxu0  ;;  %v9882_v61 = vor.u32 %v10757_v51, %v9879_v62 }
 0xdbc   :  { %v14376_v10 = vadd.f32 %v6405_v26, %v6237_v11  ;;  %v10760_v26 = vld [vmem:[#allocation3 + $0x2bc] sm:$0xf0]  ;;  %v9870_v11 = vor.u32 %v10759_v56, %v9869_v59 }
 0xdbd   :  { %4781 = vperm.xlu1 %11093, %v4563_v39   ;;  %v9878_v0 = vor.u32 %v10760_v26, %v9877_v50  ;;  %v10763_v39 = vld [vmem:[#allocation3 + $0x2dc] sm:$0xf] }
 0xdbe   :  { %4806 = vperm.xlu2 %11094, %v4568_v49   ;;  %v10771_v49 = vld [vmem:[#allocation3 + $0x314] sm:$0xf0] }
 0xdbf   :  { %v6069_v5 = vpop.f32.mrf.mxu3 }
 0xdc0   :  { %v6070_v19 = vadd.f32 %v6069_v5, %v5901_v44  ;;  %v6238_v20 = vpop.f32.mrf.mxu2  ;;  %v5903_v1 = vpop.f32.mrf.mxu1 }
 0xdc1   :  { %v5904_v29 = vadd.f32 %v5903_v1, %v14283_v6 }
 0xdc2   :  { %v6239_v30 = vadd.f32 %v6238_v20, %v6070_v19 }
 0xdc3   :  { %v6410_v28 = vpop.f32.mrf.mxu0  ;;  %5942 = vmatmul.bf16.gmra.mxu1 %v9846_v12 }
 0xdc4   :  { %v14385_v27 = vadd.f32 %v6407_v8, %v6239_v30  ;;  %6111 = vmatmul.bf16.gmra.mxu3 %v9850_v40  ;;  %v14421_v30 = vpop.permute.xlu2 %4716 }
 0xdc5   :  { %6280 = vmatmul.bf16.gmra.mxu2 %v9854_v15 }
 0xdc6   :  { %6449 = vmatmul.bf16.gmra.mxu0 %v9858_v25  ;;  %v9893_v25 = vld [vmem:[#allocation3 + $0x2d0] sm:$0xf]  ;;  %4796 = vperm.xlu2 %11094, %v4566_v41  }
 0xdc7   :  { %v6072_v43 = vpop.f32.mrf.mxu3 }
 0xdc8   :  { %v6073_v47 = vadd.f32 %v6072_v43, %v5904_v29  ;;  %v6241_v33 = vpop.f32.mrf.mxu2  ;;  %v5905_v45 = vpop.f32.mrf.mxu1  ;;  %v10762_v29 = vld [vmem:[#allocation3 + $0x2d4] sm:$0xf] }
 0xdc9   :  { %v5906_v13 = vadd.f32 %v5905_v45, %v14293_v24  ;;  %v4561_v24 = vld [vmem:[%s16097_s10 + $0x120] sm:$0xff]  ;;  %v14426_v43 = vpop.permute.xlu1 %4706  ;;  %v10766_v45 = vld [vmem:[#allocation3 + $0x2ec] sm:$0xf0]  ;;  %v9898_v14 = vor.u32 %v10762_v29, %v9895_v22 }
 0xdca   :  { %v6242_v6 = vadd.f32 %v6241_v33, %v6073_v47  ;;  %4771 = vperm.xlu1 %11093, %v4561_v24   ;;  %v9901_v33 = vld [vmem:[#allocation3 + $0x2d8] sm:$0xf] }
 0xdcb   :  { %v6412_v31 = vpop.f32.mrf.mxu0 }
 0xdcc   :  { %v14397_v54 = vadd.f32 %v6410_v28, %v6242_v6  ;;  %v10765_v28 = vld [vmem:[#allocation3 + $0x2e4] sm:$0xf0] }
 0xdcd   :  { %v9894_v56 = vor.u32 %v10765_v28, %v9893_v25  ;;  %v9927_v25 = vld [vmem:[#allocation3 + $0x320] sm:$0xf0] }
 0xdcf   :  { %v6074_v2 = vpop.f32.mrf.mxu3 }
 0xdd0   :  { %v6075_v63 = vadd.f32 %v6074_v2, %v5906_v13  ;;  %v6243_v58 = vpop.f32.mrf.mxu2  ;;  %v5908_v8 = vpop.f32.mrf.mxu1  ;;  %v9902_v13 = vor.u32 %v10766_v45, %v9901_v33  ;;  %v4557_v2 = vld [vmem:[%s16097_s10 + $0x100] sm:$0xff] }
 0xdd1   :  { %v5909_v35 = vadd.f32 %v5908_v8, %v14313_v37  ;;  %v4559_v37 = vld [vmem:[%s16097_s10 + $0x110] sm:$0xff] }
 0xdd2   :  { %v6244_v46 = vadd.f32 %v6243_v58, %v6075_v63  ;;  %4761 = vperm.xlu1 %11093, %v4559_v37   ;;  %v4564_v63 = vld [vmem:[%s16097_s10 + $0x138] sm:$0xff]  ;;  %v14438_v58 = vpop.permute.xlu2 %4691 }
 0xdd3   :  { %v6415_v44 = vpop.f32.mrf.mxu0  ;;  %5947 = vmatmul.bf16.gmra.mxu1 %v9870_v11  ;;  %4786 = vperm.xlu2 %11094, %v4564_v63   ;;  %v9941_v63 = vld [vmem:[#allocation3 + $0x330] sm:$0xf] }
 0xdd4   :  { %v14411_v5 = vadd.f32 %v6412_v31, %v6244_v46  ;;  %6116 = vmatmul.bf16.gmra.mxu3 %v9874_v60  ;;  %v9903_v31 = vld [vmem:[#allocation3 + $0x2f0] sm:$0xf0]  ;;  %v14440_v60 = vpop.permute.xlu1 %4681 }
 0xdd5   :  { %6285 = vmatmul.bf16.gmra.mxu2 %v9878_v0  ;;  %v9906_v26 = vor.u32 %v10763_v39, %v9903_v31 }
 0xdd6   :  { %6454 = vmatmul.bf16.gmra.mxu0 %v9882_v61 }
 0xdd7   :  { %v6077_v42 = vpop.f32.mrf.mxu3 }
 0xdd8   :  { %v6078_v19 = vadd.f32 %v6077_v42, %v5909_v35  ;;  %v6246_v20 = vpop.f32.mrf.mxu2  ;;  %v5910_v12 = vpop.f32.mrf.mxu1  ;;  %v4562_v35 = vld [vmem:[%s16097_s10 + $0x128] sm:$0xff]  ;;  %v10768_v42 = vld [vmem:[#allocation3 + $0x304] sm:$0xf] }
 0xdd9   :  { %v5911_v47 = vadd.f32 %v5910_v12, %v14328_v52  ;;  %v9925_v12 = vld [vmem:[#allocation3 + $0x308] sm:$0xf] }
 0xdda   :  { %v6247_v40 = vadd.f32 %v6246_v20, %v6078_v19  ;;  %4751 = vperm.xlu1 %11093, %v4557_v2   ;;  %v9919_v19 = vld [vmem:[#allocation3 + $0x318] sm:$0xf0]  ;;  %v14448_v28 = vpop.permute.xlu2 %4686 }
 0xddb   :  { %v6417_v1 = vpop.f32.mrf.mxu0  ;;  %4776 = vperm.xlu2 %11094, %v4562_v35   ;;  %v10778_v35 = vld [vmem:[#allocation3 + $0x34c] sm:$0xf0] }
 0xddc   :  { %v14419_v15 = vadd.f32 %v6415_v44, %v6247_v40  ;;  %v9917_v44 = vld [vmem:[#allocation3 + $0x300] sm:$0xf]  ;;  %v4672_v45 = vpop.permute.xlu1 %4671 }
 0xddd   :  { %v10772_v40 = vld [vmem:[#allocation3 + $0x31c] sm:$0xf0]  ;;  %v9918_v22 = vor.u32 %v10771_v49, %v9917_v44  ;;  %v9949_v44 = vld [vmem:[#allocation3 + $0x338] sm:$0xf] }
 0xddf   :  { %v6079_v6 = vpop.f32.mrf.mxu3 }
 0xde0   :  { %v6080_v59 = vadd.f32 %v6079_v6, %v5911_v47  ;;  %v6248_v34 = vpop.f32.mrf.mxu2  ;;  %v5913_v16 = vpop.f32.mrf.mxu1  ;;  %v9922_v47 = vor.u32 %v10768_v42, %v9919_v19  ;;  %v9926_v6 = vor.u32 %v10772_v40, %v9925_v12  ;;  %v10775_v42 = vld [vmem:[#allocation3 + $0x33c] sm:$0xf]  ;;  %v9951_v19 = vld [vmem:[#allocation3 + $0x350] sm:$0xf0] }
 0xde1   :  { %v5914_v52 = vadd.f32 %v5913_v16, %v14288_v38 }
 0xde2   :  { %v6249_v50 = vadd.f32 %v6248_v34, %v6080_v59  ;;  %v4677_v2 = vpop.permute.xlu2 %4676 }
 0xde3   :  { %v6420_v51 = vpop.f32.mrf.mxu0  ;;  %5952 = vmatmul.bf16.gmra.mxu1 %v9894_v56  ;;  %v4560_v56 = vld [vmem:[%s16097_s10 + $0x118] sm:$0xff] }
 0xde4   :  { %v14433_v62 = vadd.f32 %v6417_v1, %v6249_v50  ;;  %6121 = vmatmul.bf16.gmra.mxu3 %v9898_v14  ;;  %v10769_v1 = vld [vmem:[#allocation3 + $0x30c] sm:$0xf]  ;;  %4766 = vperm.xlu2 %11094, %v4560_v56  }
 0xde5   :  { %6290 = vmatmul.bf16.gmra.mxu2 %v9902_v13  ;;  %v9930_v31 = vor.u32 %v10769_v1, %v9927_v25  ;;  %v9950_v25 = vor.u32 %v10778_v35, %v9949_v44 }
 0xde6   :  { %6459 = vmatmul.bf16.gmra.mxu0 %v9906_v26 }
 0xde7   :  { %v6082_v11 = vpop.f32.mrf.mxu3 }
 0xde8   :  { %v6083_v8 = vadd.f32 %v6082_v11, %v5914_v52  ;;  %v6251_v0 = vpop.f32.mrf.mxu2  ;;  %v5915_v46 = vpop.f32.mrf.mxu1  ;;  %v4558_v11 = vld [vmem:[%s16097_s10 + $0x108] sm:$0xff] }
 0xde9   :  { %v5916_v20 = vadd.f32 %v5915_v46, %v14298_v55  ;;  %v10774_v46 = vld [vmem:[#allocation3 + $0x334] sm:$0xf] }
 0xdea   :  { %v6252_v38 = vadd.f32 %v6251_v0, %v6083_v8  ;;  %v14460_v8 = vpop.permute.xlu0 %4731  ;;  %v10777_v0 = vld [vmem:[#allocation3 + $0x344] sm:$0xf0] }
 0xdeb   :  { %v6422_v61 = vpop.f32.mrf.mxu0  ;;  %v9942_v40 = vor.u32 %v10777_v0, %v9941_v63  ;;  %v9975_v0 = vld [vmem:[#allocation3 + $0x380] sm:$0xf0] }
 0xdec   :  { %v14442_v24 = vadd.f32 %v6420_v51, %v6252_v38  ;;  %v9943_v38 = vld [vmem:[#allocation3 + $0x348] sm:$0xf0]  ;;  %4756 = vperm.xlu2 %11094, %v4558_v11  }
 0xded   :  { %v10781_v11 = vld [vmem:[#allocation3 + $0x36c] sm:$0xf] }
 0xdef   :  { %v6084_v37 = vpop.f32.mrf.mxu3 }
 0xdf0   :  { %v6085_v41 = vadd.f32 %v6084_v37, %v5916_v20  ;;  %v6253_v29 = vpop.f32.mrf.mxu2  ;;  %v5918_v33 = vpop.f32.mrf.mxu1  ;;  %v9946_v37 = vor.u32 %v10774_v46, %v9943_v38 }
 0xdf1   :  { %v5919_v55 = vadd.f32 %v5918_v33, %v4672_v45 }
 0xdf2   :  { %v6254_v39 = vadd.f32 %v6253_v29, %v6085_v41  ;;  %v9954_v29 = vor.u32 %v10775_v42, %v9951_v19 }
 0xdf3   :  { %v6425_v59 = vpop.f32.mrf.mxu0  ;;  %5957 = vmatmul.bf16.gmra.mxu1 %v9918_v22 }
 0xdf4   :  { %v14450_v34 = vadd.f32 %v6422_v61, %v6254_v39  ;;  %6126 = vmatmul.bf16.gmra.mxu3 %v9922_v47 }
 0xdf5   :  { %6295 = vmatmul.bf16.gmra.mxu2 %v9926_v6  ;;  %v14465_v6 = vpop.permute.xlu0 %4726 }
 0xdf6   :  { %6464 = vmatmul.bf16.gmra.mxu0 %v9930_v31 }
 0xdf7   :  { %v6087_v14 = vpop.f32.mrf.mxu3 }
 0xdf8   :  { %v6088_v16 = vadd.f32 %v6087_v14, %v5919_v55  ;;  %v6256_v13 = vpop.f32.mrf.mxu2  ;;  %v5920_v50 = vpop.f32.mrf.mxu1 }
 0xdf9   :  { %v5921_v61 = vadd.f32 %v5920_v50, %v4677_v2  ;;  %v10780_v50 = vld [vmem:[#allocation3 + $0x364] sm:$0xf]  ;;  %v9973_v2 = vld [vmem:[#allocation3 + $0x368] sm:$0xf] }
 0xdfa   :  { %v6257_v26 = vadd.f32 %v6256_v13, %v6088_v16  ;;  %v9965_v16 = vld [vmem:[#allocation3 + $0x360] sm:$0xf]  ;;  %v10783_v13 = vld [vmem:[#allocation3 + $0x374] sm:$0xf0] }
 0xdfb   :  { %v6427_v51 = vpop.f32.mrf.mxu0 }
 0xdfc   :  { %v14455_v52 = vadd.f32 %v6425_v59, %v6257_v26 }
 0xdfd   :  { %v4702_v35 = vpop.permute.xlu0 %4701 }
 0xdff   :  { %v6089_v49 = vpop.f32.mrf.mxu3 }
 0xe00   :  { %v6090_v20 = vadd.f32 %v6089_v49, %v5921_v61  ;;  %v6258_v12 = vpop.f32.mrf.mxu2  ;;  %v5923_v1 = vpop.f32.mrf.mxu1  ;;  %v9966_v61 = vor.u32 %v10783_v13, %v9965_v16  ;;  %v10790_v16 = vld [vmem:[#allocation3 + $0x3ac] sm:$0xf0] }
 0xe01   :  { %v5924_v47 = vadd.f32 %v5923_v1, %v14440_v60  ;;  %v9967_v60 = vld [vmem:[#allocation3 + $0x378] sm:$0xf0] }
 0xe02   :  { %v6259_v41 = vadd.f32 %v6258_v12, %v6090_v20  ;;  %v9970_v44 = vor.u32 %v10780_v50, %v9967_v60  ;;  %v9978_v20 = vor.u32 %v10781_v11, %v9975_v0  ;;  %v10787_v50 = vld [vmem:[#allocation3 + $0x39c] sm:$0xf]  ;;  %v9999_v60 = vld [vmem:[#allocation3 + $0x3b0] sm:$0xf0] }
 0xe03   :  { %v6430_v22 = vpop.f32.mrf.mxu0  ;;  %5962 = vmatmul.bf16.gmra.mxu1 %v9942_v40 }
 0xe04   :  { %v14463_v33 = vadd.f32 %v6427_v51, %v6259_v41  ;;  %6131 = vmatmul.bf16.gmra.mxu3 %v9946_v37  ;;  %v10784_v51 = vld [vmem:[#allocation3 + $0x37c] sm:$0xf0] }
 0xe05   :  { %6300 = vmatmul.bf16.gmra.mxu2 %v9950_v25  ;;  %v9974_v42 = vor.u32 %v10784_v51, %v9973_v2 }
 0xe06   :  { %6469 = vmatmul.bf16.gmra.mxu0 %v9954_v29 }
 0xe07   :  { %v6092_v45 = vpop.f32.mrf.mxu3 }
 0xe08   :  { %v6093_v39 = vadd.f32 %v6092_v45, %v5924_v47  ;;  %v6261_v31 = vpop.f32.mrf.mxu2  ;;  %v5925_v59 = vpop.f32.mrf.mxu1 }
 0xe09   :  { %v5926_v26 = vadd.f32 %v5925_v59, %v14448_v28  ;;  %v10786_v59 = vld [vmem:[#allocation3 + $0x394] sm:$0xf] }
 0xe0a   :  { %v6262_v55 = vadd.f32 %v6261_v31, %v6093_v39  ;;  %v9989_v39 = vld [vmem:[#allocation3 + $0x390] sm:$0xf]  ;;  %v10789_v31 = vld [vmem:[#allocation3 + $0x3a4] sm:$0xf0] }
 0xe0b   :  { %v6432_v56 = vpop.f32.mrf.mxu0  ;;  %v9990_v51 = vor.u32 %v10789_v31, %v9989_v39  ;;  %v10021_v31 = vld [vmem:[#allocation3 + $0x3c8] sm:$0xf] }
 0xe0c   :  { %v14467_v14 = vadd.f32 %v6430_v22, %v6262_v55  ;;  %v4697_v22 = vpop.permute.xlu0 %4696  ;;  %v9991_v55 = vld [vmem:[#allocation3 + $0x3a8] sm:$0xf0] }
 0xe0f   :  { %v6094_v63 = vpop.f32.mrf.mxu3 }
 0xe10   :  { %v6095_v46 = vadd.f32 %v6094_v63, %v5926_v26  ;;  %v6263_v38 = vpop.f32.mrf.mxu2  ;;  %v5928_v49 = vpop.f32.mrf.mxu1  ;;  %v9994_v63 = vor.u32 %v10786_v59, %v9991_v55  ;;  %v10796_v59 = vld [vmem:[#allocation3 + $0x3dc] sm:$0xf0] }
 0xe11   :  { %v5929_v40 = vadd.f32 %v5928_v49, %v14438_v58 }
 0xe12   :  { %v6264_v19 = vadd.f32 %v6263_v38, %v6095_v46  ;;  %v10002_v38 = vor.u32 %v10787_v50, %v9999_v60 }
 0xe13   :  { %v6435_v12 = vpop.f32.mrf.mxu0  ;;  %5967 = vmatmul.bf16.gmra.mxu1 %v9966_v61 }
 0xe14   :  { %v14471_v37 = vadd.f32 %v6432_v56, %v6264_v19  ;;  %6136 = vmatmul.bf16.gmra.mxu3 %v9970_v44  ;;  %v9997_v56 = vld [vmem:[#allocation3 + $0x398] sm:$0xf] }
 0xe15   :  { %6305 = vmatmul.bf16.gmra.mxu2 %v9974_v42  ;;  %v9998_v0 = vor.u32 %v10790_v16, %v9997_v56  ;;  %v10023_v56 = vld [vmem:[#allocation3 + $0x3e0] sm:$0xf0] }
 0xe16   :  { %6474 = vmatmul.bf16.gmra.mxu0 %v9978_v20 }
 0xe17   :  { %v6097_v28 = vpop.f32.mrf.mxu3 }
 0xe18   :  { %v6098_v1 = vadd.f32 %v6097_v28, %v5929_v40  ;;  %v6266_v25 = vpop.f32.mrf.mxu2  ;;  %v5930_v41 = vpop.f32.mrf.mxu1 }
 0xe19   :  { %v5931_v58 = vadd.f32 %v5930_v41, %v4697_v22  ;;  %v14477_v40 = vpop.permute.xlu1 %4821  ;;  %v10013_v41 = vld [vmem:[#allocation3 + $0x3c0] sm:$0xf]  ;;  %v10792_v22 = vld [vmem:[#allocation3 + $0x3c4] sm:$0xf] }
 0xe1a   :  { %v6267_v29 = vadd.f32 %v6266_v25, %v6098_v1  ;;  %v4587_v1 = vld [vmem:[%s16097_s10 + $0x1f0] sm:$0xff] }
 0xe1b   :  { %v6437_v47 = vpop.f32.mrf.mxu0  ;;  %4901 = vperm.xlu1 %11093, %v4587_v1  }
 0xe1c   :  { %v14473_v45 = vadd.f32 %v6435_v12, %v6267_v29  ;;  %v10795_v29 = vld [vmem:[#allocation3 + $0x3d4] sm:$0xf0] }
 0xe1d   :  { %v10014_v50 = vor.u32 %v10795_v29, %v10013_v41  ;;  %v10801_v29 = vld [vmem:[#allocation3 + $0x404] sm:$0xf0] }
 0xe1f   :  { %v6099_v13 = vpop.f32.mrf.mxu3 }
 0xe20   :  { %v6100_v26 = vadd.f32 %v6099_v13, %v5931_v58  ;;  %v6268_v2 = vpop.f32.mrf.mxu2  ;;  %v5933_v11 = vpop.f32.mrf.mxu1  ;;  %v10793_v58 = vld [vmem:[#allocation3 + $0x3cc] sm:$0xf] }
 0xe21   :  { %v5934_v44 = vadd.f32 %v5933_v11, %v4702_v35  ;;  %v10026_v11 = vor.u32 %v10793_v58, %v10023_v56  ;;  %v10799_v56 = vld [vmem:[#allocation3 + $0x3fc] sm:$0xf] }
 0xe22   :  { %v6269_v46 = vadd.f32 %v6268_v2, %v6100_v26  ;;  %v10022_v2 = vor.u32 %v10796_v59, %v10021_v31  ;;  %v10045_v59 = vld [vmem:[#allocation3 + $0x3f8] sm:$0xf] }
 0xe23   :  { %v6440_v61 = vpop.f32.mrf.mxu0  ;;  %5972 = vmatmul.bf16.gmra.mxu1 %v9990_v51  ;;  %v14485_v51 = vpop.permute.xlu2 %4826 }
 0xe24   :  { %v14475_v49 = vadd.f32 %v6437_v47, %v6269_v46  ;;  %6141 = vmatmul.bf16.gmra.mxu3 %v9994_v63  ;;  %v10015_v47 = vld [vmem:[#allocation3 + $0x3d8] sm:$0xf0]  ;;  %v14490_v46 = vpop.permute.xlu1 %4811 }
 0xe25   :  { %6310 = vmatmul.bf16.gmra.mxu2 %v9998_v0  ;;  %v10018_v60 = vor.u32 %v10792_v22, %v10015_v47  ;;  %v4585_v0 = vld [vmem:[%s16097_s10 + $0x1e0] sm:$0xff]  ;;  %v10798_v22 = vld [vmem:[#allocation3 + $0x3f4] sm:$0xf]  ;;  %v10039_v47 = vld [vmem:[#allocation3 + $0x408] sm:$0xf0] }
 0xe26   :  { %6479 = vmatmul.bf16.gmra.mxu0 %v10002_v38  ;;  %4891 = vperm.xlu1 %11093, %v4585_v0  }
 0xe27   :  { %v6102_v42 = vpop.f32.mrf.mxu3 }
 0xe28   :  { %v6103_v19 = vadd.f32 %v6102_v42, %v5934_v44  ;;  %v6271_v20 = vpop.f32.mrf.mxu2  ;;  %v5935_v12 = vpop.f32.mrf.mxu1 }
 0xe29   :  { %v5936_v39 = vadd.f32 %v5935_v12, %v14426_v43 }
 0xe2a   :  { %v6272_v28 = vadd.f32 %v6271_v20, %v6103_v19 }
 0xe2b   :  { %v6442_v25 = vpop.f32.mrf.mxu0  ;;  %v14498_v41 = vpop.permute.xlu2 %4816 }
 0xe2c   :  { %v14482_v35 = vadd.f32 %v6440_v61, %v6272_v28  ;;  %v4583_v28 = vld [vmem:[%s16097_s10 + $0x1d0] sm:$0xff] }
 0xe2e   :  { %4881 = vperm.xlu1 %11093, %v4583_v28  }
 0xe2f   :  { %v6104_v55 = vpop.f32.mrf.mxu3 }
 0xe30   :  { %v6105_v16 = vadd.f32 %v6104_v55, %v5936_v39  ;;  %v6273_v13 = vpop.f32.mrf.mxu2  ;;  %v5938_v26 = vpop.f32.mrf.mxu1  ;;  %v10802_v55 = vld [vmem:[#allocation3 + $0x40c] sm:$0xf0] }
 0xe31   :  { %v5939_v38 = vadd.f32 %v5938_v26, %v14408_v4  ;;  %v14502_v39 = vpop.permute.xlu1 %4801  ;;  %v10042_v26 = vor.u32 %v10798_v22, %v10039_v47 }
 0xe32   :  { %v6274_v63 = vadd.f32 %v6273_v13, %v6105_v16  ;;  %v10047_v16 = vld [vmem:[#allocation3 + $0x410] sm:$0xf0] }
 0xe33   :  { %v6445_v43 = vpop.f32.mrf.mxu0  ;;  %5977 = vmatmul.bf16.gmra.mxu1 %v10014_v50  ;;  %v10050_v0 = vor.u32 %v10799_v56, %v10047_v16  ;;  %v10063_v56 = vld [vmem:[#allocation3 + $0x438] sm:$0xf0] }
 0xe34   :  { %v14493_v61 = vadd.f32 %v6442_v25, %v6274_v63  ;;  %6146 = vmatmul.bf16.gmra.mxu3 %v10018_v60  ;;  %v10037_v25 = vld [vmem:[#allocation3 + $0x3f0] sm:$0xf]  ;;  %v10046_v63 = vor.u32 %v10802_v55, %v10045_v59  ;;  %v4586_v59 = vld [vmem:[%s16097_s10 + $0x1e8] sm:$0xff]  ;;  %v10807_v55 = vld [vmem:[#allocation3 + $0x434] sm:$0xf0] }
 0xe35   :  { %6315 = vmatmul.bf16.gmra.mxu2 %v10022_v2  ;;  %v10038_v60 = vor.u32 %v10801_v29, %v10037_v25 }
 0xe36   :  { %6484 = vmatmul.bf16.gmra.mxu0 %v10026_v11 }
 0xe37   :  { %v6107_v44 = vpop.f32.mrf.mxu3 }
 0xe38   :  { %v6108_v42 = vadd.f32 %v6107_v44, %v5939_v38  ;;  %v6276_v19 = vpop.f32.mrf.mxu2  ;;  %v5940_v20 = vpop.f32.mrf.mxu1 }
 0xe39   :  { %v5941_v31 = vadd.f32 %v5940_v20, %v14421_v30 }
 0xe3a   :  { %v6277_v12 = vadd.f32 %v6276_v19, %v6108_v42  ;;  %v14511_v42 = vpop.permute.xlu2 %4806  ;;  %v4588_v19 = vld [vmem:[%s16097_s10 + $0x1f8] sm:$0xff] }
 0xe3b   :  { %v6447_v1 = vpop.f32.mrf.mxu0  ;;  %4906 = vperm.xlu2 %11094, %v4588_v19  }
 0xe3c   :  { %v14500_v4 = vadd.f32 %v6445_v43, %v6277_v12  ;;  %v4581_v43 = vld [vmem:[%s16097_s10 + $0x1c0] sm:$0xff]  ;;  %v14516_v12 = vpop.permute.xlu1 %4791 }
 0xe3d   :  { %4871 = vperm.xlu1 %11093, %v4581_v43  }
 0xe3e   :  { %16210 = vst [vmem:[#allocation19_spill] sm:$0xff] %v14500_v4 }
 0xe3f   :  { %v6109_v58 = vpop.f32.mrf.mxu3 }
 0xe40   :  { %v6110_v13 = vadd.f32 %v6109_v58, %v5941_v31  ;;  %v6278_v50 = vpop.f32.mrf.mxu2  ;;  %v5943_v2 = vpop.f32.mrf.mxu1  ;;  %v10061_v31 = vld [vmem:[#allocation3 + $0x420] sm:$0xf]  ;;  %v10804_v58 = vld [vmem:[#allocation3 + $0x424] sm:$0xf] }
 0xe41   :  { %v5944_v30 = vadd.f32 %v5943_v2, %v14403_v21  ;;  %v10805_v2 = vld [vmem:[#allocation3 + $0x42c] sm:$0xf]  ;;  %v10062_v43 = vor.u32 %v10807_v55, %v10061_v31  ;;  %v4584_v31 = vld [vmem:[%s16097_s10 + $0x1d8] sm:$0xff] }
 0xe42   :  { %v6279_v11 = vadd.f32 %v6278_v50, %v6110_v13  ;;  %v10069_v13 = vld [vmem:[#allocation3 + $0x428] sm:$0xf]  ;;  %v10808_v50 = vld [vmem:[#allocation3 + $0x43c] sm:$0xf0] }
 0xe43   :  { %v6450_v38 = vpop.f32.mrf.mxu0  ;;  %5982 = vmatmul.bf16.gmra.mxu1 %v10038_v60  ;;  %4896 = vperm.xlu2 %11094, %v4586_v59   ;;  %v10070_v19 = vor.u32 %v10808_v50, %v10069_v13 }
 0xe44   :  { %v14509_v44 = vadd.f32 %v6447_v1, %v6279_v11  ;;  %6151 = vmatmul.bf16.gmra.mxu3 %v10042_v26  ;;  %v4579_v1 = vld [vmem:[%s16097_s10 + $0x1b0] sm:$0xff]  ;;  %v14527_v26 = vpop.permute.xlu2 %4796 }
 0xe45   :  { %6320 = vmatmul.bf16.gmra.mxu2 %v10046_v63  ;;  %4861 = vperm.xlu1 %11093, %v4579_v1   ;;  %v10071_v63 = vld [vmem:[#allocation3 + $0x440] sm:$0xf0] }
 0xe46   :  { %16211 = vst [vmem:[#allocation32_spill] sm:$0xff] %v14509_v44  ;;  %6489 = vmatmul.bf16.gmra.mxu0 %v10050_v0 }
 0xe47   :  { %v6112_v20 = vpop.f32.mrf.mxu3 }
 0xe48   :  { %v6113_v28 = vadd.f32 %v6112_v20, %v5944_v30  ;;  %v6281_v25 = vpop.f32.mrf.mxu2  ;;  %v5945_v29 = vpop.f32.mrf.mxu1 }
 0xe49   :  { %v5946_v16 = vadd.f32 %v5945_v29, %v14465_v6  ;;  %v14529_v20 = vpop.permute.xlu1 %4781  ;;  %v4577_v6 = vld [vmem:[%s16097_s10 + $0x1a0] sm:$0xff] }
 0xe4a   :  { %v6282_v21 = vadd.f32 %v6281_v25, %v6113_v28  ;;  %v10074_v25 = vor.u32 %v10805_v2, %v10071_v63  ;;  %v10085_v2 = vld [vmem:[#allocation3 + $0x450] sm:$0xf]  ;;  %v4582_v63 = vld [vmem:[%s16097_s10 + $0x1c8] sm:$0xff] }
 0xe4b   :  { %v6452_v22 = vpop.f32.mrf.mxu0  ;;  %4886 = vperm.xlu2 %11094, %v4584_v31  }
 0xe4c   :  { %v14521_v47 = vadd.f32 %v6450_v38, %v6282_v21  ;;  %v10066_v38 = vor.u32 %v10804_v58, %v10063_v56 }
 0xe4d   :  { %4851 = vperm.xlu1 %11093, %v4577_v6   ;;  %v10095_v6 = vld [vmem:[#allocation3 + $0x470] sm:$0xf0] }
 0xe4e   :  { %16212 = vst [vmem:[#allocation31_spill] sm:$0xff] %v14521_v47 }
 0xe4f   :  { %v6114_v60 = vpop.f32.mrf.mxu3 }
 0xe50   :  { %v6115_v11 = vadd.f32 %v6114_v60, %v5946_v16  ;;  %v6283_v0 = vpop.f32.mrf.mxu2  ;;  %v5948_v30 = vpop.f32.mrf.mxu1 }
 0xe51   :  { %v5949_v21 = vadd.f32 %v5948_v30, %v14460_v8  ;;  %v14540_v16 = vpop.permute.xlu2 %4786  ;;  %v4575_v8 = vld [vmem:[%s16097_s10 + $0x190] sm:$0xff]  ;;  %v14545_v50 = vpop.permute.xlu1 %4771  ;;  %v10093_v30 = vld [vmem:[#allocation3 + $0x458] sm:$0xf] }
 0xe52   :  { %v6284_v28 = vadd.f32 %v6283_v0, %v6115_v11  ;;  %v10813_v11 = vld [vmem:[#allocation3 + $0x464] sm:$0xf0]  ;;  %v10810_v0 = vld [vmem:[#allocation3 + $0x454] sm:$0xf] }
 0xe53   :  { %v6455_v29 = vpop.f32.mrf.mxu0  ;;  %5987 = vmatmul.bf16.gmra.mxu1 %v10062_v43  ;;  %v10087_v43 = vld [vmem:[#allocation3 + $0x468] sm:$0xf0]  ;;  %4876 = vperm.xlu2 %11094, %v4582_v63  }
 0xe54   :  { %v14535_v1 = vadd.f32 %v6452_v22, %v6284_v28  ;;  %6156 = vmatmul.bf16.gmra.mxu3 %v10066_v38 }
 0xe55   :  { %6325 = vmatmul.bf16.gmra.mxu2 %v10070_v19  ;;  %4841 = vperm.xlu1 %11093, %v4575_v8   ;;  %v10814_v19 = vld [vmem:[#allocation3 + $0x46c] sm:$0xf0] }
 0xe56   :  { %16213 = vst [vmem:[#allocation23_spill] sm:$0xff] %v14535_v1  ;;  %6494 = vmatmul.bf16.gmra.mxu0 %v10074_v25  ;;  %v10811_v25 = vld [vmem:[#allocation3 + $0x45c] sm:$0xf] }
 0xe57   :  { %v6117_v59 = vpop.f32.mrf.mxu3  ;;  %v10098_v8 = vor.u32 %v10811_v25, %v10095_v6  ;;  %v10819_v6 = vld [vmem:[#allocation3 + $0x494] sm:$0xf0] }
 0xe58   :  { %v6118_v55 = vadd.f32 %v6117_v59, %v5949_v21  ;;  %v6286_v58 = vpop.f32.mrf.mxu2  ;;  %v5950_v56 = vpop.f32.mrf.mxu1  ;;  %v10090_v59 = vor.u32 %v10810_v0, %v10087_v43 }
 0xe59   :  { %v5951_v38 = vadd.f32 %v5950_v56, %v14392_v53  ;;  %v14556_v1 = vpop.permute.xlu2 %4776 }
 0xe5a   :  { %v6287_v13 = vadd.f32 %v6286_v58, %v6118_v55  ;;  %v10094_v58 = vor.u32 %v10814_v19, %v10093_v30 }
 0xe5b   :  { %v6457_v22 = vpop.f32.mrf.mxu0 }
 0xe5c   :  { %v14547_v60 = vadd.f32 %v6455_v29, %v6287_v13  ;;  %v10086_v29 = vor.u32 %v10813_v11, %v10085_v2  ;;  %v14561_v2 = vpop.permute.xlu1 %4761  ;;  %v4580_v11 = vld [vmem:[%s16097_s10 + $0x1b8] sm:$0xff] }
 0xe5d   :  { %4866 = vperm.xlu2 %11094, %v4580_v11  }
 0xe5e   :  { %16214 = vst [vmem:[#allocation18_spill] sm:$0xff] %v14547_v60  ;;  %v4573_v60 = vld [vmem:[%s16097_s10 + $0x180] sm:$0xff] }
 0xe5f   :  { %v6119_v28 = vpop.f32.mrf.mxu3  ;;  %4831 = vperm.xlu1 %11093, %v4573_v60  }
 0xe60   :  { %v6120_v21 = vadd.f32 %v6119_v28, %v5951_v38  ;;  %v6288_v31 = vpop.f32.mrf.mxu2  ;;  %v5953_v55 = vpop.f32.mrf.mxu1  ;;  %v4578_v28 = vld [vmem:[%s16097_s10 + $0x1a8] sm:$0xff] }
 0xe61   :  { %v5954_v56 = vadd.f32 %v5953_v55, %v14379_v23  ;;  %v14571_v25 = vpop.permute.xlu2 %4766  ;;  %v10820_v55 = vld [vmem:[#allocation3 + $0x49c] sm:$0xf0] }
 0xe62   :  { %v6289_v13 = vadd.f32 %v6288_v31, %v6120_v21  ;;  %v10816_v21 = vld [vmem:[#allocation3 + $0x484] sm:$0xf]  ;;  %v10111_v31 = vld [vmem:[#allocation3 + $0x498] sm:$0xf0] }
 0xe63   :  { %v6460_v53 = vpop.f32.mrf.mxu0  ;;  %5992 = vmatmul.bf16.gmra.mxu1 %v10086_v29 }
 0xe64   :  { %v14559_v63 = vadd.f32 %v6457_v22, %v6289_v13  ;;  %6161 = vmatmul.bf16.gmra.mxu3 %v10090_v59  ;;  %v10109_v22 = vld [vmem:[#allocation3 + $0x480] sm:$0xf]  ;;  %v10117_v59 = vld [vmem:[#allocation3 + $0x488] sm:$0xf]  ;;  %v4752_v13 = vpop.permute.xlu1 %4751 }
 0xe65   :  { %6330 = vmatmul.bf16.gmra.mxu2 %v10094_v58  ;;  %4856 = vperm.xlu2 %11094, %v4578_v28  }
 0xe66   :  { %16215 = vst [vmem:[#allocation20_spill] sm:$0xff] %v14559_v63  ;;  %6499 = vmatmul.bf16.gmra.mxu0 %v10098_v8  ;;  %v10817_v8 = vld [vmem:[#allocation3 + $0x48c] sm:$0xf] }
 0xe67   :  { %v6122_v0 = vpop.f32.mrf.mxu3 }
 0xe68   :  { %v6123_v43 = vadd.f32 %v6122_v0, %v5954_v56  ;;  %v6291_v38 = vpop.f32.mrf.mxu2  ;;  %v5955_v30 = vpop.f32.mrf.mxu1  ;;  %v10110_v0 = vor.u32 %v10819_v6, %v10109_v22 }
 0xe69   :  { %v5956_v29 = vadd.f32 %v5955_v30, %v14390_v57  ;;  %v4576_v57 = vld [vmem:[%s16097_s10 + $0x198] sm:$0xff]  ;;  %v4757_v22 = vpop.permute.xlu2 %4756 }
 0xe6a   :  { %v6292_v60 = vadd.f32 %v6291_v38, %v6123_v43  ;;  %v10114_v43 = vor.u32 %v10816_v21, %v10111_v31 }
 0xe6b   :  { %v6462_v19 = vpop.f32.mrf.mxu0 }
 0xe6c   :  { %v14566_v23 = vadd.f32 %v6460_v53, %v6292_v60  ;;  %v10119_v53 = vld [vmem:[#allocation3 + $0x4a0] sm:$0xf0]  ;;  %v10118_v60 = vor.u32 %v10820_v55, %v10117_v59 }
 0xe6d   :  { %v10122_v47 = vor.u32 %v10817_v8, %v10119_v53  ;;  %4846 = vperm.xlu2 %11094, %v4576_v57   ;;  %v10135_v8 = vld [vmem:[#allocation3 + $0x4c8] sm:$0xf0]  ;;  %v10826_v53 = vld [vmem:[#allocation3 + $0x4cc] sm:$0xf0] }
 0xe6e   :  { %16216 = vst [vmem:[#allocation25_spill] sm:$0xff] %v14566_v23 }
 0xe6f   :  { %v6124_v58 = vpop.f32.mrf.mxu3 }
 0xe70   :  { %v6125_v56 = vadd.f32 %v6124_v58, %v5956_v29  ;;  %v6293_v11 = vpop.f32.mrf.mxu2  ;;  %v5958_v38 = vpop.f32.mrf.mxu1  ;;  %v10825_v58 = vld [vmem:[#allocation3 + $0x4c4] sm:$0xf0] }
 0xe71   :  { %v5959_v63 = vadd.f32 %v5958_v38, %v4752_v13  ;;  %v10822_v13 = vld [vmem:[#allocation3 + $0x4b4] sm:$0xf] }
 0xe72   :  { %v6294_v23 = vadd.f32 %v6293_v11, %v6125_v56  ;;  %v10143_v11 = vld [vmem:[#allocation3 + $0x4d0] sm:$0xf0] }
 0xe73   :  { %v6465_v44 = vpop.f32.mrf.mxu0  ;;  %5997 = vmatmul.bf16.gmra.mxu1 %v10110_v0 }
 0xe74   :  { %v14574_v4 = vadd.f32 %v6462_v19, %v6294_v23  ;;  %6166 = vmatmul.bf16.gmra.mxu3 %v10114_v43  ;;  %v10133_v19 = vld [vmem:[#allocation3 + $0x4b0] sm:$0xf]  ;;  %v4574_v23 = vld [vmem:[%s16097_s10 + $0x188] sm:$0xff] }
 0xe75   :  { %6335 = vmatmul.bf16.gmra.mxu2 %v10118_v60  ;;  %4836 = vperm.xlu2 %11094, %v4574_v23   ;;  %v10134_v38 = vor.u32 %v10825_v58, %v10133_v19  ;;  %v10138_v60 = vor.u32 %v10822_v13, %v10135_v8  ;;  %v10157_v13 = vld [vmem:[#allocation3 + $0x4e0] sm:$0xf]  ;;  %v10831_v8 = vld [vmem:[#allocation3 + $0x4f4] sm:$0xf0] }
 0xe76   :  { %6504 = vmatmul.bf16.gmra.mxu0 %v10122_v47  ;;  %v10141_v47 = vld [vmem:[#allocation3 + $0x4b8] sm:$0xf] }
 0xe77   :  { %v6127_v30 = vpop.f32.mrf.mxu3  ;;  %v10142_v57 = vor.u32 %v10826_v53, %v10141_v47  ;;  %v10828_v47 = vld [vmem:[#allocation3 + $0x4e4] sm:$0xf]  ;;  %v10159_v53 = vld [vmem:[#allocation3 + $0x4f8] sm:$0xf0] }
 0xe78   :  { %v6128_v28 = vadd.f32 %v6127_v30, %v5959_v63  ;;  %v6296_v6 = vpop.f32.mrf.mxu2  ;;  %v5960_v21 = vpop.f32.mrf.mxu1  ;;  %v10823_v63 = vld [vmem:[#allocation3 + $0x4bc] sm:$0xf] }
 0xe79   :  { %v5961_v31 = vadd.f32 %v5960_v21, %v4757_v22  ;;  %v10146_v22 = vor.u32 %v10823_v63, %v10143_v11  ;;  %v10832_v63 = vld [vmem:[#allocation3 + $0x4fc] sm:$0xf0] }
 0xe7a   :  { %v6297_v29 = vadd.f32 %v6296_v6, %v6128_v28 }
 0xe7b   :  { %v6467_v59 = vpop.f32.mrf.mxu0 }
 0xe7c   :  { %v14579_v55 = vadd.f32 %v6465_v44, %v6297_v29 }
 0xe7e   :  { %16217 = vst [vmem:[#allocation22_spill] sm:$0xff] %v14579_v55 }
 0xe7f   :  { %v6129_v56 = vpop.f32.mrf.mxu3 }
 0xe80   :  { %v6130_v0 = vadd.f32 %v6129_v56, %v5961_v31  ;;  %v6298_v43 = vpop.f32.mrf.mxu2  ;;  %v5963_v44 = vpop.f32.mrf.mxu1 }
 0xe81   :  { %v5964_v6 = vadd.f32 %v5963_v44, %v14561_v2  ;;  %v10158_v44 = vor.u32 %v10831_v8, %v10157_v13  ;;  %v10181_v8 = vld [vmem:[#allocation3 + $0x510] sm:$0xf] }
 0xe82   :  { %v6299_v30 = vadd.f32 %v6298_v43, %v6130_v0  ;;  %v10829_v0 = vld [vmem:[#allocation3 + $0x4ec] sm:$0xf]  ;;  %v10167_v43 = vld [vmem:[#allocation3 + $0x500] sm:$0xf0] }
 0xe83   :  { %v6470_v28 = vpop.f32.mrf.mxu0  ;;  %6002 = vmatmul.bf16.gmra.mxu1 %v10134_v38 }
 0xe84   :  { %v14585_v21 = vadd.f32 %v6467_v59, %v6299_v30  ;;  %6171 = vmatmul.bf16.gmra.mxu3 %v10138_v60  ;;  %v10165_v59 = vld [vmem:[#allocation3 + $0x4e8] sm:$0xf] }
 0xe85   :  { %6340 = vmatmul.bf16.gmra.mxu2 %v10142_v57  ;;  %v10162_v57 = vor.u32 %v10828_v47, %v10159_v53  ;;  %v10837_v53 = vld [vmem:[#allocation3 + $0x524] sm:$0xf0] }
 0xe86   :  { %6509 = vmatmul.bf16.gmra.mxu0 %v10146_v22 }
 0xe87   :  { %v6132_v29 = vpop.f32.mrf.mxu3 }
 0xe88   :  { %v6133_v23 = vadd.f32 %v6132_v29, %v5964_v6  ;;  %v6301_v55 = vpop.f32.mrf.mxu2  ;;  %v5965_v31 = vpop.f32.mrf.mxu1 }
 0xe89   :  { %v5966_v2 = vadd.f32 %v5965_v31, %v14571_v25 }
 0xe8a   :  { %v6302_v56 = vadd.f32 %v6301_v55, %v6133_v23  ;;  %v10166_v55 = vor.u32 %v10832_v63, %v10165_v59  ;;  %v10834_v59 = vld [vmem:[#allocation3 + $0x514] sm:$0xf]  ;;  %v10183_v63 = vld [vmem:[#allocation3 + $0x528] sm:$0xf0] }
 0xe8b   :  { %v6472_v19 = vpop.f32.mrf.mxu0 }
 0xe8c   :  { %v14587_v58 = vadd.f32 %v6470_v28, %v6302_v56  ;;  %v10170_v28 = vor.u32 %v10829_v0, %v10167_v43  ;;  %v10838_v0 = vld [vmem:[#allocation3 + $0x52c] sm:$0xf0] }
 0xe8f   :  { %v6134_v11 = vpop.f32.mrf.mxu3 }
 0xe90   :  { %v6135_v38 = vadd.f32 %v6134_v11, %v5966_v2  ;;  %v6303_v60 = vpop.f32.mrf.mxu2  ;;  %v5968_v30 = vpop.f32.mrf.mxu1 }
 0xe91   :  { %v5969_v29 = vadd.f32 %v5968_v30, %v14545_v50  ;;  %v10182_v30 = vor.u32 %v10837_v53, %v10181_v8  ;;  %v14599_v8 = vpop.permute.xlu1 %4901 }
 0xe92   :  { %v6304_v22 = vadd.f32 %v6303_v60, %v6135_v38  ;;  %v10835_v38 = vld [vmem:[#allocation3 + $0x51c] sm:$0xf]  ;;  %v10191_v60 = vld [vmem:[#allocation3 + $0x530] sm:$0xf0] }
 0xe93   :  { %v6475_v6 = vpop.f32.mrf.mxu0  ;;  %6007 = vmatmul.bf16.gmra.mxu1 %v10158_v44 }
 0xe94   :  { %v14591_v23 = vadd.f32 %v6472_v19, %v6304_v22  ;;  %6176 = vmatmul.bf16.gmra.mxu3 %v10162_v57  ;;  %v10189_v19 = vld [vmem:[#allocation3 + $0x518] sm:$0xf] }
 0xe95   :  { %6345 = vmatmul.bf16.gmra.mxu2 %v10166_v55  ;;  %v10186_v55 = vor.u32 %v10834_v59, %v10183_v63  ;;  %v10205_v59 = vld [vmem:[#allocation3 + $0x540] sm:$0xf]  ;;  %v10843_v63 = vld [vmem:[#allocation3 + $0x554] sm:$0xf0] }
 0xe96   :  { %6514 = vmatmul.bf16.gmra.mxu0 %v10170_v28  ;;  %v10190_v28 = vor.u32 %v10838_v0, %v10189_v19  ;;  %v10840_v19 = vld [vmem:[#allocation3 + $0x544] sm:$0xf]  ;;  %v10213_v0 = vld [vmem:[#allocation3 + $0x548] sm:$0xf] }
 0xe97   :  { %v6137_v25 = vpop.f32.mrf.mxu3 }
 0xe98   :  { %v6138_v31 = vadd.f32 %v6137_v25, %v5969_v29  ;;  %v6306_v56 = vpop.f32.mrf.mxu2  ;;  %v5970_v2 = vpop.f32.mrf.mxu1  ;;  %v10194_v29 = vor.u32 %v10835_v38, %v10191_v60  ;;  %v10844_v38 = vld [vmem:[#allocation3 + $0x55c] sm:$0xf0] }
 0xe99   :  { %v5971_v50 = vadd.f32 %v5970_v2, %v14556_v1 }
 0xe9a   :  { %v6307_v11 = vadd.f32 %v6306_v56, %v6138_v31 }
 0xe9b   :  { %v6477_v47 = vpop.f32.mrf.mxu0 }
 0xe9c   :  { %v14593_v13 = vadd.f32 %v6475_v6, %v6307_v11 }
 0xe9e   :  { %16218 = vst [vmem:[#allocation21_spill] sm:$0xff] %v14593_v13  ;;  %v9549_v13 = vld [vmem:[#allocation3 + $0x10] sm:$0xf] }
 0xe9f   :  { %v6139_v43 = vpop.f32.mrf.mxu3 }
 0xea0   :  { %v6140_v44 = vadd.f32 %v6139_v43, %v5971_v50  ;;  %v6308_v57 = vpop.f32.mrf.mxu2  ;;  %v5973_v22 = vpop.f32.mrf.mxu1 }
 0xea1   :  { %v5974_v25 = vadd.f32 %v5973_v22, %v14529_v20  ;;  %v10207_v20 = vld [vmem:[#allocation3 + $0x558] sm:$0xf0]  ;;  %v10206_v22 = vor.u32 %v10843_v63, %v10205_v59 }
 0xea2   :  { %v6309_v6 = vadd.f32 %v6308_v57, %v6140_v44  ;;  %v10841_v44 = vld [vmem:[#allocation3 + $0x54c] sm:$0xf]  ;;  %v10215_v57 = vld [vmem:[#allocation3 + $0x560] sm:$0xf0] }
 0xea3   :  { %6012 = vmatmul.bf16.gmra.mxu1 %v10182_v30  ;;  %v6480_v56 = vpop.f32.mrf.mxu0 }
 0xea4   :  { %v14597_v31 = vadd.f32 %v6477_v47, %v6309_v6  ;;  %6181 = vmatmul.bf16.gmra.mxu3 %v10186_v55 }
 0xea5   :  { %6350 = vmatmul.bf16.gmra.mxu2 %v10190_v28  ;;  %v10210_v28 = vor.u32 %v10840_v19, %v10207_v20  ;;  %v10229_v19 = vld [vmem:[#allocation3 + $0x570] sm:$0xf]  ;;  %v10849_v20 = vld [vmem:[#allocation3 + $0x584] sm:$0xf0] }
 0xea6   :  { %16219 = vst [vmem:[#allocation26_spill] sm:$0xff] %v14597_v31  ;;  %6519 = vmatmul.bf16.gmra.mxu0 %v10194_v29 }
 0xea7   :  { %v6142_v1 = vpop.f32.mrf.mxu3 }
 0xea8   :  { %v6143_v2 = vadd.f32 %v6142_v1, %v5974_v25  ;;  %v6311_v11 = vpop.f32.mrf.mxu2  ;;  %v5975_v50 = vpop.f32.mrf.mxu1  ;;  %v10214_v25 = vor.u32 %v10844_v38, %v10213_v0  ;;  %v10231_v0 = vld [vmem:[#allocation3 + $0x588] sm:$0xf0]  ;;  %v10237_v38 = vld [vmem:[#allocation3 + $0x578] sm:$0xf] }
 0xea9   :  { %v5976_v47 = vadd.f32 %v5975_v50, %v14540_v16  ;;  %v14607_v16 = vpop.permute.xlu2 %4906  ;;  %v14609_v50 = vpop.permute.xlu1 %4891 }
 0xeaa   :  { %v6312_v43 = vadd.f32 %v6311_v11, %v6143_v2 }
 0xeab   :  { %v6482_v29 = vpop.f32.mrf.mxu0 }
 0xeac   :  { %v14601_v53 = vadd.f32 %v6480_v56, %v6312_v43  ;;  %v10218_v56 = vor.u32 %v10841_v44, %v10215_v57 }
 0xeae   :  { %16220 = vst [vmem:[#allocation24_spill] sm:$0xff] %v14601_v53 }
 0xeaf   :  { %v6144_v60 = vpop.f32.mrf.mxu3 }
 0xeb0   :  { %v6145_v30 = vadd.f32 %v6144_v60, %v5976_v47  ;;  %v6313_v55 = vpop.f32.mrf.mxu2  ;;  %v5978_v6 = vpop.f32.mrf.mxu1  ;;  %v10846_v47 = vld [vmem:[#allocation3 + $0x574] sm:$0xf]  ;;  %v10850_v60 = vld [vmem:[#allocation3 + $0x58c] sm:$0xf0] }
 0xeb1   :  { %v5979_v2 = vadd.f32 %v5978_v6, %v14516_v12  ;;  %v14614_v44 = vpop.permute.xlu2 %4896  ;;  %v10230_v6 = vor.u32 %v10849_v20, %v10229_v19  ;;  %v10855_v19 = vld [vmem:[#allocation3 + $0x5b4] sm:$0xf0]  ;;  %v10852_v20 = vld [vmem:[#allocation3 + $0x5a4] sm:$0xf] }
 0xeb2   :  { %v6314_v1 = vadd.f32 %v6313_v55, %v6145_v30  ;;  %v14616_v30 = vpop.permute.xlu1 %4881  ;;  %v10847_v55 = vld [vmem:[#allocation3 + $0x57c] sm:$0xf] }
 0xeb3   :  { %6017 = vmatmul.bf16.gmra.mxu1 %v10206_v22  ;;  %v10239_v22 = vld [vmem:[#allocation3 + $0x590] sm:$0xf0] }
 0xeb4   :  { %v14605_v11 = vadd.f32 %v6482_v29, %v6314_v1  ;;  %6186 = vmatmul.bf16.gmra.mxu3 %v10210_v28  ;;  %v10234_v29 = vor.u32 %v10846_v47, %v10231_v0  ;;  %v10238_v1 = vor.u32 %v10850_v60, %v10237_v38  ;;  %v10255_v47 = vld [vmem:[#allocation3 + $0x5b8] sm:$0xf0]  ;;  %v10261_v38 = vld [vmem:[#allocation3 + $0x5a8] sm:$0xf] }
 0xeb5   :  { %6355 = vmatmul.bf16.gmra.mxu2 %v10214_v25 }
 0xeb6   :  { %16221 = vst [vmem:[#allocation28_spill] sm:$0xff] %v14605_v11  ;;  %6524 = vmatmul.bf16.gmra.mxu0 %v10218_v56  ;;  %v10242_v56 = vor.u32 %v10847_v55, %v10239_v22  ;;  %v10263_v55 = vld [vmem:[#allocation3 + $0x5c0] sm:$0xf0] }
 0xeb7   :  { %v6147_v43 = vpop.f32.mrf.mxu3 }
 0xeb8   :  { %v14611_v59 = vadd.f32 %v6147_v43, %v5979_v2  ;;  %v5980_v63 = vpop.f32.mrf.mxu1 }
 0xeb9   :  { %v5981_v12 = vadd.f32 %v5980_v63, %v14527_v26  ;;  %v14623_v63 = vpop.permute.xlu2 %4886 }
 0xeba   :  { %16222 = vst [vmem:[#allocation27_spill] sm:$0xff] %v14611_v59  ;;  %v14625_v11 = vpop.permute.xlu1 %4871 }
 0xebf   :  { %v6149_v57 = vpop.f32.mrf.mxu3 }
 0xec0   :  { %v14618_v28 = vadd.f32 %v6149_v57, %v5981_v12  ;;  %v5983_v25 = vpop.f32.mrf.mxu1  ;;  %v10253_v12 = vld [vmem:[#allocation3 + $0x5a0] sm:$0xf]  ;;  %v10853_v57 = vld [vmem:[#allocation3 + $0x5ac] sm:$0xf] }
 0xec1   :  { %v5984_v2 = vadd.f32 %v5983_v25, %v14502_v39  ;;  %v10856_v39 = vld [vmem:[#allocation3 + $0x5bc] sm:$0xf0] }
 0xec2   :  { %16223 = vst [vmem:[#allocation30_spill] sm:$0xff] %v14618_v28 }
 0xec3   :  { %6022 = vmatmul.bf16.gmra.mxu1 %v10230_v6  ;;  %v10254_v6 = vor.u32 %v10855_v19, %v10253_v12  ;;  %v10277_v12 = vld [vmem:[#allocation3 + $0x5d0] sm:$0xf]  ;;  %v10861_v19 = vld [vmem:[#allocation3 + $0x5e4] sm:$0xf0] }
 0xec4   :  { %6191 = vmatmul.bf16.gmra.mxu3 %v10234_v29  ;;  %v10258_v29 = vor.u32 %v10852_v20, %v10255_v47  ;;  %v10858_v20 = vld [vmem:[#allocation3 + $0x5d4] sm:$0xf]  ;;  %v10279_v47 = vld [vmem:[#allocation3 + $0x5e8] sm:$0xf0] }
 0xec5   :  { %6360 = vmatmul.bf16.gmra.mxu2 %v10238_v1  ;;  %v10262_v1 = vor.u32 %v10856_v39, %v10261_v38 }
 0xec6   :  { %6529 = vmatmul.bf16.gmra.mxu0 %v10242_v56  ;;  %v14630_v56 = vpop.permute.xlu2 %4876 }
 0xec7   :  { %v6152_v26 = vpop.f32.mrf.mxu3 }
 0xec8   :  { %v14621_v43 = vadd.f32 %v6152_v26, %v5984_v2  ;;  %v5985_v59 = vpop.f32.mrf.mxu1  ;;  %v10266_v2 = vor.u32 %v10853_v57, %v10263_v55  ;;  %v14632_v26 = vpop.permute.xlu1 %4861  ;;  %v10285_v57 = vld [vmem:[#allocation3 + $0x5d8] sm:$0xf] }
 0xec9   :  { %v5986_v0 = vadd.f32 %v5985_v59, %v14511_v42 }
 0xeca   :  { %16224 = vst [vmem:[#allocation29_spill] sm:$0xff] %v14621_v43 }
 0xecf   :  { %v6154_v60 = vpop.f32.mrf.mxu3 }
 0xed0   :  { %v14628_v22 = vadd.f32 %v6154_v60, %v5986_v0  ;;  %v5988_v25 = vpop.f32.mrf.mxu1  ;;  %v14637_v60 = vpop.permute.xlu2 %4866 }
 0xed1   :  { %v5989_v43 = vadd.f32 %v5988_v25, %v14490_v46  ;;  %v14639_v38 = vpop.permute.xlu1 %4851  ;;  %v10862_v46 = vld [vmem:[#allocation3 + $0x5ec] sm:$0xf0] }
 0xed2   :  { %16225 = vst [vmem:[#allocation33_spill] sm:$0xff] %v14628_v22 }
 0xed3   :  { %6027 = vmatmul.bf16.gmra.mxu1 %v10254_v6  ;;  %v10859_v6 = vld [vmem:[#allocation3 + $0x5dc] sm:$0xf] }
 0xed4   :  { %6196 = vmatmul.bf16.gmra.mxu3 %v10258_v29  ;;  %v10287_v29 = vld [vmem:[#allocation3 + $0x5f0] sm:$0xf0] }
 0xed5   :  { %6365 = vmatmul.bf16.gmra.mxu2 %v10262_v1  ;;  %v10282_v1 = vor.u32 %v10858_v20, %v10279_v47 }
 0xed6   :  { %6534 = vmatmul.bf16.gmra.mxu0 %v10266_v2 }
 0xed7   :  { %v6157_v42 = vpop.f32.mrf.mxu3 }
 0xed8   :  { %v14635_v59 = vadd.f32 %v6157_v42, %v5989_v43  ;;  %v5990_v0 = vpop.f32.mrf.mxu1  ;;  %v10278_v43 = vor.u32 %v10861_v19, %v10277_v12  ;;  %v10286_v42 = vor.u32 %v10862_v46, %v10285_v57  ;;  %v4857_v28 = vpop.permute.xlu2 %4856  ;;  %v9551_v12 = vld [vmem:[#allocation3 + $0x28] sm:$0xf0] }
 0xed9   :  { %v5991_v39 = vadd.f32 %v5990_v0, %v14498_v41  ;;  %v4842_v0 = vpop.permute.xlu1 %4841 }
 0xeda   :  { %16226 = vst [vmem:[#allocation34_spill] sm:$0xff] %v14635_v59  ;;  %v10290_v59 = vor.u32 %v10859_v6, %v10287_v29 }
 0xedf   :  { %v6159_v55 = vpop.f32.mrf.mxu3 }
 0xee0   :  { %v14642_v25 = vadd.f32 %v6159_v55, %v5991_v39  ;;  %v5993_v2 = vpop.f32.mrf.mxu1  ;;  %v10677_v39 = vld [vmem:[#allocation3 + $0x24] sm:$0xf0]  ;;  %v10674_v55 = vld [vmem:[#allocation3 + $0x14] sm:$0xf] }
 0xee1   :  { %v5994_v22 = vadd.f32 %v5993_v2, %v14477_v40  ;;  %v4847_v40 = vpop.permute.xlu2 %4846  ;;  %v9550_v57 = vor.u32 %v10677_v39, %v9549_v13  ;;  %v9554_v46 = vor.u32 %v10674_v55, %v9551_v12  ;;  %v4832_v29 = vpop.permute.xlu1 %4831 }
 0xee2   :  { %16227 = vst [vmem:[#allocation35_spill] sm:$0xff] %v14642_v25 }
 0xee3   :  { %6032 = vmatmul.bf16.gmra.mxu1 %v10278_v43 }
 0xee4   :  { %6201 = vmatmul.bf16.gmra.mxu3 %v10282_v1 }
 0xee5   :  { %6370 = vmatmul.bf16.gmra.mxu2 %v10286_v42  ;;  %v9573_v42 = vld [vmem:[#allocation3 + $0x40] sm:$0xf] }
 0xee6   :  { %6539 = vmatmul.bf16.gmra.mxu0 %v10290_v59 }
 0xee7   :  { %v6162_v41 = vpop.f32.mrf.mxu3 }
 0xee8   :  { %v14645_v53 = vadd.f32 %v6162_v41, %v5994_v22  ;;  %v5995_v31 = vpop.f32.mrf.mxu1  ;;  %v10683_v41 = vld [vmem:[#allocation3 + $0x54] sm:$0xf0] }
 0xee9   :  { %v5996_v19 = vadd.f32 %v5995_v31, %v14485_v51  ;;  %v4837_v2 = vpop.permute.xlu2 %4836  ;;  %v9575_v51 = vld [vmem:[#allocation3 + $0x58] sm:$0xf0]  ;;  %v9574_v13 = vor.u32 %v10683_v41, %v9573_v42 }
 0xeea   :  { %16228 = vst [vmem:[#allocation36_spill] sm:$0xff] %v14645_v53  ;;  %v10680_v53 = vld [vmem:[#allocation3 + $0x44] sm:$0xf] }
 0xeeb   :  { %v9578_v39 = vor.u32 %v10680_v53, %v9575_v51 }
 0xeef   :  { %v6164_v20 = vpop.f32.mrf.mxu3 }
 0xef0   :  { %v14648_v47 = vadd.f32 %v6164_v20, %v5996_v19  ;;  %v5998_v6 = vpop.f32.mrf.mxu1 }
 0xef1   :  { %v5999_v59 = vadd.f32 %v5998_v6, %v4832_v29 }
 0xef2   :  { %16229 = vst [vmem:[#allocation37_spill] sm:$0xff] %v14648_v47  ;;  %v9599_v47 = vld [vmem:[#allocation3 + $0x88] sm:$0xf0] }
 0xef3   :  { %6553 = vmatmul.bf16.vlgmr.msra.gmra.mxu1 %v9550_v57 }
 0xef4   :  { %6722 = vmatmul.bf16.vlgmr.msrb.gmra.mxu3 %v9554_v46 }
 0xef7   :  { %v6167_v22 = vpop.f32.mrf.mxu3 }
 0xef8   :  { %v14650_v43 = vadd.f32 %v6167_v22, %v5999_v59  ;;  %v6000_v1 = vpop.f32.mrf.mxu1  ;;  %v9597_v59 = vld [vmem:[#allocation3 + $0x70] sm:$0xf]  ;;  %v10689_v22 = vld [vmem:[#allocation3 + $0x84] sm:$0xf0] }
 0xef9   :  { %v6001_v31 = vadd.f32 %v6000_v1, %v4837_v2  ;;  %v9598_v2 = vor.u32 %v10689_v22, %v9597_v59  ;;  %v9645_v22 = vld [vmem:[#allocation3 + $0xd0] sm:$0xf] }
 0xefa   :  { %16230 = vst [vmem:[#allocation38_spill] sm:$0xff] %v14650_v43  ;;  %v10686_v43 = vld [vmem:[#allocation3 + $0x74] sm:$0xf] }
 0xeff   :  { %v6169_v19 = vpop.f32.mrf.mxu3 }
 0xf00   :  { %v14652_v20 = vadd.f32 %v6169_v19, %v6001_v31  ;;  %v6003_v55 = vpop.f32.mrf.mxu1  ;;  %v9602_v31 = vor.u32 %v10686_v43, %v9599_v47  ;;  %v9621_v19 = vld [vmem:[#allocation3 + $0xa0] sm:$0xf] }
 0xf01   :  { %v6004_v12 = vadd.f32 %v6003_v55, %v4842_v0 }
 0xf03   :  { %6558 = vmatmul.bf16.gmra.mxu1 %v9574_v13  ;;  %v10692_v13 = vld [vmem:[#allocation3 + $0xa4] sm:$0xf] }
 0xf04   :  { %6727 = vmatmul.bf16.gmra.mxu3 %v9578_v39  ;;  %v9623_v39 = vld [vmem:[#allocation3 + $0xb8] sm:$0xf0] }
 0xf07   :  { %v6172_v57 = vpop.f32.mrf.mxu3 }
 0xf08   :  { %v14654_v46 = vadd.f32 %v6172_v57, %v6004_v12  ;;  %v6005_v6 = vpop.f32.mrf.mxu1 }
 0xf09   :  { %v6006_v29 = vadd.f32 %v6005_v6, %v4847_v40  ;;  %v10695_v40 = vld [vmem:[#allocation3 + $0xb4] sm:$0xf0]  ;;  %v9626_v6 = vor.u32 %v10692_v13, %v9623_v39 }
 0xf0f   :  { %v6174_v25 = vpop.f32.mrf.mxu3 }
 0xf10   :  { %v14656_v1 = vadd.f32 %v6174_v25, %v6006_v29  ;;  %v6008_v42 = vpop.f32.mrf.mxu1  ;;  %v9622_v25 = vor.u32 %v10695_v40, %v9621_v19 }
 0xf11   :  { %v6009_v53 = vadd.f32 %v6008_v42, %v14639_v38  ;;  %v9647_v42 = vld [vmem:[#allocation3 + $0xe8] sm:$0xf0] }
 0xf13   :  { %6563 = vmatmul.bf16.gmra.mxu1 %v9598_v2  ;;  %v10701_v2 = vld [vmem:[#allocation3 + $0xe4] sm:$0xf0] }
 0xf14   :  { %6732 = vmatmul.bf16.gmra.mxu3 %v9602_v31  ;;  %v10698_v31 = vld [vmem:[#allocation3 + $0xd4] sm:$0xf] }
 0xf15   :  { %v9650_v19 = vor.u32 %v10698_v31, %v9647_v42 }
 0xf17   :  { %v6177_v0 = vpop.f32.mrf.mxu3 }
 0xf18   :  { %v14659_v41 = vadd.f32 %v6177_v0, %v6009_v53  ;;  %v6010_v51 = vpop.f32.mrf.mxu1 }
 0xf19   :  { %v6011_v55 = vadd.f32 %v6010_v51, %v4857_v28  ;;  %v9646_v51 = vor.u32 %v10701_v2, %v9645_v22 }
 0xf1f   :  { %v6179_v12 = vpop.f32.mrf.mxu3 }
 0xf20   :  { %v14661_v57 = vadd.f32 %v6179_v12, %v6011_v55  ;;  %v6013_v47 = vpop.f32.mrf.mxu1  ;;  %v9669_v12 = vld [vmem:[#allocation3 + $0x100] sm:$0xf] }
 0xf21   :  { %v6014_v43 = vadd.f32 %v6013_v47, %v14632_v26  ;;  %v9671_v47 = vld [vmem:[#allocation3 + $0x118] sm:$0xf0] }
 0xf23   :  { %6568 = vmatmul.bf16.gmra.mxu1 %v9622_v25  ;;  %v10707_v25 = vld [vmem:[#allocation3 + $0x114] sm:$0xf0] }
 0xf24   :  { %6737 = vmatmul.bf16.gmra.mxu3 %v9626_v6  ;;  %v10704_v6 = vld [vmem:[#allocation3 + $0x104] sm:$0xf] }
 0xf25   :  { %v9674_v22 = vor.u32 %v10704_v6, %v9671_v47 }
 0xf27   :  { %v6182_v38 = vpop.f32.mrf.mxu3 }
 0xf28   :  { %v14664_v29 = vadd.f32 %v6182_v38, %v6014_v43  ;;  %v6015_v59 = vpop.f32.mrf.mxu1 }
 0xf29   :  { %v6016_v28 = vadd.f32 %v6015_v59, %v14637_v60  ;;  %v9670_v59 = vor.u32 %v10707_v25, %v9669_v12 }
 0xf2f   :  { %v6184_v53 = vpop.f32.mrf.mxu3 }
 0xf30   :  { %v14667_v0 = vadd.f32 %v6184_v53, %v6016_v28  ;;  %v6018_v40 = vpop.f32.mrf.mxu1  ;;  %v9693_v53 = vld [vmem:[#allocation3 + $0x130] sm:$0xf] }
 0xf31   :  { %v6019_v26 = vadd.f32 %v6018_v40, %v14625_v11  ;;  %v9695_v40 = vld [vmem:[#allocation3 + $0x148] sm:$0xf0] }
 0xf33   :  { %6573 = vmatmul.bf16.gmra.mxu1 %v9646_v51  ;;  %v10713_v51 = vld [vmem:[#allocation3 + $0x144] sm:$0xf0] }
 0xf34   :  { %6742 = vmatmul.bf16.gmra.mxu3 %v9650_v19  ;;  %v10710_v19 = vld [vmem:[#allocation3 + $0x134] sm:$0xf] }
 0xf35   :  { %v9698_v12 = vor.u32 %v10710_v19, %v9695_v40 }
 0xf37   :  { %v6187_v13 = vpop.f32.mrf.mxu3 }
 0xf38   :  { %v14670_v39 = vadd.f32 %v6187_v13, %v6019_v26  ;;  %v6020_v55 = vpop.f32.mrf.mxu1 }
 0xf39   :  { %v6021_v60 = vadd.f32 %v6020_v55, %v14630_v56  ;;  %v9694_v55 = vor.u32 %v10713_v51, %v9693_v53 }
 0xf3f   :  { %v6189_v43 = vpop.f32.mrf.mxu3 }
 0xf40   :  { %v14673_v38 = vadd.f32 %v6189_v43, %v6021_v60  ;;  %v6023_v2 = vpop.f32.mrf.mxu1  ;;  %v9717_v43 = vld [vmem:[#allocation3 + $0x160] sm:$0xf] }
 0xf41   :  { %v6024_v11 = vadd.f32 %v6023_v2, %v14616_v30  ;;  %v9719_v2 = vld [vmem:[#allocation3 + $0x178] sm:$0xf0] }
 0xf43   :  { %6578 = vmatmul.bf16.gmra.mxu1 %v9670_v59  ;;  %v10719_v59 = vld [vmem:[#allocation3 + $0x174] sm:$0xf0] }
 0xf44   :  { %6747 = vmatmul.bf16.gmra.mxu3 %v9674_v22  ;;  %v10716_v22 = vld [vmem:[#allocation3 + $0x164] sm:$0xf] }
 0xf45   :  { %v9722_v53 = vor.u32 %v10716_v22, %v9719_v2 }
 0xf47   :  { %v6192_v31 = vpop.f32.mrf.mxu3 }
 0xf48   :  { %v14676_v42 = vadd.f32 %v6192_v31, %v6024_v11  ;;  %v6025_v28 = vpop.f32.mrf.mxu1 }
 0xf49   :  { %v6026_v56 = vadd.f32 %v6025_v28, %v14623_v63  ;;  %v9718_v28 = vor.u32 %v10719_v59, %v9717_v43 }
 0xf4f   :  { %v6194_v26 = vpop.f32.mrf.mxu3 }
 0xf50   :  { %v14679_v13 = vadd.f32 %v6194_v26, %v6026_v56  ;;  %v6028_v25 = vpop.f32.mrf.mxu1  ;;  %v9741_v26 = vld [vmem:[#allocation3 + $0x190] sm:$0xf] }
 0xf51   :  { %v6029_v30 = vadd.f32 %v6028_v25, %v14609_v50  ;;  %v9743_v25 = vld [vmem:[#allocation3 + $0x1a8] sm:$0xf0] }
 0xf53   :  { %6583 = vmatmul.bf16.gmra.mxu1 %v9694_v55  ;;  %v10725_v55 = vld [vmem:[#allocation3 + $0x1a4] sm:$0xf0] }
 0xf54   :  { %6752 = vmatmul.bf16.gmra.mxu3 %v9698_v12  ;;  %v10722_v12 = vld [vmem:[#allocation3 + $0x194] sm:$0xf] }
 0xf55   :  { %v9746_v43 = vor.u32 %v10722_v12, %v9743_v25 }
 0xf57   :  { %v6197_v6 = vpop.f32.mrf.mxu3 }
 0xf58   :  { %v14682_v47 = vadd.f32 %v6197_v6, %v6029_v30  ;;  %v6030_v60 = vpop.f32.mrf.mxu1 }
 0xf59   :  { %v6031_v63 = vadd.f32 %v6030_v60, %v14614_v44  ;;  %v9742_v60 = vor.u32 %v10725_v55, %v9741_v26 }
 0xf5f   :  { %v6199_v11 = vpop.f32.mrf.mxu3 }
 0xf60   :  { %v14685_v31 = vadd.f32 %v6199_v11, %v6031_v63  ;;  %v6033_v51 = vpop.f32.mrf.mxu1  ;;  %v9765_v11 = vld [vmem:[#allocation3 + $0x1c0] sm:$0xf] }
 0xf61   :  { %v6034_v50 = vadd.f32 %v6033_v51, %v14599_v8  ;;  %v9767_v51 = vld [vmem:[#allocation3 + $0x1d8] sm:$0xf0] }
 0xf63   :  { %6588 = vmatmul.bf16.gmra.mxu1 %v9718_v28  ;;  %v10731_v28 = vld [vmem:[#allocation3 + $0x1d4] sm:$0xf0] }
 0xf64   :  { %6757 = vmatmul.bf16.gmra.mxu3 %v9722_v53  ;;  %v10728_v53 = vld [vmem:[#allocation3 + $0x1c4] sm:$0xf] }
 0xf65   :  { %v9770_v26 = vor.u32 %v10728_v53, %v9767_v51 }
 0xf67   :  { %v6202_v19 = vpop.f32.mrf.mxu3 }
 0xf68   :  { %v14688_v40 = vadd.f32 %v6202_v19, %v6034_v50  ;;  %v6035_v56 = vpop.f32.mrf.mxu1 }
 0xf69   :  { %v6036_v44 = vadd.f32 %v6035_v56, %v14607_v16 }
 0xf6f   :  { %v6204_v30 = vpop.f32.mrf.mxu3 }
 0xf70   :  { %v14691_v6 = vadd.f32 %v6204_v30, %v6036_v44  ;;  %v6554_v59 = vpop.f32.mrf.mxu1  ;;  %v9766_v44 = vor.u32 %v10731_v28, %v9765_v11  ;;  %v10734_v11 = vld [vmem:[#allocation3 + $0x1f4] sm:$0xf]  ;;  %v9791_v28 = vld [vmem:[#allocation3 + $0x208] sm:$0xf0] }
 0xf71   :  { %v6555_v22 = vadd.f32 %v6554_v59, %v14338_v48 }
 0xf73   :  { %6593 = vmatmul.bf16.gmra.mxu1 %v9742_v60 }
 0xf74   :  { %6762 = vmatmul.bf16.gmra.mxu3 %v9746_v43 }
 0xf77   :  { %v6723_v8 = vpop.f32.mrf.mxu3 }
 0xf78   :  { %v6556_v2 = vpop.f32.mrf.mxu1  ;;  %v6724_v63 = vadd.f32 %v6723_v8, %v6555_v22 }
 0xf79   :  { %v6557_v16 = vadd.f32 %v6556_v2, %v14346_v18  ;;  %v9789_v18 = vld [vmem:[#allocation3 + $0x1f0] sm:$0xf]  ;;  %v10737_v2 = vld [vmem:[#allocation3 + $0x204] sm:$0xf0] }
 0xf7a   :  { %v6883_v50 = vmax.f32 %v6724_v63, 0.0 }
 0xf7c   :  { %v6947_v12 = vpack.c.bf16 %v6883_v50, %v6883_v50 }
 0xf7e   :  { %v7075_v48 = vunpack.c.l.b16 %v6947_v12 }
 0xf7f   :  { %v6725_v19 = vpop.f32.mrf.mxu3 }
 0xf80   :  { %v6726_v56 = vadd.f32 %v6725_v19, %v6557_v16  ;;  %v6559_v55 = vpop.f32.mrf.mxu1  ;;  %v9794_v19 = vor.u32 %v10734_v11, %v9791_v28 }
 0xf81   :  { %v6560_v59 = vadd.f32 %v6559_v55, %v14351_v32  ;;  %v9790_v32 = vor.u32 %v10737_v2, %v9789_v18  ;;  %v9815_v18 = vld [vmem:[#allocation3 + $0x238] sm:$0xf0] }
 0xf82   :  { %v6884_v25 = vmax.f32 %v6726_v56, 0.0 }
 0xf83   :  { %6598 = vmatmul.bf16.gmra.mxu1 %v9766_v44 }
 0xf84   :  { %v6948_v30 = vpack.c.bf16 %v6884_v25, %v6884_v25  ;;  %6767 = vmatmul.bf16.gmra.mxu3 %v9770_v26 }
 0xf86   :  { %v7076_v60 = vunpack.c.l.b16 %v6948_v30 }
 0xf87   :  { %v6728_v43 = vpop.f32.mrf.mxu3 }
 0xf88   :  { %v14696_v8 = vpack.c.b16 %v7076_v60, %v7075_v48  ;;  %v6561_v22 = vpop.f32.mrf.mxu1  ;;  %v6729_v63 = vadd.f32 %v6728_v43, %v6560_v59 }
 0xf89   :  { %v6562_v51 = vadd.f32 %v6561_v22, %v14353_v17  ;;  %v9813_v17 = vld [vmem:[#allocation3 + $0x220] sm:$0xf]  ;;  %v10743_v22 = vld [vmem:[#allocation3 + $0x234] sm:$0xf0] }
 0xf8a   :  { %7171 = vrot.lane.b32.xlu1 %v14696_v8, %s11202_s19  ;;  %7235 = vrot.lane.b32.xlu0 %v14696_v8, %s11200_s7  ;;  %v6885_v53 = vmax.f32 %v6729_v63, 0.0  ;;  %v10740_v63 = vld [vmem:[#allocation3 + $0x224] sm:$0xf] }
 0xf8c   :  { %v6949_v44 = vpack.c.bf16 %v6885_v53, %v6885_v53 }
 0xf8e   :  { %v7077_v12 = vunpack.c.l.b16 %v6949_v44 }
 0xf8f   :  { %v6730_v50 = vpop.f32.mrf.mxu3 }
 0xf90   :  { %v6731_v16 = vadd.f32 %v6730_v50, %v6562_v51  ;;  %v6564_v56 = vpop.f32.mrf.mxu1  ;;  %v9818_v51 = vor.u32 %v10740_v63, %v9815_v18 }
 0xf91   :  { %v6565_v48 = vadd.f32 %v6564_v56, %v14355_v36  ;;  %v9814_v36 = vor.u32 %v10743_v22, %v9813_v17 }
 0xf92   :  { %v6886_v26 = vmax.f32 %v6731_v16, 0.0 }
 0xf93   :  { %6603 = vmatmul.bf16.gmra.mxu1 %v9790_v32 }
 0xf94   :  { %v6950_v55 = vpack.c.bf16 %v6886_v26, %v6886_v26  ;;  %6772 = vmatmul.bf16.gmra.mxu3 %v9794_v19 }
 0xf96   :  { %v7078_v25 = vunpack.c.l.b16 %v6950_v55 }
 0xf97   :  { %v6733_v30 = vpop.f32.mrf.mxu3 }
 0xf98   :  { %v14704_v60 = vpack.c.b16 %v7078_v25, %v7077_v12  ;;  %v6566_v43 = vpop.f32.mrf.mxu1  ;;  %v6734_v59 = vadd.f32 %v6733_v30, %v6565_v48  ;;  %v10749_v48 = vld [vmem:[#allocation3 + $0x264] sm:$0xf0] }
 0xf99   :  { %v6567_v11 = vadd.f32 %v6566_v43, %v14359_v9  ;;  %v9837_v9 = vld [vmem:[#allocation3 + $0x250] sm:$0xf]  ;;  %v10746_v43 = vld [vmem:[#allocation3 + $0x254] sm:$0xf] }
 0xf9a   :  { %7173 = vrot.lane.b32.xlu1 %v14704_v60, %s11202_s19  ;;  %7237 = vrot.lane.b32.xlu0 %v14704_v60, %s11200_s7  ;;  %v6887_v2 = vmax.f32 %v6734_v59, 0.0  ;;  %v9839_v59 = vld [vmem:[#allocation3 + $0x268] sm:$0xf0] }
 0xf9c   :  { %v6951_v16 = vpack.c.bf16 %v6887_v2, %v6887_v2  ;;  %v9842_v2 = vor.u32 %v10746_v43, %v9839_v59 }
 0xf9e   :  { %v7079_v56 = vunpack.c.l.b16 %v6951_v16 }
 0xf9f   :  { %v6735_v28 = vpop.f32.mrf.mxu3 }
 0xfa0   :  { %v6736_v53 = vadd.f32 %v6735_v28, %v6567_v11  ;;  %v6569_v50 = vpop.f32.mrf.mxu1 }
 0xfa1   :  { %v6570_v55 = vadd.f32 %v6569_v50, %v14364_v7  ;;  %v9838_v7 = vor.u32 %v10749_v48, %v9837_v9 }
 0xfa2   :  { %v6888_v32 = vmax.f32 %v6736_v53, 0.0 }
 0xfa3   :  { %6608 = vmatmul.bf16.gmra.mxu1 %v9814_v36 }
 0xfa4   :  { %v6952_v19 = vpack.c.bf16 %v6888_v32, %v6888_v32  ;;  %6777 = vmatmul.bf16.gmra.mxu3 %v9818_v51 }
 0xfa6   :  { %v7080_v44 = vunpack.c.l.b16 %v6952_v19 }
 0xfa7   :  { %v6738_v26 = vpop.f32.mrf.mxu3 }
 0xfa8   :  { %v14712_v12 = vpack.c.b16 %v7080_v44, %v7079_v56  ;;  %v6571_v25 = vpop.f32.mrf.mxu1  ;;  %v6739_v30 = vadd.f32 %v6738_v26, %v6570_v55  ;;  %v10755_v26 = vld [vmem:[#allocation3 + $0x294] sm:$0xf0]  ;;  %v10752_v55 = vld [vmem:[#allocation3 + $0x284] sm:$0xf] }
 0xfa9   :  { %v6572_v22 = vadd.f32 %v6571_v25, %v14371_v3  ;;  %v9861_v3 = vld [vmem:[#allocation3 + $0x280] sm:$0xf]  ;;  %v9863_v25 = vld [vmem:[#allocation3 + $0x298] sm:$0xf0] }
 0xfaa   :  { %7175 = vrot.lane.b32.xlu1 %v14712_v12, %s11202_s19  ;;  %7239 = vrot.lane.b32.xlu0 %v14712_v12, %s11200_s7  ;;  %v6889_v17 = vmax.f32 %v6739_v30, 0.0  ;;  %v9866_v59 = vor.u32 %v10752_v55, %v9863_v25 }
 0xfac   :  { %v6953_v28 = vpack.c.bf16 %v6889_v17, %v6889_v17 }
 0xfae   :  { %v7081_v51 = vunpack.c.l.b16 %v6953_v28 }
 0xfaf   :  { %v6740_v63 = vpop.f32.mrf.mxu3 }
 0xfb0   :  { %v6741_v18 = vadd.f32 %v6740_v63, %v6572_v22  ;;  %v6574_v11 = vpop.f32.mrf.mxu1 }
 0xfb1   :  { %v6575_v32 = vadd.f32 %v6574_v11, %v14376_v10  ;;  %v9862_v10 = vor.u32 %v10755_v26, %v9861_v3 }
 0xfb2   :  { %v6890_v53 = vmax.f32 %v6741_v18, 0.0 }
 0xfb3   :  { %6613 = vmatmul.bf16.gmra.mxu1 %v9838_v7 }
 0xfb4   :  { %v6954_v36 = vpack.c.bf16 %v6890_v53, %v6890_v53  ;;  %6782 = vmatmul.bf16.gmra.mxu3 %v9842_v2 }
 0xfb6   :  { %v7082_v50 = vunpack.c.l.b16 %v6954_v36 }
 0xfb7   :  { %v6743_v16 = vpop.f32.mrf.mxu3 }
 0xfb8   :  { %v14720_v19 = vpack.c.b16 %v7082_v50, %v7081_v51  ;;  %v6576_v56 = vpop.f32.mrf.mxu1  ;;  %v6744_v44 = vadd.f32 %v6743_v16, %v6575_v32  ;;  %v10761_v50 = vld [vmem:[#allocation3 + $0x2c4] sm:$0xf0]  ;;  %v10758_v16 = vld [vmem:[#allocation3 + $0x2b4] sm:$0xf]  ;;  %v9887_v32 = vld [vmem:[#allocation3 + $0x2c8] sm:$0xf0] }
 0xfb9   :  { %v6577_v9 = vadd.f32 %v6576_v56, %v14385_v27  ;;  %v9885_v27 = vld [vmem:[#allocation3 + $0x2b0] sm:$0xf]  ;;  %v9890_v55 = vor.u32 %v10758_v16, %v9887_v32 }
 0xfba   :  { %7177 = vrot.lane.b32.xlu1 %v14720_v19, %s11202_s19  ;;  %7241 = vrot.lane.b32.xlu0 %v14720_v19, %s11200_s7  ;;  %v6891_v30 = vmax.f32 %v6744_v44, 0.0 }
 0xfbc   :  { %v6955_v22 = vpack.c.bf16 %v6891_v30, %v6891_v30 }
 0xfbe   :  { %v7083_v7 = vunpack.c.l.b16 %v6955_v22 }
 0xfbf   :  { %v6745_v48 = vpop.f32.mrf.mxu3 }
 0xfc0   :  { %v6746_v43 = vadd.f32 %v6745_v48, %v6577_v9  ;;  %v6579_v17 = vpop.f32.mrf.mxu1 }
 0xfc1   :  { %v6580_v28 = vadd.f32 %v6579_v17, %v14397_v54  ;;  %v9886_v54 = vor.u32 %v10761_v50, %v9885_v27 }
 0xfc2   :  { %v6892_v63 = vmax.f32 %v6746_v43, 0.0 }
 0xfc3   :  { %6618 = vmatmul.bf16.gmra.mxu1 %v9862_v10 }
 0xfc4   :  { %v6956_v18 = vpack.c.bf16 %v6892_v63, %v6892_v63  ;;  %6787 = vmatmul.bf16.gmra.mxu3 %v9866_v59 }
 0xfc6   :  { %v7084_v2 = vunpack.c.l.b16 %v6956_v18 }
 0xfc7   :  { %v6748_v11 = vpop.f32.mrf.mxu3 }
 0xfc8   :  { %v14728_v53 = vpack.c.b16 %v7084_v2, %v7083_v7  ;;  %v6581_v36 = vpop.f32.mrf.mxu1  ;;  %v6749_v51 = vadd.f32 %v6748_v11, %v6580_v28  ;;  %v10767_v7 = vld [vmem:[#allocation3 + $0x2f4] sm:$0xf0]  ;;  %v10764_v2 = vld [vmem:[#allocation3 + $0x2e4] sm:$0xf]  ;;  %v9911_v11 = vld [vmem:[#allocation3 + $0x2f8] sm:$0xf0] }
 0xfc9   :  { %v6582_v44 = vadd.f32 %v6581_v36, %v14411_v5  ;;  %v9909_v5 = vld [vmem:[#allocation3 + $0x2e0] sm:$0xf]  ;;  %v9914_v50 = vor.u32 %v10764_v2, %v9911_v11 }
 0xfca   :  { %7179 = vrot.lane.b32.xlu1 %v14728_v53, %s11202_s19  ;;  %7243 = vrot.lane.b32.xlu0 %v14728_v53, %s11200_s7  ;;  %v6893_v56 = vmax.f32 %v6749_v51, 0.0 }
 0xfcc   :  { %v6957_v30 = vpack.c.bf16 %v6893_v56, %v6893_v56 }
 0xfce   :  { %v7085_v43 = vunpack.c.l.b16 %v6957_v30 }
 0xfcf   :  { %v6750_v3 = vpop.f32.mrf.mxu3 }
 0xfd0   :  { %v6751_v26 = vadd.f32 %v6750_v3, %v6582_v44  ;;  %v6584_v25 = vpop.f32.mrf.mxu1 }
 0xfd1   :  { %v6585_v17 = vadd.f32 %v6584_v25, %v14419_v15  ;;  %v9910_v15 = vor.u32 %v10767_v7, %v9909_v5 }
 0xfd2   :  { %v6894_v9 = vmax.f32 %v6751_v26, 0.0 }
 0xfd3   :  { %6623 = vmatmul.bf16.gmra.mxu1 %v9886_v54 }
 0xfd4   :  { %v6958_v48 = vpack.c.bf16 %v6894_v9, %v6894_v9  ;;  %6792 = vmatmul.bf16.gmra.mxu3 %v9890_v55 }
 0xfd6   :  { %v7086_v10 = vunpack.c.l.b16 %v6958_v48  ;;  %v10773_v48 = vld [vmem:[#allocation3 + $0x324] sm:$0xf0] }
 0xfd7   :  { %v6753_v59 = vpop.f32.mrf.mxu3 }
 0xfd8   :  { %v14736_v22 = vpack.c.b16 %v7086_v10, %v7085_v43  ;;  %v6586_v63 = vpop.f32.mrf.mxu1  ;;  %v6754_v18 = vadd.f32 %v6753_v59, %v6585_v17  ;;  %v10770_v43 = vld [vmem:[#allocation3 + $0x314] sm:$0xf]  ;;  %v9935_v10 = vld [vmem:[#allocation3 + $0x328] sm:$0xf0] }
 0xfd9   :  { %v6587_v36 = vadd.f32 %v6586_v63, %v14433_v62  ;;  %v9933_v62 = vld [vmem:[#allocation3 + $0x310] sm:$0xf]  ;;  %v9938_v5 = vor.u32 %v10770_v43, %v9935_v10 }
 0xfda   :  { %7181 = vrot.lane.b32.xlu1 %v14736_v22, %s11202_s19  ;;  %7245 = vrot.lane.b32.xlu0 %v14736_v22, %s11200_s7  ;;  %v6895_v28 = vmax.f32 %v6754_v18, 0.0 }
 0xfdc   :  { %v6959_v32 = vpack.c.bf16 %v6895_v28, %v6895_v28 }
 0xfde   :  { %v7087_v3 = vunpack.c.l.b16 %v6959_v32 }
 0xfdf   :  { %v6755_v51 = vpop.f32.mrf.mxu3 }
 0xfe0   :  { %v6756_v27 = vadd.f32 %v6755_v51, %v6587_v36  ;;  %v6589_v16 = vpop.f32.mrf.mxu1 }
 0xfe1   :  { %v6590_v55 = vadd.f32 %v6589_v16, %v14442_v24  ;;  %v9934_v24 = vor.u32 %v10773_v48, %v9933_v62 }
 0xfe2   :  { %v6896_v56 = vmax.f32 %v6756_v27, 0.0 }
 0xfe3   :  { %6628 = vmatmul.bf16.gmra.mxu1 %v9910_v15 }
 0xfe4   :  { %v6960_v44 = vpack.c.bf16 %v6896_v56, %v6896_v56  ;;  %6797 = vmatmul.bf16.gmra.mxu3 %v9914_v50  ;;  %v10779_v56 = vld [vmem:[#allocation3 + $0x354] sm:$0xf0] }
 0xfe6   :  { %v7088_v26 = vunpack.c.l.b16 %v6960_v44  ;;  %v10776_v44 = vld [vmem:[#allocation3 + $0x344] sm:$0xf] }
 0xfe7   :  { %v6758_v54 = vpop.f32.mrf.mxu3 }
 0xfe8   :  { %v14744_v25 = vpack.c.b16 %v7088_v26, %v7087_v3  ;;  %v6591_v30 = vpop.f32.mrf.mxu1  ;;  %v6759_v9 = vadd.f32 %v6758_v54, %v6590_v55  ;;  %v9959_v3 = vld [vmem:[#allocation3 + $0x358] sm:$0xf0] }
 0xfe9   :  { %v6592_v17 = vadd.f32 %v6591_v30, %v14450_v34  ;;  %v9957_v34 = vld [vmem:[#allocation3 + $0x340] sm:$0xf]  ;;  %v9962_v62 = vor.u32 %v10776_v44, %v9959_v3 }
 0xfea   :  { %7183 = vrot.lane.b32.xlu2 %v14744_v25, %s11202_s19  ;;  %7247 = vrot.lane.b32.xlu0 %v14744_v25, %s11200_s7  ;;  %v6897_v59 = vmax.f32 %v6759_v9, 0.0  ;;  %v9958_v9 = vor.u32 %v10779_v56, %v9957_v34 }
 0xfec   :  { %v6961_v2 = vpack.c.bf16 %v6897_v59, %v6897_v59 }
 0xfee   :  { %v7089_v36 = vunpack.c.l.b16 %v6961_v2  ;;  %v10785_v2 = vld [vmem:[#allocation3 + $0x384] sm:$0xf0] }
 0xfef   :  { %v6760_v63 = vpop.f32.mrf.mxu3 }
 0xff0   :  { %v6761_v18 = vadd.f32 %v6760_v63, %v6592_v17  ;;  %v6594_v7 = vpop.f32.mrf.mxu1 }
 0xff1   :  { %v6595_v15 = vadd.f32 %v6594_v7, %v14455_v52  ;;  %v9981_v7 = vld [vmem:[#allocation3 + $0x370] sm:$0xf] }
 0xff2   :  { %v6898_v11 = vmax.f32 %v6761_v18, 0.0 }
 0xff3   :  { %6633 = vmatmul.bf16.gmra.mxu1 %v9934_v24 }
 0xff4   :  { %v6962_v28 = vpack.c.bf16 %v6898_v11, %v6898_v11  ;;  %6802 = vmatmul.bf16.gmra.mxu3 %v9938_v5  ;;  %v10782_v11 = vld [vmem:[#allocation3 + $0x374] sm:$0xf] }
 0xff6   :  { %v7090_v51 = vunpack.c.l.b16 %v6962_v28  ;;  %v9983_v28 = vld [vmem:[#allocation3 + $0x388] sm:$0xf0] }
 0xff7   :  { %v6763_v27 = vpop.f32.mrf.mxu3 }
 0xff8   :  { %v14752_v50 = vpack.c.b16 %v7090_v51, %v7089_v36  ;;  %v6596_v16 = vpop.f32.mrf.mxu1  ;;  %v6764_v32 = vadd.f32 %v6763_v27, %v6595_v15 }
 0xff9   :  { %v6597_v54 = vadd.f32 %v6596_v16, %v14463_v33  ;;  %v9986_v16 = vor.u32 %v10782_v11, %v9983_v28 }
 0xffa   :  { %7249 = vrot.lane.b32.xlu0 %v14752_v50, %s11200_s7  ;;  %v6899_v26 = vmax.f32 %v6764_v32, 0.0 }
 0xffc   :  { %v6963_v52 = vpack.c.bf16 %v6899_v26, %v6899_v26 }
 0xffe   :  { %v7091_v59 = vunpack.c.l.b16 %v6963_v52  ;;  %v10791_v52 = vld [vmem:[#allocation3 + $0x3b4] sm:$0xf0] }
 0xfff   :  { %v6765_v55 = vpop.f32.mrf.mxu3 }
0x1000   :  { %v6766_v30 = vadd.f32 %v6765_v55, %v6597_v54  ;;  %v6599_v48 = vpop.f32.mrf.mxu1 }
0x1001   :  { %v6600_v18 = vadd.f32 %v6599_v48, %v14467_v14  ;;  %v9982_v14 = vor.u32 %v10785_v2, %v9981_v7  ;;  %v10005_v48 = vld [vmem:[#allocation3 + $0x3a0] sm:$0xf] }
0x1002   :  { %v6900_v43 = vmax.f32 %v6766_v30, 0.0  ;;  %7185 = vrot.lane.b32.xlu0 %v14752_v50, %s11202_s19 }
0x1003   :  { %6638 = vmatmul.bf16.gmra.mxu1 %v9958_v9  ;;  %v14770_v9 = vpop.permute.xlu1 %7171 }
0x1004   :  { %v6964_v10 = vpack.c.bf16 %v6900_v43, %v6900_v43  ;;  %6807 = vmatmul.bf16.gmra.mxu3 %v9962_v62  ;;  %v10788_v43 = vld [vmem:[#allocation3 + $0x3a4] sm:$0xf] }
0x1006   :  { %v7092_v17 = vunpack.c.l.b16 %v6964_v10  ;;  %v10007_v10 = vld [vmem:[#allocation3 + $0x3b8] sm:$0xf0] }
0x1007   :  { %v6768_v63 = vpop.f32.mrf.mxu3 }
0x1008   :  { %v14760_v24 = vpack.c.b16 %v7092_v17, %v7091_v59  ;;  %v6601_v33 = vpop.f32.mrf.mxu1  ;;  %v6769_v5 = vadd.f32 %v6768_v63, %v6600_v18  ;;  %v10006_v18 = vor.u32 %v10791_v52, %v10005_v48 }
0x1009   :  { %v6602_v51 = vadd.f32 %v6601_v33, %v14471_v37  ;;  %v10010_v33 = vor.u32 %v10788_v43, %v10007_v10 }
0x100a   :  { %7187 = vrot.lane.b32.xlu1 %v14760_v24, %s11202_s19  ;;  %7251 = vrot.lane.b32.xlu0 %v14760_v24, %s11200_s7  ;;  %v6901_v36 = vmax.f32 %v6769_v5, 0.0 }
0x100c   :  { %v6965_v34 = vpack.c.bf16 %v6901_v36, %v6901_v36  ;;  %v14777_v5 = vpop.permute.xlu1 %7173 }
0x100e   :  { %v7093_v3 = vunpack.c.l.b16 %v6965_v34  ;;  %v10029_v34 = vld [vmem:[#allocation3 + $0x3d0] sm:$0xf] }
0x100f   :  { %v6770_v27 = vpop.f32.mrf.mxu3 }
0x1010   :  { %v6771_v15 = vadd.f32 %v6770_v27, %v6602_v51  ;;  %v6604_v32 = vpop.f32.mrf.mxu1 }
0x1011   :  { %v6605_v55 = vadd.f32 %v6604_v32, %v14473_v45 }
0x1012   :  { %v6902_v56 = vmax.f32 %v6771_v15, 0.0 }
0x1013   :  { %6643 = vmatmul.bf16.gmra.mxu1 %v9982_v14 }
0x1014   :  { %v6966_v44 = vpack.c.bf16 %v6902_v56, %v6902_v56  ;;  %6812 = vmatmul.bf16.gmra.mxu3 %v9986_v16  ;;  %v10797_v56 = vld [vmem:[#allocation3 + $0x3e4] sm:$0xf0] }
0x1016   :  { %v7094_v26 = vunpack.c.l.b16 %v6966_v44  ;;  %v10794_v44 = vld [vmem:[#allocation3 + $0x3d4] sm:$0xf] }
0x1017   :  { %v6773_v54 = vpop.f32.mrf.mxu3 }
0x1018   :  { %v14768_v30 = vpack.c.b16 %v7094_v26, %v7093_v3  ;;  %v6606_v37 = vpop.f32.mrf.mxu1  ;;  %v6774_v62 = vadd.f32 %v6773_v54, %v6605_v55  ;;  %v10031_v3 = vld [vmem:[#allocation3 + $0x3e8] sm:$0xf0] }
0x1019   :  { %v6607_v17 = vadd.f32 %v6606_v37, %v14475_v49  ;;  %v10030_v37 = vor.u32 %v10797_v56, %v10029_v34  ;;  %v16237_v34 = vld [vmem:[#allocation32_spill] sm:$0xff] }
0x101a   :  { %7189 = vrot.lane.b32.xlu1 %v14768_v30, %s11202_s19  ;;  %7253 = vrot.lane.b32.xlu0 %v14768_v30, %s11200_s7  ;;  %v6903_v59 = vmax.f32 %v6774_v62, 0.0  ;;  %v10034_v62 = vor.u32 %v10794_v44, %v10031_v3 }
0x101c   :  { %v6967_v2 = vpack.c.bf16 %v6903_v59, %v6903_v59  ;;  %v14782_v49 = vpop.permute.xlu1 %7175  ;;  %v14793_v59 = vpop.permute.xlu0 %7235 }
0x101d   :  { %16231 = vst [vmem:[#allocation39_spill] sm:$0xff] %v14782_v49  ;;  %v16266_v49 = vld [vmem:[#allocation29_spill] sm:$0xff] }
0x101e   :  { %v7095_v36 = vunpack.c.l.b16 %v6967_v2  ;;  %16233 = vst [vmem:[#allocation41_spill] sm:$0xff] %v14793_v59 }
0x101f   :  { %v6775_v45 = vpop.f32.mrf.mxu3 }
0x1020   :  { %v6776_v63 = vadd.f32 %v6775_v45, %v6607_v17  ;;  %v6609_v7 = vpop.f32.mrf.mxu1 }
0x1021   :  { %v6610_v15 = vadd.f32 %v6609_v7, %v14482_v35 }
0x1022   :  { %v6904_v11 = vmax.f32 %v6776_v63, 0.0 }
0x1023   :  { %6648 = vmatmul.bf16.gmra.mxu1 %v10006_v18  ;;  %v16234_v18 = vld [vmem:[#allocation19_spill] sm:$0xff] }
0x1024   :  { %v6968_v28 = vpack.c.bf16 %v6904_v11, %v6904_v11  ;;  %6817 = vmatmul.bf16.gmra.mxu3 %v10010_v33 }
0x1026   :  { %v7096_v51 = vunpack.c.l.b16 %v6968_v28  ;;  %v14802_v28 = vpop.permute.xlu0 %7237 }
0x1027   :  { %v6778_v27 = vpop.f32.mrf.mxu3  ;;  %16235 = vst [vmem:[#allocation19_spill] sm:$0xff] %v14802_v28 }
0x1028   :  { %v14780_v14 = vpack.c.b16 %v7096_v51, %v7095_v36  ;;  %v6611_v16 = vpop.f32.mrf.mxu1  ;;  %v6779_v32 = vadd.f32 %v6778_v27, %v6610_v15  ;;  %v10053_v51 = vld [vmem:[#allocation3 + $0x400] sm:$0xf]  ;;  %v10803_v27 = vld [vmem:[#allocation3 + $0x414] sm:$0xf0]  ;;  %v10800_v15 = vld [vmem:[#allocation3 + $0x404] sm:$0xf] }
0x1029   :  { %v6612_v54 = vadd.f32 %v6611_v16, %v14493_v61  ;;  %v10055_v16 = vld [vmem:[#allocation3 + $0x418] sm:$0xf0] }
0x102a   :  { %7191 = vrot.lane.b32.xlu2 %v14780_v14, %s11202_s19  ;;  %7255 = vrot.lane.b32.xlu0 %v14780_v14, %s11200_s7  ;;  %v6905_v26 = vmax.f32 %v6779_v32, 0.0 }
0x102c   :  { %v14789_v48 = vpop.permute.xlu1 %7177  ;;  %v6969_v43 = vpack.c.bf16 %v6905_v26, %v6905_v26  ;;  %v10054_v26 = vor.u32 %v10803_v27, %v10053_v51  ;;  %v10809_v51 = vld [vmem:[#allocation3 + $0x444] sm:$0xf0]  ;;  %v10806_v27 = vld [vmem:[#allocation3 + $0x434] sm:$0xf] }
0x102d   :  { %16232 = vst [vmem:[#allocation40_spill] sm:$0xff] %v14789_v48 }
0x102e   :  { %v7097_v45 = vunpack.c.l.b16 %v6969_v43 }
0x102f   :  { %v6780_v35 = vpop.f32.mrf.mxu3 }
0x1030   :  { %v6781_v55 = vadd.f32 %v6780_v35, %v6612_v54  ;;  %v6614_v52 = vpop.f32.mrf.mxu1  ;;  %v10058_v54 = vor.u32 %v10800_v15, %v10055_v16  ;;  %v10079_v15 = vld [vmem:[#allocation3 + $0x448] sm:$0xf0] }
0x1031   :  { %v6615_v33 = vadd.f32 %v6614_v52, %v16234_v18 }
0x1032   :  { %v6906_v10 = vmax.f32 %v6781_v55, 0.0  ;;  %7305 = vrot.lane.b32.xlu2 %v14789_v48, %s11200_s7 }
0x1033   :  { %6653 = vmatmul.bf16.gmra.mxu1 %v10030_v37 }
0x1034   :  { %v6970_v17 = vpack.c.bf16 %v6906_v10, %v6906_v10  ;;  %6822 = vmatmul.bf16.gmra.mxu3 %v10034_v62  ;;  %v14809_v62 = vpop.permute.xlu0 %7239 }
0x1035   :  { %16238 = vst [vmem:[#allocation32_spill] sm:$0xff] %v14809_v62 }
0x1036   :  { %v7098_v63 = vunpack.c.l.b16 %v6970_v17 }
0x1037   :  { %v6783_v61 = vpop.f32.mrf.mxu3 }
0x1038   :  { %v14796_v7 = vpack.c.b16 %v7098_v63, %v7097_v45  ;;  %v6616_v2 = vpop.f32.mrf.mxu1  ;;  %v6784_v11 = vadd.f32 %v6783_v61, %v6615_v33  ;;  %v16239_v45 = vld [vmem:[#allocation31_spill] sm:$0xff] }
0x1039   :  { %v6617_v56 = vadd.f32 %v6616_v2, %v16237_v34 }
0x103a   :  { %7193 = vrot.lane.b32.xlu2 %v14796_v7, %s11202_s19  ;;  %7257 = vrot.lane.b32.xlu0 %v14796_v7, %s11200_s7  ;;  %v6907_v32 = vmax.f32 %v6784_v11, 0.0  ;;  %v10077_v11 = vld [vmem:[#allocation3 + $0x430] sm:$0xf] }
0x103c   :  { %v14804_v36 = vpop.permute.xlu1 %7179  ;;  %v6971_v55 = vpack.c.bf16 %v6907_v32, %v6907_v32  ;;  %v14818_v2 = vpop.permute.xlu0 %7241  ;;  %v16241_v32 = vld [vmem:[#allocation23_spill] sm:$0xff] }
0x103d   :  { %16236 = vst [vmem:[#allocation42_spill] sm:$0xff] %v14804_v36  ;;  %7307 = vrot.lane.b32.xlu1 %v14804_v36, %s11200_s7 }
0x103e   :  { %v7099_v43 = vunpack.c.l.b16 %v6971_v55  ;;  %16240 = vst [vmem:[#allocation31_spill] sm:$0xff] %v14818_v2 }
0x103f   :  { %v6785_v44 = vpop.f32.mrf.mxu3 }
0x1040   :  { %v6786_v3 = vadd.f32 %v6785_v44, %v6617_v56  ;;  %v6619_v35 = vpop.f32.mrf.mxu1 }
0x1041   :  { %v6620_v63 = vadd.f32 %v6619_v35, %v16239_v45 }
0x1042   :  { %v6908_v37 = vmax.f32 %v6786_v3, 0.0  ;;  %v10078_v3 = vor.u32 %v10809_v51, %v10077_v11 }
0x1043   :  { %6658 = vmatmul.bf16.gmra.mxu1 %v10054_v26  ;;  %v10082_v26 = vor.u32 %v10806_v27, %v10079_v15  ;;  %v10101_v15 = vld [vmem:[#allocation3 + $0x460] sm:$0xf] }
0x1044   :  { %v6972_v52 = vpack.c.bf16 %v6908_v37, %v6908_v37  ;;  %6827 = vmatmul.bf16.gmra.mxu3 %v10058_v54 }
0x1046   :  { %v7100_v10 = vunpack.c.l.b16 %v6972_v52  ;;  %v14825_v52 = vpop.permute.xlu0 %7243 }
0x1047   :  { %v6788_v17 = vpop.f32.mrf.mxu3  ;;  %16243 = vst [vmem:[#allocation43_spill] sm:$0xff] %v14825_v52 }
0x1048   :  { %v14812_v61 = vpack.c.b16 %v7100_v10, %v7099_v43  ;;  %v6621_v18 = vpop.f32.mrf.mxu1  ;;  %v6789_v33 = vadd.f32 %v6788_v17, %v6620_v63  ;;  %v16244_v63 = vld [vmem:[#allocation18_spill] sm:$0xff] }
0x1049   :  { %v6622_v34 = vadd.f32 %v6621_v18, %v16241_v32  ;;  %v10812_v32 = vld [vmem:[#allocation3 + $0x464] sm:$0xf] }
0x104a   :  { %7195 = vrot.lane.b32.xlu2 %v14812_v61, %s11202_s19  ;;  %7259 = vrot.lane.b32.xlu0 %v14812_v61, %s11200_s7  ;;  %v6909_v16 = vmax.f32 %v6789_v33, 0.0 }
0x104c   :  { %v14821_v54 = vpop.permute.xlu1 %7181  ;;  %v6973_v55 = vpack.c.bf16 %v6909_v16, %v6909_v16  ;;  %v10815_v16 = vld [vmem:[#allocation3 + $0x474] sm:$0xf0] }
0x104d   :  { %16242 = vst [vmem:[#allocation23_spill] sm:$0xff] %v14821_v54 }
0x104e   :  { %v7101_v10 = vunpack.c.l.b16 %v6973_v55  ;;  %v14834_v27 = vpop.permute.xlu0 %7245  ;;  %v10102_v55 = vor.u32 %v10815_v16, %v10101_v15 }
0x104f   :  { %v6790_v56 = vpop.f32.mrf.mxu3  ;;  %16245 = vst [vmem:[#allocation18_spill] sm:$0xff] %v14834_v27 }
0x1050   :  { %v6791_v44 = vadd.f32 %v6790_v56, %v6622_v34  ;;  %v6624_v35 = vpop.f32.mrf.mxu1  ;;  %v10103_v34 = vld [vmem:[#allocation3 + $0x478] sm:$0xf0] }
0x1051   :  { %v6625_v18 = vadd.f32 %v6624_v35, %v16244_v63 }
0x1052   :  { %v6910_v37 = vmax.f32 %v6791_v44, 0.0  ;;  %7309 = vrot.lane.b32.xlu0 %v14821_v54, %s11200_s7  ;;  %v16246_v44 = vld [vmem:[#allocation20_spill] sm:$0xff] }
0x1053   :  { %6663 = vmatmul.bf16.gmra.mxu1 %v10078_v3 }
0x1054   :  { %v6974_v43 = vpack.c.bf16 %v6910_v37, %v6910_v37  ;;  %6832 = vmatmul.bf16.gmra.mxu3 %v10082_v26  ;;  %v10106_v37 = vor.u32 %v10812_v32, %v10103_v34 }
0x1056   :  { %v7102_v17 = vunpack.c.l.b16 %v6974_v43  ;;  %v14837_v43 = vpop.permute.xlu2 %7183 }
0x1057   :  { %v6793_v45 = vpop.f32.mrf.mxu3  ;;  %16247 = vst [vmem:[#allocation20_spill] sm:$0xff] %v14837_v43 }
0x1058   :  { %v14828_v33 = vpack.c.b16 %v7102_v17, %v7101_v10  ;;  %v6626_v11 = vpop.f32.mrf.mxu1  ;;  %v6794_v51 = vadd.f32 %v6793_v45, %v6625_v18 }
0x1059   :  { %v6627_v3 = vadd.f32 %v6626_v11, %v16246_v44  ;;  %v16249_v44 = vld [vmem:[#allocation25_spill] sm:$0xff] }
0x105a   :  { %7197 = vrot.lane.b32.xlu2 %v14828_v33, %s11202_s19  ;;  %7261 = vrot.lane.b32.xlu0 %v14828_v33, %s11200_s7  ;;  %v6911_v56 = vmax.f32 %v6794_v51, 0.0 }
0x105c   :  { %v6975_v17 = vpack.c.bf16 %v6911_v56, %v6911_v56  ;;  %v14841_v63 = vpop.permute.xlu0 %7247  ;;  %v10125_v56 = vld [vmem:[#allocation3 + $0x490] sm:$0xf] }
0x105d   :  { %16248 = vst [vmem:[#allocation44_spill] sm:$0xff] %v14841_v63 }
0x105e   :  { %v7103_v51 = vunpack.c.l.b16 %v6975_v17 }
0x105f   :  { %v6795_v26 = vpop.f32.mrf.mxu3 }
0x1060   :  { %v6796_v35 = vadd.f32 %v6795_v26, %v6627_v3  ;;  %v6629_v10 = vpop.f32.mrf.mxu1 }
0x1061   :  { %v6630_v3 = vadd.f32 %v6629_v10, %v16249_v44  ;;  %v7454_v44 = vsel %vm7427_vm7, %v14744_v25, %v14841_v63  ;;  %v16252_v25 = vld [vmem:[#allocation22_spill] sm:$0xff] }
0x1062   :  { %v6912_v45 = vmax.f32 %v6796_v35, 0.0  ;;  %7311 = vrot.lane.b32.xlu0 %v14837_v43, %s11200_s7  ;;  %v10821_v35 = vld [vmem:[#allocation3 + $0x4a4] sm:$0xf0] }
0x1063   :  { %6668 = vmatmul.bf16.gmra.mxu1 %v10102_v55  ;;  %v10818_v55 = vld [vmem:[#allocation3 + $0x494] sm:$0xf] }
0x1064   :  { %v6976_v18 = vpack.c.bf16 %v6912_v45, %v6912_v45  ;;  %6837 = vmatmul.bf16.gmra.mxu3 %v10106_v37 }
0x1066   :  { %v7104_v48 = vunpack.c.l.b16 %v6976_v18  ;;  %v10126_v18 = vor.u32 %v10821_v35, %v10125_v56 }
0x1067   :  { %v6798_v11 = vpop.f32.mrf.mxu3 }
0x1068   :  { %v14844_v15 = vpack.c.b16 %v7104_v48, %v7103_v51  ;;  %v6631_v16 = vpop.f32.mrf.mxu1  ;;  %v6799_v32 = vadd.f32 %v6798_v11, %v6630_v3  ;;  %v10127_v48 = vld [vmem:[#allocation3 + $0x4a8] sm:$0xf0] }
0x1069   :  { %v6632_v10 = vadd.f32 %v6631_v16, %v14574_v4  ;;  %v10130_v51 = vor.u32 %v10818_v55, %v10127_v48  ;;  %v7450_v4 = vsel %vm7427_vm7, %v14736_v22, %v14834_v27  ;;  %v7446_v55 = vsel %vm7427_vm7, %v14728_v53, %v14825_v52 }
0x106a   :  { %7199 = vrot.lane.b32.xlu2 %v14844_v15, %s11202_s19  ;;  %7263 = vrot.lane.b32.xlu0 %v14844_v15, %s11200_s7  ;;  %v6913_v37 = vmax.f32 %v6799_v32, 0.0  ;;  %v7442_v22 = vsel %vm7427_vm7, %v14720_v19, %v14818_v2 }
0x106c   :  { %v14850_v34 = vpop.permute.xlu0 %7249  ;;  %v6977_v3 = vpack.c.bf16 %v6913_v37, %v6913_v37  ;;  %v10149_v37 = vld [vmem:[#allocation3 + $0x4c0] sm:$0xf] }
0x106d   :  { %16250 = vst [vmem:[#allocation25_spill] sm:$0xff] %v14850_v34  ;;  %v7458_v26 = vsel %vm7427_vm7, %v14752_v50, %v14850_v34 }
0x106e   :  { %7948 = vmatpush.bf16.msrb.mxu2 %v7458_v26  ;;  %v7105_v16 = vunpack.c.l.b16 %v6977_v3 }
0x106f   :  { %v6800_v17 = vpop.f32.mrf.mxu3 }
0x1070   :  { %v6801_v45 = vadd.f32 %v6800_v17, %v6632_v10  ;;  %v6634_v11 = vpop.f32.mrf.mxu1  ;;  %v10827_v10 = vld [vmem:[#allocation3 + $0x4d4] sm:$0xf0]  ;;  %v10824_v17 = vld [vmem:[#allocation3 + $0x4c4] sm:$0xf] }
0x1071   :  { %v6635_v26 = vadd.f32 %v6634_v11, %v16252_v25  ;;  %v10150_v3 = vor.u32 %v10827_v10, %v10149_v37  ;;  %v7430_v10 = vsel %vm7427_vm7, %v14696_v8, %v14793_v59 }
0x1072   :  { %v6914_v36 = vmax.f32 %v6801_v45, 0.0  ;;  %7949 = vmatpush.bf16.msrb.mxu2 %v7454_v44  ;;  %v10151_v45 = vld [vmem:[#allocation3 + $0x4d8] sm:$0xf0] }
0x1073   :  { %6673 = vmatmul.bf16.gmra.mxu1 %v10126_v18  ;;  %v14879_v18 = vpop.f32.mrf.mxu2 }
0x1074   :  { %v6978_v50 = vpack.c.bf16 %v6914_v36, %v6914_v36  ;;  %6842 = vmatmul.bf16.gmra.mxu3 %v10130_v51  ;;  %v14859_v54 = vpop.permute.xlu0 %7185 }
0x1075   :  { %16251 = vst [vmem:[#allocation45_spill] sm:$0xff] %v14859_v54  ;;  %7313 = vrot.lane.b32.xlu0 %v14859_v54, %s11200_s7 }
0x1076   :  { %v7106_v32 = vunpack.c.l.b16 %v6978_v50  ;;  %7950 = vmatpush.bf16.msrb.mxu2 %v7450_v4  ;;  %v10154_v50 = vor.u32 %v10824_v17, %v10151_v45  ;;  %v10173_v45 = vld [vmem:[#allocation3 + $0x4f0] sm:$0xf] }
0x1077   :  { %v6803_v56 = vpop.f32.mrf.mxu3 }
0x1078   :  { %v14867_v35 = vpack.c.b16 %v7106_v32, %v7105_v16  ;;  %v6636_v36 = vpop.f32.mrf.mxu1  ;;  %v6804_v48 = vadd.f32 %v6803_v56, %v6635_v26  ;;  %v7438_v16 = vsel %vm7427_vm7, %v14712_v12, %v14809_v62  ;;  %v14885_v32 = vpop.f32.mrf.mxu0 }
0x1079   :  { %v6637_v53 = vadd.f32 %v6636_v36, %v14585_v21  ;;  %v7434_v21 = vsel %vm7427_vm7, %v14704_v60, %v14802_v28 }
0x107a   :  { %7201 = vrot.lane.b32.xlu2 %v14867_v35, %s11202_s19  ;;  %7951 = vmatpush.bf16.msrb.mxu2 %v7446_v55  ;;  %v6915_v51 = vmax.f32 %v6804_v48, 0.0 }
0x107b   :  { %v14890_v48 = vpop.f32.mrf.mxu2 }
0x107c   :  { %v6979_v19 = vpack.c.bf16 %v6915_v51, %v6915_v51  ;;  %v10833_v51 = vld [vmem:[#allocation3 + $0x504] sm:$0xf0] }
0x107d   :  { %7265 = vrot.lane.b32.xlu0 %v14867_v35, %s11200_s7 }
0x107e   :  { %7952 = vmatpush.bf16.msrb.mxu2 %v7442_v22  ;;  %v7107_v26 = vunpack.c.l.b16 %v6979_v19 }
0x107f   :  { %v6805_v11 = vpop.f32.mrf.mxu3 }
0x1080   :  { %v6806_v44 = vadd.f32 %v6805_v11, %v6637_v53  ;;  %v6639_v4 = vpop.f32.mrf.mxu1  ;;  %v14900_v60 = vpop.f32.mrf.mxu0  ;;  %v10830_v53 = vld [vmem:[#allocation3 + $0x4f4] sm:$0xf]  ;;  %v10175_v11 = vld [vmem:[#allocation3 + $0x508] sm:$0xf0] }
0x1081   :  { %v6640_v12 = vadd.f32 %v6639_v4, %v14587_v58  ;;  %v10174_v4 = vor.u32 %v10833_v51, %v10173_v45 }
0x1082   :  { %v6916_v56 = vmax.f32 %v6806_v44, 0.0  ;;  %7953 = vmatpush.bf16.msrb.mxu2 %v7438_v16  ;;  %v10178_v16 = vor.u32 %v10830_v53, %v10175_v11  ;;  %v14916_v53 = vpop.permute.xlu0 %7251  ;;  %v10197_v11 = vld [vmem:[#allocation3 + $0x520] sm:$0xf] }
0x1083   :  { %6678 = vmatmul.bf16.gmra.mxu1 %v10150_v3  ;;  %v14903_v8 = vpop.f32.mrf.mxu2 }
0x1084   :  { %v6980_v25 = vpack.c.bf16 %v6916_v56, %v6916_v56  ;;  %6847 = vmatmul.bf16.gmra.mxu3 %v10154_v50 }
0x1086   :  { %v7108_v36 = vunpack.c.l.b16 %v6980_v25  ;;  %7954 = vmatpush.bf16.msrb.mxu2 %v7434_v21 }
0x1087   :  { %v6808_v55 = vpop.f32.mrf.mxu3 }
0x1088   :  { %v14893_v37 = vpack.c.b16 %v7108_v36, %v7107_v26  ;;  %v6641_v22 = vpop.f32.mrf.mxu1  ;;  %v6809_v17 = vadd.f32 %v6808_v55, %v6640_v12  ;;  %v14905_v26 = vpop.f32.mrf.mxu0 }
0x1089   :  { %v6642_v58 = vadd.f32 %v6641_v22, %v14591_v23 }
0x108a   :  { %16253 = vst [vmem:[#allocation22_spill] sm:$0xff] %v14893_v37  ;;  %7267 = vrot.lane.b32.xlu1 %v14893_v37, %s11200_s7  ;;  %7955 = vmatpush.bf16.msrb.mxu2 %v7430_v10  ;;  %v6917_v44 = vmax.f32 %v6809_v17, 0.0  ;;  %v16254_v10 = vld [vmem:[#allocation21_spill] sm:$0xff] }
0x108b   :  { %v14914_v51 = vpop.f32.mrf.mxu2 }
0x108c   :  { %v6981_v56 = vpack.c.bf16 %v6917_v44, %v6917_v44  ;;  %v14918_v44 = vpop.permute.xlu2 %7191  ;;  %v14923_v28 = vpop.permute.xlu0 %7253 }
0x108d   :  { %16256 = vst [vmem:[#allocation46_spill] sm:$0xff] %v14918_v44 }
0x108e   :  { %v7109_v36 = vunpack.c.l.b16 %v6981_v56 }
0x108f   :  { %v6810_v3 = vpop.f32.mrf.mxu3 }
0x1090   :  { %v6811_v50 = vadd.f32 %v6810_v3, %v6642_v58  ;;  %v6644_v19 = vpop.f32.mrf.mxu1  ;;  %v10839_v58 = vld [vmem:[#allocation3 + $0x534] sm:$0xf0]  ;;  %v10836_v3 = vld [vmem:[#allocation3 + $0x524] sm:$0xf] }
0x1091   :  { %v6645_v17 = vadd.f32 %v6644_v19, %v16254_v10 }
0x1092   :  { %v6918_v25 = vmax.f32 %v6811_v50, 0.0  ;;  %v10199_v50 = vld [vmem:[#allocation3 + $0x538] sm:$0xf0] }
0x1093   :  { %6683 = vmatmul.bf16.gmra.mxu1 %v10174_v4  ;;  %v14925_v52 = vpop.f32.mrf.mxu2 }
0x1094   :  { %v6982_v21 = vpack.c.bf16 %v6918_v25, %v6918_v25  ;;  %6852 = vmatmul.bf16.gmra.mxu3 %v10178_v16  ;;  %v16257_v16 = vld [vmem:[#allocation26_spill] sm:$0xff]  ;;  %v14921_v25 = vpop.f32.mrf.mxu0  ;;  %v14927_v63 = vpop.permute.xlu2 %7305 }
0x1095   :  { %16258 = vst [vmem:[#allocation26_spill] sm:$0xff] %v14927_v63  ;;  %v16263_v63 = vld [vmem:[#allocation27_spill] sm:$0xff] }
0x1096   :  { %v7110_v55 = vunpack.c.l.b16 %v6982_v21  ;;  %v6317_v54 = vadd.f32 %v14879_v18, %v16263_v63 }
0x1097   :  { %v6813_v12 = vpop.f32.mrf.mxu3 }
0x1098   :  { %v14908_v23 = vpack.c.b16 %v7110_v55, %v7109_v36  ;;  %v6646_v22 = vpop.f32.mrf.mxu1  ;;  %v6814_v45 = vadd.f32 %v6813_v12, %v6645_v17  ;;  %v10198_v36 = vor.u32 %v10839_v58, %v10197_v11  ;;  %v10202_v55 = vor.u32 %v10836_v3, %v10199_v50 }
0x1099   :  { %v6647_v19 = vadd.f32 %v6646_v22, %v16257_v16  ;;  %v16259_v16 = vld [vmem:[#allocation24_spill] sm:$0xff] }
0x109a   :  { %16255 = vst [vmem:[#allocation21_spill] sm:$0xff] %v14908_v23  ;;  %7269 = vrot.lane.b32.xlu2 %v14908_v23, %s11200_s7  ;;  %7205 = vrot.lane.b32.xlu1 %v14908_v23, %s11202_s19  ;;  %v6919_v4 = vmax.f32 %v6814_v45, 0.0 }
0x109c   :  { %v6983_v10 = vpack.c.bf16 %v6919_v4, %v6919_v4  ;;  %v14932_v58 = vpop.f32.mrf.mxu0  ;;  %v14938_v50 = vpop.permute.xlu0 %7255  ;;  %v10845_v4 = vld [vmem:[#allocation3 + $0x564] sm:$0xf0] }
0x109e   :  { %v7111_v2 = vunpack.c.l.b16 %v6983_v10  ;;  %v14941_v10 = vpop.f32.mrf.mxu2 }
0x109f   :  { %v6815_v56 = vpop.f32.mrf.mxu3 }
0x10a0   :  { %v6816_v21 = vadd.f32 %v6815_v56, %v6647_v19  ;;  %v6649_v12 = vpop.f32.mrf.mxu1  ;;  %v10842_v56 = vld [vmem:[#allocation3 + $0x554] sm:$0xf] }
0x10a1   :  { %v6650_v43 = vadd.f32 %v6649_v12, %v16259_v16 }
0x10a2   :  { %v6920_v17 = vmax.f32 %v6816_v21, 0.0  ;;  %v10223_v21 = vld [vmem:[#allocation3 + $0x568] sm:$0xf0] }
0x10a3   :  { %6688 = vmatmul.bf16.gmra.mxu1 %v10198_v36 }
0x10a4   :  { %v6984_v59 = vpack.c.bf16 %v6920_v17, %v6920_v17  ;;  %6857 = vmatmul.bf16.gmra.mxu3 %v10202_v55  ;;  %v16261_v55 = vld [vmem:[#allocation28_spill] sm:$0xff]  ;;  %v14947_v34 = vpop.f32.mrf.mxu0 }
0x10a6   :  { %v7112_v45 = vunpack.c.l.b16 %v6984_v59  ;;  %v10221_v59 = vld [vmem:[#allocation3 + $0x550] sm:$0xf] }
0x10a7   :  { %v6818_v22 = vpop.f32.mrf.mxu3 }
0x10a8   :  { %v14930_v19 = vpack.c.b16 %v7112_v45, %v7111_v2  ;;  %v6651_v11 = vpop.f32.mrf.mxu1  ;;  %v6819_v3 = vadd.f32 %v6818_v22, %v6650_v43  ;;  %v10222_v43 = vor.u32 %v10845_v4, %v10221_v59  ;;  %v10226_v45 = vor.u32 %v10842_v56, %v10223_v21  ;;  %v14943_v22 = vpop.permute.xlu2 %7193  ;;  %v16264_v56 = vld [vmem:[#allocation30_spill] sm:$0xff] }
0x10a9   :  { %v6652_v2 = vadd.f32 %v6651_v11, %v16261_v55  ;;  %16262 = vst [vmem:[#allocation28_spill] sm:$0xff] %v14943_v22  ;;  %v6486_v11 = vadd.f32 %v14885_v32, %v6317_v54  ;;  %v6319_v21 = vadd.f32 %v14890_v48, %v16264_v56  ;;  %v14962_v54 = vpop.f32.mrf.mxu2  ;;  %v10245_v32 = vld [vmem:[#allocation3 + $0x580] sm:$0xf]  ;;  %v10851_v48 = vld [vmem:[#allocation3 + $0x594] sm:$0xf0] }
0x10aa   :  { %16260 = vst [vmem:[#allocation24_spill] sm:$0xff] %v14930_v19  ;;  %7271 = vrot.lane.b32.xlu1 %v14930_v19, %s11200_s7  ;;  %7207 = vrot.lane.b32.xlu0 %v14930_v19, %s11202_s19  ;;  %v6921_v36 = vmax.f32 %v6819_v3, 0.0 }
0x10ac   :  { %v6985_v62 = vpack.c.bf16 %v6921_v36, %v6921_v36  ;;  %v14949_v23 = vpop.permute.xlu0 %7257 }
0x10ae   :  { %v7113_v55 = vunpack.c.l.b16 %v6985_v62  ;;  %v6488_v62 = vadd.f32 %v14900_v60, %v6319_v21  ;;  %v6322_v60 = vadd.f32 %v14903_v8, %v16266_v49 }
0x10af   :  { %v6820_v12 = vpop.f32.mrf.mxu3 }
0x10b0   :  { %v6821_v17 = vadd.f32 %v6820_v12, %v6652_v2  ;;  %v6654_v16 = vpop.f32.mrf.mxu1  ;;  %v14956_v63 = vpop.permute.xlu2 %7195 }
0x10b1   :  { %v6655_v2 = vadd.f32 %v6654_v16, %v6486_v11 }
0x10b2   :  { %v6922_v27 = vmax.f32 %v6821_v17, 0.0  ;;  %v10848_v17 = vld [vmem:[#allocation3 + $0x584] sm:$0xf] }
0x10b3   :  { %6693 = vmatmul.bf16.gmra.mxu1 %v10222_v43  ;;  %v10247_v43 = vld [vmem:[#allocation3 + $0x598] sm:$0xf0] }
0x10b4   :  { %v6986_v3 = vpack.c.bf16 %v6922_v27, %v6922_v27  ;;  %6862 = vmatmul.bf16.gmra.mxu3 %v10226_v45  ;;  %v14967_v45 = vpop.f32.mrf.mxu0 }
0x10b6   :  { %v7114_v59 = vunpack.c.l.b16 %v6986_v3 }
0x10b7   :  { %v6823_v4 = vpop.f32.mrf.mxu3 }
0x10b8   :  { %v14954_v12 = vpack.c.b16 %v7114_v59, %v7113_v55  ;;  %v6656_v18 = vpop.f32.mrf.mxu1  ;;  %v6824_v36 = vadd.f32 %v6823_v4, %v6655_v2  ;;  %v10246_v59 = vor.u32 %v10851_v48, %v10245_v32  ;;  %v10250_v4 = vor.u32 %v10848_v17, %v10247_v43  ;;  %v14969_v56 = vpop.permute.xlu2 %7197  ;;  %v16268_v43 = vld [vmem:[#allocation33_spill] sm:$0xff] }
0x10b9   :  { %v6657_v3 = vadd.f32 %v6656_v18, %v6488_v62  ;;  %v14977_v18 = vpop.f32.mrf.mxu2  ;;  %v6491_v62 = vadd.f32 %v14905_v26, %v6322_v60  ;;  %v6324_v49 = vadd.f32 %v14914_v51, %v16268_v43  ;;  %v10854_v51 = vld [vmem:[#allocation3 + $0x5b4] sm:$0xf] }
0x10ba   :  { %16265 = vst [vmem:[#allocation27_spill] sm:$0xff] %v14954_v12  ;;  %7209 = vrot.lane.b32.xlu2 %v14954_v12, %s11202_s19  ;;  %7273 = vrot.lane.b32.xlu0 %v14954_v12, %s11200_s7  ;;  %v6923_v16 = vmax.f32 %v6824_v36, 0.0 }
0x10bb   :  { %v6493_v26 = vadd.f32 %v14921_v25, %v6324_v49 }
0x10bc   :  { %v14965_v27 = vpop.permute.xlu0 %7259  ;;  %v6987_v21 = vpack.c.bf16 %v6923_v16, %v6923_v16  ;;  %v14982_v8 = vpop.f32.mrf.mxu0 }
0x10be   :  { %v7115_v32 = vunpack.c.l.b16 %v6987_v21 }
0x10bf   :  { %v6825_v11 = vpop.f32.mrf.mxu3 }
0x10c0   :  { %v6826_v55 = vadd.f32 %v6825_v11, %v6657_v3  ;;  %v6659_v2 = vpop.f32.mrf.mxu1 }
0x10c1   :  { %v6660_v16 = vadd.f32 %v6659_v2, %v6491_v62  ;;  %v14993_v21 = vpop.f32.mrf.mxu2 }
0x10c2   :  { %v6924_v19 = vmax.f32 %v6826_v55, 0.0  ;;  %7325 = vrot.lane.b32.xlu0 %v14969_v56, %s11200_s7  ;;  %v10269_v55 = vld [vmem:[#allocation3 + $0x5b0] sm:$0xf] }
0x10c3   :  { %6698 = vmatmul.bf16.gmra.mxu1 %v10246_v59  ;;  %v10857_v59 = vld [vmem:[#allocation3 + $0x5c4] sm:$0xf0] }
0x10c4   :  { %v6988_v44 = vpack.c.bf16 %v6924_v19, %v6924_v19  ;;  %6867 = vmatmul.bf16.gmra.mxu3 %v10250_v4  ;;  %v14975_v36 = vpop.permute.xlu0 %7309  ;;  %v10271_v4 = vld [vmem:[#allocation3 + $0x5c8] sm:$0xf0]  ;;  %v14995_v43 = vpop.permute.xlu2 %7199 }
0x10c5   :  { %16267 = vst [vmem:[#allocation30_spill] sm:$0xff] %v14975_v36  ;;  %v16270_v36 = vld [vmem:[#allocation34_spill] sm:$0xff]  ;;  %v14999_v49 = vpop.f32.mrf.mxu0 }
0x10c6   :  { %v7116_v48 = vunpack.c.l.b16 %v6988_v44  ;;  %v6327_v25 = vadd.f32 %v14925_v52, %v16270_v36 }
0x10c7   :  { %v6828_v17 = vpop.f32.mrf.mxu3 }
0x10c8   :  { %v14984_v3 = vpack.c.b16 %v7116_v48, %v7115_v32  ;;  %v6661_v19 = vpop.f32.mrf.mxu1  ;;  %v6829_v11 = vadd.f32 %v6828_v17, %v6660_v16  ;;  %v10270_v48 = vor.u32 %v10857_v59, %v10269_v55  ;;  %v10274_v17 = vor.u32 %v10854_v51, %v10271_v4  ;;  %v16272_v4 = vld [vmem:[#allocation35_spill] sm:$0xff] }
0x10c9   :  { %v6662_v2 = vadd.f32 %v6661_v19, %v6493_v26  ;;  %v6496_v26 = vadd.f32 %v14932_v58, %v6327_v25  ;;  %v6329_v52 = vadd.f32 %v14941_v10, %v16272_v4  ;;  %v10293_v58 = vld [vmem:[#allocation3 + $0x5e0] sm:$0xf]  ;;  %v10295_v25 = vld [vmem:[#allocation3 + $0x5f8] sm:$0xf0] }
0x10ca   :  { %16269 = vst [vmem:[#allocation29_spill] sm:$0xff] %v14984_v3  ;;  %7275 = vrot.lane.b32.xlu2 %v14984_v3, %s11200_s7  ;;  %7211 = vrot.lane.b32.xlu1 %v14984_v3, %s11202_s19  ;;  %v6925_v60 = vmax.f32 %v6829_v11, 0.0 }
0x10cc   :  { %v14991_v44 = vpop.permute.xlu0 %7261  ;;  %v6989_v12 = vpack.c.bf16 %v6925_v60, %v6925_v60  ;;  %v15010_v60 = vpop.f32.mrf.mxu2 }
0x10ce   :  { %v7117_v55 = vunpack.c.l.b16 %v6989_v12  ;;  %v10863_v12 = vld [vmem:[#allocation3 + $0x5f4] sm:$0xf0] }
0x10cf   :  { %v6830_v62 = vpop.f32.mrf.mxu3 }
0x10d0   :  { %v6831_v32 = vadd.f32 %v6830_v62, %v6662_v2  ;;  %v6664_v16 = vpop.f32.mrf.mxu1 }
0x10d1   :  { %v6665_v36 = vadd.f32 %v6664_v16, %v6496_v26 }
0x10d2   :  { %v6926_v3 = vmax.f32 %v6831_v32, 0.0  ;;  %7327 = vrot.lane.b32.xlu2 %v14995_v43, %s11200_s7 }
0x10d3   :  { %6703 = vmatmul.bf16.gmra.mxu1 %v10270_v48  ;;  %v15015_v48 = vpop.f32.mrf.mxu0 }
0x10d4   :  { %v6990_v19 = vpack.c.bf16 %v6926_v3, %v6926_v3  ;;  %6872 = vmatmul.bf16.gmra.mxu3 %v10274_v17  ;;  %v15003_v11 = vpop.permute.xlu0 %7311  ;;  %v6498_v3 = vadd.f32 %v14947_v34, %v6329_v52  ;;  %v10860_v17 = vld [vmem:[#allocation3 + $0x5e4] sm:$0xf]  ;;  %v6341_v52 = vpop.f32.mrf.mxu2 }
0x10d5   :  { %16271 = vst [vmem:[#allocation33_spill] sm:$0xff] %v15003_v11  ;;  %v10298_v4 = vor.u32 %v10860_v17, %v10295_v25  ;;  %v16274_v25 = vld [vmem:[#allocation37_spill] sm:$0xff] }
0x10d6   :  { %v7118_v59 = vunpack.c.l.b16 %v6990_v19 }
0x10d7   :  { %v6833_v51 = vpop.f32.mrf.mxu3 }
0x10d8   :  { %v15008_v2 = vpack.c.b16 %v7118_v59, %v7117_v55  ;;  %v6666_v62 = vpop.f32.mrf.mxu1  ;;  %v6834_v32 = vadd.f32 %v6833_v51, %v6665_v36  ;;  %v10294_v59 = vor.u32 %v10863_v12, %v10293_v58  ;;  %v16273_v36 = vld [vmem:[#allocation36_spill] sm:$0xff] }
0x10d9   :  { %v6667_v10 = vadd.f32 %v6666_v62, %v6498_v3  ;;  %v6332_v11 = vadd.f32 %v14962_v54, %v16273_v36  ;;  %v6334_v54 = vadd.f32 %v14977_v18, %v16274_v25 }
0x10da   :  { %7277 = vrot.lane.b32.xlu1 %v15008_v2, %s11200_s7  ;;  %v6927_v19 = vmax.f32 %v6834_v32, 0.0 }
0x10db   :  { %v6501_v62 = vadd.f32 %v14967_v45, %v6332_v11  ;;  %v15024_v32 = vpop.f32.mrf.mxu0 }
0x10dc   :  { %v15017_v16 = vpop.permute.xlu0 %7263  ;;  %v6991_v22 = vpack.c.bf16 %v6927_v19, %v6927_v19 }
0x10de   :  { %v7119_v3 = vunpack.c.l.b16 %v6991_v22  ;;  %v6343_v22 = vpop.f32.mrf.mxu2 }
0x10df   :  { %v6835_v26 = vpop.f32.mrf.mxu3 }
0x10e0   :  { %v6836_v55 = vadd.f32 %v6835_v26, %v6667_v10  ;;  %v6669_v51 = vpop.f32.mrf.mxu1  ;;  %v15032_v26 = vpop.permute.xlu2 %7201 }
0x10e1   :  { %v6670_v19 = vadd.f32 %v6669_v51, %v6501_v62 }
0x10e2   :  { %v6928_v34 = vmax.f32 %v6836_v55, 0.0  ;;  %7213 = vrot.lane.b32.xlu1 %v15008_v2, %s11202_s19 }
0x10e3   :  { %6708 = vmatmul.bf16.gmra.mxu1 %v10294_v59 }
0x10e4   :  { %v6992_v37 = vpack.c.bf16 %v6928_v34, %v6928_v34  ;;  %6877 = vmatmul.bf16.gmra.mxu3 %v10298_v4  ;;  %v6512_v34 = vpop.f32.mrf.mxu0 }
0x10e6   :  { %v7120_v58 = vunpack.c.l.b16 %v6992_v37  ;;  %v6503_v37 = vadd.f32 %v14982_v8, %v6334_v54  ;;  %v7486_v54 = vsel %vm7427_vm7, %v14844_v15, %v15017_v16 }
0x10e7   :  { %v6838_v12 = vpop.f32.mrf.mxu3  ;;  %v15026_v17 = vpop.permute.xlu0 %7313 }
0x10e8   :  { %v15030_v10 = vpack.c.b16 %v7120_v58, %v7119_v3  ;;  %v6671_v55 = vpop.f32.mrf.mxu1  ;;  %v6839_v59 = vadd.f32 %v6838_v12, %v6670_v19  ;;  %v16275_v3 = vld [vmem:[#allocation38_spill] sm:$0xff] }
0x10e9   :  { %v6672_v18 = vadd.f32 %v6671_v55, %v6503_v37  ;;  %v6337_v58 = vadd.f32 %v14993_v21, %v16275_v3  ;;  %v6346_v37 = vpop.f32.mrf.mxu2  ;;  %v7482_v21 = vsel %vm7427_vm7, %v14828_v33, %v14991_v44 }
0x10ea   :  { %7215 = vrot.lane.b32.xlu2 %v15030_v10, %s11202_s19  ;;  %7329 = vrot.lane.b32.xlu1 %v15032_v26, %s11200_s7  ;;  %v6929_v45 = vmax.f32 %v6839_v59, 0.0 }
0x10eb   :  { %7279 = vrot.lane.b32.xlu0 %v15030_v10, %s11200_s7  ;;  %v6506_v19 = vadd.f32 %v14999_v49, %v6337_v58  ;;  %v7474_v58 = vsel %vm7427_vm7, %v14796_v7, %v14949_v23  ;;  %v6344_v7 = vadd.f32 %v6343_v22, %v14656_v1 }
0x10ec   :  { %v6993_v12 = vpack.c.bf16 %v6929_v45, %v6929_v45  ;;  %v6515_v49 = vpop.f32.mrf.mxu0 }
0x10ee   :  { %v7121_v55 = vunpack.c.l.b16 %v6993_v12 }
0x10ef   :  { %v6840_v11 = vpop.f32.mrf.mxu3  ;;  %v15041_v4 = vpop.permute.xlu0 %7265 }
0x10f0   :  { %v6841_v51 = vadd.f32 %v6840_v11, %v6672_v18  ;;  %v7490_v36 = vsel %vm7427_vm7, %v14867_v35, %v15041_v4  ;;  %v6674_v62 = vpop.f32.mrf.mxu1  ;;  %v6339_v18 = vadd.f32 %v15010_v60, %v14652_v20  ;;  %v7478_v20 = vsel %vm7427_vm7, %v14812_v61, %v14965_v27 }
0x10f1   :  { %7967 = vmatpush.bf16.msra.mxu2 %v7490_v36  ;;  %v6675_v11 = vadd.f32 %v6674_v62, %v6506_v19  ;;  %v6348_v12 = vpop.f32.mrf.mxu2  ;;  %v7470_v61 = vsel %vm7427_vm7, %v14780_v14, %v14938_v50 }
0x10f2   :  { %v6930_v25 = vmax.f32 %v6841_v51, 0.0  ;;  %v6508_v36 = vadd.f32 %v15015_v48, %v6339_v18 }
0x10f4   :  { %v6994_v8 = vpack.c.bf16 %v6930_v25, %v6930_v25 }
0x10f5   :  { %7968 = vmatpush.bf16.msra.mxu2 %v7486_v54 }
0x10f6   :  { %v7122_v59 = vunpack.c.l.b16 %v6994_v8  ;;  %v6342_v8 = vadd.f32 %v6341_v52, %v14654_v46  ;;  %v7466_v46 = vsel %vm7427_vm7, %v14768_v30, %v14923_v28 }
0x10f7   :  { %v6843_v35 = vpop.f32.mrf.mxu3 }
0x10f8   :  { %v15057_v45 = vpack.c.b16 %v7122_v59, %v7121_v55  ;;  %v6676_v51 = vpop.f32.mrf.mxu1  ;;  %v6844_v15 = vadd.f32 %v6843_v35, %v6675_v11  ;;  %v6517_v55 = vpop.f32.mrf.mxu0  ;;  %v6511_v59 = vadd.f32 %v15024_v32, %v6342_v8  ;;  %v6513_v32 = vadd.f32 %v6512_v34, %v6344_v7 }
0x10f9   :  { %7969 = vmatpush.bf16.msra.mxu2 %v7482_v21  ;;  %v6677_v60 = vadd.f32 %v6676_v51, %v6508_v36  ;;  %v6351_v14 = vpop.f32.mrf.mxu2  ;;  %v7462_v36 = vsel %vm7427_vm7, %v14760_v24, %v14916_v53  ;;  %v6349_v24 = vadd.f32 %v6348_v12, %v14661_v57 }
0x10fa   :  { %7217 = vrot.lane.b32.xlu2 %v15057_v45, %s11202_s19  ;;  %7281 = vrot.lane.b32.xlu0 %v15057_v45, %s11200_s7  ;;  %v6931_v33 = vmax.f32 %v6844_v15, 0.0  ;;  %v6352_v57 = vadd.f32 %v6351_v14, %v14664_v29 }
0x10fc   :  { %v6995_v54 = vpack.c.bf16 %v6931_v33, %v6931_v33 }
0x10fd   :  { %7970 = vmatpush.bf16.msra.mxu2 %v7478_v20 }
0x10fe   :  { %v7123_v35 = vunpack.c.l.b16 %v6995_v54 }
0x10ff   :  { %v6845_v62 = vpop.f32.mrf.mxu3 }
0x1100   :  { %v6846_v3 = vadd.f32 %v6845_v62, %v6677_v60  ;;  %v6679_v25 = vpop.f32.mrf.mxu1  ;;  %v6520_v20 = vpop.f32.mrf.mxu0  ;;  %v6347_v62 = vadd.f32 %v6346_v37, %v14659_v41  ;;  %v6518_v41 = vadd.f32 %v6517_v55, %v6349_v24 }
0x1101   :  { %7971 = vmatpush.bf16.msra.mxu2 %v7474_v58  ;;  %v6680_v21 = vadd.f32 %v6679_v25, %v6511_v59  ;;  %v15087_v25 = vpop.permute.xlu1 %7187  ;;  %v6353_v54 = vpop.f32.mrf.mxu2 }
0x1102   :  { %v6932_v48 = vmax.f32 %v6846_v3, 0.0  ;;  %v6516_v34 = vadd.f32 %v6515_v49, %v6347_v62 }
0x1104   :  { %v6996_v19 = vpack.c.bf16 %v6932_v48, %v6932_v48 }
0x1105   :  { %7972 = vmatpush.bf16.msra.mxu2 %v7470_v61 }
0x1106   :  { %v7124_v18 = vunpack.c.l.b16 %v6996_v19 }
0x1107   :  { %v6848_v11 = vpop.f32.mrf.mxu3 }
0x1108   :  { %v15079_v52 = vpack.c.b16 %v7124_v18, %v7123_v35  ;;  %v6681_v51 = vpop.f32.mrf.mxu1  ;;  %v6849_v15 = vadd.f32 %v6848_v11, %v6680_v21  ;;  %v6522_v18 = vpop.f32.mrf.mxu0 }
0x1109   :  { %7973 = vmatpush.bf16.msra.mxu2 %v7466_v46  ;;  %v6682_v22 = vadd.f32 %v6681_v51, %v6513_v32  ;;  %v15094_v37 = vpop.permute.xlu1 %7189  ;;  %v6356_v49 = vpop.f32.mrf.mxu2 }
0x110a   :  { %7283 = vrot.lane.b32.xlu0 %v15079_v52, %s11200_s7  ;;  %v6933_v1 = vmax.f32 %v6849_v15, 0.0 }
0x110c   :  { %v6997_v3 = vpack.c.bf16 %v6933_v1, %v6933_v1 }
0x110d   :  { %7974 = vmatpush.bf16.msra.mxu2 %v7462_v36 }
0x110e   :  { %v7125_v48 = vunpack.c.l.b16 %v6997_v3  ;;  %v6354_v3 = vadd.f32 %v6353_v54, %v14667_v0  ;;  %v6357_v0 = vadd.f32 %v6356_v49, %v14670_v39 }
0x110f   :  { %v6850_v33 = vpop.f32.mrf.mxu3 }
0x1110   :  { %v6851_v30 = vadd.f32 %v6850_v33, %v6682_v22  ;;  %v6684_v60 = vpop.f32.mrf.mxu1  ;;  %v6525_v1 = vpop.f32.mrf.mxu0  ;;  %v6523_v29 = vadd.f32 %v6522_v18, %v6354_v3 }
0x1111   :  { %v6685_v59 = vadd.f32 %v6684_v60, %v6516_v34  ;;  %v15097_v22 = vpop.permute.xlu1 %7307  ;;  %v6358_v34 = vpop.f32.mrf.mxu2 }
0x1112   :  { %v6934_v58 = vmax.f32 %v6851_v30, 0.0  ;;  %v6521_v30 = vadd.f32 %v6520_v20, %v6352_v57 }
0x1114   :  { %v6998_v8 = vpack.c.bf16 %v6934_v58, %v6934_v58 }
0x1116   :  { %v7126_v19 = vunpack.c.l.b16 %v6998_v8 }
0x1117   :  { %v6853_v61 = vpop.f32.mrf.mxu3 }
0x1118   :  { %v15090_v35 = vpack.c.b16 %v7126_v19, %v7125_v48  ;;  %v6686_v11 = vpop.f32.mrf.mxu1  ;;  %v6854_v7 = vadd.f32 %v6853_v61, %v6685_v59  ;;  %v6527_v61 = vpop.f32.mrf.mxu0 }
0x1119   :  { %v6687_v46 = vadd.f32 %v6686_v11, %v6518_v41  ;;  %v15104_v14 = vpop.permute.xlu1 %7267 }
0x111a   :  { %7285 = vrot.lane.b32.xlu0 %v15090_v35, %s11200_s7  ;;  %v6935_v21 = vmax.f32 %v6854_v7, 0.0 }
0x111c   :  { %v6999_v12 = vpack.c.bf16 %v6935_v21, %v6935_v21  ;;  %v6361_v21 = vpop.f32.mrf.mxu2 }
0x111e   :  { %v7127_v60 = vunpack.c.l.b16 %v6999_v12 }
0x111f   :  { %v6855_v51 = vpop.f32.mrf.mxu3 }
0x1120   :  { %v6856_v15 = vadd.f32 %v6855_v51, %v6687_v46  ;;  %v6689_v32 = vpop.f32.mrf.mxu1  ;;  %v6530_v18 = vpop.f32.mrf.mxu0 }
0x1121   :  { %v6690_v58 = vadd.f32 %v6689_v32, %v6521_v30  ;;  %v15107_v46 = vpop.permute.xlu1 %7205 }
0x1122   :  { %v6936_v36 = vmax.f32 %v6856_v15, 0.0  ;;  %v6526_v15 = vadd.f32 %v6525_v1, %v6357_v0 }
0x1124   :  { %v7000_v33 = vpack.c.bf16 %v6936_v36, %v6936_v36  ;;  %v6359_v36 = vadd.f32 %v6358_v34, %v14673_v38  ;;  %v6363_v1 = vpop.f32.mrf.mxu2 }
0x1126   :  { %v7128_v62 = vunpack.c.l.b16 %v7000_v33  ;;  %v6528_v39 = vadd.f32 %v6527_v61, %v6359_v36 }
0x1127   :  { %v6858_v55 = vpop.f32.mrf.mxu3 }
0x1128   :  { %v15100_v8 = vpack.c.b16 %v7128_v62, %v7127_v60  ;;  %v6691_v48 = vpop.f32.mrf.mxu1  ;;  %v6859_v19 = vadd.f32 %v6858_v55, %v6690_v58  ;;  %v6532_v38 = vpop.f32.mrf.mxu0 }
0x1129   :  { %v6692_v20 = vadd.f32 %v6691_v48, %v6523_v29  ;;  %v15116_v49 = vpop.permute.xlu1 %7271 }
0x112a   :  { %7287 = vrot.lane.b32.xlu0 %v15100_v8, %s11200_s7  ;;  %v6937_v24 = vmax.f32 %v6859_v19, 0.0  ;;  %v6362_v19 = vadd.f32 %v6361_v21, %v14676_v42 }
0x112c   :  { %v7001_v54 = vpack.c.bf16 %v6937_v24, %v6937_v24 }
0x112e   :  { %v7129_v32 = vunpack.c.l.b16 %v7001_v54  ;;  %v6366_v54 = vpop.f32.mrf.mxu2 }
0x112f   :  { %v6860_v59 = vpop.f32.mrf.mxu3 }
0x1130   :  { %v6861_v11 = vadd.f32 %v6860_v59, %v6692_v20  ;;  %v6694_v7 = vpop.f32.mrf.mxu1  ;;  %v15119_v20 = vpop.permute.xlu2 %7269 }
0x1131   :  { %v6695_v33 = vadd.f32 %v6694_v7, %v6526_v15  ;;  %v6531_v7 = vadd.f32 %v6530_v18, %v6362_v19  ;;  %v6535_v21 = vpop.f32.mrf.mxu0 }
0x1132   :  { %v6938_v41 = vmax.f32 %v6861_v11, 0.0 }
0x1134   :  { %v7002_v51 = vpack.c.bf16 %v6938_v41, %v6938_v41 }
0x1136   :  { %v7130_v57 = vunpack.c.l.b16 %v7002_v51  ;;  %v6364_v51 = vadd.f32 %v6363_v1, %v14679_v13  ;;  %v10301_v13 = vld [vmem:[%s16098_s11] sm:$0xf] }
0x1137   :  { %v6863_v12 = vpop.f32.mrf.mxu3 }
0x1138   :  { %v15110_v30 = vpack.c.b16 %v7130_v57, %v7129_v32  ;;  %v6696_v60 = vpop.f32.mrf.mxu1  ;;  %v6864_v62 = vadd.f32 %v6863_v12, %v6695_v33  ;;  %v15126_v12 = vpop.permute.xlu0 %7207  ;;  %v6533_v18 = vadd.f32 %v6532_v38, %v6364_v51  ;;  %v6367_v38 = vadd.f32 %v6366_v54, %v14682_v47 }
0x1139   :  { %v6697_v3 = vadd.f32 %v6696_v60, %v6528_v39  ;;  %v15132_v36 = vpop.permute.xlu2 %7209  ;;  %v10870_v60 = vld [vmem:[%s16098_s11 + $0x2c] sm:$0xf0] }
0x113a   :  { %7225 = vrot.lane.b32.xlu2 %v15110_v30, %s11202_s19  ;;  %7289 = vrot.lane.b32.xlu0 %v15110_v30, %s11200_s7  ;;  %v6939_v55 = vmax.f32 %v6864_v62, 0.0  ;;  %v10302_v62 = vor.u32 %v10870_v60, %v10301_v13 }
0x113c   :  { %v7003_v29 = vpack.c.bf16 %v6939_v55, %v6939_v55  ;;  %v15121_v59 = vpop.permute.xlu1 %7211  ;;  %7956 = vmatmul.bf16.vlgmr.msrb.gmra.mxu2 %v10302_v62 }
0x113e   :  { %v7131_v61 = vunpack.c.l.b16 %v7003_v29 }
0x113f   :  { %v6865_v58 = vpop.f32.mrf.mxu3 }
0x1140   :  { %v6866_v48 = vadd.f32 %v6865_v58, %v6697_v3  ;;  %v6699_v34 = vpop.f32.mrf.mxu1  ;;  %v6368_v58 = vpop.f32.mrf.mxu2 }
0x1141   :  { %v6700_v15 = vadd.f32 %v6699_v34, %v6531_v7  ;;  %v15143_v34 = vpop.permute.xlu0 %7273 }
0x1142   :  { %v6940_v24 = vmax.f32 %v6866_v48, 0.0 }
0x1144   :  { %v7004_v11 = vpack.c.bf16 %v6940_v24, %v6940_v24  ;;  %v15147_v24 = vpop.permute.xlu2 %7275 }
0x1146   :  { %v7132_v0 = vunpack.c.l.b16 %v7004_v11 }
0x1147   :  { %v6868_v41 = vpop.f32.mrf.mxu3 }
0x1148   :  { %v15124_v32 = vpack.c.b16 %v7132_v0, %v7131_v61  ;;  %v6701_v57 = vpop.f32.mrf.mxu1  ;;  %v6869_v42 = vadd.f32 %v6868_v41, %v6700_v15  ;;  %v6537_v61 = vpop.f32.mrf.mxu0  ;;  %v6536_v0 = vadd.f32 %v6535_v21, %v6367_v38 }
0x1149   :  { %v6702_v1 = vadd.f32 %v6701_v57, %v6533_v18  ;;  %v6369_v57 = vadd.f32 %v6368_v58, %v14685_v31  ;;  %v6371_v13 = vpop.f32.mrf.mxu2  ;;  %v7326_v62 = vpop.permute.xlu0 %7325 }
0x114a   :  { %7227 = vrot.lane.b32.xlu1 %v15124_v32, %s11202_s19  ;;  %7291 = vrot.lane.b32.xlu0 %v15124_v32, %s11200_s7  ;;  %v6941_v39 = vmax.f32 %v6869_v42, 0.0 }
0x114b   :  { %v6538_v60 = vadd.f32 %v6537_v61, %v6369_v57 }
0x114c   :  { %v15134_v33 = vpop.permute.xlu1 %7277  ;;  %v7005_v19 = vpack.c.bf16 %v6941_v39, %v6941_v39 }
0x114e   :  { %v7133_v41 = vunpack.c.l.b16 %v7005_v19 }
0x114f   :  { %v6870_v55 = vpop.f32.mrf.mxu3 }
0x1150   :  { %v6871_v3 = vadd.f32 %v6870_v55, %v6702_v1  ;;  %v6704_v48 = vpop.f32.mrf.mxu1  ;;  %v7328_v1 = vpop.permute.xlu2 %7327 }
0x1151   :  { %v6705_v47 = vadd.f32 %v6704_v48, %v6536_v0  ;;  %v7614_v19 = vsel %vm7427_vm7, %v14995_v43, %v7328_v1 }
0x1152   :  { %v6942_v29 = vmax.f32 %v6871_v3, 0.0  ;;  %7323 = vrot.lane.b32.xlu1 %v14956_v63, %s11200_s7  ;;  %v6540_v3 = vpop.f32.mrf.mxu0 }
0x1154   :  { %v7006_v11 = vpack.c.bf16 %v6942_v29, %v6942_v29  ;;  %v15149_v7 = vpop.permute.xlu1 %7213  ;;  %v6372_v29 = vadd.f32 %v6371_v13, %v14688_v40 }
0x1156   :  { %v7134_v51 = vunpack.c.l.b16 %v7006_v11 }
0x1157   :  { %v6873_v15 = vpop.f32.mrf.mxu3 }
0x1158   :  { %v15152_v54 = vpack.c.b16 %v7134_v51, %v7133_v41  ;;  %v6706_v42 = vpop.f32.mrf.mxu1  ;;  %v6874_v18 = vadd.f32 %v6873_v15, %v6705_v47  ;;  %v6373_v41 = vpop.f32.mrf.mxu2  ;;  %v7610_v51 = vsel %vm7427_vm7, %v14969_v56, %v7326_v62  ;;  %v6541_v15 = vadd.f32 %v6540_v3, %v6372_v29 }
0x1159   :  { %v6707_v55 = vadd.f32 %v6706_v42, %v6538_v60  ;;  %v6374_v47 = vadd.f32 %v6373_v41, %v14691_v6  ;;  %v15185_v3 = vpop.permute.xlu2 %7215  ;;  %v16277_v41 = vld [vmem:[#allocation28_spill] sm:$0xff] }
0x115a   :  { %7301 = vrot.lane.b32.xlu1 %v14777_v5, %s11200_s7  ;;  %7293 = vrot.lane.b32.xlu0 %v15152_v54, %s11200_s7  ;;  %v6943_v31 = vmax.f32 %v6874_v18, 0.0  ;;  %v6542_v13 = vpop.f32.mrf.mxu0 }
0x115b   :  { %v6543_v56 = vadd.f32 %v6542_v13, %v6374_v47  ;;  %v16282_v47 = vld [vmem:[#allocation39_spill] sm:$0xff] }
0x115c   :  { %v7330_v21 = vpop.permute.xlu1 %7329  ;;  %v7007_v11 = vpack.c.bf16 %v6943_v31, %v6943_v31 }
0x115d   :  { %v7618_v39 = vsel %vm7427_vm7, %v15032_v26, %v7330_v21  ;;  %v15167_v26 = vpop.permute.xlu0 %7279 }
0x115e   :  { %8043 = vmatpush.bf16.msrb.mxu0 %v7618_v39  ;;  %v7135_v43 = vunpack.c.l.b16 %v7007_v11 }
0x115f   :  { %v6875_v58 = vpop.f32.mrf.mxu3 }
0x1160   :  { %v6876_v48 = vadd.f32 %v6875_v58, %v6707_v55  ;;  %v6709_v38 = vpop.f32.mrf.mxu1 }
0x1161   :  { %v6710_v42 = vadd.f32 %v6709_v38, %v6541_v15  ;;  %v16276_v38 = vld [vmem:[#allocation22_spill] sm:$0xff]  ;;  %v16279_v15 = vld [vmem:[#allocation27_spill] sm:$0xff] }
0x1162   :  { %v6944_v61 = vmax.f32 %v6876_v48, 0.0  ;;  %7299 = vrot.lane.b32.xlu1 %v14770_v9, %s11200_s7  ;;  %8044 = vmatpush.bf16.msrb.mxu0 %v7614_v19  ;;  %v7518_v19 = vsel %vm7427_vm7, %v15030_v10, %v15167_v26 }
0x1163   :  { %7229 = vrot.lane.b32.xlu0 %v15152_v54, %s11202_s19 }
0x1164   :  { %v7008_v0 = vpack.c.bf16 %v6944_v61, %v6944_v61  ;;  %v7514_v61 = vsel %vm7427_vm7, %v15008_v2, %v15134_v33  ;;  %v7506_v2 = vsel %vm7427_vm7, %v16279_v15, %v15143_v34 }
0x1166   :  { %v7136_v57 = vunpack.c.l.b16 %v7008_v0  ;;  %8045 = vmatpush.bf16.msrb.mxu0 %v7610_v51  ;;  %v16278_v51 = vld [vmem:[#allocation29_spill] sm:$0xff] }
0x1167   :  { %v6878_v40 = vpop.f32.mrf.mxu3  ;;  %v7510_v10 = vsel %vm7427_vm7, %v16278_v51, %v15147_v24 }
0x1168   :  { %v15172_v18 = vpack.c.b16 %v7136_v57, %v7135_v43  ;;  %v6879_v60 = vadd.f32 %v6878_v40, %v6710_v42  ;;  %v6711_v21 = vpop.f32.mrf.mxu1  ;;  %v16280_v43 = vld [vmem:[#allocation46_spill] sm:$0xff]  ;;  %v16281_v57 = vld [vmem:[#allocation24_spill] sm:$0xff]  ;;  %v16283_v42 = vld [vmem:[#allocation21_spill] sm:$0xff] }
0x1169   :  { %v6712_v1 = vadd.f32 %v6711_v21, %v6543_v56  ;;  %v7502_v40 = vsel %vm7427_vm7, %v16281_v57, %v15116_v49  ;;  %v7498_v13 = vsel %vm7427_vm7, %v16283_v42, %v15119_v20  ;;  %v15230_v21 = vpop.permute.xlu2 %7217  ;;  %v10349_v56 = vld [vmem:[%s16098_s11 + $0x60] sm:$0xf]  ;;  %v10871_v42 = vld [vmem:[%s16098_s11 + $0x34] sm:$0xf0] }
0x116a   :  { %7231 = vrot.lane.b32.xlu2 %v15172_v18, %s11202_s19  ;;  %7317 = vrot.lane.b32.xlu1 %v15094_v37, %s11200_s7  ;;  %v6945_v39 = vmax.f32 %v6879_v60, 0.0  ;;  %v7494_v60 = vsel %vm7427_vm7, %v16276_v38, %v15104_v14 }
0x116b   :  { %7295 = vrot.lane.b32.xlu0 %v15172_v18, %s11200_s7 }
0x116c   :  { %v15180_v62 = vpop.permute.xlu0 %7281  ;;  %v7009_v58 = vpack.c.bf16 %v6945_v39, %v6945_v39 }
0x116d   :  { %v7522_v6 = vsel %vm7427_vm7, %v15057_v45, %v15180_v62 }
0x116e   :  { %7986 = vmatpush.bf16.msrb.mxu2 %v7522_v6  ;;  %v7137_v29 = vunpack.c.l.b16 %v7009_v58  ;;  %v10882_v6 = vld [vmem:[%s16098_s11 + $0x8c] sm:$0xf0] }
0x116f   :  { %v6880_v31 = vpop.f32.mrf.mxu3  ;;  %v10350_v39 = vor.u32 %v10882_v6, %v10349_v56 }
0x1170   :  { %v6881_v55 = vadd.f32 %v6880_v31, %v6712_v1  ;;  %v10864_v31 = vld [vmem:[%s16098_s11 + $0x4] sm:$0xf] }
0x1171   :  { %7961 = vmatmul.bf16.gmra.mxu2 %v10350_v39 }
0x1172   :  { %v6946_v48 = vmax.f32 %v6881_v55, 0.0  ;;  %7203 = vrot.lane.b32.xlu2 %v16276_v38, %s11202_s19  ;;  %7343 = vrot.lane.b32.xlu1 %v15185_v3, %s11200_s7  ;;  %v10303_v55 = vld [vmem:[%s16098_s11 + $0x30] sm:$0xf0] }
0x1173   :  { %7987 = vmatpush.bf16.msrb.mxu2 %v7518_v19  ;;  %v10306_v58 = vor.u32 %v10864_v31, %v10303_v55  ;;  %v10876_v19 = vld [vmem:[%s16098_s11 + $0x64] sm:$0xf] }
0x1174   :  { %v7010_v45 = vpack.c.bf16 %v6946_v48, %v6946_v48 }
0x1176   :  { %v7138_v11 = vunpack.c.l.b16 %v7010_v45  ;;  %v10351_v45 = vld [vmem:[%s16098_s11 + $0x90] sm:$0xf0] }
0x1177   :  { %7988 = vmatpush.bf16.msrb.mxu2 %v7514_v61  ;;  %v10354_v61 = vor.u32 %v10876_v19, %v10351_v45  ;;  %v10883_v19 = vld [vmem:[%s16098_s11 + $0x94] sm:$0xf0] }
0x1178   :  { %v15197_v0 = vpack.c.b16 %v7138_v11, %v7137_v29 }
0x117a   :  { %7321 = vrot.lane.b32.xlu2 %v16277_v41, %s11200_s7  ;;  %7339 = vrot.lane.b32.xlu1 %v15121_v59, %s11200_s7 }
0x117b   :  { %7297 = vrot.lane.b32.xlu0 %v15197_v0, %s11200_s7  ;;  %7989 = vmatpush.bf16.msrb.mxu2 %v7510_v10 }
0x117c   :  { %v15250_v1 = vpop.permute.xlu0 %7283 }
0x117f   :  { %7990 = vmatpush.bf16.msrb.mxu2 %v7506_v2 }
0x1181   :  { %7975 = vmatmul.bf16.vlgmr.msra.gmra.mxu2 %v10306_v58  ;;  %v10357_v58 = vld [vmem:[%s16098_s11 + $0x68] sm:$0xf] }
0x1182   :  { %7319 = vrot.lane.b32.xlu2 %v16280_v43, %s11200_s7  ;;  %7333 = vrot.lane.b32.xlu1 %v15107_v46, %s11200_s7 }
0x1183   :  { %7303 = vrot.lane.b32.xlu0 %v16282_v47, %s11200_s7  ;;  %7991 = vmatpush.bf16.msrb.mxu2 %v7502_v40  ;;  %v10309_v40 = vld [vmem:[%s16098_s11 + $0x8] sm:$0xf] }
0x1184   :  { %v10310_v56 = vor.u32 %v10871_v42, %v10309_v40 }
0x1187   :  { %7992 = vmatpush.bf16.msrb.mxu2 %v7498_v13 }
0x118a   :  { %7233 = vrot.lane.b32.xlu2 %v15197_v0, %s11202_s19 }
0x118b   :  { %7223 = vrot.lane.b32.xlu0 %v15100_v8, %s11202_s19  ;;  %7993 = vmatpush.bf16.msrb.mxu2 %v7494_v60 }
0x118c   :  { %v15260_v48 = vpop.permute.xlu0 %7285 }
0x1191   :  { %7980 = vmatmul.bf16.gmra.mxu2 %v10354_v61  ;;  %v10358_v61 = vor.u32 %v10883_v19, %v10357_v58  ;;  %v16285_v58 = vld [vmem:[#allocation18_spill] sm:$0xff] }
0x1192   :  { %7345 = vrot.lane.b32.xlu2 %v15230_v21, %s11200_s7 }
0x1193   :  { %7221 = vrot.lane.b32.xlu0 %v15090_v35, %s11202_s19 }
0x1194   :  { %v15270_v29 = vpop.permute.xlu2 %7225 }
0x119a   :  { %7341 = vrot.lane.b32.xlu2 %v15149_v7, %s11200_s7 }
0x119b   :  { %7219 = vrot.lane.b32.xlu0 %v15079_v52, %s11202_s19 }
0x119c   :  { %v15262_v38 = vpop.permute.xlu0 %7287 }
0x11a1   :  { %7994 = vmatmul.bf16.vlgmr.msrb.gmra.mxu2 %v10310_v56 }
0x11a2   :  { %7335 = vrot.lane.b32.xlu2 %v15126_v12, %s11200_s7 }
0x11a3   :  { %7315 = vrot.lane.b32.xlu0 %v15087_v25, %s11200_s7 }
0x11ab   :  { %7337 = vrot.lane.b32.xlu0 %v15132_v36, %s11200_s7 }
0x11ac   :  { %v15274_v51 = vpop.permute.xlu0 %7289 }
0x11b1   :  { %7999 = vmatmul.bf16.gmra.mxu2 %v10358_v61  ;;  %v16286_v61 = vld [vmem:[#allocation32_spill] sm:$0xff] }
0x11bc   :  { %v15272_v11 = vpop.permute.xlu1 %7227  ;;  %v15280_v57 = vpop.permute.xlu0 %7291 }
0x11c4   :  { %v15276_v10 = vpop.permute.xlu2 %7231  ;;  %v7324_v15 = vpop.permute.xlu1 %7323 }
0x11c5   :  { %v7606_v2 = vsel %vm7427_vm7, %v14956_v63, %v7324_v15 }
0x11c6   :  { %8046 = vmatpush.bf16.msrb.mxu0 %v7606_v2 }
0x11cc   :  { %v15288_v13 = vpop.permute.xlu2 %7203  ;;  %v15290_v60 = vpop.permute.xlu1 %7301 }
0x11cd   :  { %7331 = vrot.lane.b32.xlu0 %v15288_v13, %s11200_s7  ;;  %v15294_v63 = vpop.permute.xlu0 %7293 }
0x11ce   :  { %v7546_v19 = vsel %vm7427_vm7, %v15152_v54, %v15294_v63  ;;  %v7534_v54 = vsel %vm7427_vm7, %v15100_v8, %v15262_v38  ;;  %v10865_v8 = vld [vmem:[%s16098_s11 + $0xc] sm:$0xf] }
0x11d4   :  { %v7322_v6 = vpop.permute.xlu2 %7321  ;;  %v15296_v39 = vpop.permute.xlu1 %7299 }
0x11d5   :  { %7355 = vrot.lane.b32.xlu0 %v15272_v11, %s11200_s7  ;;  %v7602_v31 = vsel %vm7427_vm7, %v16277_v41, %v7322_v6  ;;  %v15302_v55 = vpop.permute.xlu0 %7229  ;;  %v16284_v6 = vld [vmem:[#allocation25_spill] sm:$0xff] }
0x11d6   :  { %8047 = vmatpush.bf16.msrb.mxu0 %v7602_v31 }
0x11dc   :  { %v7320_v45 = vpop.permute.xlu2 %7319  ;;  %v7318_v2 = vpop.permute.xlu1 %7317 }
0x11dd   :  { %v7598_v15 = vsel %vm7427_vm7, %v16280_v43, %v7320_v45  ;;  %v7594_v41 = vsel %vm7427_vm7, %v15094_v37, %v7318_v2  ;;  %v15316_v42 = vpop.permute.xlu0 %7295  ;;  %v7542_v45 = vsel %vm7427_vm7, %v15124_v32, %v15280_v57  ;;  %v7526_v2 = vsel %vm7427_vm7, %v15079_v52, %v15250_v1  ;;  %v16288_v52 = vld [vmem:[#allocation33_spill] sm:$0xff] }
0x11de   :  { %8048 = vmatpush.bf16.msrb.mxu0 %v7598_v15  ;;  %v7550_v37 = vsel %vm7427_vm7, %v15172_v18, %v15316_v42  ;;  %v7538_v18 = vsel %vm7427_vm7, %v15110_v30, %v15274_v51  ;;  %v7530_v30 = vsel %vm7427_vm7, %v15090_v35, %v15260_v48  ;;  %v10311_v15 = vld [vmem:[%s16098_s11 + $0x38] sm:$0xf0] }
0x11e2   :  { %8049 = vmatpush.bf16.msrb.mxu0 %v7594_v41  ;;  %v10314_v41 = vor.u32 %v10865_v8, %v10311_v15  ;;  %v10319_v8 = vld [vmem:[%s16098_s11 + $0x40] sm:$0xf0] }
0x11e4   :  { %v15314_v40 = vpop.permute.xlu2 %7233 }
0x11e5   :  { %7361 = vrot.lane.b32.xlu0 %v15314_v40, %s11200_s7 }
0x11ed   :  { %v15320_v56 = vpop.permute.xlu0 %7297  ;;  %7377 = vrot.lane.b32.xlu0 %v16284_v6, %s11200_s7 }
0x11ee   :  { %v7554_v43 = vsel %vm7427_vm7, %v15197_v0, %v15320_v56 }
0x11ef   :  { %8005 = vmatpush.bf16.msra.mxu2 %v7554_v43  ;;  %v16287_v43 = vld [vmem:[#allocation45_spill] sm:$0xff] }
0x11f3   :  { %8006 = vmatpush.bf16.msra.mxu2 %v7550_v37  ;;  %v7586_v37 = vsel %vm7427_vm7, %v16287_v43, %v15026_v17  ;;  %v16290_v17 = vld [vmem:[#allocation30_spill] sm:$0xff] }
0x11f4   :  { %v16292_v43 = vld [vmem:[#allocation42_spill] sm:$0xff] }
0x11f5   :  { %v7304_v31 = vpop.permute.xlu0 %7303  ;;  %7373 = vrot.lane.b32.xlu0 %v16285_v58, %s11200_s7 }
0x11f7   :  { %8007 = vmatpush.bf16.msra.mxu2 %v7546_v19  ;;  %v16289_v19 = vld [vmem:[#allocation20_spill] sm:$0xff] }
0x11fb   :  { %8008 = vmatpush.bf16.msra.mxu2 %v7542_v45  ;;  %v7582_v45 = vsel %vm7427_vm7, %v16289_v19, %v16288_v52  ;;  %v10877_v52 = vld [vmem:[%s16098_s11 + $0x6c] sm:$0xf]  ;;  %v10359_v19 = vld [vmem:[%s16098_s11 + $0x98] sm:$0xf0] }
0x11fd   :  { %v15338_v0 = vpop.permute.xlu0 %7223  ;;  %7391 = vrot.lane.b32.xlu0 %v15017_v16, %s11200_s7 }
0x11fe   :  { %7351 = vrot.lane.b32.xlu1 %v15338_v0, %s11200_s7 }
0x11ff   :  { %8009 = vmatpush.bf16.msra.mxu2 %v7538_v18  ;;  %v16291_v18 = vld [vmem:[#allocation23_spill] sm:$0xff] }
0x1203   :  { %8010 = vmatpush.bf16.msra.mxu2 %v7534_v54  ;;  %v7578_v54 = vsel %vm7427_vm7, %v16291_v18, %v16290_v17  ;;  %v16293_v17 = vld [vmem:[#allocation26_spill] sm:$0xff]  ;;  %v16294_v18 = vld [vmem:[#allocation40_spill] sm:$0xff] }
0x1205   :  { %v15350_v32 = vpop.permute.xlu0 %7221  ;;  %7367 = vrot.lane.b32.xlu0 %v16286_v61, %s11200_s7 }
0x1206   :  { %7357 = vrot.lane.b32.xlu1 %v15302_v55, %s11200_s7  ;;  %7349 = vrot.lane.b32.xlu2 %v15350_v32, %s11200_s7 }
0x1207   :  { %8011 = vmatpush.bf16.msra.mxu2 %v7530_v30  ;;  %v10866_v30 = vld [vmem:[%s16098_s11 + $0x14] sm:$0xf] }
0x120b   :  { %8012 = vmatpush.bf16.msra.mxu2 %v7526_v2 }
0x120d   :  { %v15373_v35 = vpop.permute.xlu0 %7219  ;;  %7385 = vrot.lane.b32.xlu0 %v14949_v23, %s11200_s7 }
0x120e   :  { %8013 = vmatmul.bf16.vlgmr.msra.gmra.mxu2 %v10314_v41  ;;  %7353 = vrot.lane.b32.xlu2 %v15270_v29, %s11200_s7  ;;  %v10322_v41 = vor.u32 %v10866_v30, %v10319_v8  ;;  %v16296_v30 = vld [vmem:[#allocation31_spill] sm:$0xff]  ;;  %v7566_v8 = vsel %vm7427_vm7, %v16282_v47, %v7304_v31 }
0x120f   :  { %8024 = vmatpush.bf16.msrb.mxu2 %v7586_v37  ;;  %7347 = vrot.lane.b32.xlu1 %v15373_v35, %s11200_s7  ;;  %v7574_v37 = vsel %vm7427_vm7, %v16292_v43, %v15097_v22  ;;  %v16295_v22 = vld [vmem:[#allocation44_spill] sm:$0xff]  ;;  %v16297_v47 = vld [vmem:[#allocation43_spill] sm:$0xff] }
0x1210   :  { %v10878_v43 = vld [vmem:[%s16098_s11 + $0x74] sm:$0xf] }
0x1213   :  { %8025 = vmatpush.bf16.msrb.mxu2 %v7582_v45  ;;  %v15410_v45 = vpop.f32.mrf.mxu2 }
0x1215   :  { %v7316_v15 = vpop.permute.xlu0 %7315  ;;  %7381 = vrot.lane.b32.xlu0 %v14923_v28, %s11200_s7 }
0x1216   :  { %7359 = vrot.lane.b32.xlu2 %v15276_v10, %s11200_s7  ;;  %v7590_v2 = vsel %vm7427_vm7, %v15087_v25, %v7316_v15  ;;  %v10362_v25 = vor.u32 %v10877_v52, %v10359_v19  ;;  %v7346_v15 = vpop.permute.xlu2 %7345  ;;  %v7344_v52 = vpop.permute.xlu1 %7343  ;;  %v10872_v19 = vld [vmem:[%s16098_s11 + $0x3c] sm:$0xf0] }
0x1217   :  { %8026 = vmatpush.bf16.msrb.mxu2 %v7578_v54  ;;  %7393 = vrot.lane.b32.xlu1 %v15041_v4, %s11200_s7  ;;  %v7570_v54 = vsel %vm7427_vm7, %v16294_v18, %v16293_v17  ;;  %v7646_v18 = vsel %vm7427_vm7, %v15185_v3, %v7344_v52 }
0x1218   :  { %8050 = vmatpush.bf16.msrb.mxu0 %v7590_v2  ;;  %v7562_v2 = vsel %vm7427_vm7, %v14777_v5, %v15290_v60  ;;  %v7558_v5 = vsel %vm7427_vm7, %v14770_v9, %v15296_v39  ;;  %v10317_v60 = vld [vmem:[%s16098_s11 + $0x10] sm:$0xf] }
0x1219   :  { %v10318_v17 = vor.u32 %v10872_v19, %v10317_v60 }
0x121b   :  { %8027 = vmatpush.bf16.msrb.mxu2 %v7574_v37  ;;  %8051 = vmatmul.bf16.vlgmr.msrb.gmra.mxu0 %v10322_v41  ;;  %v15426_v41 = vpop.f32.mrf.mxu2  ;;  %v10367_v37 = vld [vmem:[%s16098_s11 + $0xa0] sm:$0xf0] }
0x121c   :  { %v10370_v31 = vor.u32 %v10878_v43, %v10367_v37  ;;  %v10884_v43 = vld [vmem:[%s16098_s11 + $0x9c] sm:$0xf0] }
0x121d   :  { %7407 = vrot.lane.b32.xlu0 %v15167_v26, %s11200_s7 }
0x121e   :  { %8018 = vmatmul.bf16.gmra.mxu2 %v10362_v25  ;;  %7375 = vrot.lane.b32.xlu2 %v16295_v22, %s11200_s7  ;;  %v7650_v25 = vsel %vm7427_vm7, %v15230_v21, %v7346_v15  ;;  %v16298_v21 = vld [vmem:[#allocation41_spill] sm:$0xff]  ;;  %v7338_v15 = vpop.permute.xlu0 %7337 }
0x121f   :  { %8028 = vmatpush.bf16.msrb.mxu2 %v7570_v54  ;;  %7369 = vrot.lane.b32.xlu1 %v16296_v30, %s11200_s7  ;;  %v7342_v54 = vpop.permute.xlu2 %7341  ;;  %v7634_v37 = vsel %vm7427_vm7, %v15132_v36, %v7338_v15 }
0x1220   :  { %v7642_v39 = vsel %vm7427_vm7, %v15149_v7, %v7342_v54  ;;  %v10365_v7 = vld [vmem:[%s16098_s11 + $0x70] sm:$0xf] }
0x1221   :  { %v10366_v52 = vor.u32 %v10884_v43, %v10365_v7  ;;  %v10373_v7 = vld [vmem:[%s16098_s11 + $0x78] sm:$0xf]  ;;  %v10885_v43 = vld [vmem:[%s16098_s11 + $0xa4] sm:$0xf0] }
0x1223   :  { %8029 = vmatpush.bf16.msrb.mxu2 %v7566_v8  ;;  %v15455_v9 = vpop.f32.mrf.mxu2  ;;  %v7340_v8 = vpop.permute.xlu1 %7339 }
0x1224   :  { %v7638_v3 = vsel %vm7427_vm7, %v15121_v59, %v7340_v8 }
0x1225   :  { %7403 = vrot.lane.b32.xlu0 %v15147_v24, %s11200_s7 }
0x1226   :  { %7371 = vrot.lane.b32.xlu2 %v16297_v47, %s11200_s7 }
0x1227   :  { %8030 = vmatpush.bf16.msrb.mxu2 %v7562_v2  ;;  %7387 = vrot.lane.b32.xlu1 %v14965_v27, %s11200_s7  ;;  %v16299_v2 = vld [vmem:[#allocation19_spill] sm:$0xff] }
0x122b   :  { %8031 = vmatpush.bf16.msrb.mxu2 %v7558_v5  ;;  %8056 = vmatmul.bf16.gmra.mxu0 %v10370_v31  ;;  %v15477_v59 = vpop.f32.mrf.mxu2  ;;  %v7336_v31 = vpop.permute.xlu2 %7335 }
0x122c   :  { %v7630_v5 = vsel %vm7427_vm7, %v15126_v12, %v7336_v31  ;;  %v7334_v60 = vpop.permute.xlu1 %7333  ;;  %v7804_v12 = vld [vmem:[%s16099_s12] sm:$0xff]  ;;  %v10374_v31 = vor.u32 %v10885_v43, %v10373_v7 }
0x122d   :  { %7421 = vrot.lane.b32.xlu0 %v15294_v63, %s11200_s7  ;;  %v7626_v36 = vsel %vm7427_vm7, %v15107_v46, %v7334_v60  ;;  %v10325_v46 = vld [vmem:[%s16098_s11 + $0x18] sm:$0xf] }
0x122e   :  { %8032 = vmatmul.bf16.vlgmr.msrb.gmra.mxu2 %v10318_v17  ;;  %7389 = vrot.lane.b32.xlu2 %v14991_v44, %s11200_s7 }
0x122f   :  { %8062 = vmatpush.bf16.msra.mxu2 %v7650_v25  ;;  %7363 = vrot.lane.b32.xlu1 %v16298_v21, %s11200_s7 }
0x1233   :  { %8063 = vmatpush.bf16.msra.mxu2 %v7646_v18  ;;  %v15491_v25 = vpop.f32.mrf.mxu2  ;;  %v10873_v18 = vld [vmem:[%s16098_s11 + $0x44] sm:$0xf0] }
0x1234   :  { %v10326_v54 = vor.u32 %v10873_v18, %v10325_v46 }
0x1235   :  { %7397 = vrot.lane.b32.xlu0 %v15119_v20, %s11200_s7 }
0x1236   :  { %7365 = vrot.lane.b32.xlu2 %v16299_v2, %s11200_s7 }
0x1237   :  { %8064 = vmatpush.bf16.msra.mxu2 %v7642_v39  ;;  %7409 = vrot.lane.b32.xlu1 %v15180_v62, %s11200_s7 }
0x123b   :  { %8065 = vmatpush.bf16.msra.mxu2 %v7638_v3  ;;  %v15511_v39 = vpop.f32.mrf.mxu2 }
0x123d   :  { %7415 = vrot.lane.b32.xlu0 %v15262_v38, %s11200_s7 }
0x123e   :  { %8037 = vmatmul.bf16.gmra.mxu2 %v10366_v52  ;;  %7383 = vrot.lane.b32.xlu2 %v14938_v50, %s11200_s7 }
0x123f   :  { %8066 = vmatpush.bf16.msra.mxu2 %v7634_v37  ;;  %7405 = vrot.lane.b32.xlu1 %v15134_v33, %s11200_s7  ;;  %v7332_v19 = vpop.permute.xlu0 %7331 }
0x1240   :  { %v7622_v17 = vsel %vm7427_vm7, %v15288_v13, %v7332_v19  ;;  %v7807_v13 = vld [vmem:[%s16099_s12 + $0x18] sm:$0xff] }
0x1243   :  { %8067 = vmatpush.bf16.msra.mxu2 %v7630_v5  ;;  %v15517_v3 = vpop.f32.mrf.mxu2 }
0x1245   :  { %7810 = vperm.xlu0 %11092, %v7804_v12  }
0x1246   :  { %7379 = vrot.lane.b32.xlu2 %v14916_v53, %s11200_s7 }
0x1247   :  { %8068 = vmatpush.bf16.msra.mxu2 %v7626_v36  ;;  %7423 = vrot.lane.b32.xlu1 %v15316_v42, %s11200_s7  ;;  %v7356_v8 = vpop.permute.xlu0 %7355 }
0x124b   :  { %8069 = vmatpush.bf16.msra.mxu2 %v7622_v17  ;;  %v15535_v5 = vpop.f32.mrf.mxu2 }
0x124d   :  { %7825 = vperm.xlu0 %11092, %v7807_v13  }
0x124e   :  { %7425 = vrot.lane.b32.xlu2 %v15320_v56, %s11200_s7  ;;  %8070 = vmatmul.bf16.vlgmr.msra.gmra.mxu2 %v10326_v54  ;;  %v7806_v54 = vld [vmem:[%s16099_s12 + $0x10] sm:$0xff] }
0x124f   :  { %7399 = vrot.lane.b32.xlu1 %v15116_v49, %s11200_s7 }
0x1253   :  { %v15544_v17 = vpop.f32.mrf.mxu2 }
0x1256   :  { %7401 = vrot.lane.b32.xlu2 %v15143_v34, %s11200_s7 }
0x1257   :  { %7417 = vrot.lane.b32.xlu1 %v15274_v51, %s11200_s7  ;;  %v7362_v15 = vpop.permute.xlu0 %7361 }
0x1258   :  { %v7682_v37 = vsel %vm7427_vm7, %v15314_v40, %v7362_v15  ;;  %v7805_v40 = vld [vmem:[%s16099_s12 + $0x8] sm:$0xff] }
0x1259   :  { %8081 = vmatpush.bf16.msra.mxu0 %v7682_v37 }
0x125b   :  { %v15553_v15 = vpop.f32.mrf.mxu2 }
0x125e   :  { %7419 = vrot.lane.b32.xlu2 %v15280_v57, %s11200_s7  ;;  %8075 = vmatmul.bf16.gmra.mxu2 %v10374_v31 }
0x125f   :  { %7413 = vrot.lane.b32.xlu1 %v15260_v48, %s11200_s7  ;;  %v7378_v52 = vpop.permute.xlu0 %7377 }
0x1260   :  { %v7350_v60 = vpop.permute.xlu2 %7349  ;;  %v7706_v36 = vsel %vm7427_vm7, %v16284_v6, %v7378_v52 }
0x1261   :  { %8100 = vmatpush.bf16.msrb.mxu2 %v7706_v36 }
0x1266   :  { %7395 = vrot.lane.b32.xlu2 %v15104_v14, %s11200_s7 }
0x1267   :  { %7815 = vperm.xlu1 %11093, %v7805_v40   ;;  %v7374_v19 = vpop.permute.xlu0 %7373  ;;  %v15563_v40 = vpop.f32.mrf.mxu2 }
0x1268   :  { %v7354_v12 = vpop.permute.xlu2 %7353  ;;  %v7700_v36 = vsel %vm7427_vm7, %v16285_v58, %v7374_v19 }
0x126e   :  { %7411 = vrot.lane.b32.xlu2 %v15250_v1, %s11200_s7 }
0x126f   :  { %v7392_v46 = vpop.permute.xlu0 %7391 }
0x1270   :  { %v7352_v18 = vpop.permute.xlu1 %7351  ;;  %v7360_v13 = vpop.permute.xlu2 %7359 }
0x1271   :  { %v7678_v6 = vsel %vm7427_vm7, %v15276_v10, %v7360_v13  ;;  %v7670_v10 = vsel %vm7427_vm7, %v15272_v11, %v7356_v8  ;;  %v7662_v11 = vsel %vm7427_vm7, %v15338_v0, %v7352_v18  ;;  %v15571_v8 = vpop.f32.mrf.mxu2 }
0x1272   :  { %8082 = vmatpush.bf16.msra.mxu0 %v7678_v6 }
0x1276   :  { %7820 = vperm.xlu2 %11094, %v7806_v54  }
0x1277   :  { %v7368_v7 = vpop.permute.xlu0 %7367 }
0x1278   :  { %v7358_v43 = vpop.permute.xlu1 %7357  ;;  %v7376_v37 = vpop.permute.xlu2 %7375 }
0x1279   :  { %v7674_v31 = vsel %vm7427_vm7, %v15302_v55, %v7358_v43  ;;  %v7703_v52 = vsel %vm7427_vm7, %v16295_v22, %v7376_v37  ;;  %v7666_v55 = vsel %vm7427_vm7, %v15270_v29, %v7354_v12  ;;  %v7658_v37 = vsel %vm7427_vm7, %v15350_v32, %v7350_v60  ;;  %v10867_v29 = vld [vmem:[%s16098_s11 + $0x1c] sm:$0xf] }
0x127a   :  { %8083 = vmatpush.bf16.msra.mxu0 %v7674_v31  ;;  %8101 = vmatpush.bf16.msrb.mxu2 %v7703_v52 }
0x127e   :  { %8084 = vmatpush.bf16.msra.mxu0 %v7670_v10  ;;  %8102 = vmatpush.bf16.msrb.mxu2 %v7700_v36  ;;  %v7727_v36 = vsel %vm7427_vm7, %v15017_v16, %v7392_v46 }
0x127f   :  { %v7386_v13 = vpop.permute.xlu0 %7385 }
0x1280   :  { %v7372_v6 = vpop.permute.xlu2 %7371 }
0x1281   :  { %v7348_v54 = vpop.permute.xlu1 %7347  ;;  %v7697_v22 = vsel %vm7427_vm7, %v16297_v47, %v7372_v6  ;;  %v10327_v47 = vld [vmem:[%s16098_s11 + $0x48] sm:$0xf0] }
0x1282   :  { %8085 = vmatpush.bf16.msra.mxu0 %v7666_v55  ;;  %8103 = vmatpush.bf16.msrb.mxu2 %v7697_v22  ;;  %v7654_v0 = vsel %vm7427_vm7, %v15373_v35, %v7348_v54  ;;  %v10330_v12 = vor.u32 %v10867_v29, %v10327_v47  ;;  %v7691_v35 = vsel %vm7427_vm7, %v16286_v61, %v7368_v7  ;;  %v10879_v61 = vld [vmem:[%s16098_s11 + $0x7c] sm:$0xf] }
0x1283   :  { %v7718_v7 = vsel %vm7427_vm7, %v14949_v23, %v7386_v13 }
0x1286   :  { %8086 = vmatpush.bf16.msra.mxu0 %v7662_v11 }
0x1287   :  { %v7382_v58 = vpop.permute.xlu0 %7381 }
0x1288   :  { %v7390_v19 = vpop.permute.xlu2 %7389  ;;  %v7712_v47 = vsel %vm7427_vm7, %v14923_v28, %v7382_v58  ;;  %v10335_v28 = vld [vmem:[%s16098_s11 + $0x50] sm:$0xf0] }
0x1289   :  { %v7394_v43 = vpop.permute.xlu1 %7393 }
0x128a   :  { %8087 = vmatpush.bf16.msra.mxu0 %v7658_v37  ;;  %v7730_v18 = vsel %vm7427_vm7, %v15041_v4, %v7394_v43  ;;  %v7724_v4 = vsel %vm7427_vm7, %v14991_v44, %v7390_v19  ;;  %v10375_v44 = vld [vmem:[%s16098_s11 + $0xa8] sm:$0xf0] }
0x128b   :  { %v10378_v46 = vor.u32 %v10879_v61, %v10375_v44 }
0x128e   :  { %8088 = vmatpush.bf16.msra.mxu0 %v7654_v0 }
0x128f   :  { %v7408_v31 = vpop.permute.xlu0 %7407 }
0x1290   :  { %v7366_v32 = vpop.permute.xlu2 %7365 }
0x1291   :  { %v7370_v60 = vpop.permute.xlu1 %7369  ;;  %v15585_v52 = vpop.f32.mrf.mxu2  ;;  %8089 = vmatmul.bf16.vlgmr.msra.gmra.mxu0 %v10330_v12 }
0x1292   :  { %8119 = vmatpush.bf16.msrb.mxu0 %v7730_v18  ;;  %v7694_v10 = vsel %vm7427_vm7, %v16296_v30, %v7370_v60  ;;  %v7688_v30 = vsel %vm7427_vm7, %v16299_v2, %v7366_v32  ;;  %v10874_v2 = vld [vmem:[%s16098_s11 + $0x4c] sm:$0xf0] }
0x1293   :  { %8104 = vmatpush.bf16.msrb.mxu2 %v7694_v10 }
0x1296   :  { %8120 = vmatpush.bf16.msrb.mxu0 %v7727_v36  ;;  %v10381_v36 = vld [vmem:[%s16098_s11 + $0x80] sm:$0xf] }
0x1297   :  { %8105 = vmatpush.bf16.msrb.mxu2 %v7691_v35  ;;  %v7404_v6 = vpop.permute.xlu0 %7403  ;;  %v10886_v35 = vld [vmem:[%s16098_s11 + $0xac] sm:$0xf0] }
0x1298   :  { %v7384_v54 = vpop.permute.xlu2 %7383 }
0x1299   :  { %v7388_v55 = vpop.permute.xlu1 %7387  ;;  %v15595_v22 = vpop.f32.mrf.mxu2  ;;  %v7715_v23 = vsel %vm7427_vm7, %v14938_v50, %v7384_v54  ;;  %v10868_v50 = vld [vmem:[%s16098_s11 + $0x24] sm:$0xf] }
0x129a   :  { %8121 = vmatpush.bf16.msrb.mxu0 %v7724_v4  ;;  %v7721_v16 = vsel %vm7427_vm7, %v14965_v27, %v7388_v55  ;;  %v10333_v27 = vld [vmem:[%s16098_s11 + $0x20] sm:$0xf]  ;;  %v10338_v10 = vor.u32 %v10868_v50, %v10335_v28 }
0x129b   :  { %8106 = vmatpush.bf16.msrb.mxu2 %v7688_v30  ;;  %v10334_v13 = vor.u32 %v10874_v2, %v10333_v27  ;;  %v10382_v30 = vor.u32 %v10886_v35, %v10381_v36  ;;  %v10869_v36 = vld [vmem:[%s16098_s11 + $0x2c] sm:$0xf] }
0x129e   :  { %8122 = vmatpush.bf16.msrb.mxu0 %v7721_v16 }
0x129f   :  { %v7422_v11 = vpop.permute.xlu0 %7421 }
0x12a0   :  { %v7380_v19 = vpop.permute.xlu2 %7379 }
0x12a1   :  { %v7364_v43 = vpop.permute.xlu1 %7363  ;;  %v15615_v37 = vpop.f32.mrf.mxu2  ;;  %8094 = vmatmul.bf16.gmra.mxu0 %v10378_v46 }
0x12a2   :  { %8123 = vmatpush.bf16.msrb.mxu0 %v7718_v7  ;;  %v7685_v29 = vsel %vm7427_vm7, %v16298_v21, %v7364_v43  ;;  %v7709_v21 = vsel %vm7427_vm7, %v14916_v53, %v7380_v19 }
0x12a3   :  { %8107 = vmatpush.bf16.msrb.mxu2 %v7685_v29 }
0x12a6   :  { %8124 = vmatpush.bf16.msrb.mxu0 %v7715_v23  ;;  %8108 = vmatmul.bf16.vlgmr.msrb.gmra.mxu2 %v10334_v13 }
0x12a7   :  { %v7398_v0 = vpop.permute.xlu0 %7397 }
0x12a8   :  { %v7426_v12 = vpop.permute.xlu2 %7425 }
0x12a9   :  { %v7410_v18 = vpop.permute.xlu1 %7409  ;;  %v15623_v32 = vpop.f32.mrf.mxu2  ;;  %v7778_v58 = vsel %vm7427_vm7, %v15320_v56, %v7426_v12 }
0x12aa   :  { %8125 = vmatpush.bf16.msrb.mxu0 %v7712_v47  ;;  %v7754_v60 = vsel %vm7427_vm7, %v15180_v62, %v7410_v18  ;;  %v7751_v62 = vsel %vm7427_vm7, %v15167_v26, %v7408_v31  ;;  %v7745_v26 = vsel %vm7427_vm7, %v15147_v24, %v7404_v6  ;;  %v10880_v24 = vld [vmem:[%s16098_s11 + $0x84] sm:$0xf]  ;;  %v10383_v6 = vld [vmem:[%s16098_s11 + $0xb0] sm:$0xf0] }
0x12ab   :  { %8138 = vmatpush.bf16.msra.mxu2 %v7754_v60  ;;  %v10386_v2 = vor.u32 %v10880_v24, %v10383_v6 }
0x12ae   :  { %8126 = vmatpush.bf16.msrb.mxu0 %v7709_v21 }
0x12af   :  { %8139 = vmatpush.bf16.msra.mxu2 %v7751_v62  ;;  %v7416_v53 = vpop.permute.xlu0 %7415 }
0x12b0   :  { %v7402_v4 = vpop.permute.xlu2 %7401 }
0x12b1   :  { %v7406_v54 = vpop.permute.xlu1 %7405  ;;  %v8033_v56 = vpop.f32.mrf.mxu2  ;;  %8127 = vmatmul.bf16.vlgmr.msrb.gmra.mxu0 %v10338_v10  ;;  %v7742_v27 = vsel %vm7427_vm7, %v15143_v34, %v7402_v4 }
0x12b2   :  { %8157 = vmatpush.bf16.msra.mxu0 %v7778_v58  ;;  %v7748_v55 = vsel %vm7427_vm7, %v15134_v33, %v7406_v54 }
0x12b3   :  { %8140 = vmatpush.bf16.msra.mxu2 %v7748_v55 }
0x12b6   :  { %8113 = vmatmul.bf16.gmra.mxu2 %v10382_v30 }
0x12b7   :  { %8141 = vmatpush.bf16.msra.mxu2 %v7745_v26  ;;  %v7811_v31 = vpop.permute.xlu0 %7810 }
0x12b8   :  { %v7420_v16 = vpop.permute.xlu2 %7419  ;;  %v7958_v61 = vadd.f32 %v15410_v45, %v7811_v31  ;;  %v10881_v31 = vld [vmem:[%s16098_s11 + $0x8c] sm:$0xf] }
0x12b9   :  { %v7424_v44 = vpop.permute.xlu1 %7423  ;;  %v15650_v46 = vpop.f32.mrf.mxu2  ;;  %v7769_v47 = vsel %vm7427_vm7, %v15280_v57, %v7420_v16  ;;  %v10391_v16 = vld [vmem:[%s16098_s11 + $0xb8] sm:$0xf0] }
0x12ba   :  { %v7977_v7 = vadd.f32 %v15491_v25, %v7958_v61  ;;  %v7775_v33 = vsel %vm7427_vm7, %v15316_v42, %v7424_v44  ;;  %v7772_v25 = vsel %vm7427_vm7, %v15294_v63, %v7422_v11  ;;  %v8052_v42 = vpop.f32.mrf.mxu0  ;;  %v7736_v63 = vsel %vm7427_vm7, %v15119_v20, %v7398_v0  ;;  %v10875_v11 = vld [vmem:[%s16098_s11 + $0x54] sm:$0xf0] }
0x12bb   :  { %8142 = vmatpush.bf16.msra.mxu2 %v7742_v27  ;;  %8158 = vmatpush.bf16.msra.mxu0 %v7775_v33  ;;  %v7763_v0 = vsel %vm7427_vm7, %v15262_v38, %v7416_v53  ;;  %v10343_v38 = vld [vmem:[%s16098_s11 + $0x58] sm:$0xf0]  ;;  %v10394_v61 = vor.u32 %v10881_v31, %v10391_v16 }
0x12bc   :  { %v7996_v45 = vadd.f32 %v15544_v17, %v7977_v7  ;;  %v10346_v35 = vor.u32 %v10869_v36, %v10343_v38 }
0x12be   :  { %v8015_v34 = vadd.f32 %v15585_v52, %v7996_v45  ;;  %v10341_v52 = vld [vmem:[%s16098_s11 + $0x28] sm:$0xf] }
0x12bf   :  { %8159 = vmatpush.bf16.msra.mxu0 %v7772_v25  ;;  %v10342_v20 = vor.u32 %v10875_v11, %v10341_v52  ;;  %v7826_v52 = vpop.permute.xlu0 %7825 }
0x12c0   :  { %v7396_v19 = vpop.permute.xlu2 %7395  ;;  %v8034_v43 = vadd.f32 %v8033_v56, %v8015_v34 }
0x12c1   :  { %v7400_v29 = vpop.permute.xlu1 %7399  ;;  %v8038_v23 = vpop.f32.mrf.mxu2  ;;  %8132 = vmatmul.bf16.gmra.mxu0 %v10386_v2  ;;  %v7733_v57 = vsel %vm7427_vm7, %v15104_v14, %v7396_v19 }
0x12c2   :  { %v7739_v13 = vsel %vm7427_vm7, %v15116_v49, %v7400_v29  ;;  %v8053_v17 = vadd.f32 %v8052_v42, %v8034_v43  ;;  %v8054_v21 = vpop.f32.mrf.mxu0 }
0x12c3   :  { %8143 = vmatpush.bf16.msra.mxu2 %v7739_v13  ;;  %8160 = vmatpush.bf16.msra.mxu0 %v7769_v47 }
0x12c7   :  { %8144 = vmatpush.bf16.msra.mxu2 %v7736_v63 }
0x12c8   :  { %v7412_v12 = vpop.permute.xlu2 %7411 }
0x12c9   :  { %v7418_v49 = vpop.permute.xlu1 %7417  ;;  %v15679_v18 = vpop.f32.mrf.mxu2 }
0x12ca   :  { %v7766_v60 = vsel %vm7427_vm7, %v15274_v51, %v7418_v49  ;;  %v8057_v55 = vpop.f32.mrf.mxu0  ;;  %v7965_v49 = vadd.f32 %v15477_v59, %v7826_v52 }
0x12cb   :  { %8145 = vmatpush.bf16.msra.mxu2 %v7733_v57  ;;  %8161 = vmatpush.bf16.msra.mxu0 %v7766_v60 }
0x12ce   :  { %8146 = vmatmul.bf16.vlgmr.msra.gmra.mxu2 %v10342_v20  ;;  %v7984_v20 = vadd.f32 %v15535_v5, %v7965_v49  ;;  %v10912_v5 = vld [vmem:[%s16100_s13 + $0xc4] sm:$0xf] }
0x12cf   :  { %8162 = vmatpush.bf16.msra.mxu0 %v7763_v0 }
0x12d0   :  { %v7821_v50 = vpop.permute.xlu2 %7820 }
0x12d1   :  { %v7963_v28 = vadd.f32 %v15455_v9, %v7821_v50  ;;  %v7414_v58 = vpop.permute.xlu1 %7413  ;;  %v8071_v10 = vpop.f32.mrf.mxu2  ;;  %v7757_v9 = vsel %vm7427_vm7, %v15250_v1, %v7412_v12 }
0x12d2   :  { %v8072_v62 = vadd.f32 %v8071_v10, %v8053_v17  ;;  %v7760_v14 = vsel %vm7427_vm7, %v15260_v48, %v7414_v58  ;;  %v10389_v48 = vld [vmem:[%s16098_s11 + $0x88] sm:$0xf] }
0x12d3   :  { %v7982_v51 = vadd.f32 %v15517_v3, %v7963_v28  ;;  %8163 = vmatpush.bf16.msra.mxu0 %v7760_v14  ;;  %v10887_v3 = vld [vmem:[%s16098_s11 + $0xb4] sm:$0xf0]  ;;  %v8003_v28 = vadd.f32 %v15571_v8, %v7984_v20  ;;  %v10896_v20 = vld [vmem:[%s16100_s13 + $0x44] sm:$0xf] }
0x12d4   :  { %v10517_v14 = vld [vmem:[%s16100_s13 + $0xd8] sm:$0xf] }
0x12d5   :  { %v8001_v53 = vadd.f32 %v15563_v40, %v7982_v51  ;;  %v10390_v40 = vor.u32 %v10887_v3, %v10389_v48  ;;  %v10919_v51 = vld [vmem:[%s16100_s13 + $0xf4] sm:$0x10]  ;;  %v8022_v3 = vadd.f32 %v15623_v32, %v8003_v28 }
0x12d7   :  { %8164 = vmatpush.bf16.msra.mxu0 %v7757_v9  ;;  %v8020_v4 = vadd.f32 %v15615_v37, %v8001_v53  ;;  %v15713_v37 = vpop.f32.mrf.mxu0  ;;  %v10518_v53 = vor.u32 %v10919_v51, %v10517_v14 }
0x12d9   :  { %v8073_v54 = vpop.f32.mrf.mxu2  ;;  %v8039_v56 = vadd.f32 %v8038_v23, %v8020_v4  ;;  %v7816_v42 = vpop.permute.xlu1 %7815 }
0x12da   :  { %8165 = vmatmul.bf16.vlgmr.msra.gmra.mxu0 %v10346_v35  ;;  %v7960_v43 = vadd.f32 %v15426_v41, %v7816_v42 }
0x12db   :  { %v8058_v30 = vadd.f32 %v8057_v55, %v8039_v56 }
0x12dc   :  { %v7979_v23 = vadd.f32 %v15511_v39, %v7960_v43  ;;  %v10493_v39 = vld [vmem:[%s16100_s13 + $0xc0] sm:$0xf] }
0x12de   :  { %8151 = vmatmul.bf16.gmra.mxu2 %v10390_v40  ;;  %v7998_v47 = vadd.f32 %v15553_v15, %v7979_v23  ;;  %v10916_v15 = vld [vmem:[%s16100_s13 + $0xdc] sm:$0x10] }
0x12df   :  { %v10494_v50 = vor.u32 %v10916_v15, %v10493_v39  ;;  %v10431_v39 = vld [vmem:[%s16100_s13 + $0x60] sm:$0xf0]  ;;  %v10453_v15 = vld [vmem:[%s16100_s13 + $0x58] sm:$0xf] }
0x12e0   :  { %v8017_v63 = vadd.f32 %v15595_v22, %v7998_v47  ;;  %v16300_v22 = vmov 65535  }
0x12e1   :  { %v8076_v1 = vpop.f32.mrf.mxu2 }
0x12e2   :  { %v8077_v26 = vadd.f32 %v8076_v1, %v8058_v30  ;;  %v8036_v11 = vadd.f32 %v15650_v46, %v8017_v63  ;;  %v8418_v46 = vsel %vm447_vm15, 4294967295, %v16300_v22  ;;  %v8041_v30 = vadd.f32 %v15679_v18, %v8022_v3  ;;  %v10903_v22 = vld [vmem:[%s16100_s13 + $0x74] sm:$0xf0] }
0x12e3   :  { %v15732_v59 = vsel %vm8417_vm8, %v8418_v46, 0  ;;  %v10434_v46 = vor.u32 %v10896_v20, %v10431_v39 }
0x12e4   :  { %v8055_v60 = vadd.f32 %v8054_v21, %v8036_v11  ;;  %v10495_v21 = vld [vmem:[%s16100_s13 + $0xe0] sm:$0x10]  ;;  %v8421_v38 = vand.u32 %v10494_v50, %v15732_v59  ;;  %v8439_v8 = vand.u32 %v10518_v53, %v15732_v59  ;;  %v10911_v11 = vld [vmem:[%s16100_s13 + $0xb4] sm:$0xf0]  ;;  %v10397_v50 = vld [vmem:[%s16100_s13] sm:$0xf] }
0x12e6   :  { %v8074_v41 = vadd.f32 %v8073_v54, %v8055_v60  ;;  %8448 = vmatpush.bf16.msrb.mxu2 %v8421_v38  ;;  %8622 = vmatpush.bf16.msrb.mxu1 %v8439_v8  ;;  %v10900_v60 = vld [vmem:[%s16100_s13 + $0x5c] sm:$0xf0] }
0x12e9   :  { %v8078_v6 = vpop.f32.mrf.mxu2 }
0x12ea   :  { %8170 = vmatmul.bf16.gmra.mxu0 %v10394_v61  ;;  %v8060_v61 = vadd.f32 %v15713_v37, %v8041_v30 }
0x130e   :  { %v8090_v44 = vpop.f32.mrf.mxu0 }
0x130f   :  { %v8091_v7 = vadd.f32 %v8090_v44, %v8072_v62  ;;  %v10498_v62 = vor.u32 %v10912_v5, %v10495_v21  ;;  %v8079_v44 = vadd.f32 %v8078_v6, %v8060_v61  ;;  %v10461_v6 = vld [vmem:[%s16100_s13 + $0x80] sm:$0xf]  ;;  %v10888_v21 = vld [vmem:[%s16100_s13 + $0x4] sm:$0xf]  ;;  %v10503_v61 = vld [vmem:[%s16100_s13 + $0xe8] sm:$0x10] }
0x1310   :  { %v10892_v5 = vld [vmem:[%s16100_s13 + $0x1c] sm:$0xf0] }
0x1311   :  { %v8424_v48 = vand.u32 %v10498_v62, %v15732_v59  ;;  %v10398_v28 = vor.u32 %v10892_v5, %v10397_v50  ;;  %v10895_v62 = vld [vmem:[%s16100_s13 + $0x34] sm:$0xf0]  ;;  %v8693_v5 = vld [vmem:[#allocation5 + $0x88] sm:$0xff] }
0x1313   :  { %8477 = vmatpush.bf16.msrb.mxu0 %v8424_v48 }
0x1316   :  { %v8092_v27 = vpop.f32.mrf.mxu0 }
0x1317   :  { %v8093_v58 = vadd.f32 %v8092_v27, %v8074_v41 }
0x131e   :  { %v8095_v33 = vpop.f32.mrf.mxu0 }
0x131f   :  { %v15715_v24 = vadd.f32 %v8095_v33, %v8077_v26 }
0x1326   :  { %v8097_v45 = vpop.f32.mrf.mxu0 }
0x1327   :  { %v8098_v27 = vadd.f32 %v8097_v45, %v8079_v44  ;;  %v10904_v45 = vld [vmem:[%s16100_s13 + $0x84] sm:$0xf] }
0x1329   :  { %v8109_v2 = vpop.f32.mrf.mxu2 }
0x132a   :  { %v8110_v10 = vadd.f32 %v8109_v2, %v8091_v7 }
0x132e   :  { %v8128_v25 = vpop.f32.mrf.mxu0 }
0x132f   :  { %v8129_v9 = vadd.f32 %v8128_v25, %v8110_v10  ;;  %v10421_v10 = vld [vmem:[%s16100_s13 + $0x18] sm:$0xf] }
0x1330   :  { %v10422_v51 = vor.u32 %v10895_v62, %v10421_v10  ;;  %v8676_v10 = vld [vmem:[#allocation5] sm:$0xff] }
0x1331   :  { %v8111_v34 = vpop.f32.mrf.mxu2 }
0x1332   :  { %v8112_v35 = vadd.f32 %v8111_v34, %v8093_v58  ;;  %v10399_v58 = vld [vmem:[%s16100_s13 + $0x20] sm:$0xf0] }
0x1333   :  { %v10402_v14 = vor.u32 %v10888_v21, %v10399_v58 }
0x1336   :  { %v8130_v19 = vpop.f32.mrf.mxu0 }
0x1337   :  { %v8131_v4 = vadd.f32 %v8130_v19, %v8112_v35 }
0x1339   :  { %v8114_v29 = vpop.f32.mrf.mxu2 }
0x133a   :  { %v8115_v18 = vadd.f32 %v8114_v29, %v15715_v24  ;;  %v10908_v24 = vld [vmem:[%s16100_s13 + $0x9c] sm:$0xf0] }
0x133b   :  { %v10462_v29 = vor.u32 %v10908_v24, %v10461_v6  ;;  %v10893_v6 = vld [vmem:[%s16100_s13 + $0x24] sm:$0xf0]  ;;  %v10889_v24 = vld [vmem:[%s16100_s13 + $0xc] sm:$0xf] }
0x133d   :  { %8449 = vmatpush.bf16.msrb.mxu2 %v10462_v29 }
0x133e   :  { %v8133_v13 = vpop.f32.mrf.mxu0 }
0x133f   :  { %v8134_v33 = vadd.f32 %v8133_v13, %v8115_v18  ;;  %v10463_v13 = vld [vmem:[%s16100_s13 + $0xa0] sm:$0xf0]  ;;  %v10909_v18 = vld [vmem:[%s16100_s13 + $0xa4] sm:$0xf0] }
0x1341   :  { %v8116_v17 = vpop.f32.mrf.mxu2 }
0x1342   :  { %v8117_v2 = vadd.f32 %v8116_v17, %v8098_v27  ;;  %v10485_v17 = vld [vmem:[%s16100_s13 + $0x98] sm:$0xf]  ;;  %v10469_v27 = vld [vmem:[%s16100_s13 + $0x88] sm:$0xf] }
0x1343   :  { %v10486_v49 = vor.u32 %v10911_v11, %v10485_v17  ;;  %v10407_v17 = vld [vmem:[%s16100_s13 + $0x28] sm:$0xf0] }
0x1344   :  { %v10410_v11 = vor.u32 %v10889_v24, %v10407_v17 }
0x1345   :  { %8623 = vmatpush.bf16.msrb.mxu1 %v10486_v49 }
0x1346   :  { %v8135_v12 = vpop.f32.mrf.mxu0 }
0x1347   :  { %v8136_v34 = vadd.f32 %v8135_v12, %v8117_v2  ;;  %v10466_v12 = vor.u32 %v10904_v45, %v10463_v13  ;;  %v10470_v2 = vor.u32 %v10909_v18, %v10469_v27  ;;  %v10445_v18 = vld [vmem:[%s16100_s13 + $0x50] sm:$0xf] }
0x1349   :  { %8478 = vmatpush.bf16.msrb.mxu0 %v10466_v12 }
0x134d   :  { %8479 = vmatpush.bf16.msrb.mxu0 %v10434_v46  ;;  %v8677_v46 = vld [vmem:[#allocation5 + $0x8] sm:$0xff] }
0x1351   :  { %v8147_v57 = vpop.f32.mrf.mxu2  ;;  %8480 = vmatpush.bf16.msrb.mxu0 %v10402_v14 }
0x1352   :  { %v8148_v54 = vadd.f32 %v8147_v57, %v8129_v9  ;;  %v10429_v57 = vld [vmem:[%s16100_s13 + $0x40] sm:$0xf] }
0x1353   :  { %v10430_v41 = vor.u32 %v10900_v60, %v10429_v57 }
0x1355   :  { %8450 = vmatpush.bf16.msrb.mxu2 %v10430_v41 }
0x1357   :  { %v8166_v0 = vpop.f32.mrf.mxu0 }
0x1358   :  { %v15751_v56 = vadd.f32 %v8166_v0, %v8148_v54  ;;  %v10454_v0 = vor.u32 %v10903_v22, %v10453_v15  ;;  %v8685_v22 = vld [vmem:[#allocation5 + $0x48] sm:$0xff] }
0x1359   :  { %v8149_v36 = vpop.f32.mrf.mxu2  ;;  %8451 = vmatpush.bf16.msrb.mxu2 %v10398_v28  ;;  %v8684_v28 = vld [vmem:[#allocation5 + $0x40] sm:$0xff] }
0x135a   :  { %v8150_v55 = vadd.f32 %v8149_v36, %v8131_v4  ;;  %v8176_v31 = vmax.f32 %v15751_v56, 0.0  ;;  %8624 = vmatpush.bf16.msrb.mxu1 %v10454_v0  ;;  %v10501_v56 = vld [vmem:[%s16100_s13 + $0xc8] sm:$0xf] }
0x135e   :  { %8625 = vmatpush.bf16.msrb.mxu1 %v10422_v51 }
0x135f   :  { %v8168_v40 = vpop.f32.mrf.mxu0 }
0x1360   :  { %v15754_v1 = vadd.f32 %v8168_v40, %v8150_v55 }
0x1361   :  { %v8152_v26 = vpop.f32.mrf.mxu2 }
0x1362   :  { %v8177_v16 = vmax.f32 %v15754_v1, 0.0  ;;  %v8153_v42 = vadd.f32 %v8152_v26, %v8134_v33  ;;  %v10917_v1 = vld [vmem:[%s16100_s13 + $0xe4] sm:$0x10]  ;;  %v10905_v33 = vld [vmem:[%s16100_s13 + $0x8c] sm:$0xf] }
0x1364   :  { %v11095_v32 = vpack.i.bf16 %v8177_v16, %v8176_v31 }
0x1366   :  { %11096 = vrot.lane.b32.xlu1 %v11095_v32, %s11202_s19 }
0x1367   :  { %v8171_v7 = vpop.f32.mrf.mxu0 }
0x1368   :  { %v8172_v19 = vadd.f32 %v8171_v7, %v8153_v42  ;;  %v10437_v42 = vld [vmem:[%s16100_s13 + $0x48] sm:$0xf] }
0x1369   :  { %v8154_v25 = vpop.f32.mrf.mxu2 }
0x136a   :  { %v8155_v43 = vadd.f32 %v8154_v25, %v8136_v34  ;;  %v8178_v47 = vmax.f32 %v8172_v19, 0.0  ;;  %v10471_v25 = vld [vmem:[%s16100_s13 + $0xa8] sm:$0xf0]  ;;  %v10901_v19 = vld [vmem:[%s16100_s13 + $0x64] sm:$0xf0] }
0x136b   :  { %v10474_v34 = vor.u32 %v10905_v33, %v10471_v25  ;;  %v10902_v33 = vld [vmem:[%s16100_s13 + $0x6c] sm:$0xf0]  ;;  %v10447_v25 = vld [vmem:[%s16100_s13 + $0x70] sm:$0xf0] }
0x136f   :  { %v8173_v37 = vpop.f32.mrf.mxu0 }
0x1370   :  { %v8174_v23 = vadd.f32 %v8173_v37, %v8155_v43  ;;  %v10897_v43 = vld [vmem:[%s16100_s13 + $0x4c] sm:$0xf] }
0x1371   :  { %v10439_v37 = vld [vmem:[%s16100_s13 + $0x68] sm:$0xf0] }
0x1372   :  { %v8179_v63 = vmax.f32 %v8174_v23, 0.0  ;;  %v10438_v23 = vor.u32 %v10901_v19, %v10437_v42  ;;  %v10413_v19 = vld [vmem:[%s16100_s13 + $0x10] sm:$0xf] }
0x1374   :  { %v11100_v52 = vpack.i.bf16 %v8179_v63, %v8178_v47 }
0x1376   :  { %11101 = vrot.lane.b32.xlu2 %v11100_v52, %s11202_s19  ;;  %v10405_v52 = vld [vmem:[%s16100_s13 + $0x8] sm:$0xf] }
0x1377   :  { %v10406_v13 = vor.u32 %v10893_v6, %v10405_v52  ;;  %v10915_v52 = vld [vmem:[%s16100_s13 + $0xdc] sm:$0xf] }
0x1378   :  { %v10519_v6 = vld [vmem:[%s16100_s13 + $0xf8] sm:$0x10] }
0x1379   :  { %v10522_v24 = vor.u32 %v10915_v52, %v10519_v6 }
0x13d0   :  { %v11102_v36 = vpop.permute.xlu2 %11101 }
0x13d1   :  { %v11104_v38 = vunpack.i.h.bf16 %v11102_v36  ;;  %v11103_v53 = vunpack.i.l.bf16 %v11102_v36 }
0x13d3   :  { %v8199_v9 = vmax.f32 %v8179_v63, %v11104_v38  ;;  %v8198_v35 = vmax.f32 %v8178_v47, %v11103_v53  ;;  %v10442_v47 = vor.u32 %v10897_v43, %v10439_v37  ;;  %v8692_v38 = vld [vmem:[#allocation5 + $0x80] sm:$0xff]  ;;  %v10894_v43 = vld [vmem:[%s16100_s13 + $0x2c] sm:$0xf0]  ;;  %v10890_v37 = vld [vmem:[%s16100_s13 + $0x14] sm:$0xf] }
0x13d5   :  { %v11110_v48 = vpack.i.bf16 %v8199_v9, %v8198_v35  ;;  %v15832_v26 = vpack.c.bf16 %v8199_v9, %v8198_v35 }
0x13d7   :  { %11111 = vrot.lane.b32.xlu1 %v11110_v48, %s11209_s20 }
0x13d8   :  { %v11097_v8 = vpop.permute.xlu1 %11096 }
0x13d9   :  { %v11099_v3 = vunpack.i.h.bf16 %v11097_v8  ;;  %v11098_v4 = vunpack.i.l.bf16 %v11097_v8 }
0x13db   :  { %v8197_v54 = vmax.f32 %v8177_v16, %v11099_v3  ;;  %v8196_v55 = vmax.f32 %v8176_v31, %v11098_v4  ;;  %v10913_v31 = vld [vmem:[%s16100_s13 + $0xcc] sm:$0xf]  ;;  %v10502_v16 = vor.u32 %v10917_v1, %v10501_v56  ;;  %v10509_v3 = vld [vmem:[%s16100_s13 + $0xd0] sm:$0xf] }
0x13dc   :  { %v10506_v32 = vor.u32 %v10913_v31, %v10503_v61  ;;  %v10918_v4 = vld [vmem:[%s16100_s13 + $0xec] sm:$0x10]  ;;  %v10906_v61 = vld [vmem:[%s16100_s13 + $0x94] sm:$0xf] }
0x13dd   :  { %v11105_v40 = vpack.i.bf16 %v8197_v54, %v8196_v55  ;;  %v15824_v30 = vpack.c.bf16 %v8197_v54, %v8196_v55  ;;  %v8427_v44 = vand.u32 %v10502_v16, %v15732_v59  ;;  %v10510_v54 = vor.u32 %v10918_v4, %v10509_v3  ;;  %v10914_v55 = vld [vmem:[%s16100_s13 + $0xd4] sm:$0xf]  ;;  %v10477_v31 = vld [vmem:[%s16100_s13 + $0x90] sm:$0xf] }
0x13de   :  { %v8430_v7 = vand.u32 %v10506_v32, %v15732_v59  ;;  %v10910_v16 = vld [vmem:[%s16100_s13 + $0xac] sm:$0xf0] }
0x13df   :  { %11106 = vrot.lane.b32.xlu0 %v11105_v40, %s11209_s20  ;;  %10523 = vmatmul.msk.bf16.vlgmr.msrb.gmra.mxu2 %vm8404_vm11, %v15824_v30  ;;  %v10511_v40 = vld [vmem:[%s16100_s13 + $0xf0] sm:$0x10]  ;;  %v8433_v1 = vand.u32 %v10510_v54, %v15732_v59 }
0x13e0   :  { %10527 = vmatmul.msk.bf16.vlgmr.msrb.gmra.mxu0 %vm8404_vm11, %v15824_v30  ;;  %10547 = vmatmul.msk.bf16.vlgmr.msrb.gmra.mxu1 %vm8404_vm11, %v15824_v30  ;;  %v10514_v56 = vor.u32 %v10914_v55, %v10511_v40 }
0x13e1   :  { %8506 = vmatpush.bf16.msra.mxu2 %v8427_v44  ;;  %8535 = vmatpush.bf16.msra.mxu0 %v8430_v7  ;;  %v10479_v44 = vld [vmem:[%s16100_s13 + $0xb0] sm:$0xf0]  ;;  %v10478_v7 = vor.u32 %v10910_v16, %v10477_v31  ;;  %v8724_v16 = vld [vmem:[#allocation5 + $0x180] sm:$0xff] }
0x13e2   :  { %v8436_v32 = vand.u32 %v10514_v56, %v15732_v59  ;;  %v10482_v27 = vor.u32 %v10906_v61, %v10479_v44 }
0x13e5   :  { %8507 = vmatpush.bf16.msra.mxu2 %v10470_v2  ;;  %8536 = vmatpush.bf16.msra.mxu0 %v10474_v34  ;;  %v10898_v2 = vld [vmem:[%s16100_s13 + $0x54] sm:$0xf]  ;;  %v10446_v34 = vor.u32 %v10902_v33, %v10445_v18 }
0x13e6   :  { %v10450_v42 = vor.u32 %v10898_v2, %v10447_v25 }
0x13e9   :  { %8508 = vmatpush.bf16.msra.mxu2 %v10438_v23  ;;  %8537 = vmatpush.bf16.msra.mxu0 %v10442_v47  ;;  %v10415_v23 = vld [vmem:[%s16100_s13 + $0x30] sm:$0xf0]  ;;  %v10414_v47 = vor.u32 %v10894_v43, %v10413_v19 }
0x13ed   :  { %8509 = vmatpush.bf16.msra.mxu2 %v10406_v13  ;;  %8538 = vmatpush.bf16.msra.mxu0 %v10410_v11  ;;  %v10487_v13 = vld [vmem:[%s16100_s13 + $0xb8] sm:$0xf0] }
0x13ef   :  { %10524 = vmatmul.msk.bf16.gmra.mxu2 %vm8404_vm11, %v15832_v26 }
0x13f0   :  { %10528 = vmatmul.msk.bf16.gmra.mxu0 %vm8404_vm11, %v15832_v26  ;;  %10548 = vmatmul.msk.bf16.gmra.mxu1 %vm8404_vm11, %v15832_v26 }
0x13f1   :  { %8564 = vmatpush.bf16.msrb.mxu2 %v8433_v1  ;;  %8593 = vmatpush.bf16.msrb.mxu0 %v8436_v32  ;;  %v8733_v32 = vld [vmem:[#allocation5 + $0x1c8] sm:$0xff] }
0x13f5   :  { %8565 = vmatpush.bf16.msrb.mxu2 %v10478_v7  ;;  %8594 = vmatpush.bf16.msrb.mxu0 %v10482_v27 }
0x13f9   :  { %8566 = vmatpush.bf16.msrb.mxu2 %v10446_v34  ;;  %8595 = vmatpush.bf16.msrb.mxu0 %v10450_v42  ;;  %v8732_v42 = vld [vmem:[#allocation5 + $0x1c0] sm:$0xff] }
0x13fd   :  { %8567 = vmatpush.bf16.msrb.mxu2 %v10414_v47 }
0x1449   :  { %v11112_v49 = vpop.permute.xlu1 %11111 }
0x144a   :  { %v11114_v60 = vunpack.i.h.bf16 %v11112_v49  ;;  %v11113_v20 = vunpack.i.l.bf16 %v11112_v49  ;;  %v10899_v49 = vld [vmem:[%s16100_s13 + $0x5c] sm:$0xf] }
0x144c   :  { %v15898_v39 = vpack.c.bf16 %v11114_v60, %v11113_v20  ;;  %v10891_v20 = vld [vmem:[%s16100_s13 + $0x1c] sm:$0xf] }
0x1451   :  { %v11107_v63 = vpop.permute.xlu0 %11106 }
0x1452   :  { %v11109_v45 = vunpack.i.h.bf16 %v11107_v63  ;;  %v11108_v29 = vunpack.i.l.bf16 %v11107_v63  ;;  %v10418_v63 = vor.u32 %v10890_v37, %v10415_v23 }
0x1454   :  { %v15890_v12 = vpack.c.bf16 %v11109_v45, %v11108_v29  ;;  %8596 = vmatpush.bf16.msrb.mxu0 %v10418_v63  ;;  %v8442_v45 = vand.u32 %v10522_v24, %v15732_v59  ;;  %v10907_v29 = vld [vmem:[%s16100_s13 + $0x9c] sm:$0xf] }
0x1455   :  { %v10490_v17 = vor.u32 %v10907_v29, %v10487_v13  ;;  %v10455_v59 = vld [vmem:[%s16100_s13 + $0x78] sm:$0xf0] }
0x1456   :  { %10525 = vmatmul.msk.bf16.gmra.mxu2 %vm8404_vm11, %v15890_v12  ;;  %10529 = vmatmul.msk.bf16.gmra.mxu0 %vm8404_vm11, %v15890_v12 }
0x1457   :  { %10549 = vmatmul.msk.bf16.gmra.mxu1 %vm8404_vm11, %v15890_v12 }
0x145d   :  { %v8482_v57 = vpop.f32.mrf.mxu0 }
0x145e   :  { %v8741_v21 = vmul.f32 %v8677_v46, %v8482_v57  ;;  %v10458_v57 = vor.u32 %v10899_v49, %v10455_v59  ;;  %v8709_v46 = vld [vmem:[#allocation5 + $0x108] sm:$0xff]  ;;  %v8679_v49 = vld [vmem:[#allocation5 + $0x18] sm:$0xff] }
0x1462   :  { %v8453_v41 = vpop.f32.mrf.mxu2 }
0x1463   :  { %v8740_v53 = vmul.f32 %v8676_v10, %v8453_v41  ;;  %v10423_v41 = vld [vmem:[%s16100_s13 + $0x38] sm:$0xf0] }
0x1465   :  { %v8484_v15 = vpop.f32.mrf.mxu0 }
0x1466   :  { %10526 = vmatmul.msk.bf16.gmra.mxu2 %vm8404_vm11, %v15898_v39  ;;  %10530 = vmatmul.msk.bf16.gmra.mxu0 %vm8404_vm11, %v15898_v39  ;;  %v8749_v0 = vmul.f32 %v8685_v22, %v8484_v15  ;;  %v10426_v15 = vor.u32 %v10891_v20, %v10423_v41 }
0x1467   :  { %10550 = vmatmul.msk.bf16.gmra.mxu1 %vm8404_vm11, %v15898_v39 }
0x1468   :  { %v8813_v62 = vadd.f32 %v8749_v0, %v8741_v21 }
0x146a   :  { %v8455_v50 = vpop.f32.mrf.mxu2 }
0x146b   :  { %v8748_v51 = vmul.f32 %v8684_v28, %v8455_v50  ;;  %v8717_v50 = vld [vmem:[#allocation5 + $0x148] sm:$0xff] }
0x146d   :  { %v8487_v58 = vpop.f32.mrf.mxu0  ;;  %v8804_v35 = vadd.f32 %v8748_v51, %v8740_v53  ;;  %v8716_v51 = vld [vmem:[#allocation5 + $0x140] sm:$0xff] }
0x146e   :  { %v8757_v14 = vmul.f32 %v8693_v5, %v8487_v58  ;;  %v8701_v5 = vld [vmem:[#allocation5 + $0xc8] sm:$0xff] }
0x1470   :  { %v15906_v36 = vadd.f32 %v8813_v62, %v8757_v14  ;;  %v8708_v14 = vld [vmem:[#allocation5 + $0x100] sm:$0xff] }
0x1472   :  { %v8458_v9 = vpop.f32.mrf.mxu2 }
0x1473   :  { %v8756_v48 = vmul.f32 %v8692_v38, %v8458_v9  ;;  %v8700_v38 = vld [vmem:[#allocation5 + $0xc0] sm:$0xff]  ;;  %v8725_v9 = vld [vmem:[#allocation5 + $0x188] sm:$0xff] }
0x1475   :  { %v15908_v8 = vadd.f32 %v8804_v35, %v8756_v48  ;;  %v8489_v11 = vpop.f32.mrf.mxu0 }
0x1476   :  { %10531 = vmatmul.msk.bf16.vlgmr.msra.gmra.mxu2 %vm8404_vm11, %v15824_v30  ;;  %10535 = vmatmul.msk.bf16.vlgmr.msra.gmra.mxu0 %vm8404_vm11, %v15824_v30  ;;  %v8765_v10 = vmul.f32 %v8701_v5, %v8489_v11 }
0x1477   :  { %8651 = vmatpush.bf16.msra.mxu2 %v8442_v45 }
0x1478   :  { %v8815_v35 = vadd.f32 %v15906_v36, %v8765_v10 }
0x147a   :  { %v8460_v60 = vpop.f32.mrf.mxu2  ;;  %v8816_v56 = vrot.slane %v8815_v35, 4 }
0x147b   :  { %8652 = vmatpush.bf16.msra.mxu2 %v10490_v17  ;;  %v8764_v4 = vmul.f32 %v8700_v38, %v8460_v60 }
0x147c   :  { %v8817_v36 = vadd.f32 %v8816_v56, %v8815_v35 }
0x147d   :  { %v8806_v31 = vadd.f32 %v15908_v8, %v8764_v4 }
0x147e   :  { %v8818_v2 = vrot.slane %v8817_v36, 2 }
0x147f   :  { %8653 = vmatpush.bf16.msra.mxu2 %v10458_v57  ;;  %v8807_v7 = vrot.slane %v8806_v31, 4  ;;  %v8687_v57 = vld [vmem:[#allocation5 + $0x58] sm:$0xff] }
0x1480   :  { %v8819_v37 = vadd.f32 %v8818_v2, %v8817_v36  ;;  %v8719_v2 = vld [vmem:[#allocation5 + $0x158] sm:$0xff] }
0x1481   :  { %v8808_v34 = vadd.f32 %v8807_v7, %v8806_v31 }
0x1482   :  { %v8820_v24 = vrot.slane %v8819_v37, 1 }
0x1483   :  { %8654 = vmatpush.bf16.msra.mxu2 %v10426_v15  ;;  %v8809_v63 = vrot.slane %v8808_v34, 2 }
0x1484   :  { %v8821_v60 = vadd.f32 %v8820_v24, %v8819_v37  ;;  %v8718_v37 = vld [vmem:[#allocation5 + $0x150] sm:$0xff] }
0x1485   :  { %v8810_v13 = vadd.f32 %v8809_v63, %v8808_v34 }
0x1486   :  { %10532 = vmatmul.msk.bf16.gmra.mxu2 %vm8404_vm11, %v15832_v26  ;;  %10536 = vmatmul.msk.bf16.gmra.mxu0 %vm8404_vm11, %v15832_v26 }
0x1487   :  { %v8811_v15 = vrot.slane %v8810_v13, 1 }
0x1489   :  { %v8812_v10 = vadd.f32 %v8811_v15, %v8810_v13  ;;  %v8726_v13 = vld [vmem:[#allocation5 + $0x190] sm:$0xff] }
0x1496   :  { %10533 = vmatmul.msk.bf16.gmra.mxu2 %vm8404_vm11, %v15890_v12  ;;  %10537 = vmatmul.msk.bf16.gmra.mxu0 %vm8404_vm11, %v15890_v12 }
0x14a6   :  { %10534 = vmatmul.msk.bf16.gmra.mxu2 %vm8404_vm11, %v15898_v39  ;;  %10538 = vmatmul.msk.bf16.gmra.mxu0 %vm8404_vm11, %v15898_v39 }
0x14b6   :  { %10539 = vmatmul.msk.bf16.vlgmr.msrb.gmra.mxu2 %vm8404_vm11, %v15824_v30  ;;  %10543 = vmatmul.msk.bf16.vlgmr.msrb.gmra.mxu0 %vm8404_vm11, %v15824_v30 }
0x14c6   :  { %10540 = vmatmul.msk.bf16.gmra.mxu2 %vm8404_vm11, %v15832_v26  ;;  %10544 = vmatmul.msk.bf16.gmra.mxu0 %vm8404_vm11, %v15832_v26 }
0x14d3   :  { %v8492_v22 = vpop.f32.mrf.mxu0 }
0x14d4   :  { %v8773_v28 = vmul.f32 %v8709_v46, %v8492_v22 }
0x14d6   :  { %10541 = vmatmul.msk.bf16.gmra.mxu2 %vm8404_vm11, %v15890_v12  ;;  %10545 = vmatmul.msk.bf16.gmra.mxu0 %vm8404_vm11, %v15890_v12 }
0x14d9   :  { %v8463_v0 = vpop.f32.mrf.mxu2 }
0x14da   :  { %v8772_v48 = vmul.f32 %v8708_v14, %v8463_v0 }
0x14db   :  { %v8494_v21 = vpop.f32.mrf.mxu0 }
0x14dc   :  { %v8781_v58 = vmul.f32 %v8717_v50, %v8494_v21 }
0x14de   :  { %v8885_v62 = vadd.f32 %v8781_v58, %v8773_v28  ;;  %v8686_v58 = vld [vmem:[#allocation5 + $0x50] sm:$0xff] }
0x14e1   :  { %v8465_v53 = vpop.f32.mrf.mxu2 }
0x14e2   :  { %v8780_v3 = vmul.f32 %v8716_v51, %v8465_v53  ;;  %v8695_v51 = vld [vmem:[#allocation5 + $0x98] sm:$0xff] }
0x14e3   :  { %v8497_v54 = vpop.f32.mrf.mxu0 }
0x14e4   :  { %v8876_v55 = vadd.f32 %v8780_v3, %v8772_v48  ;;  %v8789_v40 = vmul.f32 %v8725_v9, %v8497_v54  ;;  %v8694_v54 = vld [vmem:[#allocation5 + $0x90] sm:$0xff] }
0x14e6   :  { %v8886_v1 = vadd.f32 %v8885_v62, %v8789_v40  ;;  %10542 = vmatmul.msk.bf16.gmra.mxu2 %vm8404_vm11, %v15898_v39  ;;  %10546 = vmatmul.msk.bf16.gmra.mxu0 %vm8404_vm11, %v15898_v39  ;;  %v8703_v40 = vld [vmem:[#allocation5 + $0xd8] sm:$0xff] }
0x14e9   :  { %v8468_v61 = vpop.f32.mrf.mxu2 }
0x14ea   :  { %v8788_v44 = vmul.f32 %v8724_v16, %v8468_v61 }
0x14eb   :  { %v8499_v27 = vpop.f32.mrf.mxu0 }
0x14ec   :  { %v8877_v18 = vadd.f32 %v8876_v55, %v8788_v44  ;;  %v8797_v33 = vmul.f32 %v8733_v32, %v8499_v27  ;;  %v8702_v32 = vld [vmem:[#allocation5 + $0xd0] sm:$0xff] }
0x14ee   :  { %v8887_v25 = vadd.f32 %v8886_v1, %v8797_v33 }
0x14f0   :  { %v8888_v19 = vrot.slane %v8887_v25, 4 }
0x14f1   :  { %v8470_v43 = vpop.f32.mrf.mxu2 }
0x14f2   :  { %v8889_v23 = vadd.f32 %v8888_v19, %v8887_v25  ;;  %v8796_v47 = vmul.f32 %v8732_v42, %v8470_v43  ;;  %v8710_v43 = vld [vmem:[#allocation5 + $0x110] sm:$0xff] }
0x14f3   :  { %v8540_v8 = vpop.f32.mrf.mxu0 }
0x14f4   :  { %v8890_v52 = vrot.slane %v8889_v23, 2  ;;  %v8878_v6 = vadd.f32 %v8877_v18, %v8796_v47  ;;  %v8743_v0 = vmul.f32 %v8679_v49, %v8540_v8  ;;  %v8711_v18 = vld [vmem:[#allocation5 + $0x118] sm:$0xff] }
0x14f5   :  { %v8727_v47 = vld [vmem:[#allocation5 + $0x198] sm:$0xff] }
0x14f6   :  { %v8891_v45 = vadd.f32 %v8890_v52, %v8889_v23  ;;  %v8879_v29 = vrot.slane %v8878_v6, 4  ;;  %10551 = vmatmul.msk.bf16.vlgmr.msra.gmra.mxu2 %vm8404_vm11, %v15824_v30  ;;  %v8678_v30 = vld [vmem:[#allocation5 + $0x10] sm:$0xff] }
0x14f8   :  { %v8892_v17 = vrot.slane %v8891_v45, 1  ;;  %v8880_v11 = vadd.f32 %v8879_v29, %v8878_v6 }
0x14f9   :  { %v8511_v59 = vpop.f32.mrf.mxu2 }
0x14fa   :  { %v8893_v20 = vadd.f32 %v8892_v17, %v8891_v45  ;;  %v8881_v41 = vrot.slane %v8880_v11, 2  ;;  %v8742_v38 = vmul.f32 %v8678_v30, %v8511_v59 }
0x14fb   :  { %v8542_v22 = vpop.f32.mrf.mxu0 }
0x14fc   :  { %v8882_v46 = vadd.f32 %v8881_v41, %v8880_v11  ;;  %v8751_v50 = vmul.f32 %v8687_v57, %v8542_v22  ;;  %v16022_v5 = vsel %vm296_vm0, %v8821_v60, %v8893_v20  ;;  %v8735_v11 = vld [vmem:[#allocation5 + $0x1d8] sm:$0xff] }
0x14fe   :  { %v8883_v21 = vrot.slane %v8882_v46, 1  ;;  %v8831_v28 = vadd.f32 %v8751_v50, %v8743_v0  ;;  %v8734_v0 = vld [vmem:[#allocation5 + $0x1d0] sm:$0xff] }
0x1500   :  { %v8884_v62 = vadd.f32 %v8883_v21, %v8882_v46 }
0x1501   :  { %v8513_v14 = vpop.f32.mrf.mxu2 }
0x1502   :  { %v8750_v53 = vmul.f32 %v8686_v58, %v8513_v14  ;;  %v16025_v9 = vsel %vm296_vm0, %v8812_v10, %v8884_v62 }
0x1503   :  { %v8545_v35 = vpop.f32.mrf.mxu0 }
0x1504   :  { %v8822_v48 = vadd.f32 %v8750_v53, %v8742_v38  ;;  %v8759_v3 = vmul.f32 %v8695_v51, %v8545_v35 }
0x1506   :  { %v8832_v4 = vadd.f32 %v8831_v28, %v8759_v3  ;;  %10552 = vmatmul.msk.bf16.gmra.mxu2 %vm8404_vm11, %v15832_v26  ;;  %v16031_v26 = vpop.f32.mrf.mxu1 }
0x1509   :  { %v8516_v55 = vpop.f32.mrf.mxu2 }
0x150a   :  { %v8758_v56 = vmul.f32 %v8694_v54, %v8516_v55 }
0x150b   :  { %v8547_v1 = vpop.f32.mrf.mxu0 }
0x150c   :  { %v8823_v31 = vadd.f32 %v8822_v48, %v8758_v56  ;;  %v8767_v16 = vmul.f32 %v8703_v40, %v8547_v1 }
0x150e   :  { %v8833_v61 = vadd.f32 %v8832_v4, %v8767_v16  ;;  %v16033_v45 = vpop.f32.mrf.mxu1 }
0x1511   :  { %v8518_v36 = vpop.f32.mrf.mxu2 }
0x1512   :  { %v8766_v44 = vmul.f32 %v8702_v32, %v8518_v36  ;;  %v8680_v32 = vld [vmem:[#allocation5 + $0x20] sm:$0xff] }
0x1513   :  { %v8550_v7 = vpop.f32.mrf.mxu0  ;;  %v8688_v36 = vld [vmem:[#allocation5 + $0x60] sm:$0xff] }
0x1514   :  { %v8824_v27 = vadd.f32 %v8823_v31, %v8766_v44  ;;  %v8775_v34 = vmul.f32 %v8711_v18, %v8550_v7 }
0x1516   :  { %10553 = vmatmul.msk.bf16.gmra.mxu2 %vm8404_vm11, %v15890_v12  ;;  %v8834_v12 = vrot.slane %v8833_v61, 4  ;;  %v8825_v60 = vrot.slane %v8824_v27, 4  ;;  %v16037_v46 = vpop.f32.mrf.mxu1 }
0x1518   :  { %v8835_v49 = vadd.f32 %v8834_v12, %v8833_v61  ;;  %v8826_v50 = vadd.f32 %v8825_v60, %v8824_v27 }
0x1519   :  { %v8521_v33 = vpop.f32.mrf.mxu2 }
0x151a   :  { %v8774_v63 = vmul.f32 %v8710_v43, %v8521_v33  ;;  %v8836_v15 = vrot.slane %v8835_v49, 2  ;;  %v8827_v10 = vrot.slane %v8826_v50, 2 }
0x151b   :  { %v8552_v25 = vpop.f32.mrf.mxu0 }
0x151c   :  { %v8783_v42 = vmul.f32 %v8719_v2, %v8552_v25  ;;  %v8837_v30 = vadd.f32 %v8836_v15, %v8835_v49  ;;  %v8828_v35 = vadd.f32 %v8827_v10, %v8826_v50  ;;  %v8682_v49 = vld [vmem:[#allocation5 + $0x30] sm:$0xff]  ;;  %v8720_v15 = vld [vmem:[#allocation5 + $0x160] sm:$0xff] }
0x151e   :  { %v8903_v19 = vadd.f32 %v8783_v42, %v8775_v34  ;;  %v8838_v51 = vrot.slane %v8837_v30, 1  ;;  %v8634_v4 = vpop.f32.mrf.mxu1  ;;  %v8829_v1 = vrot.slane %v8828_v35, 1  ;;  %v8696_v42 = vld [vmem:[#allocation5 + $0xa0] sm:$0xff] }
0x1520   :  { %v8839_v55 = vadd.f32 %v8838_v51, %v8837_v30  ;;  %v8830_v44 = vadd.f32 %v8829_v1, %v8828_v35  ;;  %v8706_v30 = vld [vmem:[#allocation5 + $0xf0] sm:$0xff] }
0x1521   :  { %v8523_v23 = vpop.f32.mrf.mxu2 }
0x1522   :  { %v8782_v8 = vmul.f32 %v8718_v37, %v8523_v23 }
0x1523   :  { %v8555_v52 = vpop.f32.mrf.mxu0 }
0x1524   :  { %v8894_v6 = vadd.f32 %v8782_v8, %v8774_v63  ;;  %v8791_v24 = vmul.f32 %v8727_v47, %v8555_v52  ;;  %v8704_v47 = vld [vmem:[#allocation5 + $0xe0] sm:$0xff] }
0x1526   :  { %v8904_v29 = vadd.f32 %v8903_v19, %v8791_v24  ;;  %10554 = vmatmul.msk.bf16.gmra.mxu2 %vm8404_vm11, %v15898_v39  ;;  %v8637_v27 = vpop.f32.mrf.mxu1 }
0x1529   :  { %v8526_v17 = vpop.f32.mrf.mxu2 }
0x152a   :  { %v8790_v59 = vmul.f32 %v8726_v13, %v8526_v17  ;;  %v8690_v13 = vld [vmem:[#allocation5 + $0x70] sm:$0xff] }
0x152b   :  { %v8557_v57 = vpop.f32.mrf.mxu0  ;;  %v8714_v17 = vld [vmem:[#allocation5 + $0x130] sm:$0xff] }
0x152c   :  { %v8895_v20 = vadd.f32 %v8894_v6, %v8790_v59  ;;  %v8799_v41 = vmul.f32 %v8735_v11, %v8557_v57  ;;  %v8730_v11 = vld [vmem:[#allocation5 + $0x1b0] sm:$0xff] }
0x152d   :  { %v8698_v59 = vld [vmem:[#allocation5 + $0xb0] sm:$0xff] }
0x152e   :  { %v8905_v22 = vadd.f32 %v8904_v29, %v8799_v41  ;;  %v8639_v37 = vpop.f32.mrf.mxu1  ;;  %v8722_v29 = vld [vmem:[#allocation5 + $0x170] sm:$0xff]  ;;  %v8712_v41 = vld [vmem:[#allocation5 + $0x120] sm:$0xff] }
0x152f   :  { %v8786_v57 = vmul.f32 %v8722_v29, %v8639_v37 }
0x1530   :  { %v8906_v21 = vrot.slane %v8905_v22, 4 }
0x1531   :  { %v8528_v28 = vpop.f32.mrf.mxu2 }
0x1532   :  { %v8907_v58 = vadd.f32 %v8906_v21, %v8905_v22  ;;  %v8798_v39 = vmul.f32 %v8734_v0, %v8528_v28  ;;  %v8754_v22 = vmul.f32 %v8690_v13, %v16033_v45  ;;  %v8778_v0 = vmul.f32 %v8714_v17, %v8637_v27 }
0x1533   :  { %v16045_v24 = vpop.f32.mrf.mxu0  ;;  %v8746_v21 = vmul.f32 %v8682_v49, %v16031_v26  ;;  %v8762_v28 = vmul.f32 %v8698_v59, %v16037_v46 }
0x1534   :  { %v8908_v62 = vrot.slane %v8907_v58, 2  ;;  %v8896_v14 = vadd.f32 %v8895_v20, %v8798_v39  ;;  %v8738_v20 = vld [vmem:[#allocation5 + $0x1f0] sm:$0xff]  ;;  %v8930_v10 = vadd.f32 %v8786_v57, %v8778_v0 }
0x1536   :  { %v8909_v38 = vadd.f32 %v8908_v62, %v8907_v58  ;;  %v8897_v53 = vrot.slane %v8896_v14, 4  ;;  %v8642_v6 = vpop.f32.mrf.mxu1 }
0x1537   :  { %v8794_v50 = vmul.f32 %v8730_v11, %v8642_v6 }
0x1538   :  { %v8910_v48 = vrot.slane %v8909_v38, 1  ;;  %v8898_v3 = vadd.f32 %v8897_v53, %v8896_v14  ;;  %v8770_v53 = vmul.f32 %v8706_v30, %v8634_v4 }
0x1539   :  { %v8569_v54 = vpop.f32.mrf.mxu2  ;;  %v8931_v35 = vadd.f32 %v8930_v10, %v8794_v50 }
0x153a   :  { %v8911_v40 = vadd.f32 %v8910_v48, %v8909_v38  ;;  %v8899_v56 = vrot.slane %v8898_v3, 2  ;;  %v8744_v33 = vmul.f32 %v8680_v32, %v8569_v54  ;;  %v8858_v38 = vadd.f32 %v8754_v22, %v8746_v21  ;;  %v8728_v54 = vld [vmem:[#allocation5 + $0x1a0] sm:$0xff] }
0x153b   :  { %v16050_v58 = vpop.f32.mrf.mxu0 }
0x153c   :  { %v8900_v31 = vadd.f32 %v8899_v56, %v8898_v3  ;;  %v16040_v16 = vsel %vm296_vm0, %v8839_v55, %v8911_v40  ;;  %v8859_v3 = vadd.f32 %v8858_v38, %v8762_v28  ;;  %v8681_v38 = vld [vmem:[#allocation5 + $0x28] sm:$0xff] }
0x153e   :  { %v8901_v61 = vrot.slane %v8900_v31, 1  ;;  %v8644_v60 = vpop.f32.mrf.mxu1  ;;  %v8860_v55 = vadd.f32 %v8859_v3, %v8770_v53 }
0x153f   :  { %v8802_v62 = vmul.f32 %v8738_v20, %v8644_v60 }
0x1540   :  { %v8902_v7 = vadd.f32 %v8901_v61, %v8900_v31  ;;  %v8861_v1 = vrot.slane %v8860_v55, 4 }
0x1541   :  { %v8571_v18 = vpop.f32.mrf.mxu2  ;;  %v8932_v45 = vadd.f32 %v8931_v35, %v8802_v62  ;;  %v8689_v62 = vld [vmem:[#allocation5 + $0x68] sm:$0xff] }
0x1542   :  { %v8752_v2 = vmul.f32 %v8688_v36, %v8571_v18  ;;  %v16043_v25 = vsel %vm296_vm0, %v8830_v44, %v8902_v7  ;;  %v8736_v36 = vld [vmem:[#allocation5 + $0x1e0] sm:$0xff]  ;;  %v8862_v44 = vadd.f32 %v8861_v1, %v8860_v55  ;;  %v8753_v35 = vmul.f32 %v8689_v62, %v16050_v58 }
0x1543   :  { %v8933_v26 = vrot.slane %v8932_v45, 4  ;;  %v8603_v46 = vpop.f32.mrf.mxu0  ;;  %v8745_v55 = vmul.f32 %v8681_v38, %v16045_v24 }
0x1544   :  { %v8840_v34 = vadd.f32 %v8752_v2, %v8744_v33  ;;  %v8863_v33 = vrot.slane %v8862_v44, 2 }
0x1545   :  { %v8934_v32 = vadd.f32 %v8933_v26, %v8932_v45  ;;  %v8691_v45 = vld [vmem:[#allocation5 + $0x78] sm:$0xff] }
0x1546   :  { %v8864_v37 = vadd.f32 %v8863_v33, %v8862_v44  ;;  %v8683_v26 = vld [vmem:[#allocation5 + $0x38] sm:$0xff] }
0x1547   :  { %v8935_v18 = vrot.slane %v8934_v32, 2  ;;  %v8707_v44 = vld [vmem:[#allocation5 + $0xf8] sm:$0xff] }
0x1549   :  { %v8574_v19 = vpop.f32.mrf.mxu2 }
0x154a   :  { %v8760_v43 = vmul.f32 %v8696_v42, %v8574_v19  ;;  %v8936_v19 = vadd.f32 %v8935_v18, %v8934_v32 }
0x154b   :  { %v8605_v42 = vpop.f32.mrf.mxu0 }
0x154c   :  { %v8841_v23 = vadd.f32 %v8840_v34, %v8760_v43 }
0x1551   :  { %v8576_v63 = vpop.f32.mrf.mxu2 }
0x1552   :  { %v8768_v8 = vmul.f32 %v8704_v47, %v8576_v63 }
0x1553   :  { %v8608_v11 = vpop.f32.mrf.mxu0 }
0x1554   :  { %v8842_v52 = vadd.f32 %v8841_v23, %v8768_v8  ;;  %v8937_v8 = vrot.slane %v8936_v19, 1 }
0x1556   :  { %v8843_v31 = vrot.slane %v8842_v52, 4  ;;  %v8938_v17 = vadd.f32 %v8937_v8, %v8936_v19 }
0x1558   :  { %v8844_v7 = vadd.f32 %v8843_v31, %v8842_v52 }
0x1559   :  { %v8579_v12 = vpop.f32.mrf.mxu2 }
0x155a   :  { %v8776_v14 = vmul.f32 %v8712_v41, %v8579_v12  ;;  %v8845_v2 = vrot.slane %v8844_v7, 2  ;;  %v8865_v12 = vrot.slane %v8864_v37, 1 }
0x155b   :  { %v8610_v50 = vpop.f32.mrf.mxu0 }
0x155c   :  { %v8846_v23 = vadd.f32 %v8845_v2, %v8844_v7  ;;  %v8866_v49 = vadd.f32 %v8865_v12, %v8864_v37  ;;  %v8731_v12 = vld [vmem:[#allocation5 + $0x1b8] sm:$0xff] }
0x155e   :  { %v8847_v29 = vrot.slane %v8846_v23, 1  ;;  %v8954_v41 = vsel %vm296_vm0, %v8866_v49, %v8938_v17 }
0x155f   :  { %v8958_v22 = vadd.f32 %v8954_v41, %v16043_v25 }
0x1560   :  { %v8848_v59 = vadd.f32 %v8847_v29, %v8846_v23 }
0x1561   :  { %v8581_v39 = vpop.f32.mrf.mxu2 }
0x1562   :  { %v8784_v51 = vmul.f32 %v8720_v15, %v8581_v39  ;;  %v8721_v39 = vld [vmem:[#allocation5 + $0x168] sm:$0xff] }
0x1563   :  { %v8613_v30 = vpop.f32.mrf.mxu0  ;;  %v8785_v53 = vmul.f32 %v8721_v39, %v8610_v50 }
0x1564   :  { %v8912_v48 = vadd.f32 %v8784_v51, %v8776_v14  ;;  %v8713_v14 = vld [vmem:[#allocation5 + $0x128] sm:$0xff] }
0x1565   :  { %v8729_v51 = vld [vmem:[#allocation5 + $0x1a8] sm:$0xff]  ;;  %v8777_v25 = vmul.f32 %v8713_v14, %v8608_v11  ;;  %v8739_v11 = vld [vmem:[#allocation5 + $0x1f8] sm:$0xff] }
0x1567   :  { %v8921_v31 = vadd.f32 %v8785_v53, %v8777_v25 }
0x1569   :  { %v8584_v40 = vpop.f32.mrf.mxu2 }
0x156a   :  { %v8792_v56 = vmul.f32 %v8728_v54, %v8584_v40  ;;  %v8793_v54 = vmul.f32 %v8729_v51, %v8613_v30  ;;  %v8705_v40 = vld [vmem:[#allocation5 + $0xe8] sm:$0xff] }
0x156b   :  { %v8615_v3 = vpop.f32.mrf.mxu0 }
0x156c   :  { %v8913_v61 = vadd.f32 %v8912_v48, %v8792_v56  ;;  %v8697_v48 = vld [vmem:[#allocation5 + $0xa8] sm:$0xff]  ;;  %v8699_v56 = vld [vmem:[#allocation5 + $0xb8] sm:$0xff]  ;;  %v8922_v58 = vadd.f32 %v8921_v31, %v8793_v54 }
0x156d   :  { %v8761_v1 = vmul.f32 %v8697_v48, %v8603_v46 }
0x1571   :  { %v8586_v27 = vpop.f32.mrf.mxu2 }
0x1572   :  { %v8800_v4 = vmul.f32 %v8736_v36, %v8586_v27  ;;  %v8849_v36 = vadd.f32 %v8753_v35, %v8745_v55  ;;  %v8769_v27 = vmul.f32 %v8705_v40, %v8605_v42 }
0x1574   :  { %v8914_v34 = vadd.f32 %v8913_v61, %v8800_v4  ;;  %v8850_v33 = vadd.f32 %v8849_v36, %v8761_v1  ;;  %v8982_v1 = vld [vmem:[%s16103_s16 + $0x18] sm:$0xff] }
0x1575   :  { %9003 = vmatpush.msra.mxu0 %v8982_v1 }
0x1576   :  { %v8915_v43 = vrot.slane %v8914_v34, 4 }
0x1578   :  { %v8916_v47 = vadd.f32 %v8915_v43, %v8914_v34  ;;  %v8851_v43 = vadd.f32 %v8850_v33, %v8769_v27 }
0x1579   :  { %v8656_v63 = vpop.f32.mrf.mxu2 }
0x157a   :  { %v8917_v6 = vrot.slane %v8916_v47, 2  ;;  %v8747_v18 = vmul.f32 %v8683_v26, %v8656_v63  ;;  %v8852_v8 = vrot.slane %v8851_v43, 4 }
0x157c   :  { %v8918_v13 = vadd.f32 %v8917_v6, %v8916_v47  ;;  %v8723_v47 = vld [vmem:[#allocation5 + $0x178] sm:$0xff]  ;;  %v8853_v42 = vadd.f32 %v8852_v8, %v8851_v43 }
0x157d   :  { %v8715_v6 = vld [vmem:[#allocation5 + $0x138] sm:$0xff] }
0x157e   :  { %v8919_v52 = vrot.slane %v8918_v13, 1 }
0x1580   :  { %v8920_v57 = vadd.f32 %v8919_v52, %v8918_v13 }
0x1581   :  { %v8658_v60 = vpop.f32.mrf.mxu2 }
0x1582   :  { %v8952_v20 = vsel %vm296_vm0, %v8848_v59, %v8920_v57  ;;  %v8755_v32 = vmul.f32 %v8691_v45, %v8658_v60 }
0x1583   :  { %v8956_v15 = vadd.f32 %v8952_v20, %v16025_v9  ;;  %v8737_v9 = vld [vmem:[#allocation5 + $0x1e8] sm:$0xff]  ;;  %v8854_v20 = vrot.slane %v8853_v42, 2 }
0x1584   :  { %v8801_v61 = vmul.f32 %v8737_v9, %v8615_v3  ;;  %v8867_v34 = vadd.f32 %v8755_v32, %v8747_v18  ;;  %v11115_v32 = vld [vmem:[%s16102_s15] ss:$0 sm:$0xff] }
0x1585   :  { %v16056_v0 = vadd.f32 %v8958_v22, %v8956_v15 }
0x1586   :  { %v8923_v2 = vadd.f32 %v8922_v58, %v8801_v61  ;;  %v11116_v58 = vld [vmem:[%s16104_s17] ss:$0 sm:$0xff] }
0x1588   :  { %v8924_v37 = vrot.slane %v8923_v2, 4 }
0x1589   :  { %v8661_v21 = vpop.f32.mrf.mxu2 }
0x158a   :  { %v8763_v4 = vmul.f32 %v8699_v56, %v8661_v21  ;;  %v8925_v29 = vadd.f32 %v8924_v37, %v8923_v2 }
0x158c   :  { %v8868_v24 = vadd.f32 %v8867_v34, %v8763_v4  ;;  %v8926_v49 = vrot.slane %v8925_v29, 2 }
0x158e   :  { %v8927_v22 = vadd.f32 %v8926_v49, %v8925_v29 }
0x1590   :  { %v8928_v39 = vrot.slane %v8927_v22, 1 }
0x1591   :  { %v8663_v28 = vpop.f32.mrf.mxu2 }
0x1592   :  { %v8771_v19 = vmul.f32 %v8707_v44, %v8663_v28  ;;  %v8855_v28 = vadd.f32 %v8854_v20, %v8853_v42 }
0x1594   :  { %v8869_v23 = vadd.f32 %v8868_v24, %v8771_v19  ;;  %v8856_v51 = vrot.slane %v8855_v28, 1 }
0x1596   :  { %v8870_v13 = vrot.slane %v8869_v23, 4  ;;  %v8857_v48 = vadd.f32 %v8856_v51, %v8855_v28 }
0x1598   :  { %v8871_v59 = vadd.f32 %v8870_v13, %v8869_v23 }
0x1599   :  { %v8666_v10 = vpop.f32.mrf.mxu2 }
0x159a   :  { %v8779_v52 = vmul.f32 %v8715_v6, %v8666_v10  ;;  %v8872_v50 = vrot.slane %v8871_v59, 2  ;;  %v8929_v10 = vadd.f32 %v8928_v39, %v8927_v22 }
0x159c   :  { %v8873_v62 = vadd.f32 %v8872_v50, %v8871_v59  ;;  %v8953_v25 = vsel %vm296_vm0, %v8857_v48, %v8929_v10 }
0x159d   :  { %v8957_v55 = vadd.f32 %v8953_v25, %v16022_v5  ;;  %v8981_v5 = vld [vmem:[%s16103_s16 + $0x10] sm:$0xff] }
0x159e   :  { %v8874_v53 = vrot.slane %v8873_v62, 1  ;;  %9004 = vmatpush.msra.mxu0 %v8981_v5 }
0x15a0   :  { %v8875_v9 = vadd.f32 %v8874_v53, %v8873_v62 }
0x15a1   :  { %v8668_v7 = vpop.f32.mrf.mxu2 }
0x15a2   :  { %v8787_v17 = vmul.f32 %v8723_v47, %v8668_v7 }
0x15a4   :  { %v8939_v57 = vadd.f32 %v8787_v17, %v8779_v52 }
0x15a9   :  { %v8671_v46 = vpop.f32.mrf.mxu2 }
0x15aa   :  { %v8795_v63 = vmul.f32 %v8731_v12, %v8671_v46 }
0x15ac   :  { %v8940_v41 = vadd.f32 %v8939_v57, %v8795_v63 }
0x15b1   :  { %v8673_v60 = vpop.f32.mrf.mxu2 }
0x15b2   :  { %v8803_v15 = vmul.f32 %v8739_v11, %v8673_v60 }
0x15b4   :  { %v8941_v21 = vadd.f32 %v8940_v41, %v8803_v15 }
0x15b6   :  { %v8942_v30 = vrot.slane %v8941_v21, 4 }
0x15b8   :  { %v8943_v14 = vadd.f32 %v8942_v30, %v8941_v21 }
0x15ba   :  { %v8944_v38 = vrot.slane %v8943_v14, 2 }
0x15bc   :  { %v8945_v35 = vadd.f32 %v8944_v38, %v8943_v14 }
0x15be   :  { %v8946_v3 = vrot.slane %v8945_v35, 1 }
0x15c0   :  { %v8947_v45 = vadd.f32 %v8946_v3, %v8945_v35 }
0x15c2   :  { %v8955_v54 = vsel %vm296_vm0, %v8875_v9, %v8947_v45  ;;  %vm8987_vm0 = vcmask 261120  }
0x15c3   :  { %v8959_v40 = vadd.f32 %v8955_v54, %v16040_v16  ;;  %v8980_v16 = vld [vmem:[%s16103_s16 + $0x8] sm:$0xff] }
0x15c4   :  { %9005 = vmatpush.msra.mxu0 %v8980_v16 }
0x15c5   :  { %v8961_v26 = vadd.f32 %v8959_v40, %v8957_v55 }
0x15c7   :  { %v8962_v56 = vadd.f32 %v8961_v26, %v16056_v0  ;;  %v8979_v0 = vld [vmem:[%s16103_s16] sm:$0xff]  ;;  %s9020_s16 = sshll.u32 %s16105_s18, 4  ;;  %s9021_s16 = int_to_ptr.hbm [resolvable:$true] %s9020_s16 }
0x15c8   :  { %9006 = vmatpush.msra.mxu0 %v8979_v0 }
0x15c9   :  { %8964 = vrot.lane.b32.xlu2 %v8962_v56, %s11199_s1 }
0x1623   :  { %v8965_v31 = vpop.permute.xlu2 %8964 }
0x1624   :  { %v8967_v61 = vadd.f32 %v8965_v31, %v8962_v56 }
0x1626   :  { %8969 = vrot.lane.b32.xlu0 %v8967_v61, %s11210_s25 }
0x1698   :  { %v8970_v36 = vpop.permute.xlu0 %8969 }
0x1699   :  { %v8972_v44 = vadd.f32 %v8970_v36, %v8967_v61 }
0x169b   :  { %v8977_v7 = vadd.f32 %v11115_v32, %v8972_v44 }
0x169d   :  { %v8978_v27 = vmax.f32 %v8977_v7, 0.0 }
0x169f   :  { %10555 = vmatmul.msk.f32.vlgmr.msra.gmra.mxu0 %vm8987_vm0, %v8978_v27 }
0x171c   :  { %v9008_v18 = vpop.f32.mrf.mxu0 }
0x171d   :  { %v9009_v4 = vadd.f32 %v11116_v58, %v9008_v18 }
0x171f   :  { %9012 = vst.msk [vmem:[#allocation8] sm:$0x3] %vm9011_vm12, %v9009_v4 }
0x1720   :  { %9023 = dma.vmem_to_hbm [thread:$0]  %s9019_s29, 32, %s9021_s16, [#allocation7]  }
0x1721   :  { %11195 = dma.done.wait [#allocation7], 32  }
0x1722   :  { %11196 = vsyncadd [#allocation7], 4294967264 }
0x1723   :  { %9028 = vsyncpa [#allocation6], 1 }
0x1724   :  { %9029 = vsyncpa [#allocation7], 1 }
0x1725   :  { %9030 = vsyncmov [#allocation4] }
0x1728   :  { %s9031_s15 = vpop.sfrf %9030 }
0x1729   :  { %p10556_p0 = scmp.ne.s32.totalorder %s9031_s15, 0 }
0x172b   :  { %9035 = shalt.err (%p10556_p0)  }
0x172c   :  { %9037 = vsyncmov [#allocation4 + $0x1] }
0x172f   :  { %s9038_s17 = vpop.sfrf %9037 }
0x1730   :  { %p10557_p1 = scmp.ne.s32.totalorder %s9038_s17, 0 }
0x1732   :  { %9042 = shalt.err (%p10557_p1)  }

</bundles_post_ra>
